<compile_context>
chip_gen: v5e
topology: v5e:2x2
jax: 0.10.0
libtpu: 0.0.40
codegen_flags: <defaults>
</compile_context>

<pallas_src>
import functools

import numpy as np
import jax
import jax.numpy as jnp
from jax.experimental import pallas as pl
from jax.experimental.pallas import tpu as pltpu

ENC_NF = (8, 32, 32, 32)               # default VoxelMorph encoder features
DEC_NF = (32, 32, 32, 32, 32, 8, 8)    # default decoder features
NDIMS = 2                              # 2-D registration -> 2 flow channels


def _rup(x, m):
    return ((x + m - 1) // m) * m


def _rp(h):
    """Lane-padded length of the zero-haloed, row-major flattened h x h image."""
    return _rup((h + 2) * (h + 2), 128)


# ---------------------------------------------------------------------------
# Constant 0/1 plumbing matrices, applied on the right of a (Cout, Rp) tile.
# Rows = flat positions of the *source* padded layout (only valid conv output
# positions r*wp+c are populated; seam / wrap garbage rows stay all-zero).
# Columns = flat positions of the destination padded layout (halo + lane
# padding columns are all-zero, so scratch never carries stale data).
# ---------------------------------------------------------------------------
def _down_proj(h):      # stride-2 output selection + fresh halo at h/2
    wp, ho, wpo = h + 2, h // 2, h // 2 + 2
    m = np.zeros((_rp(h), _rp(h // 2)), np.float32)
    for r in range(ho):
        for c in range(ho):
            m[(2 * r) * wp + (2 * c), (r + 1) * wpo + (c + 1)] = 1.0
    return m


def _up_proj(h):        # 2x nearest upsample + fresh halo at 2h
    wp, ho, wpo = h + 2, 2 * h, 2 * h + 2
    m = np.zeros((_rp(h), _rp(2 * h)), np.float32)
    for r in range(ho):
        for c in range(ho):
            m[(r // 2) * wp + (c // 2), (r + 1) * wpo + (c + 1)] = 1.0
    return m


def _repad_proj(h):     # same-resolution fresh halo
    wp = h + 2
    m = np.zeros((_rp(h), _rp(h)), np.float32)
    for r in range(h):
        for c in range(h):
            m[r * wp + c, (r + 1) * wp + (c + 1)] = 1.0
    return m


def _extract_proj(h):   # dense h*h extraction (flow head)
    wp = h + 2
    m = np.zeros((_rp(h), h * h), np.float32)
    for r in range(h):
        for c in range(h):
            m[r * wp + c, r * h + c] = 1.0
    return m


# ---------------------------------------------------------------------------
# Static execution plan mirroring the PyTorch Unet/VxmDense wiring.
# ---------------------------------------------------------------------------
@functools.lru_cache(maxsize=None)
def _build_plan(h0):
    nlev = len(ENC_NF)
    assert h0 % (2 ** nlev) == 0 and h0 // (2 ** nlev) >= 1
    assert all(c % 8 == 0 for c in ENC_NF + DEC_NF)
    res = [h0 // (2 ** k) for k in range(nlev + 1)]

    scratch = []                                   # (rows, lanes) f32 buffers

    def add_buf(rows, h):
        scratch.append((rows, _rp(h)))
        return len(scratch) - 1

    # Shared per-resolution buffers: rows [0:dec) decoder upsample output,
    # rows [dec:dec+skip) encoder skip (the res-h0 "skip" is the raw input).
    dec_rows = [_rup(DEC_NF[nlev - 1 - j], 8) for j in range(nlev)]
    skip_rows = [_rup(NDIMS, 8)] + [_rup(ENC_NF[j - 1], 8) for j in range(1, nlev)]
    comb = [add_buf(dec_rows[j] + skip_rows[j], res[j]) for j in range(nlev)]
    deep = add_buf(_rup(ENC_NF[-1], 8), res[nlev])

    proj_mats, proj_idx = [], {}

    def proj(kind, h):
        key = (kind, h)
        if key not in proj_idx:
            fn = {"down": _down_proj, "up": _up_proj,
                  "repad": _repad_proj, "ext": _extract_proj}[kind]
            dt = jnp.float32 if kind == "ext" else jnp.bfloat16
            proj_idx[key] = len(proj_mats)
            proj_mats.append((fn(h), dt))
        return proj_idx[key]

    convs, w_off, b_off = [], 0, 0

    def add_conv(h, src_buf, src_row, cin_real, cin, cout, act, pidx,
                 dst_buf, dst_row, is_flow=False):
        nonlocal w_off, b_off
        crow = _rup(cout, 8)
        convs.append(dict(h=h, src_buf=src_buf, src_row=src_row,
                          cin_real=cin_real, cin=cin, cout=cout, crow=crow,
                          act=act, proj=pidx, dst_buf=dst_buf, dst_row=dst_row,
                          w_off=w_off, b_off=b_off, is_flow=is_flow))
        w_off += 9 * crow
        b_off += crow

    # encoder: ConvBlock(stride=2) x len(ENC_NF)
    prev_real = NDIMS
    for k in range(nlev):
        h = res[k]
        dst_buf, dst_row = ((comb[k + 1], dec_rows[k + 1]) if k < nlev - 1
                            else (deep, 0))
        add_conv(h, comb[k], dec_rows[k], prev_real, skip_rows[k], ENC_NF[k],
                 True, proj("down", h), dst_buf, dst_row)
        prev_real = ENC_NF[k]

    # decoder: ConvBlock(stride=1) -> 2x nearest upsample -> concat(skip)
    src_buf, src_row, src_cin = deep, 0, _rup(ENC_NF[-1], 8)
    for d in range(nlev):
        h = res[nlev - d]
        j = nlev - 1 - d
        add_conv(h, src_buf, src_row, prev_real, src_cin, DEC_NF[d],
                 True, proj("up", h), comb[j], 0)
        skip_real = NDIMS if j == 0 else ENC_NF[j - 1]
        prev_real = DEC_NF[d] + skip_real
        src_buf, src_row, src_cin = comb[j], 0, dec_rows[j] + skip_rows[j]

    # extra stride-1 ConvBlocks at full resolution
    h = res[0]
    for nf in DEC_NF[nlev:]:
        dst = add_buf(_rup(nf, 8), h)
        add_conv(h, src_buf, src_row, prev_real, src_cin, nf, True,
                 proj("repad", h), dst, 0)
        prev_real = nf
        src_buf, src_row, src_cin = dst, 0, _rup(nf, 8)

    # flow head: 3x3 conv, no activation, dense (NDIMS, h0*h0) output
    add_conv(h, src_buf, src_row, prev_real, src_cin, NDIMS, False,
             proj("ext", h), -1, 0, is_flow=True)

    return dict(convs=convs, scratch=scratch, proj_mats=proj_mats,
                rp0=_rp(h0), in_buf=comb[0], in_row=dec_rows[0],
                in_rows=skip_rows[0], w_rows=w_off,
                w_cols=max(cv["cin"] for cv in convs), b_rows=b_off)


# ---------------------------------------------------------------------------
# Parameters (synthetic, deterministic): one bf16 weight slab, one f32 bias
# slab (kernel operands) + per-layer f32 copies (pure-XLA reference).
# ---------------------------------------------------------------------------
def init_vxm_params(key, h0=16):
    plan = _build_plan(h0)
    convs = plan["convs"]
    keys = jax.random.split(key, 2 * len(convs))
    layers = []
    wslab = np.zeros((plan["w_rows"], plan["w_cols"]), np.float32)
    bslab = np.zeros((plan["b_rows"], 1), np.float32)
    for i, cv in enumerate(convs):
        cin, cout = cv["cin_real"], cv["cout"]
        if cv["is_flow"]:           # VxmDense: flow weights ~ N(0, 1e-5), zero bias
            w = jax.random.normal(keys[2 * i], (9, cin, cout), jnp.float32) * 1e-5
            b = jnp.zeros((cout,), jnp.float32)
        else:                       # PyTorch-like U(-k, k)
            bound = 1.0 / np.sqrt(9.0 * cin)
            w = jax.random.uniform(keys[2 * i], (9, cin, cout), jnp.float32,
                                   -bound, bound)
            b = jax.random.uniform(keys[2 * i + 1], (cout,), jnp.float32,
                                   -bound, bound)
        # canonical weights are bf16-representable so kernel & reference match
        w = w.astype(jnp.bfloat16).astype(jnp.float32)
        layers.append((w, b))
        w_np, b_np = np.asarray(w), np.asarray(b)
        for t in range(9):          # per-tap (Cout, Cin) slabs, 8-row aligned
            r = cv["w_off"] + t * cv["crow"]
            wslab[r:r + cout, :cin] = w_np[t].T
        bslab[cv["b_off"]:cv["b_off"] + cout, 0] = b_np
    return {"wslab": jnp.asarray(wslab, jnp.bfloat16),
            "bslab": jnp.asarray(bslab, jnp.float32),
            "layers": tuple(layers)}


# ---------------------------------------------------------------------------
# The fused kernel: whole Unet + flow head per batch element.
# ---------------------------------------------------------------------------
def _make_vxm_kernel(plan):
    convs = plan["convs"]
    n_proj = len(plan["proj_mats"])
    in_buf, in_row, in_rows = plan["in_buf"], plan["in_row"], plan["in_rows"]

    def kernel(*refs):
        x_ref, w_ref, b_ref = refs[0], refs[1], refs[2]
        p_refs = refs[3:3 + n_proj]
        out_ref = refs[3 + n_proj]
        scratch = refs[4 + n_proj:]

        # (mov, fix, zero-padding channels), haloed + flattened by the wrapper,
        # becomes the full-resolution skip slab.
        scratch[in_buf][pl.ds(in_row, in_rows), :] = x_ref[...]

        for cv in convs:
            h = cv["h"]
            wp, rp = h + 2, _rp(h)
            cin, cout = cv["cin"], cv["cout"]

            # One aligned full-width load per layer; taps are static lane rolls.
            z_full = scratch[cv["src_buf"]][pl.ds(cv["src_row"], cin), :]
            taps = (4,) if h == 1 else tuple(range(9))   # h==1: only centre tap
            acc = None
            for t in taps:
                off = (t // 3) * wp + (t % 3)
                zt = z_full if off == 0 else pltpu.roll(z_full, rp - off, axis=1)
                wt = w_ref[pl.ds(cv["w_off"] + t * cv["crow"], cout),
                           pl.ds(0, cin)]
                d = jnp.dot(wt, zt.astype(jnp.bfloat16),
                            preferred_element_type=jnp.float32)
                acc = d if acc is None else acc + d

            y = acc + b_ref[pl.ds(cv["b_off"], cout), :]        # f32 epilogue
            if cv["act"]:
                y = jnp.where(y >= 0.0, y, 0.2 * y)             # LeakyReLU(0.2)

            p = p_refs[cv["proj"]]
            if cv["dst_buf"] < 0:
                # flow head: f32 extract, lane-dense (NDIMS, H*W) output
                out_ref[...] = jnp.dot(y, p[...],
                                       preferred_element_type=jnp.float32)
            else:
                z = jnp.dot(y.astype(jnp.bfloat16), p[...],
                            preferred_element_type=jnp.float32)
                scratch[cv["dst_buf"]][pl.ds(cv["dst_row"], cout), :] = z

    return kernel


# ---------------------------------------------------------------------------
# Public forward: PyTorch-style NCHW in, pos_flow NCHW out.
# ---------------------------------------------------------------------------
@jax.jit
def vxm_dense_forward(params, mov, fix):
    """mov, fix: (B, 1, H, W) float32. Returns pos_flow: (B, 2, H, W) float32."""
    B, _, H, W = mov.shape
    assert H == W
    plan = _build_plan(H)
    rp0, in_rows = plan["rp0"], plan["in_rows"]

    # One-time input glue (XLA): NCHW -> zero-haloed, row-major flattened,
    # channels-on-sublanes / spatial-on-lanes, channel- and lane-padded.
    x = jnp.concatenate([mov, fix], axis=1)                       # (B, 2, H, W)
    x = jnp.pad(x, ((0, 0), (0, in_rows - NDIMS), (1, 1), (1, 1)))
    x = x.reshape(B, in_rows, (H + 2) * (W + 2))
    x = jnp.pad(x, ((0, 0), (0, 0), (0, rp0 - (H + 2) * (W + 2))))

    projs = [jnp.asarray(m, dt) for m, dt in plan["proj_mats"]]
    wslab, bslab = params["wslab"], params["bslab"]

    in_specs = [pl.BlockSpec((None, in_rows, rp0), lambda b: (b, 0, 0)),
                pl.BlockSpec(wslab.shape, lambda b: (0, 0)),
                pl.BlockSpec(bslab.shape, lambda b: (0, 0))]
    in_specs += [pl.BlockSpec(p.shape, lambda b: (0, 0)) for p in projs]

    flow = pl.pallas_call(
        _make_vxm_kernel(plan),
        out_shape=jax.ShapeDtypeStruct((B, NDIMS, H * W), jnp.float32),
        grid=(B,),
        in_specs=in_specs,
        out_specs=pl.BlockSpec((None, NDIMS, H * W), lambda b: (b, 0, 0)),
        scratch_shapes=[pltpu.VMEM(s, jnp.float32) for s in plan["scratch"]],
        compiler_params=pltpu.CompilerParams(
            dimension_semantics=("parallel",),
            vmem_limit_bytes=32 * 1024 * 1024),
    )(x, wslab, bslab, *projs)

    return flow.reshape(B, NDIMS, H, W)


# ---------------------------------------------------------------------------
# Pure-XLA reference (same bf16-representable weights, f32 activations).
# ---------------------------------------------------------------------------
def _reference_forward(params, mov, fix):
    layers = params["layers"]
    ws = [w.reshape(3, 3, w.shape[1], w.shape[2]) for w, _ in layers]
    bs = [b for _, b in layers]

    def conv2d(x, w, b, stride):
        y = jax.lax.conv_general_dilated(
            x, w, (stride, stride), ((1, 1), (1, 1)),
            dimension_numbers=("NHWC", "HWIO", "NHWC"),
            precision=jax.lax.Precision.HIGHEST)
        return y + b

    def block(x, i, stride):
        y = conv2d(x, ws[i], bs[i], stride)
        return jnp.where(y >= 0, y, 0.2 * y)

    nlev = len(ENC_NF)
    x = jnp.transpose(jnp.concatenate([mov, fix], axis=1), (0, 2, 3, 1))
    x_enc = [x]
    for i in range(nlev):
        x_enc.append(block(x_enc[-1], i, 2))
    x = x_enc.pop()
    for i in range(nlev, 2 * nlev):
        x = block(x, i, 1)
        x = jnp.repeat(jnp.repeat(x, 2, axis=1), 2, axis=2)
        x = jnp.concatenate([x, x_enc.pop()], axis=-1)
    for i in range(2 * nlev, len(ws) - 1):
        x = block(x, i, 1)
    flow = conv2d(x, ws[-1], bs[-1], 1)
    return jnp.transpose(flow, (0, 3, 1, 2))


if __name__ == "__main__":
    key = jax.random.PRNGKey(0)
    k_mov, k_fix, k_par = jax.random.split(key, 3)
    B, H, W = 2, 16, 16
    mov = jax.random.normal(k_mov, (B, 1, H, W), jnp.float32)
    fix = jax.random.normal(k_fix, (B, 1, H, W), jnp.float32)

    params = init_vxm_params(k_par, H)
    pos_flow = jax.block_until_ready(vxm_dense_forward(params, mov, fix))

    assert pos_flow.shape == (B, NDIMS, H, W), pos_flow.shape
    assert pos_flow.dtype == jnp.float32
    assert bool(jnp.all(jnp.isfinite(pos_flow)))

    # Self-check vs a pure-XLA reference built from the same bf16 weights.
    # Tightened tolerance (3% of max |ref|): residual difference comes only
    # from the in-kernel bf16 activation casts at each MXU input.
    ref = jax.block_until_ready(_reference_forward(params, mov, fix))
    err = float(jnp.max(jnp.abs(pos_flow - ref)))
    tol = 0.03 * float(jnp.max(jnp.abs(ref))) + 1e-7
    assert err <= tol, ("mismatch vs reference", err, tol)

    print("KERNEL_OK")
</pallas_src>

<mosaic_0001>
module attributes {stable_mosaic.version = 11 : i64} {
  func.func @kernel(%arg0: i32, %arg1: memref<1x8x384xf32, #tpu.memory_space<vmem>>, %arg2: memref<2592x64xbf16, #tpu.memory_space<vmem>>, %arg3: memref<288x1xf32, #tpu.memory_space<vmem>>, %arg4: memref<384x128xbf16, #tpu.memory_space<vmem>>, %arg5: memref<128x128xbf16, #tpu.memory_space<vmem>>, %arg6: memref<128x128xbf16, #tpu.memory_space<vmem>>, %arg7: memref<128x128xbf16, #tpu.memory_space<vmem>>, %arg8: memref<128x128xbf16, #tpu.memory_space<vmem>>, %arg9: memref<128x128xbf16, #tpu.memory_space<vmem>>, %arg10: memref<128x128xbf16, #tpu.memory_space<vmem>>, %arg11: memref<128x384xbf16, #tpu.memory_space<vmem>>, %arg12: memref<384x384xbf16, #tpu.memory_space<vmem>>, %arg13: memref<384x256xf32, #tpu.memory_space<vmem>>, %arg14: memref<1x2x256xf32, #tpu.memory_space<vmem>>, %arg15: memref<40x384xf32, #tpu.memory_space<vmem>>, %arg16: memref<40x128xf32, #tpu.memory_space<vmem>>, %arg17: memref<64x128xf32, #tpu.memory_space<vmem>>, %arg18: memref<64x128xf32, #tpu.memory_space<vmem>>, %arg19: memref<32x128xf32, #tpu.memory_space<vmem>>, %arg20: memref<32x384xf32, #tpu.memory_space<vmem>>, %arg21: memref<8x384xf32, #tpu.memory_space<vmem>>, %arg22: memref<8x384xf32, #tpu.memory_space<vmem>>) attributes {dimension_semantics = [#tpu.dimension_semantics<parallel>], iteration_bounds = array<i64: 2>, scalar_prefetch = 0 : i64, scratch_operands = 8 : i64, tpu.core_type = #tpu.core_type<tc>, window_params = [{transform_indices = @transform_0, window_bounds = array<i64: 1, 8, 384>}, {pipeline_mode = #tpu.pipeline_mode<synchronous>, transform_indices = @transform_1, window_bounds = array<i64: 2592, 64>}, {pipeline_mode = #tpu.pipeline_mode<synchronous>, transform_indices = @transform_2, window_bounds = array<i64: 288, 1>}, {pipeline_mode = #tpu.pipeline_mode<synchronous>, transform_indices = @transform_3, window_bounds = array<i64: 384, 128>}, {pipeline_mode = #tpu.pipeline_mode<synchronous>, transform_indices = @transform_4, window_bounds = array<i64: 128, 128>}, {pipeline_mode = #tpu.pipeline_mode<synchronous>, transform_indices = @transform_5, window_bounds = array<i64: 128, 128>}, {pipeline_mode = #tpu.pipeline_mode<synchronous>, transform_indices = @transform_6, window_bounds = array<i64: 128, 128>}, {pipeline_mode = #tpu.pipeline_mode<synchronous>, transform_indices = @transform_7, window_bounds = array<i64: 128, 128>}, {pipeline_mode = #tpu.pipeline_mode<synchronous>, transform_indices = @transform_8, window_bounds = array<i64: 128, 128>}, {pipeline_mode = #tpu.pipeline_mode<synchronous>, transform_indices = @transform_9, window_bounds = array<i64: 128, 128>}, {pipeline_mode = #tpu.pipeline_mode<synchronous>, transform_indices = @transform_10, window_bounds = array<i64: 128, 384>}, {pipeline_mode = #tpu.pipeline_mode<synchronous>, transform_indices = @transform_11, window_bounds = array<i64: 384, 384>}, {pipeline_mode = #tpu.pipeline_mode<synchronous>, transform_indices = @transform_12, window_bounds = array<i64: 384, 256>}, {transform_indices = @transform_13, window_bounds = array<i64: 1, 2, 256>}]} {
    %c0 = arith.constant 0 : index
    %c0_0 = arith.constant 0 : index
    %c0_1 = arith.constant 0 : index
    %0 = vector.load %arg1[%c0, %c0_0, %c0_1] : memref<1x8x384xf32, #tpu.memory_space<vmem>>, vector<1x8x384xf32>
    %1 = vector.shape_cast %0 : vector<1x8x384xf32> to vector<8x384xf32>
    %c32 = arith.constant 32 : index
    %c0_2 = arith.constant 0 : index
    %2 = vector.load %arg15[%c32, %c0_2] : memref<40x384xf32, #tpu.memory_space<vmem>>, vector<8x384xf32>
    tpu.vector_store %arg15[%c32, %c0_2], %1 {strides = array<i32>} : memref<40x384xf32, #tpu.memory_space<vmem>>, vector<8x384xf32>,
    %c32_3 = arith.constant 32 : index
    %c0_4 = arith.constant 0 : index
    %3 = vector.load %arg15[%c32_3, %c0_4] : memref<40x384xf32, #tpu.memory_space<vmem>>, vector<8x384xf32>
    %c0_5 = arith.constant 0 : index
    %c0_6 = arith.constant 0 : index
    %4 = vector.load %arg2[%c0_5, %c0_6] : memref<2592x64xbf16, #tpu.memory_space<vmem>>, vector<8x8xbf16>
    %5 = arith.truncf %3 : vector<8x384xf32> to vector<8x384xbf16>
    %cst = arith.constant dense<0.000000e+00> : vector<8x384xf32>
    %6 = tpu.matmul %4, %5, %cst {dimension_numbers = #tpu.dot_dimension_numbers<[1], [0], [0], [1], [0, 0, 1, 1], [], []>} : vector<8x8xbf16>, vector<8x384xbf16>, vector<8x384xf32> -> vector<8x384xf32>
    %c383_i32 = arith.constant 383 : i32
    %7 = tpu.dynamic_rotate %3 by %c383_i32 dim 1 : vector<8x384xf32>, i32 -> vector<8x384xf32>
    %c8 = arith.constant 8 : index
    %c0_7 = arith.constant 0 : index
    %8 = vector.load %arg2[%c8, %c0_7] : memref<2592x64xbf16, #tpu.memory_space<vmem>>, vector<8x8xbf16>
    %9 = arith.truncf %7 : vector<8x384xf32> to vector<8x384xbf16>
    %cst_8 = arith.constant dense<0.000000e+00> : vector<8x384xf32>
    %10 = tpu.matmul %8, %9, %cst_8 {dimension_numbers = #tpu.dot_dimension_numbers<[1], [0], [0], [1], [0, 0, 1, 1], [], []>} : vector<8x8xbf16>, vector<8x384xbf16>, vector<8x384xf32> -> vector<8x384xf32>
    %11 = arith.addf %6, %10 : vector<8x384xf32>
    %c382_i32 = arith.constant 382 : i32
    %12 = tpu.dynamic_rotate %3 by %c382_i32 dim 1 : vector<8x384xf32>, i32 -> vector<8x384xf32>
    %c16 = arith.constant 16 : index
    %c0_9 = arith.constant 0 : index
    %13 = vector.load %arg2[%c16, %c0_9] : memref<2592x64xbf16, #tpu.memory_space<vmem>>, vector<8x8xbf16>
    %14 = arith.truncf %12 : vector<8x384xf32> to vector<8x384xbf16>
    %cst_10 = arith.constant dense<0.000000e+00> : vector<8x384xf32>
    %15 = tpu.matmul %13, %14, %cst_10 {dimension_numbers = #tpu.dot_dimension_numbers<[1], [0], [0], [1], [0, 0, 1, 1], [], []>} : vector<8x8xbf16>, vector<8x384xbf16>, vector<8x384xf32> -> vector<8x384xf32>
    %16 = arith.addf %11, %15 : vector<8x384xf32>
    %c366_i32 = arith.constant 366 : i32
    %17 = tpu.dynamic_rotate %3 by %c366_i32 dim 1 : vector<8x384xf32>, i32 -> vector<8x384xf32>
    %c24 = arith.constant 24 : index
    %c0_11 = arith.constant 0 : index
    %18 = vector.load %arg2[%c24, %c0_11] : memref<2592x64xbf16, #tpu.memory_space<vmem>>, vector<8x8xbf16>
    %19 = arith.truncf %17 : vector<8x384xf32> to vector<8x384xbf16>
    %cst_12 = arith.constant dense<0.000000e+00> : vector<8x384xf32>
    %20 = tpu.matmul %18, %19, %cst_12 {dimension_numbers = #tpu.dot_dimension_numbers<[1], [0], [0], [1], [0, 0, 1, 1], [], []>} : vector<8x8xbf16>, vector<8x384xbf16>, vector<8x384xf32> -> vector<8x384xf32>
    %21 = arith.addf %16, %20 : vector<8x384xf32>
    %c365_i32 = arith.constant 365 : i32
    %22 = tpu.dynamic_rotate %3 by %c365_i32 dim 1 : vector<8x384xf32>, i32 -> vector<8x384xf32>
    %c32_13 = arith.constant 32 : index
    %c0_14 = arith.constant 0 : index
    %23 = vector.load %arg2[%c32_13, %c0_14] : memref<2592x64xbf16, #tpu.memory_space<vmem>>, vector<8x8xbf16>
    %24 = arith.truncf %22 : vector<8x384xf32> to vector<8x384xbf16>
    %cst_15 = arith.constant dense<0.000000e+00> : vector<8x384xf32>
    %25 = tpu.matmul %23, %24, %cst_15 {dimension_numbers = #tpu.dot_dimension_numbers<[1], [0], [0], [1], [0, 0, 1, 1], [], []>} : vector<8x8xbf16>, vector<8x384xbf16>, vector<8x384xf32> -> vector<8x384xf32>
    %26 = arith.addf %21, %25 : vector<8x384xf32>
    %c364_i32 = arith.constant 364 : i32
    %27 = tpu.dynamic_rotate %3 by %c364_i32 dim 1 : vector<8x384xf32>, i32 -> vector<8x384xf32>
    %c40 = arith.constant 40 : index
    %c0_16 = arith.constant 0 : index
    %28 = vector.load %arg2[%c40, %c0_16] : memref<2592x64xbf16, #tpu.memory_space<vmem>>, vector<8x8xbf16>
    %29 = arith.truncf %27 : vector<8x384xf32> to vector<8x384xbf16>
    %cst_17 = arith.constant dense<0.000000e+00> : vector<8x384xf32>
    %30 = tpu.matmul %28, %29, %cst_17 {dimension_numbers = #tpu.dot_dimension_numbers<[1], [0], [0], [1], [0, 0, 1, 1], [], []>} : vector<8x8xbf16>, vector<8x384xbf16>, vector<8x384xf32> -> vector<8x384xf32>
    %31 = arith.addf %26, %30 : vector<8x384xf32>
    %c348_i32 = arith.constant 348 : i32
    %32 = tpu.dynamic_rotate %3 by %c348_i32 dim 1 : vector<8x384xf32>, i32 -> vector<8x384xf32>
    %c48 = arith.constant 48 : index
    %c0_18 = arith.constant 0 : index
    %33 = vector.load %arg2[%c48, %c0_18] : memref<2592x64xbf16, #tpu.memory_space<vmem>>, vector<8x8xbf16>
    %34 = arith.truncf %32 : vector<8x384xf32> to vector<8x384xbf16>
    %cst_19 = arith.constant dense<0.000000e+00> : vector<8x384xf32>
    %35 = tpu.matmul %33, %34, %cst_19 {dimension_numbers = #tpu.dot_dimension_numbers<[1], [0], [0], [1], [0, 0, 1, 1], [], []>} : vector<8x8xbf16>, vector<8x384xbf16>, vector<8x384xf32> -> vector<8x384xf32>
    %36 = arith.addf %31, %35 : vector<8x384xf32>
    %c347_i32 = arith.constant 347 : i32
    %37 = tpu.dynamic_rotate %3 by %c347_i32 dim 1 : vector<8x384xf32>, i32 -> vector<8x384xf32>
    %c56 = arith.constant 56 : index
    %c0_20 = arith.constant 0 : index
    %38 = vector.load %arg2[%c56, %c0_20] : memref<2592x64xbf16, #tpu.memory_space<vmem>>, vector<8x8xbf16>
    %39 = arith.truncf %37 : vector<8x384xf32> to vector<8x384xbf16>
    %cst_21 = arith.constant dense<0.000000e+00> : vector<8x384xf32>
    %40 = tpu.matmul %38, %39, %cst_21 {dimension_numbers = #tpu.dot_dimension_numbers<[1], [0], [0], [1], [0, 0, 1, 1], [], []>} : vector<8x8xbf16>, vector<8x384xbf16>, vector<8x384xf32> -> vector<8x384xf32>
    %41 = arith.addf %36, %40 : vector<8x384xf32>
    %c346_i32 = arith.constant 346 : i32
    %42 = tpu.dynamic_rotate %3 by %c346_i32 dim 1 : vector<8x384xf32>, i32 -> vector<8x384xf32>
    %c64 = arith.constant 64 : index
    %c0_22 = arith.constant 0 : index
    %43 = vector.load %arg2[%c64, %c0_22] : memref<2592x64xbf16, #tpu.memory_space<vmem>>, vector<8x8xbf16>
    %44 = arith.truncf %42 : vector<8x384xf32> to vector<8x384xbf16>
    %cst_23 = arith.constant dense<0.000000e+00> : vector<8x384xf32>
    %45 = tpu.matmul %43, %44, %cst_23 {dimension_numbers = #tpu.dot_dimension_numbers<[1], [0], [0], [1], [0, 0, 1, 1], [], []>} : vector<8x8xbf16>, vector<8x384xbf16>, vector<8x384xf32> -> vector<8x384xf32>
    %46 = arith.addf %41, %45 : vector<8x384xf32>
    %c0_24 = arith.constant 0 : index
    %c0_25 = arith.constant 0 : index
    %47 = vector.load %arg3[%c0_24, %c0_25] : memref<288x1xf32, #tpu.memory_space<vmem>>, vector<8x1xf32>
    %48 = vector.broadcast %47 : vector<8x1xf32> to vector<8x384xf32>
    %49 = arith.addf %46, %48 : vector<8x384xf32>
    %cst_26 = arith.constant 0.000000e+00 : f32
    %50 = vector.broadcast %cst_26 : f32 to vector<8x384xf32>
    %51 = arith.cmpf oge, %49, %50 : vector<8x384xf32>
    %cst_27 = arith.constant 2.000000e-01 : f32
    %52 = vector.broadcast %cst_27 : f32 to vector<8x384xf32>
    %53 = arith.mulf %52, %49 : vector<8x384xf32>
    %54 = arith.select %51, %49, %53 : vector<8x384xi1>, vector<8x384xf32>
    %55 = arith.truncf %54 : vector<8x384xf32> to vector<8x384xbf16>
    %c0_28 = arith.constant 0 : index
    %c0_29 = arith.constant 0 : index
    %56 = vector.load %arg4[%c0_28, %c0_29] : memref<384x128xbf16, #tpu.memory_space<vmem>>, vector<384x128xbf16>
    %cst_30 = arith.constant dense<0.000000e+00> : vector<8x128xf32>
    %57 = tpu.matmul %55, %56, %cst_30 {dimension_numbers = #tpu.dot_dimension_numbers<[1], [0], [0], [1], [0, 0, 1, 1], [], []>} : vector<8x384xbf16>, vector<384x128xbf16>, vector<8x128xf32> -> vector<8x128xf32>
    %c32_31 = arith.constant 32 : index
    %c0_32 = arith.constant 0 : index
    %58 = vector.load %arg16[%c32_31, %c0_32] : memref<40x128xf32, #tpu.memory_space<vmem>>, vector<8x128xf32>
    tpu.vector_store %arg16[%c32_31, %c0_32], %57 {strides = array<i32>} : memref<40x128xf32, #tpu.memory_space<vmem>>, vector<8x128xf32>,
    %c32_33 = arith.constant 32 : index
    %c0_34 = arith.constant 0 : index
    %59 = vector.load %arg16[%c32_33, %c0_34] : memref<40x128xf32, #tpu.memory_space<vmem>>, vector<8x128xf32>
    %c72 = arith.constant 72 : index
    %c0_35 = arith.constant 0 : index
    %60 = vector.load %arg2[%c72, %c0_35] : memref<2592x64xbf16, #tpu.memory_space<vmem>>, vector<32x8xbf16>
    %61 = arith.truncf %59 : vector<8x128xf32> to vector<8x128xbf16>
    %cst_36 = arith.constant dense<0.000000e+00> : vector<32x128xf32>
    %62 = tpu.matmul %60, %61, %cst_36 {dimension_numbers = #tpu.dot_dimension_numbers<[1], [0], [0], [1], [0, 0, 1, 1], [], []>} : vector<32x8xbf16>, vector<8x128xbf16>, vector<32x128xf32> -> vector<32x128xf32>
    %c127_i32 = arith.constant 127 : i32
    %63 = tpu.dynamic_rotate %59 by %c127_i32 dim 1 : vector<8x128xf32>, i32 -> vector<8x128xf32>
    %c104 = arith.constant 104 : index
    %c0_37 = arith.constant 0 : index
    %64 = vector.load %arg2[%c104, %c0_37] : memref<2592x64xbf16, #tpu.memory_space<vmem>>, vector<32x8xbf16>
    %65 = arith.truncf %63 : vector<8x128xf32> to vector<8x128xbf16>
    %cst_38 = arith.constant dense<0.000000e+00> : vector<32x128xf32>
    %66 = tpu.matmul %64, %65, %cst_38 {dimension_numbers = #tpu.dot_dimension_numbers<[1], [0], [0], [1], [0, 0, 1, 1], [], []>} : vector<32x8xbf16>, vector<8x128xbf16>, vector<32x128xf32> -> vector<32x128xf32>
    %67 = arith.addf %62, %66 : vector<32x128xf32>
    %c126_i32 = arith.constant 126 : i32
    %68 = tpu.dynamic_rotate %59 by %c126_i32 dim 1 : vector<8x128xf32>, i32 -> vector<8x128xf32>
    %c136 = arith.constant 136 : index
    %c0_39 = arith.constant 0 : index
    %69 = vector.load %arg2[%c136, %c0_39] : memref<2592x64xbf16, #tpu.memory_space<vmem>>, vector<32x8xbf16>
    %70 = arith.truncf %68 : vector<8x128xf32> to vector<8x128xbf16>
    %cst_40 = arith.constant dense<0.000000e+00> : vector<32x128xf32>
    %71 = tpu.matmul %69, %70, %cst_40 {dimension_numbers = #tpu.dot_dimension_numbers<[1], [0], [0], [1], [0, 0, 1, 1], [], []>} : vector<32x8xbf16>, vector<8x128xbf16>, vector<32x128xf32> -> vector<32x128xf32>
    %72 = arith.addf %67, %71 : vector<32x128xf32>
    %c118_i32 = arith.constant 118 : i32
    %73 = tpu.dynamic_rotate %59 by %c118_i32 dim 1 : vector<8x128xf32>, i32 -> vector<8x128xf32>
    %c168 = arith.constant 168 : index
    %c0_41 = arith.constant 0 : index
    %74 = vector.load %arg2[%c168, %c0_41] : memref<2592x64xbf16, #tpu.memory_space<vmem>>, vector<32x8xbf16>
    %75 = arith.truncf %73 : vector<8x128xf32> to vector<8x128xbf16>
    %cst_42 = arith.constant dense<0.000000e+00> : vector<32x128xf32>
    %76 = tpu.matmul %74, %75, %cst_42 {dimension_numbers = #tpu.dot_dimension_numbers<[1], [0], [0], [1], [0, 0, 1, 1], [], []>} : vector<32x8xbf16>, vector<8x128xbf16>, vector<32x128xf32> -> vector<32x128xf32>
    %77 = arith.addf %72, %76 : vector<32x128xf32>
    %c117_i32 = arith.constant 117 : i32
    %78 = tpu.dynamic_rotate %59 by %c117_i32 dim 1 : vector<8x128xf32>, i32 -> vector<8x128xf32>
    %c200 = arith.constant 200 : index
    %c0_43 = arith.constant 0 : index
    %79 = vector.load %arg2[%c200, %c0_43] : memref<2592x64xbf16, #tpu.memory_space<vmem>>, vector<32x8xbf16>
    %80 = arith.truncf %78 : vector<8x128xf32> to vector<8x128xbf16>
    %cst_44 = arith.constant dense<0.000000e+00> : vector<32x128xf32>
    %81 = tpu.matmul %79, %80, %cst_44 {dimension_numbers = #tpu.dot_dimension_numbers<[1], [0], [0], [1], [0, 0, 1, 1], [], []>} : vector<32x8xbf16>, vector<8x128xbf16>, vector<32x128xf32> -> vector<32x128xf32>
    %82 = arith.addf %77, %81 : vector<32x128xf32>
    %c116_i32 = arith.constant 116 : i32
    %83 = tpu.dynamic_rotate %59 by %c116_i32 dim 1 : vector<8x128xf32>, i32 -> vector<8x128xf32>
    %c232 = arith.constant 232 : index
    %c0_45 = arith.constant 0 : index
    %84 = vector.load %arg2[%c232, %c0_45] : memref<2592x64xbf16, #tpu.memory_space<vmem>>, vector<32x8xbf16>
    %85 = arith.truncf %83 : vector<8x128xf32> to vector<8x128xbf16>
    %cst_46 = arith.constant dense<0.000000e+00> : vector<32x128xf32>
    %86 = tpu.matmul %84, %85, %cst_46 {dimension_numbers = #tpu.dot_dimension_numbers<[1], [0], [0], [1], [0, 0, 1, 1], [], []>} : vector<32x8xbf16>, vector<8x128xbf16>, vector<32x128xf32> -> vector<32x128xf32>
    %87 = arith.addf %82, %86 : vector<32x128xf32>
    %c108_i32 = arith.constant 108 : i32
    %88 = tpu.dynamic_rotate %59 by %c108_i32 dim 1 : vector<8x128xf32>, i32 -> vector<8x128xf32>
    %c264 = arith.constant 264 : index
    %c0_47 = arith.constant 0 : index
    %89 = vector.load %arg2[%c264, %c0_47] : memref<2592x64xbf16, #tpu.memory_space<vmem>>, vector<32x8xbf16>
    %90 = arith.truncf %88 : vector<8x128xf32> to vector<8x128xbf16>
    %cst_48 = arith.constant dense<0.000000e+00> : vector<32x128xf32>
    %91 = tpu.matmul %89, %90, %cst_48 {dimension_numbers = #tpu.dot_dimension_numbers<[1], [0], [0], [1], [0, 0, 1, 1], [], []>} : vector<32x8xbf16>, vector<8x128xbf16>, vector<32x128xf32> -> vector<32x128xf32>
    %92 = arith.addf %87, %91 : vector<32x128xf32>
    %c107_i32 = arith.constant 107 : i32
    %93 = tpu.dynamic_rotate %59 by %c107_i32 dim 1 : vector<8x128xf32>, i32 -> vector<8x128xf32>
    %c296 = arith.constant 296 : index
    %c0_49 = arith.constant 0 : index
    %94 = vector.load %arg2[%c296, %c0_49] : memref<2592x64xbf16, #tpu.memory_space<vmem>>, vector<32x8xbf16>
    %95 = arith.truncf %93 : vector<8x128xf32> to vector<8x128xbf16>
    %cst_50 = arith.constant dense<0.000000e+00> : vector<32x128xf32>
    %96 = tpu.matmul %94, %95, %cst_50 {dimension_numbers = #tpu.dot_dimension_numbers<[1], [0], [0], [1], [0, 0, 1, 1], [], []>} : vector<32x8xbf16>, vector<8x128xbf16>, vector<32x128xf32> -> vector<32x128xf32>
    %97 = arith.addf %92, %96 : vector<32x128xf32>
    %c106_i32 = arith.constant 106 : i32
    %98 = tpu.dynamic_rotate %59 by %c106_i32 dim 1 : vector<8x128xf32>, i32 -> vector<8x128xf32>
    %c328 = arith.constant 328 : index
    %c0_51 = arith.constant 0 : index
    %99 = vector.load %arg2[%c328, %c0_51] : memref<2592x64xbf16, #tpu.memory_space<vmem>>, vector<32x8xbf16>
    %100 = arith.truncf %98 : vector<8x128xf32> to vector<8x128xbf16>
    %cst_52 = arith.constant dense<0.000000e+00> : vector<32x128xf32>
    %101 = tpu.matmul %99, %100, %cst_52 {dimension_numbers = #tpu.dot_dimension_numbers<[1], [0], [0], [1], [0, 0, 1, 1], [], []>} : vector<32x8xbf16>, vector<8x128xbf16>, vector<32x128xf32> -> vector<32x128xf32>
    %102 = arith.addf %97, %101 : vector<32x128xf32>
    %c8_53 = arith.constant 8 : index
    %c0_54 = arith.constant 0 : index
    %103 = vector.load %arg3[%c8_53, %c0_54] : memref<288x1xf32, #tpu.memory_space<vmem>>, vector<32x1xf32>
    %104 = vector.broadcast %103 : vector<32x1xf32> to vector<32x128xf32>
    %105 = arith.addf %102, %104 : vector<32x128xf32>
    %cst_55 = arith.constant 0.000000e+00 : f32
    %106 = vector.broadcast %cst_55 : f32 to vector<32x128xf32>
    %107 = arith.cmpf oge, %105, %106 : vector<32x128xf32>
    %cst_56 = arith.constant 2.000000e-01 : f32
    %108 = vector.broadcast %cst_56 : f32 to vector<32x128xf32>
    %109 = arith.mulf %108, %105 : vector<32x128xf32>
    %110 = arith.select %107, %105, %109 : vector<32x128xi1>, vector<32x128xf32>
    %111 = arith.truncf %110 : vector<32x128xf32> to vector<32x128xbf16>
    %c0_57 = arith.constant 0 : index
    %c0_58 = arith.constant 0 : index
    %112 = vector.load %arg5[%c0_57, %c0_58] : memref<128x128xbf16, #tpu.memory_space<vmem>>, vector<128x128xbf16>
    %cst_59 = arith.constant dense<0.000000e+00> : vector<32x128xf32>
    %113 = tpu.matmul %111, %112, %cst_59 {dimension_numbers = #tpu.dot_dimension_numbers<[1], [0], [0], [1], [0, 0, 1, 1], [], []>} : vector<32x128xbf16>, vector<128x128xbf16>, vector<32x128xf32> -> vector<32x128xf32>
    %c32_60 = arith.constant 32 : index
    %c0_61 = arith.constant 0 : index
    %114 = vector.load %arg17[%c32_60, %c0_61] : memref<64x128xf32, #tpu.memory_space<vmem>>, vector<32x128xf32>
    tpu.vector_store %arg17[%c32_60, %c0_61], %113 {strides = array<i32>} : memref<64x128xf32, #tpu.memory_space<vmem>>, vector<32x128xf32>,
    %c32_62 = arith.constant 32 : index
    %c0_63 = arith.constant 0 : index
    %115 = vector.load %arg17[%c32_62, %c0_63] : memref<64x128xf32, #tpu.memory_space<vmem>>, vector<32x128xf32>
    %c360 = arith.constant 360 : index
    %c0_64 = arith.constant 0 : index
    %116 = vector.load %arg2[%c360, %c0_64] : memref<2592x64xbf16, #tpu.memory_space<vmem>>, vector<32x32xbf16>
    %117 = arith.truncf %115 : vector<32x128xf32> to vector<32x128xbf16>
    %cst_65 = arith.constant dense<0.000000e+00> : vector<32x128xf32>
    %118 = tpu.matmul %116, %117, %cst_65 {dimension_numbers = #tpu.dot_dimension_numbers<[1], [0], [0], [1], [0, 0, 1, 1], [], []>} : vector<32x32xbf16>, vector<32x128xbf16>, vector<32x128xf32> -> vector<32x128xf32>
    %c127_i32_66 = arith.constant 127 : i32
    %119 = tpu.dynamic_rotate %115 by %c127_i32_66 dim 1 : vector<32x128xf32>, i32 -> vector<32x128xf32>
    %c392 = arith.constant 392 : index
    %c0_67 = arith.constant 0 : index
    %120 = vector.load %arg2[%c392, %c0_67] : memref<2592x64xbf16, #tpu.memory_space<vmem>>, vector<32x32xbf16>
    %121 = arith.truncf %119 : vector<32x128xf32> to vector<32x128xbf16>
    %cst_68 = arith.constant dense<0.000000e+00> : vector<32x128xf32>
    %122 = tpu.matmul %120, %121, %cst_68 {dimension_numbers = #tpu.dot_dimension_numbers<[1], [0], [0], [1], [0, 0, 1, 1], [], []>} : vector<32x32xbf16>, vector<32x128xbf16>, vector<32x128xf32> -> vector<32x128xf32>
    %123 = arith.addf %118, %122 : vector<32x128xf32>
    %c126_i32_69 = arith.constant 126 : i32
    %124 = tpu.dynamic_rotate %115 by %c126_i32_69 dim 1 : vector<32x128xf32>, i32 -> vector<32x128xf32>
    %c424 = arith.constant 424 : index
    %c0_70 = arith.constant 0 : index
    %125 = vector.load %arg2[%c424, %c0_70] : memref<2592x64xbf16, #tpu.memory_space<vmem>>, vector<32x32xbf16>
    %126 = arith.truncf %124 : vector<32x128xf32> to vector<32x128xbf16>
    %cst_71 = arith.constant dense<0.000000e+00> : vector<32x128xf32>
    %127 = tpu.matmul %125, %126, %cst_71 {dimension_numbers = #tpu.dot_dimension_numbers<[1], [0], [0], [1], [0, 0, 1, 1], [], []>} : vector<32x32xbf16>, vector<32x128xbf16>, vector<32x128xf32> -> vector<32x128xf32>
    %128 = arith.addf %123, %127 : vector<32x128xf32>
    %c122_i32 = arith.constant 122 : i32
    %129 = tpu.dynamic_rotate %115 by %c122_i32 dim 1 : vector<32x128xf32>, i32 -> vector<32x128xf32>
    %c456 = arith.constant 456 : index
    %c0_72 = arith.constant 0 : index
    %130 = vector.load %arg2[%c456, %c0_72] : memref<2592x64xbf16, #tpu.memory_space<vmem>>, vector<32x32xbf16>
    %131 = arith.truncf %129 : vector<32x128xf32> to vector<32x128xbf16>
    %cst_73 = arith.constant dense<0.000000e+00> : vector<32x128xf32>
    %132 = tpu.matmul %130, %131, %cst_73 {dimension_numbers = #tpu.dot_dimension_numbers<[1], [0], [0], [1], [0, 0, 1, 1], [], []>} : vector<32x32xbf16>, vector<32x128xbf16>, vector<32x128xf32> -> vector<32x128xf32>
    %133 = arith.addf %128, %132 : vector<32x128xf32>
    %c121_i32 = arith.constant 121 : i32
    %134 = tpu.dynamic_rotate %115 by %c121_i32 dim 1 : vector<32x128xf32>, i32 -> vector<32x128xf32>
    %c488 = arith.constant 488 : index
    %c0_74 = arith.constant 0 : index
    %135 = vector.load %arg2[%c488, %c0_74] : memref<2592x64xbf16, #tpu.memory_space<vmem>>, vector<32x32xbf16>
    %136 = arith.truncf %134 : vector<32x128xf32> to vector<32x128xbf16>
    %cst_75 = arith.constant dense<0.000000e+00> : vector<32x128xf32>
    %137 = tpu.matmul %135, %136, %cst_75 {dimension_numbers = #tpu.dot_dimension_numbers<[1], [0], [0], [1], [0, 0, 1, 1], [], []>} : vector<32x32xbf16>, vector<32x128xbf16>, vector<32x128xf32> -> vector<32x128xf32>
    %138 = arith.addf %133, %137 : vector<32x128xf32>
    %c120_i32 = arith.constant 120 : i32
    %139 = tpu.dynamic_rotate %115 by %c120_i32 dim 1 : vector<32x128xf32>, i32 -> vector<32x128xf32>
    %c520 = arith.constant 520 : index
    %c0_76 = arith.constant 0 : index
    %140 = vector.load %arg2[%c520, %c0_76] : memref<2592x64xbf16, #tpu.memory_space<vmem>>, vector<32x32xbf16>
    %141 = arith.truncf %139 : vector<32x128xf32> to vector<32x128xbf16>
    %cst_77 = arith.constant dense<0.000000e+00> : vector<32x128xf32>
    %142 = tpu.matmul %140, %141, %cst_77 {dimension_numbers = #tpu.dot_dimension_numbers<[1], [0], [0], [1], [0, 0, 1, 1], [], []>} : vector<32x32xbf16>, vector<32x128xbf16>, vector<32x128xf32> -> vector<32x128xf32>
    %143 = arith.addf %138, %142 : vector<32x128xf32>
    %c116_i32_78 = arith.constant 116 : i32
    %144 = tpu.dynamic_rotate %115 by %c116_i32_78 dim 1 : vector<32x128xf32>, i32 -> vector<32x128xf32>
    %c552 = arith.constant 552 : index
    %c0_79 = arith.constant 0 : index
    %145 = vector.load %arg2[%c552, %c0_79] : memref<2592x64xbf16, #tpu.memory_space<vmem>>, vector<32x32xbf16>
    %146 = arith.truncf %144 : vector<32x128xf32> to vector<32x128xbf16>
    %cst_80 = arith.constant dense<0.000000e+00> : vector<32x128xf32>
    %147 = tpu.matmul %145, %146, %cst_80 {dimension_numbers = #tpu.dot_dimension_numbers<[1], [0], [0], [1], [0, 0, 1, 1], [], []>} : vector<32x32xbf16>, vector<32x128xbf16>, vector<32x128xf32> -> vector<32x128xf32>
    %148 = arith.addf %143, %147 : vector<32x128xf32>
    %c115_i32 = arith.constant 115 : i32
    %149 = tpu.dynamic_rotate %115 by %c115_i32 dim 1 : vector<32x128xf32>, i32 -> vector<32x128xf32>
    %c584 = arith.constant 584 : index
    %c0_81 = arith.constant 0 : index
    %150 = vector.load %arg2[%c584, %c0_81] : memref<2592x64xbf16, #tpu.memory_space<vmem>>, vector<32x32xbf16>
    %151 = arith.truncf %149 : vector<32x128xf32> to vector<32x128xbf16>
    %cst_82 = arith.constant dense<0.000000e+00> : vector<32x128xf32>
    %152 = tpu.matmul %150, %151, %cst_82 {dimension_numbers = #tpu.dot_dimension_numbers<[1], [0], [0], [1], [0, 0, 1, 1], [], []>} : vector<32x32xbf16>, vector<32x128xbf16>, vector<32x128xf32> -> vector<32x128xf32>
    %153 = arith.addf %148, %152 : vector<32x128xf32>
    %c114_i32 = arith.constant 114 : i32
    %154 = tpu.dynamic_rotate %115 by %c114_i32 dim 1 : vector<32x128xf32>, i32 -> vector<32x128xf32>
    %c616 = arith.constant 616 : index
    %c0_83 = arith.constant 0 : index
    %155 = vector.load %arg2[%c616, %c0_83] : memref<2592x64xbf16, #tpu.memory_space<vmem>>, vector<32x32xbf16>
    %156 = arith.truncf %154 : vector<32x128xf32> to vector<32x128xbf16>
    %cst_84 = arith.constant dense<0.000000e+00> : vector<32x128xf32>
    %157 = tpu.matmul %155, %156, %cst_84 {dimension_numbers = #tpu.dot_dimension_numbers<[1], [0], [0], [1], [0, 0, 1, 1], [], []>} : vector<32x32xbf16>, vector<32x128xbf16>, vector<32x128xf32> -> vector<32x128xf32>
    %158 = arith.addf %153, %157 : vector<32x128xf32>
    %c40_85 = arith.constant 40 : index
    %c0_86 = arith.constant 0 : index
    %159 = vector.load %arg3[%c40_85, %c0_86] : memref<288x1xf32, #tpu.memory_space<vmem>>, vector<32x1xf32>
    %160 = vector.broadcast %159 : vector<32x1xf32> to vector<32x128xf32>
    %161 = arith.addf %158, %160 : vector<32x128xf32>
    %cst_87 = arith.constant 0.000000e+00 : f32
    %162 = vector.broadcast %cst_87 : f32 to vector<32x128xf32>
    %163 = arith.cmpf oge, %161, %162 : vector<32x128xf32>
    %cst_88 = arith.constant 2.000000e-01 : f32
    %164 = vector.broadcast %cst_88 : f32 to vector<32x128xf32>
    %165 = arith.mulf %164, %161 : vector<32x128xf32>
    %166 = arith.select %163, %161, %165 : vector<32x128xi1>, vector<32x128xf32>
    %167 = arith.truncf %166 : vector<32x128xf32> to vector<32x128xbf16>
    %c0_89 = arith.constant 0 : index
    %c0_90 = arith.constant 0 : index
    %168 = vector.load %arg6[%c0_89, %c0_90] : memref<128x128xbf16, #tpu.memory_space<vmem>>, vector<128x128xbf16>
    %cst_91 = arith.constant dense<0.000000e+00> : vector<32x128xf32>
    %169 = tpu.matmul %167, %168, %cst_91 {dimension_numbers = #tpu.dot_dimension_numbers<[1], [0], [0], [1], [0, 0, 1, 1], [], []>} : vector<32x128xbf16>, vector<128x128xbf16>, vector<32x128xf32> -> vector<32x128xf32>
    %c32_92 = arith.constant 32 : index
    %c0_93 = arith.constant 0 : index
    %170 = vector.load %arg18[%c32_92, %c0_93] : memref<64x128xf32, #tpu.memory_space<vmem>>, vector<32x128xf32>
    tpu.vector_store %arg18[%c32_92, %c0_93], %169 {strides = array<i32>} : memref<64x128xf32, #tpu.memory_space<vmem>>, vector<32x128xf32>,
    %c32_94 = arith.constant 32 : index
    %c0_95 = arith.constant 0 : index
    %171 = vector.load %arg18[%c32_94, %c0_95] : memref<64x128xf32, #tpu.memory_space<vmem>>, vector<32x128xf32>
    %c648 = arith.constant 648 : index
    %c0_96 = arith.constant 0 : index
    %172 = vector.load %arg2[%c648, %c0_96] : memref<2592x64xbf16, #tpu.memory_space<vmem>>, vector<32x32xbf16>
    %173 = arith.truncf %171 : vector<32x128xf32> to vector<32x128xbf16>
    %cst_97 = arith.constant dense<0.000000e+00> : vector<32x128xf32>
    %174 = tpu.matmul %172, %173, %cst_97 {dimension_numbers = #tpu.dot_dimension_numbers<[1], [0], [0], [1], [0, 0, 1, 1], [], []>} : vector<32x32xbf16>, vector<32x128xbf16>, vector<32x128xf32> -> vector<32x128xf32>
    %c127_i32_98 = arith.constant 127 : i32
    %175 = tpu.dynamic_rotate %171 by %c127_i32_98 dim 1 : vector<32x128xf32>, i32 -> vector<32x128xf32>
    %c680 = arith.constant 680 : index
    %c0_99 = arith.constant 0 : index
    %176 = vector.load %arg2[%c680, %c0_99] : memref<2592x64xbf16, #tpu.memory_space<vmem>>, vector<32x32xbf16>
    %177 = arith.truncf %175 : vector<32x128xf32> to vector<32x128xbf16>
    %cst_100 = arith.constant dense<0.000000e+00> : vector<32x128xf32>
    %178 = tpu.matmul %176, %177, %cst_100 {dimension_numbers = #tpu.dot_dimension_numbers<[1], [0], [0], [1], [0, 0, 1, 1], [], []>} : vector<32x32xbf16>, vector<32x128xbf16>, vector<32x128xf32> -> vector<32x128xf32>
    %179 = arith.addf %174, %178 : vector<32x128xf32>
    %c126_i32_101 = arith.constant 126 : i32
    %180 = tpu.dynamic_rotate %171 by %c126_i32_101 dim 1 : vector<32x128xf32>, i32 -> vector<32x128xf32>
    %c712 = arith.constant 712 : index
    %c0_102 = arith.constant 0 : index
    %181 = vector.load %arg2[%c712, %c0_102] : memref<2592x64xbf16, #tpu.memory_space<vmem>>, vector<32x32xbf16>
    %182 = arith.truncf %180 : vector<32x128xf32> to vector<32x128xbf16>
    %cst_103 = arith.constant dense<0.000000e+00> : vector<32x128xf32>
    %183 = tpu.matmul %181, %182, %cst_103 {dimension_numbers = #tpu.dot_dimension_numbers<[1], [0], [0], [1], [0, 0, 1, 1], [], []>} : vector<32x32xbf16>, vector<32x128xbf16>, vector<32x128xf32> -> vector<32x128xf32>
    %184 = arith.addf %179, %183 : vector<32x128xf32>
    %c124_i32 = arith.constant 124 : i32
    %185 = tpu.dynamic_rotate %171 by %c124_i32 dim 1 : vector<32x128xf32>, i32 -> vector<32x128xf32>
    %c744 = arith.constant 744 : index
    %c0_104 = arith.constant 0 : index
    %186 = vector.load %arg2[%c744, %c0_104] : memref<2592x64xbf16, #tpu.memory_space<vmem>>, vector<32x32xbf16>
    %187 = arith.truncf %185 : vector<32x128xf32> to vector<32x128xbf16>
    %cst_105 = arith.constant dense<0.000000e+00> : vector<32x128xf32>
    %188 = tpu.matmul %186, %187, %cst_105 {dimension_numbers = #tpu.dot_dimension_numbers<[1], [0], [0], [1], [0, 0, 1, 1], [], []>} : vector<32x32xbf16>, vector<32x128xbf16>, vector<32x128xf32> -> vector<32x128xf32>
    %189 = arith.addf %184, %188 : vector<32x128xf32>
    %c123_i32 = arith.constant 123 : i32
    %190 = tpu.dynamic_rotate %171 by %c123_i32 dim 1 : vector<32x128xf32>, i32 -> vector<32x128xf32>
    %c776 = arith.constant 776 : index
    %c0_106 = arith.constant 0 : index
    %191 = vector.load %arg2[%c776, %c0_106] : memref<2592x64xbf16, #tpu.memory_space<vmem>>, vector<32x32xbf16>
    %192 = arith.truncf %190 : vector<32x128xf32> to vector<32x128xbf16>
    %cst_107 = arith.constant dense<0.000000e+00> : vector<32x128xf32>
    %193 = tpu.matmul %191, %192, %cst_107 {dimension_numbers = #tpu.dot_dimension_numbers<[1], [0], [0], [1], [0, 0, 1, 1], [], []>} : vector<32x32xbf16>, vector<32x128xbf16>, vector<32x128xf32> -> vector<32x128xf32>
    %194 = arith.addf %189, %193 : vector<32x128xf32>
    %c122_i32_108 = arith.constant 122 : i32
    %195 = tpu.dynamic_rotate %171 by %c122_i32_108 dim 1 : vector<32x128xf32>, i32 -> vector<32x128xf32>
    %c808 = arith.constant 808 : index
    %c0_109 = arith.constant 0 : index
    %196 = vector.load %arg2[%c808, %c0_109] : memref<2592x64xbf16, #tpu.memory_space<vmem>>, vector<32x32xbf16>
    %197 = arith.truncf %195 : vector<32x128xf32> to vector<32x128xbf16>
    %cst_110 = arith.constant dense<0.000000e+00> : vector<32x128xf32>
    %198 = tpu.matmul %196, %197, %cst_110 {dimension_numbers = #tpu.dot_dimension_numbers<[1], [0], [0], [1], [0, 0, 1, 1], [], []>} : vector<32x32xbf16>, vector<32x128xbf16>, vector<32x128xf32> -> vector<32x128xf32>
    %199 = arith.addf %194, %198 : vector<32x128xf32>
    %c120_i32_111 = arith.constant 120 : i32
    %200 = tpu.dynamic_rotate %171 by %c120_i32_111 dim 1 : vector<32x128xf32>, i32 -> vector<32x128xf32>
    %c840 = arith.constant 840 : index
    %c0_112 = arith.constant 0 : index
    %201 = vector.load %arg2[%c840, %c0_112] : memref<2592x64xbf16, #tpu.memory_space<vmem>>, vector<32x32xbf16>
    %202 = arith.truncf %200 : vector<32x128xf32> to vector<32x128xbf16>
    %cst_113 = arith.constant dense<0.000000e+00> : vector<32x128xf32>
    %203 = tpu.matmul %201, %202, %cst_113 {dimension_numbers = #tpu.dot_dimension_numbers<[1], [0], [0], [1], [0, 0, 1, 1], [], []>} : vector<32x32xbf16>, vector<32x128xbf16>, vector<32x128xf32> -> vector<32x128xf32>
    %204 = arith.addf %199, %203 : vector<32x128xf32>
    %c119_i32 = arith.constant 119 : i32
    %205 = tpu.dynamic_rotate %171 by %c119_i32 dim 1 : vector<32x128xf32>, i32 -> vector<32x128xf32>
    %c872 = arith.constant 872 : index
    %c0_114 = arith.constant 0 : index
    %206 = vector.load %arg2[%c872, %c0_114] : memref<2592x64xbf16, #tpu.memory_space<vmem>>, vector<32x32xbf16>
    %207 = arith.truncf %205 : vector<32x128xf32> to vector<32x128xbf16>
    %cst_115 = arith.constant dense<0.000000e+00> : vector<32x128xf32>
    %208 = tpu.matmul %206, %207, %cst_115 {dimension_numbers = #tpu.dot_dimension_numbers<[1], [0], [0], [1], [0, 0, 1, 1], [], []>} : vector<32x32xbf16>, vector<32x128xbf16>, vector<32x128xf32> -> vector<32x128xf32>
    %209 = arith.addf %204, %208 : vector<32x128xf32>
    %c118_i32_116 = arith.constant 118 : i32
    %210 = tpu.dynamic_rotate %171 by %c118_i32_116 dim 1 : vector<32x128xf32>, i32 -> vector<32x128xf32>
    %c904 = arith.constant 904 : index
    %c0_117 = arith.constant 0 : index
    %211 = vector.load %arg2[%c904, %c0_117] : memref<2592x64xbf16, #tpu.memory_space<vmem>>, vector<32x32xbf16>
    %212 = arith.truncf %210 : vector<32x128xf32> to vector<32x128xbf16>
    %cst_118 = arith.constant dense<0.000000e+00> : vector<32x128xf32>
    %213 = tpu.matmul %211, %212, %cst_118 {dimension_numbers = #tpu.dot_dimension_numbers<[1], [0], [0], [1], [0, 0, 1, 1], [], []>} : vector<32x32xbf16>, vector<32x128xbf16>, vector<32x128xf32> -> vector<32x128xf32>
    %214 = arith.addf %209, %213 : vector<32x128xf32>
    %c72_119 = arith.constant 72 : index
    %c0_120 = arith.constant 0 : index
    %215 = vector.load %arg3[%c72_119, %c0_120] : memref<288x1xf32, #tpu.memory_space<vmem>>, vector<32x1xf32>
    %216 = vector.broadcast %215 : vector<32x1xf32> to vector<32x128xf32>
    %217 = arith.addf %214, %216 : vector<32x128xf32>
    %cst_121 = arith.constant 0.000000e+00 : f32
    %218 = vector.broadcast %cst_121 : f32 to vector<32x128xf32>
    %219 = arith.cmpf oge, %217, %218 : vector<32x128xf32>
    %cst_122 = arith.constant 2.000000e-01 : f32
    %220 = vector.broadcast %cst_122 : f32 to vector<32x128xf32>
    %221 = arith.mulf %220, %217 : vector<32x128xf32>
    %222 = arith.select %219, %217, %221 : vector<32x128xi1>, vector<32x128xf32>
    %223 = arith.truncf %222 : vector<32x128xf32> to vector<32x128xbf16>
    %c0_123 = arith.constant 0 : index
    %c0_124 = arith.constant 0 : index
    %224 = vector.load %arg7[%c0_123, %c0_124] : memref<128x128xbf16, #tpu.memory_space<vmem>>, vector<128x128xbf16>
    %cst_125 = arith.constant dense<0.000000e+00> : vector<32x128xf32>
    %225 = tpu.matmul %223, %224, %cst_125 {dimension_numbers = #tpu.dot_dimension_numbers<[1], [0], [0], [1], [0, 0, 1, 1], [], []>} : vector<32x128xbf16>, vector<128x128xbf16>, vector<32x128xf32> -> vector<32x128xf32>
    %c0_126 = arith.constant 0 : index
    %c0_127 = arith.constant 0 : index
    %226 = vector.load %arg19[%c0_126, %c0_127] : memref<32x128xf32, #tpu.memory_space<vmem>>, vector<32x128xf32>
    tpu.vector_store %arg19[%c0_126, %c0_127], %225 {strides = array<i32>} : memref<32x128xf32, #tpu.memory_space<vmem>>, vector<32x128xf32>,
    %c0_128 = arith.constant 0 : index
    %c0_129 = arith.constant 0 : index
    %227 = vector.load %arg19[%c0_128, %c0_129] : memref<32x128xf32, #tpu.memory_space<vmem>>, vector<32x128xf32>
    %c124_i32_130 = arith.constant 124 : i32
    %228 = tpu.dynamic_rotate %227 by %c124_i32_130 dim 1 : vector<32x128xf32>, i32 -> vector<32x128xf32>
    %c1064 = arith.constant 1064 : index
    %c0_131 = arith.constant 0 : index
    %229 = vector.load %arg2[%c1064, %c0_131] : memref<2592x64xbf16, #tpu.memory_space<vmem>>, vector<32x32xbf16>
    %230 = arith.truncf %228 : vector<32x128xf32> to vector<32x128xbf16>
    %cst_132 = arith.constant dense<0.000000e+00> : vector<32x128xf32>
    %231 = tpu.matmul %229, %230, %cst_132 {dimension_numbers = #tpu.dot_dimension_numbers<[1], [0], [0], [1], [0, 0, 1, 1], [], []>} : vector<32x32xbf16>, vector<32x128xbf16>, vector<32x128xf32> -> vector<32x128xf32>
    %c104_133 = arith.constant 104 : index
    %c0_134 = arith.constant 0 : index
    %232 = vector.load %arg3[%c104_133, %c0_134] : memref<288x1xf32, #tpu.memory_space<vmem>>, vector<32x1xf32>
    %233 = vector.broadcast %232 : vector<32x1xf32> to vector<32x128xf32>
    %234 = arith.addf %231, %233 : vector<32x128xf32>
    %cst_135 = arith.constant 0.000000e+00 : f32
    %235 = vector.broadcast %cst_135 : f32 to vector<32x128xf32>
    %236 = arith.cmpf oge, %234, %235 : vector<32x128xf32>
    %cst_136 = arith.constant 2.000000e-01 : f32
    %237 = vector.broadcast %cst_136 : f32 to vector<32x128xf32>
    %238 = arith.mulf %237, %234 : vector<32x128xf32>
    %239 = arith.select %236, %234, %238 : vector<32x128xi1>, vector<32x128xf32>
    %240 = arith.truncf %239 : vector<32x128xf32> to vector<32x128xbf16>
    %c0_137 = arith.constant 0 : index
    %c0_138 = arith.constant 0 : index
    %241 = vector.load %arg8[%c0_137, %c0_138] : memref<128x128xbf16, #tpu.memory_space<vmem>>, vector<128x128xbf16>
    %cst_139 = arith.constant dense<0.000000e+00> : vector<32x128xf32>
    %242 = tpu.matmul %240, %241, %cst_139 {dimension_numbers = #tpu.dot_dimension_numbers<[1], [0], [0], [1], [0, 0, 1, 1], [], []>} : vector<32x128xbf16>, vector<128x128xbf16>, vector<32x128xf32> -> vector<32x128xf32>
    %c0_140 = arith.constant 0 : index
    %c0_141 = arith.constant 0 : index
    %243 = vector.load %arg18[%c0_140, %c0_141] : memref<64x128xf32, #tpu.memory_space<vmem>>, vector<32x128xf32>
    tpu.vector_store %arg18[%c0_140, %c0_141], %242 {strides = array<i32>} : memref<64x128xf32, #tpu.memory_space<vmem>>, vector<32x128xf32>,
    %c0_142 = arith.constant 0 : index
    %c0_143 = arith.constant 0 : index
    %244 = vector.load %arg18[%c0_142, %c0_143] : memref<64x128xf32, #tpu.memory_space<vmem>>, vector<64x128xf32>
    %c1224 = arith.constant 1224 : index
    %c0_144 = arith.constant 0 : index
    %245 = vector.load %arg2[%c1224, %c0_144] : memref<2592x64xbf16, #tpu.memory_space<vmem>>, vector<32x64xbf16>
    %246 = arith.truncf %244 : vector<64x128xf32> to vector<64x128xbf16>
    %cst_145 = arith.constant dense<0.000000e+00> : vector<32x128xf32>
    %247 = tpu.matmul %245, %246, %cst_145 {dimension_numbers = #tpu.dot_dimension_numbers<[1], [0], [0], [1], [0, 0, 1, 1], [], []>} : vector<32x64xbf16>, vector<64x128xbf16>, vector<32x128xf32> -> vector<32x128xf32>
    %c127_i32_146 = arith.constant 127 : i32
    %248 = tpu.dynamic_rotate %244 by %c127_i32_146 dim 1 : vector<64x128xf32>, i32 -> vector<64x128xf32>
    %c1256 = arith.constant 1256 : index
    %c0_147 = arith.constant 0 : index
    %249 = vector.load %arg2[%c1256, %c0_147] : memref<2592x64xbf16, #tpu.memory_space<vmem>>, vector<32x64xbf16>
    %250 = arith.truncf %248 : vector<64x128xf32> to vector<64x128xbf16>
    %cst_148 = arith.constant dense<0.000000e+00> : vector<32x128xf32>
    %251 = tpu.matmul %249, %250, %cst_148 {dimension_numbers = #tpu.dot_dimension_numbers<[1], [0], [0], [1], [0, 0, 1, 1], [], []>} : vector<32x64xbf16>, vector<64x128xbf16>, vector<32x128xf32> -> vector<32x128xf32>
    %252 = arith.addf %247, %251 : vector<32x128xf32>
    %c126_i32_149 = arith.constant 126 : i32
    %253 = tpu.dynamic_rotate %244 by %c126_i32_149 dim 1 : vector<64x128xf32>, i32 -> vector<64x128xf32>
    %c1288 = arith.constant 1288 : index
    %c0_150 = arith.constant 0 : index
    %254 = vector.load %arg2[%c1288, %c0_150] : memref<2592x64xbf16, #tpu.memory_space<vmem>>, vector<32x64xbf16>
    %255 = arith.truncf %253 : vector<64x128xf32> to vector<64x128xbf16>
    %cst_151 = arith.constant dense<0.000000e+00> : vector<32x128xf32>
    %256 = tpu.matmul %254, %255, %cst_151 {dimension_numbers = #tpu.dot_dimension_numbers<[1], [0], [0], [1], [0, 0, 1, 1], [], []>} : vector<32x64xbf16>, vector<64x128xbf16>, vector<32x128xf32> -> vector<32x128xf32>
    %257 = arith.addf %252, %256 : vector<32x128xf32>
    %c124_i32_152 = arith.constant 124 : i32
    %258 = tpu.dynamic_rotate %244 by %c124_i32_152 dim 1 : vector<64x128xf32>, i32 -> vector<64x128xf32>
    %c1320 = arith.constant 1320 : index
    %c0_153 = arith.constant 0 : index
    %259 = vector.load %arg2[%c1320, %c0_153] : memref<2592x64xbf16, #tpu.memory_space<vmem>>, vector<32x64xbf16>
    %260 = arith.truncf %258 : vector<64x128xf32> to vector<64x128xbf16>
    %cst_154 = arith.constant dense<0.000000e+00> : vector<32x128xf32>
    %261 = tpu.matmul %259, %260, %cst_154 {dimension_numbers = #tpu.dot_dimension_numbers<[1], [0], [0], [1], [0, 0, 1, 1], [], []>} : vector<32x64xbf16>, vector<64x128xbf16>, vector<32x128xf32> -> vector<32x128xf32>
    %262 = arith.addf %257, %261 : vector<32x128xf32>
    %c123_i32_155 = arith.constant 123 : i32
    %263 = tpu.dynamic_rotate %244 by %c123_i32_155 dim 1 : vector<64x128xf32>, i32 -> vector<64x128xf32>
    %c1352 = arith.constant 1352 : index
    %c0_156 = arith.constant 0 : index
    %264 = vector.load %arg2[%c1352, %c0_156] : memref<2592x64xbf16, #tpu.memory_space<vmem>>, vector<32x64xbf16>
    %265 = arith.truncf %263 : vector<64x128xf32> to vector<64x128xbf16>
    %cst_157 = arith.constant dense<0.000000e+00> : vector<32x128xf32>
    %266 = tpu.matmul %264, %265, %cst_157 {dimension_numbers = #tpu.dot_dimension_numbers<[1], [0], [0], [1], [0, 0, 1, 1], [], []>} : vector<32x64xbf16>, vector<64x128xbf16>, vector<32x128xf32> -> vector<32x128xf32>
    %267 = arith.addf %262, %266 : vector<32x128xf32>
    %c122_i32_158 = arith.constant 122 : i32
    %268 = tpu.dynamic_rotate %244 by %c122_i32_158 dim 1 : vector<64x128xf32>, i32 -> vector<64x128xf32>
    %c1384 = arith.constant 1384 : index
    %c0_159 = arith.constant 0 : index
    %269 = vector.load %arg2[%c1384, %c0_159] : memref<2592x64xbf16, #tpu.memory_space<vmem>>, vector<32x64xbf16>
    %270 = arith.truncf %268 : vector<64x128xf32> to vector<64x128xbf16>
    %cst_160 = arith.constant dense<0.000000e+00> : vector<32x128xf32>
    %271 = tpu.matmul %269, %270, %cst_160 {dimension_numbers = #tpu.dot_dimension_numbers<[1], [0], [0], [1], [0, 0, 1, 1], [], []>} : vector<32x64xbf16>, vector<64x128xbf16>, vector<32x128xf32> -> vector<32x128xf32>
    %272 = arith.addf %267, %271 : vector<32x128xf32>
    %c120_i32_161 = arith.constant 120 : i32
    %273 = tpu.dynamic_rotate %244 by %c120_i32_161 dim 1 : vector<64x128xf32>, i32 -> vector<64x128xf32>
    %c1416 = arith.constant 1416 : index
    %c0_162 = arith.constant 0 : index
    %274 = vector.load %arg2[%c1416, %c0_162] : memref<2592x64xbf16, #tpu.memory_space<vmem>>, vector<32x64xbf16>
    %275 = arith.truncf %273 : vector<64x128xf32> to vector<64x128xbf16>
    %cst_163 = arith.constant dense<0.000000e+00> : vector<32x128xf32>
    %276 = tpu.matmul %274, %275, %cst_163 {dimension_numbers = #tpu.dot_dimension_numbers<[1], [0], [0], [1], [0, 0, 1, 1], [], []>} : vector<32x64xbf16>, vector<64x128xbf16>, vector<32x128xf32> -> vector<32x128xf32>
    %277 = arith.addf %272, %276 : vector<32x128xf32>
    %c119_i32_164 = arith.constant 119 : i32
    %278 = tpu.dynamic_rotate %244 by %c119_i32_164 dim 1 : vector<64x128xf32>, i32 -> vector<64x128xf32>
    %c1448 = arith.constant 1448 : index
    %c0_165 = arith.constant 0 : index
    %279 = vector.load %arg2[%c1448, %c0_165] : memref<2592x64xbf16, #tpu.memory_space<vmem>>, vector<32x64xbf16>
    %280 = arith.truncf %278 : vector<64x128xf32> to vector<64x128xbf16>
    %cst_166 = arith.constant dense<0.000000e+00> : vector<32x128xf32>
    %281 = tpu.matmul %279, %280, %cst_166 {dimension_numbers = #tpu.dot_dimension_numbers<[1], [0], [0], [1], [0, 0, 1, 1], [], []>} : vector<32x64xbf16>, vector<64x128xbf16>, vector<32x128xf32> -> vector<32x128xf32>
    %282 = arith.addf %277, %281 : vector<32x128xf32>
    %c118_i32_167 = arith.constant 118 : i32
    %283 = tpu.dynamic_rotate %244 by %c118_i32_167 dim 1 : vector<64x128xf32>, i32 -> vector<64x128xf32>
    %c1480 = arith.constant 1480 : index
    %c0_168 = arith.constant 0 : index
    %284 = vector.load %arg2[%c1480, %c0_168] : memref<2592x64xbf16, #tpu.memory_space<vmem>>, vector<32x64xbf16>
    %285 = arith.truncf %283 : vector<64x128xf32> to vector<64x128xbf16>
    %cst_169 = arith.constant dense<0.000000e+00> : vector<32x128xf32>
    %286 = tpu.matmul %284, %285, %cst_169 {dimension_numbers = #tpu.dot_dimension_numbers<[1], [0], [0], [1], [0, 0, 1, 1], [], []>} : vector<32x64xbf16>, vector<64x128xbf16>, vector<32x128xf32> -> vector<32x128xf32>
    %287 = arith.addf %282, %286 : vector<32x128xf32>
    %c136_170 = arith.constant 136 : index
    %c0_171 = arith.constant 0 : index
    %288 = vector.load %arg3[%c136_170, %c0_171] : memref<288x1xf32, #tpu.memory_space<vmem>>, vector<32x1xf32>
    %289 = vector.broadcast %288 : vector<32x1xf32> to vector<32x128xf32>
    %290 = arith.addf %287, %289 : vector<32x128xf32>
    %cst_172 = arith.constant 0.000000e+00 : f32
    %291 = vector.broadcast %cst_172 : f32 to vector<32x128xf32>
    %292 = arith.cmpf oge, %290, %291 : vector<32x128xf32>
    %cst_173 = arith.constant 2.000000e-01 : f32
    %293 = vector.broadcast %cst_173 : f32 to vector<32x128xf32>
    %294 = arith.mulf %293, %290 : vector<32x128xf32>
    %295 = arith.select %292, %290, %294 : vector<32x128xi1>, vector<32x128xf32>
    %296 = arith.truncf %295 : vector<32x128xf32> to vector<32x128xbf16>
    %c0_174 = arith.constant 0 : index
    %c0_175 = arith.constant 0 : index
    %297 = vector.load %arg9[%c0_174, %c0_175] : memref<128x128xbf16, #tpu.memory_space<vmem>>, vector<128x128xbf16>
    %cst_176 = arith.constant dense<0.000000e+00> : vector<32x128xf32>
    %298 = tpu.matmul %296, %297, %cst_176 {dimension_numbers = #tpu.dot_dimension_numbers<[1], [0], [0], [1], [0, 0, 1, 1], [], []>} : vector<32x128xbf16>, vector<128x128xbf16>, vector<32x128xf32> -> vector<32x128xf32>
    %c0_177 = arith.constant 0 : index
    %c0_178 = arith.constant 0 : index
    %299 = vector.load %arg17[%c0_177, %c0_178] : memref<64x128xf32, #tpu.memory_space<vmem>>, vector<32x128xf32>
    tpu.vector_store %arg17[%c0_177, %c0_178], %298 {strides = array<i32>} : memref<64x128xf32, #tpu.memory_space<vmem>>, vector<32x128xf32>,
    %c0_179 = arith.constant 0 : index
    %c0_180 = arith.constant 0 : index
    %300 = vector.load %arg17[%c0_179, %c0_180] : memref<64x128xf32, #tpu.memory_space<vmem>>, vector<64x128xf32>
    %c1512 = arith.constant 1512 : index
    %c0_181 = arith.constant 0 : index
    %301 = vector.load %arg2[%c1512, %c0_181] : memref<2592x64xbf16, #tpu.memory_space<vmem>>, vector<32x64xbf16>
    %302 = arith.truncf %300 : vector<64x128xf32> to vector<64x128xbf16>
    %cst_182 = arith.constant dense<0.000000e+00> : vector<32x128xf32>
    %303 = tpu.matmul %301, %302, %cst_182 {dimension_numbers = #tpu.dot_dimension_numbers<[1], [0], [0], [1], [0, 0, 1, 1], [], []>} : vector<32x64xbf16>, vector<64x128xbf16>, vector<32x128xf32> -> vector<32x128xf32>
    %c127_i32_183 = arith.constant 127 : i32
    %304 = tpu.dynamic_rotate %300 by %c127_i32_183 dim 1 : vector<64x128xf32>, i32 -> vector<64x128xf32>
    %c1544 = arith.constant 1544 : index
    %c0_184 = arith.constant 0 : index
    %305 = vector.load %arg2[%c1544, %c0_184] : memref<2592x64xbf16, #tpu.memory_space<vmem>>, vector<32x64xbf16>
    %306 = arith.truncf %304 : vector<64x128xf32> to vector<64x128xbf16>
    %cst_185 = arith.constant dense<0.000000e+00> : vector<32x128xf32>
    %307 = tpu.matmul %305, %306, %cst_185 {dimension_numbers = #tpu.dot_dimension_numbers<[1], [0], [0], [1], [0, 0, 1, 1], [], []>} : vector<32x64xbf16>, vector<64x128xbf16>, vector<32x128xf32> -> vector<32x128xf32>
    %308 = arith.addf %303, %307 : vector<32x128xf32>
    %c126_i32_186 = arith.constant 126 : i32
    %309 = tpu.dynamic_rotate %300 by %c126_i32_186 dim 1 : vector<64x128xf32>, i32 -> vector<64x128xf32>
    %c1576 = arith.constant 1576 : index
    %c0_187 = arith.constant 0 : index
    %310 = vector.load %arg2[%c1576, %c0_187] : memref<2592x64xbf16, #tpu.memory_space<vmem>>, vector<32x64xbf16>
    %311 = arith.truncf %309 : vector<64x128xf32> to vector<64x128xbf16>
    %cst_188 = arith.constant dense<0.000000e+00> : vector<32x128xf32>
    %312 = tpu.matmul %310, %311, %cst_188 {dimension_numbers = #tpu.dot_dimension_numbers<[1], [0], [0], [1], [0, 0, 1, 1], [], []>} : vector<32x64xbf16>, vector<64x128xbf16>, vector<32x128xf32> -> vector<32x128xf32>
    %313 = arith.addf %308, %312 : vector<32x128xf32>
    %c122_i32_189 = arith.constant 122 : i32
    %314 = tpu.dynamic_rotate %300 by %c122_i32_189 dim 1 : vector<64x128xf32>, i32 -> vector<64x128xf32>
    %c1608 = arith.constant 1608 : index
    %c0_190 = arith.constant 0 : index
    %315 = vector.load %arg2[%c1608, %c0_190] : memref<2592x64xbf16, #tpu.memory_space<vmem>>, vector<32x64xbf16>
    %316 = arith.truncf %314 : vector<64x128xf32> to vector<64x128xbf16>
    %cst_191 = arith.constant dense<0.000000e+00> : vector<32x128xf32>
    %317 = tpu.matmul %315, %316, %cst_191 {dimension_numbers = #tpu.dot_dimension_numbers<[1], [0], [0], [1], [0, 0, 1, 1], [], []>} : vector<32x64xbf16>, vector<64x128xbf16>, vector<32x128xf32> -> vector<32x128xf32>
    %318 = arith.addf %313, %317 : vector<32x128xf32>
    %c121_i32_192 = arith.constant 121 : i32
    %319 = tpu.dynamic_rotate %300 by %c121_i32_192 dim 1 : vector<64x128xf32>, i32 -> vector<64x128xf32>
    %c1640 = arith.constant 1640 : index
    %c0_193 = arith.constant 0 : index
    %320 = vector.load %arg2[%c1640, %c0_193] : memref<2592x64xbf16, #tpu.memory_space<vmem>>, vector<32x64xbf16>
    %321 = arith.truncf %319 : vector<64x128xf32> to vector<64x128xbf16>
    %cst_194 = arith.constant dense<0.000000e+00> : vector<32x128xf32>
    %322 = tpu.matmul %320, %321, %cst_194 {dimension_numbers = #tpu.dot_dimension_numbers<[1], [0], [0], [1], [0, 0, 1, 1], [], []>} : vector<32x64xbf16>, vector<64x128xbf16>, vector<32x128xf32> -> vector<32x128xf32>
    %323 = arith.addf %318, %322 : vector<32x128xf32>
    %c120_i32_195 = arith.constant 120 : i32
    %324 = tpu.dynamic_rotate %300 by %c120_i32_195 dim 1 : vector<64x128xf32>, i32 -> vector<64x128xf32>
    %c1672 = arith.constant 1672 : index
    %c0_196 = arith.constant 0 : index
    %325 = vector.load %arg2[%c1672, %c0_196] : memref<2592x64xbf16, #tpu.memory_space<vmem>>, vector<32x64xbf16>
    %326 = arith.truncf %324 : vector<64x128xf32> to vector<64x128xbf16>
    %cst_197 = arith.constant dense<0.000000e+00> : vector<32x128xf32>
    %327 = tpu.matmul %325, %326, %cst_197 {dimension_numbers = #tpu.dot_dimension_numbers<[1], [0], [0], [1], [0, 0, 1, 1], [], []>} : vector<32x64xbf16>, vector<64x128xbf16>, vector<32x128xf32> -> vector<32x128xf32>
    %328 = arith.addf %323, %327 : vector<32x128xf32>
    %c116_i32_198 = arith.constant 116 : i32
    %329 = tpu.dynamic_rotate %300 by %c116_i32_198 dim 1 : vector<64x128xf32>, i32 -> vector<64x128xf32>
    %c1704 = arith.constant 1704 : index
    %c0_199 = arith.constant 0 : index
    %330 = vector.load %arg2[%c1704, %c0_199] : memref<2592x64xbf16, #tpu.memory_space<vmem>>, vector<32x64xbf16>
    %331 = arith.truncf %329 : vector<64x128xf32> to vector<64x128xbf16>
    %cst_200 = arith.constant dense<0.000000e+00> : vector<32x128xf32>
    %332 = tpu.matmul %330, %331, %cst_200 {dimension_numbers = #tpu.dot_dimension_numbers<[1], [0], [0], [1], [0, 0, 1, 1], [], []>} : vector<32x64xbf16>, vector<64x128xbf16>, vector<32x128xf32> -> vector<32x128xf32>
    %333 = arith.addf %328, %332 : vector<32x128xf32>
    %c115_i32_201 = arith.constant 115 : i32
    %334 = tpu.dynamic_rotate %300 by %c115_i32_201 dim 1 : vector<64x128xf32>, i32 -> vector<64x128xf32>
    %c1736 = arith.constant 1736 : index
    %c0_202 = arith.constant 0 : index
    %335 = vector.load %arg2[%c1736, %c0_202] : memref<2592x64xbf16, #tpu.memory_space<vmem>>, vector<32x64xbf16>
    %336 = arith.truncf %334 : vector<64x128xf32> to vector<64x128xbf16>
    %cst_203 = arith.constant dense<0.000000e+00> : vector<32x128xf32>
    %337 = tpu.matmul %335, %336, %cst_203 {dimension_numbers = #tpu.dot_dimension_numbers<[1], [0], [0], [1], [0, 0, 1, 1], [], []>} : vector<32x64xbf16>, vector<64x128xbf16>, vector<32x128xf32> -> vector<32x128xf32>
    %338 = arith.addf %333, %337 : vector<32x128xf32>
    %c114_i32_204 = arith.constant 114 : i32
    %339 = tpu.dynamic_rotate %300 by %c114_i32_204 dim 1 : vector<64x128xf32>, i32 -> vector<64x128xf32>
    %c1768 = arith.constant 1768 : index
    %c0_205 = arith.constant 0 : index
    %340 = vector.load %arg2[%c1768, %c0_205] : memref<2592x64xbf16, #tpu.memory_space<vmem>>, vector<32x64xbf16>
    %341 = arith.truncf %339 : vector<64x128xf32> to vector<64x128xbf16>
    %cst_206 = arith.constant dense<0.000000e+00> : vector<32x128xf32>
    %342 = tpu.matmul %340, %341, %cst_206 {dimension_numbers = #tpu.dot_dimension_numbers<[1], [0], [0], [1], [0, 0, 1, 1], [], []>} : vector<32x64xbf16>, vector<64x128xbf16>, vector<32x128xf32> -> vector<32x128xf32>
    %343 = arith.addf %338, %342 : vector<32x128xf32>
    %c168_207 = arith.constant 168 : index
    %c0_208 = arith.constant 0 : index
    %344 = vector.load %arg3[%c168_207, %c0_208] : memref<288x1xf32, #tpu.memory_space<vmem>>, vector<32x1xf32>
    %345 = vector.broadcast %344 : vector<32x1xf32> to vector<32x128xf32>
    %346 = arith.addf %343, %345 : vector<32x128xf32>
    %cst_209 = arith.constant 0.000000e+00 : f32
    %347 = vector.broadcast %cst_209 : f32 to vector<32x128xf32>
    %348 = arith.cmpf oge, %346, %347 : vector<32x128xf32>
    %cst_210 = arith.constant 2.000000e-01 : f32
    %349 = vector.broadcast %cst_210 : f32 to vector<32x128xf32>
    %350 = arith.mulf %349, %346 : vector<32x128xf32>
    %351 = arith.select %348, %346, %350 : vector<32x128xi1>, vector<32x128xf32>
    %352 = arith.truncf %351 : vector<32x128xf32> to vector<32x128xbf16>
    %c0_211 = arith.constant 0 : index
    %c0_212 = arith.constant 0 : index
    %353 = vector.load %arg10[%c0_211, %c0_212] : memref<128x128xbf16, #tpu.memory_space<vmem>>, vector<128x128xbf16>
    %cst_213 = arith.constant dense<0.000000e+00> : vector<32x128xf32>
    %354 = tpu.matmul %352, %353, %cst_213 {dimension_numbers = #tpu.dot_dimension_numbers<[1], [0], [0], [1], [0, 0, 1, 1], [], []>} : vector<32x128xbf16>, vector<128x128xbf16>, vector<32x128xf32> -> vector<32x128xf32>
    %c0_214 = arith.constant 0 : index
    %c0_215 = arith.constant 0 : index
    %355 = vector.load %arg16[%c0_214, %c0_215] : memref<40x128xf32, #tpu.memory_space<vmem>>, vector<32x128xf32>
    tpu.vector_store %arg16[%c0_214, %c0_215], %354 {strides = array<i32>} : memref<40x128xf32, #tpu.memory_space<vmem>>, vector<32x128xf32>,
    %c0_216 = arith.constant 0 : index
    %c0_217 = arith.constant 0 : index
    %356 = vector.load %arg16[%c0_216, %c0_217] : memref<40x128xf32, #tpu.memory_space<vmem>>, vector<40x128xf32>
    %c1800 = arith.constant 1800 : index
    %c0_218 = arith.constant 0 : index
    %357 = vector.load %arg2[%c1800, %c0_218] : memref<2592x64xbf16, #tpu.memory_space<vmem>>, vector<32x40xbf16>
    %358 = arith.truncf %356 : vector<40x128xf32> to vector<40x128xbf16>
    %cst_219 = arith.constant dense<0.000000e+00> : vector<32x128xf32>
    %359 = tpu.matmul %357, %358, %cst_219 {dimension_numbers = #tpu.dot_dimension_numbers<[1], [0], [0], [1], [0, 0, 1, 1], [], []>} : vector<32x40xbf16>, vector<40x128xbf16>, vector<32x128xf32> -> vector<32x128xf32>
    %c127_i32_220 = arith.constant 127 : i32
    %360 = tpu.dynamic_rotate %356 by %c127_i32_220 dim 1 : vector<40x128xf32>, i32 -> vector<40x128xf32>
    %c1832 = arith.constant 1832 : index
    %c0_221 = arith.constant 0 : index
    %361 = vector.load %arg2[%c1832, %c0_221] : memref<2592x64xbf16, #tpu.memory_space<vmem>>, vector<32x40xbf16>
    %362 = arith.truncf %360 : vector<40x128xf32> to vector<40x128xbf16>
    %cst_222 = arith.constant dense<0.000000e+00> : vector<32x128xf32>
    %363 = tpu.matmul %361, %362, %cst_222 {dimension_numbers = #tpu.dot_dimension_numbers<[1], [0], [0], [1], [0, 0, 1, 1], [], []>} : vector<32x40xbf16>, vector<40x128xbf16>, vector<32x128xf32> -> vector<32x128xf32>
    %364 = arith.addf %359, %363 : vector<32x128xf32>
    %c126_i32_223 = arith.constant 126 : i32
    %365 = tpu.dynamic_rotate %356 by %c126_i32_223 dim 1 : vector<40x128xf32>, i32 -> vector<40x128xf32>
    %c1864 = arith.constant 1864 : index
    %c0_224 = arith.constant 0 : index
    %366 = vector.load %arg2[%c1864, %c0_224] : memref<2592x64xbf16, #tpu.memory_space<vmem>>, vector<32x40xbf16>
    %367 = arith.truncf %365 : vector<40x128xf32> to vector<40x128xbf16>
    %cst_225 = arith.constant dense<0.000000e+00> : vector<32x128xf32>
    %368 = tpu.matmul %366, %367, %cst_225 {dimension_numbers = #tpu.dot_dimension_numbers<[1], [0], [0], [1], [0, 0, 1, 1], [], []>} : vector<32x40xbf16>, vector<40x128xbf16>, vector<32x128xf32> -> vector<32x128xf32>
    %369 = arith.addf %364, %368 : vector<32x128xf32>
    %c118_i32_226 = arith.constant 118 : i32
    %370 = tpu.dynamic_rotate %356 by %c118_i32_226 dim 1 : vector<40x128xf32>, i32 -> vector<40x128xf32>
    %c1896 = arith.constant 1896 : index
    %c0_227 = arith.constant 0 : index
    %371 = vector.load %arg2[%c1896, %c0_227] : memref<2592x64xbf16, #tpu.memory_space<vmem>>, vector<32x40xbf16>
    %372 = arith.truncf %370 : vector<40x128xf32> to vector<40x128xbf16>
    %cst_228 = arith.constant dense<0.000000e+00> : vector<32x128xf32>
    %373 = tpu.matmul %371, %372, %cst_228 {dimension_numbers = #tpu.dot_dimension_numbers<[1], [0], [0], [1], [0, 0, 1, 1], [], []>} : vector<32x40xbf16>, vector<40x128xbf16>, vector<32x128xf32> -> vector<32x128xf32>
    %374 = arith.addf %369, %373 : vector<32x128xf32>
    %c117_i32_229 = arith.constant 117 : i32
    %375 = tpu.dynamic_rotate %356 by %c117_i32_229 dim 1 : vector<40x128xf32>, i32 -> vector<40x128xf32>
    %c1928 = arith.constant 1928 : index
    %c0_230 = arith.constant 0 : index
    %376 = vector.load %arg2[%c1928, %c0_230] : memref<2592x64xbf16, #tpu.memory_space<vmem>>, vector<32x40xbf16>
    %377 = arith.truncf %375 : vector<40x128xf32> to vector<40x128xbf16>
    %cst_231 = arith.constant dense<0.000000e+00> : vector<32x128xf32>
    %378 = tpu.matmul %376, %377, %cst_231 {dimension_numbers = #tpu.dot_dimension_numbers<[1], [0], [0], [1], [0, 0, 1, 1], [], []>} : vector<32x40xbf16>, vector<40x128xbf16>, vector<32x128xf32> -> vector<32x128xf32>
    %379 = arith.addf %374, %378 : vector<32x128xf32>
    %c116_i32_232 = arith.constant 116 : i32
    %380 = tpu.dynamic_rotate %356 by %c116_i32_232 dim 1 : vector<40x128xf32>, i32 -> vector<40x128xf32>
    %c1960 = arith.constant 1960 : index
    %c0_233 = arith.constant 0 : index
    %381 = vector.load %arg2[%c1960, %c0_233] : memref<2592x64xbf16, #tpu.memory_space<vmem>>, vector<32x40xbf16>
    %382 = arith.truncf %380 : vector<40x128xf32> to vector<40x128xbf16>
    %cst_234 = arith.constant dense<0.000000e+00> : vector<32x128xf32>
    %383 = tpu.matmul %381, %382, %cst_234 {dimension_numbers = #tpu.dot_dimension_numbers<[1], [0], [0], [1], [0, 0, 1, 1], [], []>} : vector<32x40xbf16>, vector<40x128xbf16>, vector<32x128xf32> -> vector<32x128xf32>
    %384 = arith.addf %379, %383 : vector<32x128xf32>
    %c108_i32_235 = arith.constant 108 : i32
    %385 = tpu.dynamic_rotate %356 by %c108_i32_235 dim 1 : vector<40x128xf32>, i32 -> vector<40x128xf32>
    %c1992 = arith.constant 1992 : index
    %c0_236 = arith.constant 0 : index
    %386 = vector.load %arg2[%c1992, %c0_236] : memref<2592x64xbf16, #tpu.memory_space<vmem>>, vector<32x40xbf16>
    %387 = arith.truncf %385 : vector<40x128xf32> to vector<40x128xbf16>
    %cst_237 = arith.constant dense<0.000000e+00> : vector<32x128xf32>
    %388 = tpu.matmul %386, %387, %cst_237 {dimension_numbers = #tpu.dot_dimension_numbers<[1], [0], [0], [1], [0, 0, 1, 1], [], []>} : vector<32x40xbf16>, vector<40x128xbf16>, vector<32x128xf32> -> vector<32x128xf32>
    %389 = arith.addf %384, %388 : vector<32x128xf32>
    %c107_i32_238 = arith.constant 107 : i32
    %390 = tpu.dynamic_rotate %356 by %c107_i32_238 dim 1 : vector<40x128xf32>, i32 -> vector<40x128xf32>
    %c2024 = arith.constant 2024 : index
    %c0_239 = arith.constant 0 : index
    %391 = vector.load %arg2[%c2024, %c0_239] : memref<2592x64xbf16, #tpu.memory_space<vmem>>, vector<32x40xbf16>
    %392 = arith.truncf %390 : vector<40x128xf32> to vector<40x128xbf16>
    %cst_240 = arith.constant dense<0.000000e+00> : vector<32x128xf32>
    %393 = tpu.matmul %391, %392, %cst_240 {dimension_numbers = #tpu.dot_dimension_numbers<[1], [0], [0], [1], [0, 0, 1, 1], [], []>} : vector<32x40xbf16>, vector<40x128xbf16>, vector<32x128xf32> -> vector<32x128xf32>
    %394 = arith.addf %389, %393 : vector<32x128xf32>
    %c106_i32_241 = arith.constant 106 : i32
    %395 = tpu.dynamic_rotate %356 by %c106_i32_241 dim 1 : vector<40x128xf32>, i32 -> vector<40x128xf32>
    %c2056 = arith.constant 2056 : index
    %c0_242 = arith.constant 0 : index
    %396 = vector.load %arg2[%c2056, %c0_242] : memref<2592x64xbf16, #tpu.memory_space<vmem>>, vector<32x40xbf16>
    %397 = arith.truncf %395 : vector<40x128xf32> to vector<40x128xbf16>
    %cst_243 = arith.constant dense<0.000000e+00> : vector<32x128xf32>
    %398 = tpu.matmul %396, %397, %cst_243 {dimension_numbers = #tpu.dot_dimension_numbers<[1], [0], [0], [1], [0, 0, 1, 1], [], []>} : vector<32x40xbf16>, vector<40x128xbf16>, vector<32x128xf32> -> vector<32x128xf32>
    %399 = arith.addf %394, %398 : vector<32x128xf32>
    %c200_244 = arith.constant 200 : index
    %c0_245 = arith.constant 0 : index
    %400 = vector.load %arg3[%c200_244, %c0_245] : memref<288x1xf32, #tpu.memory_space<vmem>>, vector<32x1xf32>
    %401 = vector.broadcast %400 : vector<32x1xf32> to vector<32x128xf32>
    %402 = arith.addf %399, %401 : vector<32x128xf32>
    %cst_246 = arith.constant 0.000000e+00 : f32
    %403 = vector.broadcast %cst_246 : f32 to vector<32x128xf32>
    %404 = arith.cmpf oge, %402, %403 : vector<32x128xf32>
    %cst_247 = arith.constant 2.000000e-01 : f32
    %405 = vector.broadcast %cst_247 : f32 to vector<32x128xf32>
    %406 = arith.mulf %405, %402 : vector<32x128xf32>
    %407 = arith.select %404, %402, %406 : vector<32x128xi1>, vector<32x128xf32>
    %408 = arith.truncf %407 : vector<32x128xf32> to vector<32x128xbf16>
    %c0_248 = arith.constant 0 : index
    %c0_249 = arith.constant 0 : index
    %409 = vector.load %arg11[%c0_248, %c0_249] : memref<128x384xbf16, #tpu.memory_space<vmem>>, vector<128x384xbf16>
    %cst_250 = arith.constant dense<0.000000e+00> : vector<32x384xf32>
    %410 = tpu.matmul %408, %409, %cst_250 {dimension_numbers = #tpu.dot_dimension_numbers<[1], [0], [0], [1], [0, 0, 1, 1], [], []>} : vector<32x128xbf16>, vector<128x384xbf16>, vector<32x384xf32> -> vector<32x384xf32>
    %c0_251 = arith.constant 0 : index
    %c0_252 = arith.constant 0 : index
    %411 = vector.load %arg15[%c0_251, %c0_252] : memref<40x384xf32, #tpu.memory_space<vmem>>, vector<32x384xf32>
    tpu.vector_store %arg15[%c0_251, %c0_252], %410 {strides = array<i32>} : memref<40x384xf32, #tpu.memory_space<vmem>>, vector<32x384xf32>,
    %c0_253 = arith.constant 0 : index
    %c0_254 = arith.constant 0 : index
    %412 = vector.load %arg15[%c0_253, %c0_254] : memref<40x384xf32, #tpu.memory_space<vmem>>, vector<40x384xf32>
    %c2088 = arith.constant 2088 : index
    %c0_255 = arith.constant 0 : index
    %413 = vector.load %arg2[%c2088, %c0_255] : memref<2592x64xbf16, #tpu.memory_space<vmem>>, vector<32x40xbf16>
    %414 = arith.truncf %412 : vector<40x384xf32> to vector<40x384xbf16>
    %cst_256 = arith.constant dense<0.000000e+00> : vector<32x384xf32>
    %415 = tpu.matmul %413, %414, %cst_256 {dimension_numbers = #tpu.dot_dimension_numbers<[1], [0], [0], [1], [0, 0, 1, 1], [], []>} : vector<32x40xbf16>, vector<40x384xbf16>, vector<32x384xf32> -> vector<32x384xf32>
    %c383_i32_257 = arith.constant 383 : i32
    %416 = tpu.dynamic_rotate %412 by %c383_i32_257 dim 1 : vector<40x384xf32>, i32 -> vector<40x384xf32>
    %c2120 = arith.constant 2120 : index
    %c0_258 = arith.constant 0 : index
    %417 = vector.load %arg2[%c2120, %c0_258] : memref<2592x64xbf16, #tpu.memory_space<vmem>>, vector<32x40xbf16>
    %418 = arith.truncf %416 : vector<40x384xf32> to vector<40x384xbf16>
    %cst_259 = arith.constant dense<0.000000e+00> : vector<32x384xf32>
    %419 = tpu.matmul %417, %418, %cst_259 {dimension_numbers = #tpu.dot_dimension_numbers<[1], [0], [0], [1], [0, 0, 1, 1], [], []>} : vector<32x40xbf16>, vector<40x384xbf16>, vector<32x384xf32> -> vector<32x384xf32>
    %420 = arith.addf %415, %419 : vector<32x384xf32>
    %c382_i32_260 = arith.constant 382 : i32
    %421 = tpu.dynamic_rotate %412 by %c382_i32_260 dim 1 : vector<40x384xf32>, i32 -> vector<40x384xf32>
    %c2152 = arith.constant 2152 : index
    %c0_261 = arith.constant 0 : index
    %422 = vector.load %arg2[%c2152, %c0_261] : memref<2592x64xbf16, #tpu.memory_space<vmem>>, vector<32x40xbf16>
    %423 = arith.truncf %421 : vector<40x384xf32> to vector<40x384xbf16>
    %cst_262 = arith.constant dense<0.000000e+00> : vector<32x384xf32>
    %424 = tpu.matmul %422, %423, %cst_262 {dimension_numbers = #tpu.dot_dimension_numbers<[1], [0], [0], [1], [0, 0, 1, 1], [], []>} : vector<32x40xbf16>, vector<40x384xbf16>, vector<32x384xf32> -> vector<32x384xf32>
    %425 = arith.addf %420, %424 : vector<32x384xf32>
    %c366_i32_263 = arith.constant 366 : i32
    %426 = tpu.dynamic_rotate %412 by %c366_i32_263 dim 1 : vector<40x384xf32>, i32 -> vector<40x384xf32>
    %c2184 = arith.constant 2184 : index
    %c0_264 = arith.constant 0 : index
    %427 = vector.load %arg2[%c2184, %c0_264] : memref<2592x64xbf16, #tpu.memory_space<vmem>>, vector<32x40xbf16>
    %428 = arith.truncf %426 : vector<40x384xf32> to vector<40x384xbf16>
    %cst_265 = arith.constant dense<0.000000e+00> : vector<32x384xf32>
    %429 = tpu.matmul %427, %428, %cst_265 {dimension_numbers = #tpu.dot_dimension_numbers<[1], [0], [0], [1], [0, 0, 1, 1], [], []>} : vector<32x40xbf16>, vector<40x384xbf16>, vector<32x384xf32> -> vector<32x384xf32>
    %430 = arith.addf %425, %429 : vector<32x384xf32>
    %c365_i32_266 = arith.constant 365 : i32
    %431 = tpu.dynamic_rotate %412 by %c365_i32_266 dim 1 : vector<40x384xf32>, i32 -> vector<40x384xf32>
    %c2216 = arith.constant 2216 : index
    %c0_267 = arith.constant 0 : index
    %432 = vector.load %arg2[%c2216, %c0_267] : memref<2592x64xbf16, #tpu.memory_space<vmem>>, vector<32x40xbf16>
    %433 = arith.truncf %431 : vector<40x384xf32> to vector<40x384xbf16>
    %cst_268 = arith.constant dense<0.000000e+00> : vector<32x384xf32>
    %434 = tpu.matmul %432, %433, %cst_268 {dimension_numbers = #tpu.dot_dimension_numbers<[1], [0], [0], [1], [0, 0, 1, 1], [], []>} : vector<32x40xbf16>, vector<40x384xbf16>, vector<32x384xf32> -> vector<32x384xf32>
    %435 = arith.addf %430, %434 : vector<32x384xf32>
    %c364_i32_269 = arith.constant 364 : i32
    %436 = tpu.dynamic_rotate %412 by %c364_i32_269 dim 1 : vector<40x384xf32>, i32 -> vector<40x384xf32>
    %c2248 = arith.constant 2248 : index
    %c0_270 = arith.constant 0 : index
    %437 = vector.load %arg2[%c2248, %c0_270] : memref<2592x64xbf16, #tpu.memory_space<vmem>>, vector<32x40xbf16>
    %438 = arith.truncf %436 : vector<40x384xf32> to vector<40x384xbf16>
    %cst_271 = arith.constant dense<0.000000e+00> : vector<32x384xf32>
    %439 = tpu.matmul %437, %438, %cst_271 {dimension_numbers = #tpu.dot_dimension_numbers<[1], [0], [0], [1], [0, 0, 1, 1], [], []>} : vector<32x40xbf16>, vector<40x384xbf16>, vector<32x384xf32> -> vector<32x384xf32>
    %440 = arith.addf %435, %439 : vector<32x384xf32>
    %c348_i32_272 = arith.constant 348 : i32
    %441 = tpu.dynamic_rotate %412 by %c348_i32_272 dim 1 : vector<40x384xf32>, i32 -> vector<40x384xf32>
    %c2280 = arith.constant 2280 : index
    %c0_273 = arith.constant 0 : index
    %442 = vector.load %arg2[%c2280, %c0_273] : memref<2592x64xbf16, #tpu.memory_space<vmem>>, vector<32x40xbf16>
    %443 = arith.truncf %441 : vector<40x384xf32> to vector<40x384xbf16>
    %cst_274 = arith.constant dense<0.000000e+00> : vector<32x384xf32>
    %444 = tpu.matmul %442, %443, %cst_274 {dimension_numbers = #tpu.dot_dimension_numbers<[1], [0], [0], [1], [0, 0, 1, 1], [], []>} : vector<32x40xbf16>, vector<40x384xbf16>, vector<32x384xf32> -> vector<32x384xf32>
    %445 = arith.addf %440, %444 : vector<32x384xf32>
    %c347_i32_275 = arith.constant 347 : i32
    %446 = tpu.dynamic_rotate %412 by %c347_i32_275 dim 1 : vector<40x384xf32>, i32 -> vector<40x384xf32>
    %c2312 = arith.constant 2312 : index
    %c0_276 = arith.constant 0 : index
    %447 = vector.load %arg2[%c2312, %c0_276] : memref<2592x64xbf16, #tpu.memory_space<vmem>>, vector<32x40xbf16>
    %448 = arith.truncf %446 : vector<40x384xf32> to vector<40x384xbf16>
    %cst_277 = arith.constant dense<0.000000e+00> : vector<32x384xf32>
    %449 = tpu.matmul %447, %448, %cst_277 {dimension_numbers = #tpu.dot_dimension_numbers<[1], [0], [0], [1], [0, 0, 1, 1], [], []>} : vector<32x40xbf16>, vector<40x384xbf16>, vector<32x384xf32> -> vector<32x384xf32>
    %450 = arith.addf %445, %449 : vector<32x384xf32>
    %c346_i32_278 = arith.constant 346 : i32
    %451 = tpu.dynamic_rotate %412 by %c346_i32_278 dim 1 : vector<40x384xf32>, i32 -> vector<40x384xf32>
    %c2344 = arith.constant 2344 : index
    %c0_279 = arith.constant 0 : index
    %452 = vector.load %arg2[%c2344, %c0_279] : memref<2592x64xbf16, #tpu.memory_space<vmem>>, vector<32x40xbf16>
    %453 = arith.truncf %451 : vector<40x384xf32> to vector<40x384xbf16>
    %cst_280 = arith.constant dense<0.000000e+00> : vector<32x384xf32>
    %454 = tpu.matmul %452, %453, %cst_280 {dimension_numbers = #tpu.dot_dimension_numbers<[1], [0], [0], [1], [0, 0, 1, 1], [], []>} : vector<32x40xbf16>, vector<40x384xbf16>, vector<32x384xf32> -> vector<32x384xf32>
    %455 = arith.addf %450, %454 : vector<32x384xf32>
    %c232_281 = arith.constant 232 : index
    %c0_282 = arith.constant 0 : index
    %456 = vector.load %arg3[%c232_281, %c0_282] : memref<288x1xf32, #tpu.memory_space<vmem>>, vector<32x1xf32>
    %457 = vector.broadcast %456 : vector<32x1xf32> to vector<32x384xf32>
    %458 = arith.addf %455, %457 : vector<32x384xf32>
    %cst_283 = arith.constant 0.000000e+00 : f32
    %459 = vector.broadcast %cst_283 : f32 to vector<32x384xf32>
    %460 = arith.cmpf oge, %458, %459 : vector<32x384xf32>
    %cst_284 = arith.constant 2.000000e-01 : f32
    %461 = vector.broadcast %cst_284 : f32 to vector<32x384xf32>
    %462 = arith.mulf %461, %458 : vector<32x384xf32>
    %463 = arith.select %460, %458, %462 : vector<32x384xi1>, vector<32x384xf32>
    %464 = arith.truncf %463 : vector<32x384xf32> to vector<32x384xbf16>
    %c0_285 = arith.constant 0 : index
    %c0_286 = arith.constant 0 : index
    %465 = vector.load %arg12[%c0_285, %c0_286] : memref<384x384xbf16, #tpu.memory_space<vmem>>, vector<384x384xbf16>
    %cst_287 = arith.constant dense<0.000000e+00> : vector<32x384xf32>
    %466 = tpu.matmul %464, %465, %cst_287 {dimension_numbers = #tpu.dot_dimension_numbers<[1], [0], [0], [1], [0, 0, 1, 1], [], []>} : vector<32x384xbf16>, vector<384x384xbf16>, vector<32x384xf32> -> vector<32x384xf32>
    %c0_288 = arith.constant 0 : index
    %c0_289 = arith.constant 0 : index
    %467 = vector.load %arg20[%c0_288, %c0_289] : memref<32x384xf32, #tpu.memory_space<vmem>>, vector<32x384xf32>
    tpu.vector_store %arg20[%c0_288, %c0_289], %466 {strides = array<i32>} : memref<32x384xf32, #tpu.memory_space<vmem>>, vector<32x384xf32>,
    %c0_290 = arith.constant 0 : index
    %c0_291 = arith.constant 0 : index
    %468 = vector.load %arg20[%c0_290, %c0_291] : memref<32x384xf32, #tpu.memory_space<vmem>>, vector<32x384xf32>
    %c2376 = arith.constant 2376 : index
    %c0_292 = arith.constant 0 : index
    %469 = vector.load %arg2[%c2376, %c0_292] : memref<2592x64xbf16, #tpu.memory_space<vmem>>, vector<8x32xbf16>
    %470 = arith.truncf %468 : vector<32x384xf32> to vector<32x384xbf16>
    %cst_293 = arith.constant dense<0.000000e+00> : vector<8x384xf32>
    %471 = tpu.matmul %469, %470, %cst_293 {dimension_numbers = #tpu.dot_dimension_numbers<[1], [0], [0], [1], [0, 0, 1, 1], [], []>} : vector<8x32xbf16>, vector<32x384xbf16>, vector<8x384xf32> -> vector<8x384xf32>
    %c383_i32_294 = arith.constant 383 : i32
    %472 = tpu.dynamic_rotate %468 by %c383_i32_294 dim 1 : vector<32x384xf32>, i32 -> vector<32x384xf32>
    %c2384 = arith.constant 2384 : index
    %c0_295 = arith.constant 0 : index
    %473 = vector.load %arg2[%c2384, %c0_295] : memref<2592x64xbf16, #tpu.memory_space<vmem>>, vector<8x32xbf16>
    %474 = arith.truncf %472 : vector<32x384xf32> to vector<32x384xbf16>
    %cst_296 = arith.constant dense<0.000000e+00> : vector<8x384xf32>
    %475 = tpu.matmul %473, %474, %cst_296 {dimension_numbers = #tpu.dot_dimension_numbers<[1], [0], [0], [1], [0, 0, 1, 1], [], []>} : vector<8x32xbf16>, vector<32x384xbf16>, vector<8x384xf32> -> vector<8x384xf32>
    %476 = arith.addf %471, %475 : vector<8x384xf32>
    %c382_i32_297 = arith.constant 382 : i32
    %477 = tpu.dynamic_rotate %468 by %c382_i32_297 dim 1 : vector<32x384xf32>, i32 -> vector<32x384xf32>
    %c2392 = arith.constant 2392 : index
    %c0_298 = arith.constant 0 : index
    %478 = vector.load %arg2[%c2392, %c0_298] : memref<2592x64xbf16, #tpu.memory_space<vmem>>, vector<8x32xbf16>
    %479 = arith.truncf %477 : vector<32x384xf32> to vector<32x384xbf16>
    %cst_299 = arith.constant dense<0.000000e+00> : vector<8x384xf32>
    %480 = tpu.matmul %478, %479, %cst_299 {dimension_numbers = #tpu.dot_dimension_numbers<[1], [0], [0], [1], [0, 0, 1, 1], [], []>} : vector<8x32xbf16>, vector<32x384xbf16>, vector<8x384xf32> -> vector<8x384xf32>
    %481 = arith.addf %476, %480 : vector<8x384xf32>
    %c366_i32_300 = arith.constant 366 : i32
    %482 = tpu.dynamic_rotate %468 by %c366_i32_300 dim 1 : vector<32x384xf32>, i32 -> vector<32x384xf32>
    %c2400 = arith.constant 2400 : index
    %c0_301 = arith.constant 0 : index
    %483 = vector.load %arg2[%c2400, %c0_301] : memref<2592x64xbf16, #tpu.memory_space<vmem>>, vector<8x32xbf16>
    %484 = arith.truncf %482 : vector<32x384xf32> to vector<32x384xbf16>
    %cst_302 = arith.constant dense<0.000000e+00> : vector<8x384xf32>
    %485 = tpu.matmul %483, %484, %cst_302 {dimension_numbers = #tpu.dot_dimension_numbers<[1], [0], [0], [1], [0, 0, 1, 1], [], []>} : vector<8x32xbf16>, vector<32x384xbf16>, vector<8x384xf32> -> vector<8x384xf32>
    %486 = arith.addf %481, %485 : vector<8x384xf32>
    %c365_i32_303 = arith.constant 365 : i32
    %487 = tpu.dynamic_rotate %468 by %c365_i32_303 dim 1 : vector<32x384xf32>, i32 -> vector<32x384xf32>
    %c2408 = arith.constant 2408 : index
    %c0_304 = arith.constant 0 : index
    %488 = vector.load %arg2[%c2408, %c0_304] : memref<2592x64xbf16, #tpu.memory_space<vmem>>, vector<8x32xbf16>
    %489 = arith.truncf %487 : vector<32x384xf32> to vector<32x384xbf16>
    %cst_305 = arith.constant dense<0.000000e+00> : vector<8x384xf32>
    %490 = tpu.matmul %488, %489, %cst_305 {dimension_numbers = #tpu.dot_dimension_numbers<[1], [0], [0], [1], [0, 0, 1, 1], [], []>} : vector<8x32xbf16>, vector<32x384xbf16>, vector<8x384xf32> -> vector<8x384xf32>
    %491 = arith.addf %486, %490 : vector<8x384xf32>
    %c364_i32_306 = arith.constant 364 : i32
    %492 = tpu.dynamic_rotate %468 by %c364_i32_306 dim 1 : vector<32x384xf32>, i32 -> vector<32x384xf32>
    %c2416 = arith.constant 2416 : index
    %c0_307 = arith.constant 0 : index
    %493 = vector.load %arg2[%c2416, %c0_307] : memref<2592x64xbf16, #tpu.memory_space<vmem>>, vector<8x32xbf16>
    %494 = arith.truncf %492 : vector<32x384xf32> to vector<32x384xbf16>
    %cst_308 = arith.constant dense<0.000000e+00> : vector<8x384xf32>
    %495 = tpu.matmul %493, %494, %cst_308 {dimension_numbers = #tpu.dot_dimension_numbers<[1], [0], [0], [1], [0, 0, 1, 1], [], []>} : vector<8x32xbf16>, vector<32x384xbf16>, vector<8x384xf32> -> vector<8x384xf32>
    %496 = arith.addf %491, %495 : vector<8x384xf32>
    %c348_i32_309 = arith.constant 348 : i32
    %497 = tpu.dynamic_rotate %468 by %c348_i32_309 dim 1 : vector<32x384xf32>, i32 -> vector<32x384xf32>
    %c2424 = arith.constant 2424 : index
    %c0_310 = arith.constant 0 : index
    %498 = vector.load %arg2[%c2424, %c0_310] : memref<2592x64xbf16, #tpu.memory_space<vmem>>, vector<8x32xbf16>
    %499 = arith.truncf %497 : vector<32x384xf32> to vector<32x384xbf16>
    %cst_311 = arith.constant dense<0.000000e+00> : vector<8x384xf32>
    %500 = tpu.matmul %498, %499, %cst_311 {dimension_numbers = #tpu.dot_dimension_numbers<[1], [0], [0], [1], [0, 0, 1, 1], [], []>} : vector<8x32xbf16>, vector<32x384xbf16>, vector<8x384xf32> -> vector<8x384xf32>
    %501 = arith.addf %496, %500 : vector<8x384xf32>
    %c347_i32_312 = arith.constant 347 : i32
    %502 = tpu.dynamic_rotate %468 by %c347_i32_312 dim 1 : vector<32x384xf32>, i32 -> vector<32x384xf32>
    %c2432 = arith.constant 2432 : index
    %c0_313 = arith.constant 0 : index
    %503 = vector.load %arg2[%c2432, %c0_313] : memref<2592x64xbf16, #tpu.memory_space<vmem>>, vector<8x32xbf16>
    %504 = arith.truncf %502 : vector<32x384xf32> to vector<32x384xbf16>
    %cst_314 = arith.constant dense<0.000000e+00> : vector<8x384xf32>
    %505 = tpu.matmul %503, %504, %cst_314 {dimension_numbers = #tpu.dot_dimension_numbers<[1], [0], [0], [1], [0, 0, 1, 1], [], []>} : vector<8x32xbf16>, vector<32x384xbf16>, vector<8x384xf32> -> vector<8x384xf32>
    %506 = arith.addf %501, %505 : vector<8x384xf32>
    %c346_i32_315 = arith.constant 346 : i32
    %507 = tpu.dynamic_rotate %468 by %c346_i32_315 dim 1 : vector<32x384xf32>, i32 -> vector<32x384xf32>
    %c2440 = arith.constant 2440 : index
    %c0_316 = arith.constant 0 : index
    %508 = vector.load %arg2[%c2440, %c0_316] : memref<2592x64xbf16, #tpu.memory_space<vmem>>, vector<8x32xbf16>
    %509 = arith.truncf %507 : vector<32x384xf32> to vector<32x384xbf16>
    %cst_317 = arith.constant dense<0.000000e+00> : vector<8x384xf32>
    %510 = tpu.matmul %508, %509, %cst_317 {dimension_numbers = #tpu.dot_dimension_numbers<[1], [0], [0], [1], [0, 0, 1, 1], [], []>} : vector<8x32xbf16>, vector<32x384xbf16>, vector<8x384xf32> -> vector<8x384xf32>
    %511 = arith.addf %506, %510 : vector<8x384xf32>
    %c264_318 = arith.constant 264 : index
    %c0_319 = arith.constant 0 : index
    %512 = vector.load %arg3[%c264_318, %c0_319] : memref<288x1xf32, #tpu.memory_space<vmem>>, vector<8x1xf32>
    %513 = vector.broadcast %512 : vector<8x1xf32> to vector<8x384xf32>
    %514 = arith.addf %511, %513 : vector<8x384xf32>
    %cst_320 = arith.constant 0.000000e+00 : f32
    %515 = vector.broadcast %cst_320 : f32 to vector<8x384xf32>
    %516 = arith.cmpf oge, %514, %515 : vector<8x384xf32>
    %cst_321 = arith.constant 2.000000e-01 : f32
    %517 = vector.broadcast %cst_321 : f32 to vector<8x384xf32>
    %518 = arith.mulf %517, %514 : vector<8x384xf32>
    %519 = arith.select %516, %514, %518 : vector<8x384xi1>, vector<8x384xf32>
    %520 = arith.truncf %519 : vector<8x384xf32> to vector<8x384xbf16>
    %c0_322 = arith.constant 0 : index
    %c0_323 = arith.constant 0 : index
    %521 = vector.load %arg12[%c0_322, %c0_323] : memref<384x384xbf16, #tpu.memory_space<vmem>>, vector<384x384xbf16>
    %cst_324 = arith.constant dense<0.000000e+00> : vector<8x384xf32>
    %522 = tpu.matmul %520, %521, %cst_324 {dimension_numbers = #tpu.dot_dimension_numbers<[1], [0], [0], [1], [0, 0, 1, 1], [], []>} : vector<8x384xbf16>, vector<384x384xbf16>, vector<8x384xf32> -> vector<8x384xf32>
    %c0_325 = arith.constant 0 : index
    %c0_326 = arith.constant 0 : index
    %523 = vector.load %arg21[%c0_325, %c0_326] : memref<8x384xf32, #tpu.memory_space<vmem>>, vector<8x384xf32>
    tpu.vector_store %arg21[%c0_325, %c0_326], %522 {strides = array<i32>} : memref<8x384xf32, #tpu.memory_space<vmem>>, vector<8x384xf32>,
    %c0_327 = arith.constant 0 : index
    %c0_328 = arith.constant 0 : index
    %524 = vector.load %arg21[%c0_327, %c0_328] : memref<8x384xf32, #tpu.memory_space<vmem>>, vector<8x384xf32>
    %c2448 = arith.constant 2448 : index
    %c0_329 = arith.constant 0 : index
    %525 = vector.load %arg2[%c2448, %c0_329] : memref<2592x64xbf16, #tpu.memory_space<vmem>>, vector<8x8xbf16>
    %526 = arith.truncf %524 : vector<8x384xf32> to vector<8x384xbf16>
    %cst_330 = arith.constant dense<0.000000e+00> : vector<8x384xf32>
    %527 = tpu.matmul %525, %526, %cst_330 {dimension_numbers = #tpu.dot_dimension_numbers<[1], [0], [0], [1], [0, 0, 1, 1], [], []>} : vector<8x8xbf16>, vector<8x384xbf16>, vector<8x384xf32> -> vector<8x384xf32>
    %c383_i32_331 = arith.constant 383 : i32
    %528 = tpu.dynamic_rotate %524 by %c383_i32_331 dim 1 : vector<8x384xf32>, i32 -> vector<8x384xf32>
    %c2456 = arith.constant 2456 : index
    %c0_332 = arith.constant 0 : index
    %529 = vector.load %arg2[%c2456, %c0_332] : memref<2592x64xbf16, #tpu.memory_space<vmem>>, vector<8x8xbf16>
    %530 = arith.truncf %528 : vector<8x384xf32> to vector<8x384xbf16>
    %cst_333 = arith.constant dense<0.000000e+00> : vector<8x384xf32>
    %531 = tpu.matmul %529, %530, %cst_333 {dimension_numbers = #tpu.dot_dimension_numbers<[1], [0], [0], [1], [0, 0, 1, 1], [], []>} : vector<8x8xbf16>, vector<8x384xbf16>, vector<8x384xf32> -> vector<8x384xf32>
    %532 = arith.addf %527, %531 : vector<8x384xf32>
    %c382_i32_334 = arith.constant 382 : i32
    %533 = tpu.dynamic_rotate %524 by %c382_i32_334 dim 1 : vector<8x384xf32>, i32 -> vector<8x384xf32>
    %c2464 = arith.constant 2464 : index
    %c0_335 = arith.constant 0 : index
    %534 = vector.load %arg2[%c2464, %c0_335] : memref<2592x64xbf16, #tpu.memory_space<vmem>>, vector<8x8xbf16>
    %535 = arith.truncf %533 : vector<8x384xf32> to vector<8x384xbf16>
    %cst_336 = arith.constant dense<0.000000e+00> : vector<8x384xf32>
    %536 = tpu.matmul %534, %535, %cst_336 {dimension_numbers = #tpu.dot_dimension_numbers<[1], [0], [0], [1], [0, 0, 1, 1], [], []>} : vector<8x8xbf16>, vector<8x384xbf16>, vector<8x384xf32> -> vector<8x384xf32>
    %537 = arith.addf %532, %536 : vector<8x384xf32>
    %c366_i32_337 = arith.constant 366 : i32
    %538 = tpu.dynamic_rotate %524 by %c366_i32_337 dim 1 : vector<8x384xf32>, i32 -> vector<8x384xf32>
    %c2472 = arith.constant 2472 : index
    %c0_338 = arith.constant 0 : index
    %539 = vector.load %arg2[%c2472, %c0_338] : memref<2592x64xbf16, #tpu.memory_space<vmem>>, vector<8x8xbf16>
    %540 = arith.truncf %538 : vector<8x384xf32> to vector<8x384xbf16>
    %cst_339 = arith.constant dense<0.000000e+00> : vector<8x384xf32>
    %541 = tpu.matmul %539, %540, %cst_339 {dimension_numbers = #tpu.dot_dimension_numbers<[1], [0], [0], [1], [0, 0, 1, 1], [], []>} : vector<8x8xbf16>, vector<8x384xbf16>, vector<8x384xf32> -> vector<8x384xf32>
    %542 = arith.addf %537, %541 : vector<8x384xf32>
    %c365_i32_340 = arith.constant 365 : i32
    %543 = tpu.dynamic_rotate %524 by %c365_i32_340 dim 1 : vector<8x384xf32>, i32 -> vector<8x384xf32>
    %c2480 = arith.constant 2480 : index
    %c0_341 = arith.constant 0 : index
    %544 = vector.load %arg2[%c2480, %c0_341] : memref<2592x64xbf16, #tpu.memory_space<vmem>>, vector<8x8xbf16>
    %545 = arith.truncf %543 : vector<8x384xf32> to vector<8x384xbf16>
    %cst_342 = arith.constant dense<0.000000e+00> : vector<8x384xf32>
    %546 = tpu.matmul %544, %545, %cst_342 {dimension_numbers = #tpu.dot_dimension_numbers<[1], [0], [0], [1], [0, 0, 1, 1], [], []>} : vector<8x8xbf16>, vector<8x384xbf16>, vector<8x384xf32> -> vector<8x384xf32>
    %547 = arith.addf %542, %546 : vector<8x384xf32>
    %c364_i32_343 = arith.constant 364 : i32
    %548 = tpu.dynamic_rotate %524 by %c364_i32_343 dim 1 : vector<8x384xf32>, i32 -> vector<8x384xf32>
    %c2488 = arith.constant 2488 : index
    %c0_344 = arith.constant 0 : index
    %549 = vector.load %arg2[%c2488, %c0_344] : memref<2592x64xbf16, #tpu.memory_space<vmem>>, vector<8x8xbf16>
    %550 = arith.truncf %548 : vector<8x384xf32> to vector<8x384xbf16>
    %cst_345 = arith.constant dense<0.000000e+00> : vector<8x384xf32>
    %551 = tpu.matmul %549, %550, %cst_345 {dimension_numbers = #tpu.dot_dimension_numbers<[1], [0], [0], [1], [0, 0, 1, 1], [], []>} : vector<8x8xbf16>, vector<8x384xbf16>, vector<8x384xf32> -> vector<8x384xf32>
    %552 = arith.addf %547, %551 : vector<8x384xf32>
    %c348_i32_346 = arith.constant 348 : i32
    %553 = tpu.dynamic_rotate %524 by %c348_i32_346 dim 1 : vector<8x384xf32>, i32 -> vector<8x384xf32>
    %c2496 = arith.constant 2496 : index
    %c0_347 = arith.constant 0 : index
    %554 = vector.load %arg2[%c2496, %c0_347] : memref<2592x64xbf16, #tpu.memory_space<vmem>>, vector<8x8xbf16>
    %555 = arith.truncf %553 : vector<8x384xf32> to vector<8x384xbf16>
    %cst_348 = arith.constant dense<0.000000e+00> : vector<8x384xf32>
    %556 = tpu.matmul %554, %555, %cst_348 {dimension_numbers = #tpu.dot_dimension_numbers<[1], [0], [0], [1], [0, 0, 1, 1], [], []>} : vector<8x8xbf16>, vector<8x384xbf16>, vector<8x384xf32> -> vector<8x384xf32>
    %557 = arith.addf %552, %556 : vector<8x384xf32>
    %c347_i32_349 = arith.constant 347 : i32
    %558 = tpu.dynamic_rotate %524 by %c347_i32_349 dim 1 : vector<8x384xf32>, i32 -> vector<8x384xf32>
    %c2504 = arith.constant 2504 : index
    %c0_350 = arith.constant 0 : index
    %559 = vector.load %arg2[%c2504, %c0_350] : memref<2592x64xbf16, #tpu.memory_space<vmem>>, vector<8x8xbf16>
    %560 = arith.truncf %558 : vector<8x384xf32> to vector<8x384xbf16>
    %cst_351 = arith.constant dense<0.000000e+00> : vector<8x384xf32>
    %561 = tpu.matmul %559, %560, %cst_351 {dimension_numbers = #tpu.dot_dimension_numbers<[1], [0], [0], [1], [0, 0, 1, 1], [], []>} : vector<8x8xbf16>, vector<8x384xbf16>, vector<8x384xf32> -> vector<8x384xf32>
    %562 = arith.addf %557, %561 : vector<8x384xf32>
    %c346_i32_352 = arith.constant 346 : i32
    %563 = tpu.dynamic_rotate %524 by %c346_i32_352 dim 1 : vector<8x384xf32>, i32 -> vector<8x384xf32>
    %c2512 = arith.constant 2512 : index
    %c0_353 = arith.constant 0 : index
    %564 = vector.load %arg2[%c2512, %c0_353] : memref<2592x64xbf16, #tpu.memory_space<vmem>>, vector<8x8xbf16>
    %565 = arith.truncf %563 : vector<8x384xf32> to vector<8x384xbf16>
    %cst_354 = arith.constant dense<0.000000e+00> : vector<8x384xf32>
    %566 = tpu.matmul %564, %565, %cst_354 {dimension_numbers = #tpu.dot_dimension_numbers<[1], [0], [0], [1], [0, 0, 1, 1], [], []>} : vector<8x8xbf16>, vector<8x384xbf16>, vector<8x384xf32> -> vector<8x384xf32>
    %567 = arith.addf %562, %566 : vector<8x384xf32>
    %c272 = arith.constant 272 : index
    %c0_355 = arith.constant 0 : index
    %568 = vector.load %arg3[%c272, %c0_355] : memref<288x1xf32, #tpu.memory_space<vmem>>, vector<8x1xf32>
    %569 = vector.broadcast %568 : vector<8x1xf32> to vector<8x384xf32>
    %570 = arith.addf %567, %569 : vector<8x384xf32>
    %cst_356 = arith.constant 0.000000e+00 : f32
    %571 = vector.broadcast %cst_356 : f32 to vector<8x384xf32>
    %572 = arith.cmpf oge, %570, %571 : vector<8x384xf32>
    %cst_357 = arith.constant 2.000000e-01 : f32
    %573 = vector.broadcast %cst_357 : f32 to vector<8x384xf32>
    %574 = arith.mulf %573, %570 : vector<8x384xf32>
    %575 = arith.select %572, %570, %574 : vector<8x384xi1>, vector<8x384xf32>
    %576 = arith.truncf %575 : vector<8x384xf32> to vector<8x384xbf16>
    %c0_358 = arith.constant 0 : index
    %c0_359 = arith.constant 0 : index
    %577 = vector.load %arg12[%c0_358, %c0_359] : memref<384x384xbf16, #tpu.memory_space<vmem>>, vector<384x384xbf16>
    %cst_360 = arith.constant dense<0.000000e+00> : vector<8x384xf32>
    %578 = tpu.matmul %576, %577, %cst_360 {dimension_numbers = #tpu.dot_dimension_numbers<[1], [0], [0], [1], [0, 0, 1, 1], [], []>} : vector<8x384xbf16>, vector<384x384xbf16>, vector<8x384xf32> -> vector<8x384xf32>
    %c0_361 = arith.constant 0 : index
    %c0_362 = arith.constant 0 : index
    %579 = vector.load %arg22[%c0_361, %c0_362] : memref<8x384xf32, #tpu.memory_space<vmem>>, vector<8x384xf32>
    tpu.vector_store %arg22[%c0_361, %c0_362], %578 {strides = array<i32>} : memref<8x384xf32, #tpu.memory_space<vmem>>, vector<8x384xf32>,
    %c0_363 = arith.constant 0 : index
    %c0_364 = arith.constant 0 : index
    %580 = vector.load %arg22[%c0_363, %c0_364] : memref<8x384xf32, #tpu.memory_space<vmem>>, vector<8x384xf32>
    %c2520 = arith.constant 2520 : index
    %c0_365 = arith.constant 0 : index
    %581 = vector.load %arg2[%c2520, %c0_365] : memref<2592x64xbf16, #tpu.memory_space<vmem>>, vector<2x8xbf16>
    %582 = arith.truncf %580 : vector<8x384xf32> to vector<8x384xbf16>
    %cst_366 = arith.constant dense<0.000000e+00> : vector<2x384xf32>
    %583 = tpu.matmul %581, %582, %cst_366 {dimension_numbers = #tpu.dot_dimension_numbers<[1], [0], [0], [1], [0, 0, 1, 1], [], []>} : vector<2x8xbf16>, vector<8x384xbf16>, vector<2x384xf32> -> vector<2x384xf32>
    %c383_i32_367 = arith.constant 383 : i32
    %584 = tpu.dynamic_rotate %580 by %c383_i32_367 dim 1 : vector<8x384xf32>, i32 -> vector<8x384xf32>
    %c2528 = arith.constant 2528 : index
    %c0_368 = arith.constant 0 : index
    %585 = vector.load %arg2[%c2528, %c0_368] : memref<2592x64xbf16, #tpu.memory_space<vmem>>, vector<2x8xbf16>
    %586 = arith.truncf %584 : vector<8x384xf32> to vector<8x384xbf16>
    %cst_369 = arith.constant dense<0.000000e+00> : vector<2x384xf32>
    %587 = tpu.matmul %585, %586, %cst_369 {dimension_numbers = #tpu.dot_dimension_numbers<[1], [0], [0], [1], [0, 0, 1, 1], [], []>} : vector<2x8xbf16>, vector<8x384xbf16>, vector<2x384xf32> -> vector<2x384xf32>
    %588 = arith.addf %583, %587 : vector<2x384xf32>
    %c382_i32_370 = arith.constant 382 : i32
    %589 = tpu.dynamic_rotate %580 by %c382_i32_370 dim 1 : vector<8x384xf32>, i32 -> vector<8x384xf32>
    %c2536 = arith.constant 2536 : index
    %c0_371 = arith.constant 0 : index
    %590 = vector.load %arg2[%c2536, %c0_371] : memref<2592x64xbf16, #tpu.memory_space<vmem>>, vector<2x8xbf16>
    %591 = arith.truncf %589 : vector<8x384xf32> to vector<8x384xbf16>
    %cst_372 = arith.constant dense<0.000000e+00> : vector<2x384xf32>
    %592 = tpu.matmul %590, %591, %cst_372 {dimension_numbers = #tpu.dot_dimension_numbers<[1], [0], [0], [1], [0, 0, 1, 1], [], []>} : vector<2x8xbf16>, vector<8x384xbf16>, vector<2x384xf32> -> vector<2x384xf32>
    %593 = arith.addf %588, %592 : vector<2x384xf32>
    %c366_i32_373 = arith.constant 366 : i32
    %594 = tpu.dynamic_rotate %580 by %c366_i32_373 dim 1 : vector<8x384xf32>, i32 -> vector<8x384xf32>
    %c2544 = arith.constant 2544 : index
    %c0_374 = arith.constant 0 : index
    %595 = vector.load %arg2[%c2544, %c0_374] : memref<2592x64xbf16, #tpu.memory_space<vmem>>, vector<2x8xbf16>
    %596 = arith.truncf %594 : vector<8x384xf32> to vector<8x384xbf16>
    %cst_375 = arith.constant dense<0.000000e+00> : vector<2x384xf32>
    %597 = tpu.matmul %595, %596, %cst_375 {dimension_numbers = #tpu.dot_dimension_numbers<[1], [0], [0], [1], [0, 0, 1, 1], [], []>} : vector<2x8xbf16>, vector<8x384xbf16>, vector<2x384xf32> -> vector<2x384xf32>
    %598 = arith.addf %593, %597 : vector<2x384xf32>
    %c365_i32_376 = arith.constant 365 : i32
    %599 = tpu.dynamic_rotate %580 by %c365_i32_376 dim 1 : vector<8x384xf32>, i32 -> vector<8x384xf32>
    %c2552 = arith.constant 2552 : index
    %c0_377 = arith.constant 0 : index
    %600 = vector.load %arg2[%c2552, %c0_377] : memref<2592x64xbf16, #tpu.memory_space<vmem>>, vector<2x8xbf16>
    %601 = arith.truncf %599 : vector<8x384xf32> to vector<8x384xbf16>
    %cst_378 = arith.constant dense<0.000000e+00> : vector<2x384xf32>
    %602 = tpu.matmul %600, %601, %cst_378 {dimension_numbers = #tpu.dot_dimension_numbers<[1], [0], [0], [1], [0, 0, 1, 1], [], []>} : vector<2x8xbf16>, vector<8x384xbf16>, vector<2x384xf32> -> vector<2x384xf32>
    %603 = arith.addf %598, %602 : vector<2x384xf32>
    %c364_i32_379 = arith.constant 364 : i32
    %604 = tpu.dynamic_rotate %580 by %c364_i32_379 dim 1 : vector<8x384xf32>, i32 -> vector<8x384xf32>
    %c2560 = arith.constant 2560 : index
    %c0_380 = arith.constant 0 : index
    %605 = vector.load %arg2[%c2560, %c0_380] : memref<2592x64xbf16, #tpu.memory_space<vmem>>, vector<2x8xbf16>
    %606 = arith.truncf %604 : vector<8x384xf32> to vector<8x384xbf16>
    %cst_381 = arith.constant dense<0.000000e+00> : vector<2x384xf32>
    %607 = tpu.matmul %605, %606, %cst_381 {dimension_numbers = #tpu.dot_dimension_numbers<[1], [0], [0], [1], [0, 0, 1, 1], [], []>} : vector<2x8xbf16>, vector<8x384xbf16>, vector<2x384xf32> -> vector<2x384xf32>
    %608 = arith.addf %603, %607 : vector<2x384xf32>
    %c348_i32_382 = arith.constant 348 : i32
    %609 = tpu.dynamic_rotate %580 by %c348_i32_382 dim 1 : vector<8x384xf32>, i32 -> vector<8x384xf32>
    %c2568 = arith.constant 2568 : index
    %c0_383 = arith.constant 0 : index
    %610 = vector.load %arg2[%c2568, %c0_383] : memref<2592x64xbf16, #tpu.memory_space<vmem>>, vector<2x8xbf16>
    %611 = arith.truncf %609 : vector<8x384xf32> to vector<8x384xbf16>
    %cst_384 = arith.constant dense<0.000000e+00> : vector<2x384xf32>
    %612 = tpu.matmul %610, %611, %cst_384 {dimension_numbers = #tpu.dot_dimension_numbers<[1], [0], [0], [1], [0, 0, 1, 1], [], []>} : vector<2x8xbf16>, vector<8x384xbf16>, vector<2x384xf32> -> vector<2x384xf32>
    %613 = arith.addf %608, %612 : vector<2x384xf32>
    %c347_i32_385 = arith.constant 347 : i32
    %614 = tpu.dynamic_rotate %580 by %c347_i32_385 dim 1 : vector<8x384xf32>, i32 -> vector<8x384xf32>
    %c2576 = arith.constant 2576 : index
    %c0_386 = arith.constant 0 : index
    %615 = vector.load %arg2[%c2576, %c0_386] : memref<2592x64xbf16, #tpu.memory_space<vmem>>, vector<2x8xbf16>
    %616 = arith.truncf %614 : vector<8x384xf32> to vector<8x384xbf16>
    %cst_387 = arith.constant dense<0.000000e+00> : vector<2x384xf32>
    %617 = tpu.matmul %615, %616, %cst_387 {dimension_numbers = #tpu.dot_dimension_numbers<[1], [0], [0], [1], [0, 0, 1, 1], [], []>} : vector<2x8xbf16>, vector<8x384xbf16>, vector<2x384xf32> -> vector<2x384xf32>
    %618 = arith.addf %613, %617 : vector<2x384xf32>
    %c346_i32_388 = arith.constant 346 : i32
    %619 = tpu.dynamic_rotate %580 by %c346_i32_388 dim 1 : vector<8x384xf32>, i32 -> vector<8x384xf32>
    %c2584 = arith.constant 2584 : index
    %c0_389 = arith.constant 0 : index
    %620 = vector.load %arg2[%c2584, %c0_389] : memref<2592x64xbf16, #tpu.memory_space<vmem>>, vector<2x8xbf16>
    %621 = arith.truncf %619 : vector<8x384xf32> to vector<8x384xbf16>
    %cst_390 = arith.constant dense<0.000000e+00> : vector<2x384xf32>
    %622 = tpu.matmul %620, %621, %cst_390 {dimension_numbers = #tpu.dot_dimension_numbers<[1], [0], [0], [1], [0, 0, 1, 1], [], []>} : vector<2x8xbf16>, vector<8x384xbf16>, vector<2x384xf32> -> vector<2x384xf32>
    %623 = arith.addf %618, %622 : vector<2x384xf32>
    %c280 = arith.constant 280 : index
    %c0_391 = arith.constant 0 : index
    %624 = vector.load %arg3[%c280, %c0_391] : memref<288x1xf32, #tpu.memory_space<vmem>>, vector<2x1xf32>
    %625 = vector.broadcast %624 : vector<2x1xf32> to vector<2x384xf32>
    %626 = arith.addf %623, %625 : vector<2x384xf32>
    %c0_392 = arith.constant 0 : index
    %c0_393 = arith.constant 0 : index
    %627 = vector.load %arg13[%c0_392, %c0_393] : memref<384x256xf32, #tpu.memory_space<vmem>>, vector<384x256xf32>
    %cst_394 = arith.constant dense<0.000000e+00> : vector<2x256xf32>
    %628 = tpu.matmul %626, %627, %cst_394 {dimension_numbers = #tpu.dot_dimension_numbers<[1], [0], [0], [1], [0, 0, 1, 1], [], []>} : vector<2x384xf32>, vector<384x256xf32>, vector<2x256xf32> -> vector<2x256xf32>
    %c0_395 = arith.constant 0 : index
    %c0_396 = arith.constant 0 : index
    %c0_397 = arith.constant 0 : index
    %629 = vector.load %arg14[%c0_395, %c0_396, %c0_397] : memref<1x2x256xf32, #tpu.memory_space<vmem>>, vector<1x2x256xf32>
    %630 = vector.shape_cast %629 : vector<1x2x256xf32> to vector<2x256xf32>
    %631 = vector.shape_cast %628 : vector<2x256xf32> to vector<1x2x256xf32>
    tpu.vector_store %arg14[%c0_395, %c0_396, %c0_397], %631 {strides = array<i32>} : memref<1x2x256xf32, #tpu.memory_space<vmem>>, vector<1x2x256xf32>,
    return
  }
  func.func @transform_0(%arg0: i32) -> (i32, i32, i32) {
    %c0_i32 = arith.constant 0 : i32
    %c0_i32_0 = arith.constant 0 : i32
    %c0_i32_1 = arith.constant 0 : i32
    return %arg0, %c0_i32, %c0_i32_0 : i32, i32, i32
  }
  func.func @transform_1(%arg0: i32) -> (i32, i32) {
    %c0_i32 = arith.constant 0 : i32
    %c0_i32_0 = arith.constant 0 : i32
    %c0_i32_1 = arith.constant 0 : i32
    return %c0_i32, %c0_i32_0 : i32, i32
  }
  func.func @transform_2(%arg0: i32) -> (i32, i32) {
    %c0_i32 = arith.constant 0 : i32
    %c0_i32_0 = arith.constant 0 : i32
    %c0_i32_1 = arith.constant 0 : i32
    return %c0_i32, %c0_i32_0 : i32, i32
  }
  func.func @transform_3(%arg0: i32) -> (i32, i32) {
    %c0_i32 = arith.constant 0 : i32
    %c0_i32_0 = arith.constant 0 : i32
    %c0_i32_1 = arith.constant 0 : i32
    return %c0_i32, %c0_i32_0 : i32, i32
  }
  func.func @transform_4(%arg0: i32) -> (i32, i32) {
    %c0_i32 = arith.constant 0 : i32
    %c0_i32_0 = arith.constant 0 : i32
    %c0_i32_1 = arith.constant 0 : i32
    return %c0_i32, %c0_i32_0 : i32, i32
  }
  func.func @transform_5(%arg0: i32) -> (i32, i32) {
    %c0_i32 = arith.constant 0 : i32
    %c0_i32_0 = arith.constant 0 : i32
    %c0_i32_1 = arith.constant 0 : i32
    return %c0_i32, %c0_i32_0 : i32, i32
  }
  func.func @transform_6(%arg0: i32) -> (i32, i32) {
    %c0_i32 = arith.constant 0 : i32
    %c0_i32_0 = arith.constant 0 : i32
    %c0_i32_1 = arith.constant 0 : i32
    return %c0_i32, %c0_i32_0 : i32, i32
  }
  func.func @transform_7(%arg0: i32) -> (i32, i32) {
    %c0_i32 = arith.constant 0 : i32
    %c0_i32_0 = arith.constant 0 : i32
    %c0_i32_1 = arith.constant 0 : i32
    return %c0_i32, %c0_i32_0 : i32, i32
  }
  func.func @transform_8(%arg0: i32) -> (i32, i32) {
    %c0_i32 = arith.constant 0 : i32
    %c0_i32_0 = arith.constant 0 : i32
    %c0_i32_1 = arith.constant 0 : i32
    return %c0_i32, %c0_i32_0 : i32, i32
  }
  func.func @transform_9(%arg0: i32) -> (i32, i32) {
    %c0_i32 = arith.constant 0 : i32
    %c0_i32_0 = arith.constant 0 : i32
    %c0_i32_1 = arith.constant 0 : i32
    return %c0_i32, %c0_i32_0 : i32, i32
  }
  func.func @transform_10(%arg0: i32) -> (i32, i32) {
    %c0_i32 = arith.constant 0 : i32
    %c0_i32_0 = arith.constant 0 : i32
    %c0_i32_1 = arith.constant 0 : i32
    return %c0_i32, %c0_i32_0 : i32, i32
  }
  func.func @transform_11(%arg0: i32) -> (i32, i32) {
    %c0_i32 = arith.constant 0 : i32
    %c0_i32_0 = arith.constant 0 : i32
    %c0_i32_1 = arith.constant 0 : i32
    return %c0_i32, %c0_i32_0 : i32, i32
  }
  func.func @transform_12(%arg0: i32) -> (i32, i32) {
    %c0_i32 = arith.constant 0 : i32
    %c0_i32_0 = arith.constant 0 : i32
    %c0_i32_1 = arith.constant 0 : i32
    return %c0_i32, %c0_i32_0 : i32, i32
  }
  func.func @transform_13(%arg0: i32) -> (i32, i32, i32) {
    %c0_i32 = arith.constant 0 : i32
    %c0_i32_0 = arith.constant 0 : i32
    %c0_i32_1 = arith.constant 0 : i32
    return %arg0, %c0_i32, %c0_i32_0 : i32, i32, i32
  }
}

</mosaic_0001>

<bundles_post_ra>
// kernel: vxm_dense_forward.1
= control target key start
LH: loop header
LB: loop body
LE: loop exit
PB: predicated region body
PF: predicated region fallthrough
CT: control target
= control target key end

     0   :  { %s14741_s25 = smov 0   ;;  %s19830_s0 = inlined_call_operand.vmem [shape: f32[2,8,384], index: 0, kind: input, shape index: {}]   ;;  %s19831_s1 = inlined_call_operand.vmem [shape: bf16[2592,64], index: 1, kind: input, shape index: {}]   ;;  %s19832_s2 = inlined_call_operand.vmem [shape: f32[288,1], index: 2, kind: input, shape index: {}]   ;;  %s19833_s3 = inlined_call_operand.vmem [shape: bf16[384,128], index: 3, kind: input, shape index: {}]   ;;  %s19834_s4 = inlined_call_operand.vmem [shape: bf16[128,128], index: 4, kind: input, shape index: {}]   ;;  %s19835_s5 = inlined_call_operand.vmem [shape: bf16[128,128], index: 5, kind: input, shape index: {}]   ;;  %s19836_s6 = inlined_call_operand.vmem [shape: bf16[128,128], index: 6, kind: input, shape index: {}]   ;;  %s19837_s7 = inlined_call_operand.vmem [shape: bf16[128,128], index: 7, kind: input, shape index: {}]   ;;  %s19838_s8 = inlined_call_operand.vmem [shape: bf16[128,128], index: 8, kind: input, shape index: {}]   ;;  %s19839_s9 = inlined_call_operand.vmem [shape: bf16[128,128], index: 9, kind: input, shape index: {}]   ;;  %s19840_s10 = inlined_call_operand.vmem [shape: bf16[128,384], index: 10, kind: input, shape index: {}]   ;;  %s19841_s11 = inlined_call_operand.vmem [shape: bf16[384,384], index: 11, kind: input, shape index: {}]   ;;  %s19842_s12 = inlined_call_operand.vmem [shape: f32[384,256], index: 12, kind: input, shape index: {}]   ;;  %s19843_s13 = inlined_call_operand.vmem [shape: f32[2,2,256], index: 13, kind: output, shape index: {}]  }
   0x1   :  { %19886 = sst [smem:[#allocation19_spill]] %s19830_s0 }
   0x2   :  { %19887 = sst [smem:[#allocation20_spill]] %s19833_s3 }
   0x3   :  { %19888 = sst [smem:[#allocation21_spill]] %s19834_s4 }
   0x4   :  { %19889 = sst [smem:[#allocation22_spill]] %s19835_s5 }
   0x5   :  { %19890 = sst [smem:[#allocation23_spill]] %s19836_s6 }
   0x6 LB: > { %s10911_s26 = sadd.s32 4294967295, %s14647_s25   ;;  %p10915_p0 = scmp.ge.s32.totalorder %s14647_s25, 1  ;;  %s14647_s25 = sphi %s14741_s25, %s23_s25  }
   0x7   : > { %p387_p1 = scmp.lt.s32.totalorder %s14647_s25, 3 }
   0x9   : > { %p388_p2 = pnand %p10915_p0, %p387_p1 }
   0xb   : > { %391 = sbr.rel (%p388_p2) target bundleno = 6032 (0x1790), region = 72 }
  0x10   : > { %p431_p3 = scmp.lt.s32.totalorder %s10911_s26, 1  ;;  %s19891_s0 = sld [smem:[#allocation19_spill]]  ;;  %vm475_vm0 = vcmask 1043456   ;;  %v14792_v7 = vld [vmem:[%s19831_s1] sm:$0xf]  ;;  %vm19884_vm1 = vcmask 64512   ;;  %v461_v8 = vlaneseq }
  0x11   : > { %s19880_s14 = smov 127   ;;  %s19872_s15 = smov 126   ;;  %v467_v29 = vld [vmem:[%s19831_s1 + $0x4] sm:$0xf]  ;;  %v585_v54 = vld [vmem:[%s19831_s1 + $0x8] sm:$0xf] }
  0x12   : > { %s19986_s26 = smov (!%p431_p3, %s10911_s26), 1  ;;  %s19852_s16 = smov 110   ;;  %v14796_v10 = vand.u32 127, %v461_v8 }
  0x13   : > { %s13394_s27 = smul.u32 24, %s19986_s26  ;;  %s19850_s17 = smov 109  }
  0x14   : > { %s19854_s18 = smov 108   ;;  %s19848_s19 = smov 92   ;;  %19892 = vst [vmem:[#allocation10_spill] sm:$0xff] %v14796_v10  ;;  %vm463_vm2 = vcmp.lt.s32.totalorder %v14796_v10, 127  ;;  %vm649_vm3 = vcmp.lt.s32.totalorder %v14796_v10, 110  ;;  %vm581_vm4 = vcmp.lt.s32.totalorder %v14796_v10, 126 }
  0x15   : > { %s19846_s20 = smov 91   ;;  %s19844_s21 = smov 90   ;;  %vm785_vm5 = vcmp.lt.s32.totalorder %v14796_v10, 108  ;;  %vm717_vm6 = vcmp.lt.s32.totalorder %v14796_v10, 109  ;;  %vm853_vm7 = vcmp.lt.s32.totalorder %v14796_v10, 92  ;;  %vm921_vm8 = vcmp.lt.s32.totalorder %v14796_v10, 91 }
  0x16   : > { %s14755_s30 = scalar_lea.vmem %s19891_s0, %s13394_s27  ;;  %vm19885_vm9 = vcmp.lt.s32.totalorder %v14796_v10, 90  ;;  %s19893_s3 = sld [smem:[#allocation20_spill]] }
  0x17   : > { %v442_v0 = vld [vmem:[%s14755_s30] sm:$0xff]  ;;  %v443_v1 = vld [vmem:[%s14755_s30 + $0x8] sm:$0xff]  ;;  %v14760_v2 = vld [vmem:[%s14755_s30 + $0x10] sm:$0xff]  ;;  %s19864_s28 = smov 116   ;;  %s19876_s29 = smov 118  }
  0x18   : > { %v13425_v3 = vpack.i.bf16 %v443_v1, %v442_v0  ;;  %v13435_v4 = vpack.i.bf16 %v14760_v2, %v443_v1  ;;  %v452_v5 = vpack.c.bf16 %v442_v0, %v442_v0  ;;  %v453_v18 = vpack.c.bf16 %v443_v1, %v443_v1  ;;  %s19856_s24 = smov 107   ;;  %s19894_s4 = sld [smem:[#allocation21_spill]] }
  0x19   : > { %v454_v23 = vpack.c.bf16 %v14760_v2, %v14760_v2  ;;  %s19870_s23 = smov 120   ;;  %s19862_s27 = smov 115  }
  0x1a   : > { %13426 = vrot.lane.b32.xlu0 %v13425_v3, %s19880_s14  ;;  %13431 = vrot.lane.b32.xlu1 %v13425_v3, %s19872_s15  ;;  %v14785_v6 = vsel %vm475_vm0, %v452_v5, 0  ;;  %v14808_v25 = vsel %vm475_vm0, %v453_v18, 0  ;;  %s19895_s5 = sld [smem:[#allocation22_spill]]  ;;  %s19899_s22 = smov 119  }
  0x1b   : > { %13436 = vrot.lane.b32.xlu2 %v13435_v4, %s19852_s16  ;;  %543 = vmatpush.bf16.msra.mxu3 %v14785_v6  ;;  %v14820_v33 = vsel %vm475_vm0, %v454_v23, 0  ;;  %s19896_s6 = sld [smem:[#allocation23_spill]] }
  0x1e   : > { %10922 = vmatmul.msk.bf16.vlgmr.msra.gmra.mxu3 %vm19884_vm1, %v14792_v7 }
  0x22   : > { %459 = vrot.lane.b32.xlu0 %v14760_v2, %s19880_s14  ;;  %579 = vrot.lane.b32.xlu1 %v14760_v2, %s19872_s15 }
  0x23   : > { %643 = vrot.lane.b32.xlu2 %v442_v0, %s19852_s16  ;;  %s19874_s16 = smov 119  }
  0x2a   : > { %13441 = vrot.lane.b32.xlu0 %v13425_v3, %s19850_s17  ;;  %715 = vrot.lane.b32.xlu1 %v14760_v2, %s19850_s17  ;;  %s19903_s17 = smov 122  }
  0x2b   : > { %13446 = vrot.lane.b32.xlu2 %v13425_v3, %s19854_s18 }
  0x32   : > { %13451 = vrot.lane.b32.xlu1 %v13425_v3, %s19848_s19  ;;  %783 = vrot.lane.b32.xlu0 %v14760_v2, %s19854_s18 }
  0x33   : > { %851 = vrot.lane.b32.xlu2 %v14760_v2, %s19848_s19  ;;  %s19897_s19 = smov 118  }
  0x3a   : > { %13456 = vrot.lane.b32.xlu0 %v13435_v4, %s19846_s20  ;;  %915 = vrot.lane.b32.xlu1 %v442_v0, %s19846_s20  ;;  %s19860_s20 = smov 117  }
  0x3b   : > { %13461 = vrot.lane.b32.xlu2 %v13425_v3, %s19844_s21 }
  0x42   : > { %987 = vrot.lane.b32.xlu0 %v14760_v2, %s19844_s21  ;;  %s19858_s21 = smov 106  }
  0x75   : > { %v13437_v9 = vpop.permute.xlu2 %13436 }
  0x76   : > { %v13439_v13 = vunpack.i.h.bf16 %v13437_v9  ;;  %v13438_v14 = vunpack.i.l.bf16 %v13437_v9 }
  0x78   : > { %v650_v36 = vsel %vm649_vm3, %v13438_v14, %v13439_v13 }
  0x79   : > { %v655_v47 = vpack.c.bf16 %v650_v36, %v650_v36 }
  0x7b   : > { %v664_v57 = vsel %vm475_vm0, %v655_v47, 0 }
  0x7d   : > { %v644_v20 = vpop.permute.xlu2 %643 }
  0x7e   : > { %v651_v26 = vsel %vm649_vm3, %v644_v20, %v13438_v14  ;;  %v652_v27 = vsel %vm649_vm3, %v13439_v13, %v644_v20 }
  0x7f   : > { %v654_v34 = vpack.c.bf16 %v651_v26, %v651_v26  ;;  %v656_v35 = vpack.c.bf16 %v652_v27, %v652_v27 }
  0x81   : > { %v661_v55 = vsel %vm475_vm0, %v654_v34, 0  ;;  %v667_v56 = vsel %vm475_vm0, %v656_v35, 0  ;;  %v789_v34 = vld [vmem:[%s19831_s1 + $0x14] sm:$0xf] }
  0x85   : > { %v14833_v45 = vpop.permute.xlu2 %13446 }
  0x86   : > { %v13449_v48 = vunpack.i.h.bf16 %v14833_v45  ;;  %v13448_v49 = vunpack.i.l.bf16 %v14833_v45 }
  0x88   : > { %v787_v58 = vsel %vm785_vm5, %v13448_v49, %v13449_v48 }
  0x89   : > { %v790_v60 = vpack.c.bf16 %v787_v58, %v787_v58 }
  0x8b   : > { %v797_v0 = vsel %vm475_vm0, %v790_v60, 0 }
  0x8c   : > { %v13427_v11 = vpop.permute.xlu0 %13426  ;;  %v13432_v12 = vpop.permute.xlu1 %13431 }
  0x8d   : > { %v13429_v15 = vunpack.i.h.bf16 %v13427_v11  ;;  %v13428_v16 = vunpack.i.l.bf16 %v13427_v11  ;;  %v13433_v17 = vunpack.i.l.bf16 %v13432_v12  ;;  %v13434_v19 = vunpack.i.h.bf16 %v13432_v12  ;;  %v852_v11 = vpop.permute.xlu2 %851 }
  0x8f   : > { %v465_v21 = vsel %vm463_vm2, %v13428_v16, %v13429_v15  ;;  %v583_v24 = vsel %vm581_vm4, %v13433_v17, %v13434_v19 }
  0x90   : > { %v468_v22 = vpack.c.bf16 %v465_v21, %v465_v21  ;;  %v586_v30 = vpack.c.bf16 %v583_v24, %v583_v24 }
  0x92   : > { %v477_v28 = vsel %vm475_vm0, %v468_v22, 0  ;;  %v593_v46 = vsel %vm475_vm0, %v586_v30, 0 }
  0x93   : > { %492 = vmatpush.bf16.msra.mxu0 %v477_v28 }
  0x94   : > { %v460_v31 = vpop.permute.xlu0 %459  ;;  %v580_v32 = vpop.permute.xlu1 %579 }
  0x95   : > { %v464_v37 = vsel %vm463_vm2, %v13429_v15, %v460_v31  ;;  %v466_v38 = vsel %vm463_vm2, %v460_v31, %v13428_v16  ;;  %v584_v39 = vsel %vm581_vm4, %v580_v32, %v13433_v17  ;;  %v582_v40 = vsel %vm581_vm4, %v13434_v19, %v580_v32  ;;  %v653_v15 = vld [vmem:[%s19831_s1 + $0xc] sm:$0xf] }
  0x96   : > { %10919 = vmatmul.msk.bf16.vlgmr.msra.gmra.mxu0 %vm19884_vm1, %v467_v29  ;;  %v469_v41 = vpack.c.bf16 %v464_v37, %v464_v37  ;;  %v470_v42 = vpack.c.bf16 %v466_v38, %v466_v38  ;;  %v588_v43 = vpack.c.bf16 %v584_v39, %v584_v39  ;;  %v587_v44 = vpack.c.bf16 %v582_v40, %v582_v40 }
  0x97   : > { %556 = vmatpush.bf16.msrb.mxu0 %v14808_v25 }
  0x98   : > { %v480_v50 = vsel %vm475_vm0, %v469_v41, 0  ;;  %v483_v51 = vsel %vm475_vm0, %v470_v42, 0  ;;  %v596_v52 = vsel %vm475_vm0, %v587_v44, 0  ;;  %v599_v53 = vsel %vm475_vm0, %v588_v43, 0  ;;  %v721_v42 = vld [vmem:[%s19831_s1 + $0x10] sm:$0xf] }
  0x99   : > { %505 = vmatpush.bf16.msra.mxu1 %v480_v50  ;;  %518 = vmatpush.bf16.msra.mxu2 %v483_v51 }
  0x9a   : > { %621 = vmatpush.bf16.msrb.mxu3 %v596_v52 }
  0x9b   : > { %634 = vmatpush.bf16.msra.mxu0 %v599_v53 }
  0x9c   : > { %10920 = vmatmul.msk.bf16.vlgmr.msra.gmra.mxu1 %vm19884_vm1, %v467_v29  ;;  %10921 = vmatmul.msk.bf16.vlgmr.msra.gmra.mxu2 %vm19884_vm1, %v467_v29  ;;  %v13442_v59 = vpop.permute.xlu0 %13441  ;;  %v716_v61 = vpop.permute.xlu1 %715 }
  0x9d   : > { %569 = vmatpush.bf16.msrb.mxu1 %v14820_v33  ;;  %608 = vmatpush.bf16.msrb.mxu2 %v593_v46  ;;  %v13444_v62 = vunpack.i.h.bf16 %v13442_v59  ;;  %v13443_v63 = vunpack.i.l.bf16 %v13442_v59 }
  0x9e   : > { %10926 = vmatmul.msk.bf16.vlgmr.msrb.gmra.mxu3 %vm19884_vm1, %v585_v54 }
  0x9f   : > { %702 = vmatpush.bf16.msra.mxu3 %v667_v56  ;;  %v719_v1 = vsel %vm717_vm6, %v13443_v63, %v13444_v62  ;;  %v718_v3 = vsel %vm717_vm6, %v13444_v62, %v716_v61  ;;  %v720_v4 = vsel %vm717_vm6, %v716_v61, %v13443_v63  ;;  %v925_v62 = vld [vmem:[%s19831_s1 + $0x1c] sm:$0xf] }
  0xa0   : > { %v722_v2 = vpack.c.bf16 %v719_v1, %v719_v1  ;;  %v723_v8 = vpack.c.bf16 %v718_v3, %v718_v3  ;;  %v724_v12 = vpack.c.bf16 %v720_v4, %v720_v4  ;;  %v1051_v1 = vld [vmem:[%s19832_s2] sm:$0xff] }
  0xa1   : > { %676 = vmatpush.bf16.msra.mxu1 %v661_v55  ;;  %689 = vmatpush.bf16.msra.mxu2 %v664_v57  ;;  %v993_v3 = vld [vmem:[%s19831_s1 + $0x20] sm:$0xf]  ;;  %v545_v4 = vpop.f32.mrf.mxu3 }
  0xa2   : > { %v729_v5 = vsel %vm475_vm0, %v722_v2, 0  ;;  %v732_v16 = vsel %vm475_vm0, %v723_v8, 0  ;;  %v735_v18 = vsel %vm475_vm0, %v724_v12, 0  ;;  %v14657_v2 = vmov 0  }
  0xa3   : > { %812 = vmatpush.bf16.msrb.mxu3 %v797_v0  ;;  %13465 = vset.pattern.permute.xlu1 %v14657_v2 }
  0xa4   : > { %v13452_v9 = vpop.permute.xlu1 %13451  ;;  %v784_v19 = vpop.permute.xlu0 %783  ;;  %1054 = vperm.xlu1 %13465, %v1051_v1   ;;  %13467 = vset.pattern.permute.xlu0 %v14657_v2 }
  0xa5   : > { %v13454_v13 = vunpack.i.h.bf16 %v13452_v9  ;;  %v786_v21 = vsel %vm785_vm5, %v13449_v48, %v784_v19  ;;  %v13453_v23 = vunpack.i.l.bf16 %v13452_v9  ;;  %v788_v24 = vsel %vm785_vm5, %v784_v19, %v13448_v49  ;;  %v13462_v48 = vpop.permute.xlu2 %13461  ;;  %v857_v49 = vld [vmem:[%s19831_s1 + $0x18] sm:$0xf]  ;;  %13466 = vset.pattern.permute.xlu2 %v14657_v2  ;;  %v12954_v2 = vld [vmem:[%s19893_s3] sm:$0xff] }
  0xa6   : > { %10923 = vmatmul.msk.bf16.vlgmr.msrb.gmra.mxu0 %vm19884_vm1, %v14792_v7  ;;  %v791_v22 = vpack.c.bf16 %v786_v21, %v786_v21  ;;  %v792_v27 = vpack.c.bf16 %v788_v24, %v788_v24  ;;  %v13464_v51 = vunpack.i.h.bf16 %v13462_v48  ;;  %v13463_v52 = vunpack.i.l.bf16 %v13462_v48 }
  0xa7   : > { %744 = vmatpush.bf16.msrb.mxu0 %v729_v5  ;;  %v854_v14 = vsel %vm853_vm7, %v13454_v13, %v852_v11  ;;  %v855_v26 = vsel %vm853_vm7, %v13453_v23, %v13454_v13  ;;  %v856_v39 = vsel %vm853_vm7, %v852_v11, %v13453_v23 }
  0xa8   : > { %v859_v17 = vpack.c.bf16 %v854_v14, %v854_v14  ;;  %v858_v31 = vpack.c.bf16 %v855_v26, %v855_v26  ;;  %v803_v35 = vsel %vm475_vm0, %v792_v27, 0  ;;  %v860_v41 = vpack.c.bf16 %v856_v39, %v856_v39 }
  0xa9   : > { %v547_v5 = vpop.f32.mrf.mxu3 }
  0xaa   : > { %v868_v20 = vsel %vm475_vm0, %v859_v17, 0  ;;  %v865_v37 = vsel %vm475_vm0, %v858_v31, 0  ;;  %v871_v44 = vsel %vm475_vm0, %v860_v41, 0  ;;  %v12963_v5 = vld [vmem:[%s19893_s3 + $0x48] sm:$0xff] }
  0xac   : > { %10924 = vmatmul.msk.bf16.vlgmr.msrb.gmra.mxu1 %vm19884_vm1, %v14792_v7  ;;  %10925 = vmatmul.msk.bf16.vlgmr.msrb.gmra.mxu2 %vm19884_vm1, %v585_v54  ;;  %v800_v7 = vsel %vm475_vm0, %v791_v22, 0  ;;  %v13457_v28 = vpop.permute.xlu0 %13456  ;;  %v916_v29 = vpop.permute.xlu1 %915 }
  0xad   : > { %757 = vmatpush.bf16.msrb.mxu1 %v732_v16  ;;  %770 = vmatpush.bf16.msrb.mxu2 %v735_v18  ;;  %v13459_v30 = vunpack.i.h.bf16 %v13457_v28  ;;  %v13458_v40 = vunpack.i.l.bf16 %v13457_v28 }
  0xae   : > { %10930 = vmatmul.msk.bf16.vlgmr.msra.gmra.mxu3 %vm19884_vm1, %v653_v15 }
  0xaf   : > { %893 = vmatpush.bf16.msra.mxu3 %v868_v20  ;;  %v924_v32 = vsel %vm921_vm8, %v13459_v30, %v916_v29  ;;  %v923_v43 = vsel %vm921_vm8, %v916_v29, %v13458_v40  ;;  %v922_v45 = vsel %vm921_vm8, %v13458_v40, %v13459_v30  ;;  %v12969_v40 = vld [vmem:[%s19893_s3 + $0x78] sm:$0xff] }
  0xb0   : > { %v928_v36 = vpack.c.bf16 %v924_v32, %v924_v32  ;;  %v926_v46 = vpack.c.bf16 %v923_v43, %v923_v43  ;;  %v927_v47 = vpack.c.bf16 %v922_v45, %v922_v45  ;;  %v12968_v43 = vld [vmem:[%s19893_s3 + $0x70] sm:$0xff] }
  0xb2   : > { %v939_v38 = vsel %vm475_vm0, %v928_v36, 0  ;;  %v933_v50 = vsel %vm475_vm0, %v926_v46, 0  ;;  %v936_v53 = vsel %vm475_vm0, %v927_v47, 0  ;;  %v12958_v46 = vld [vmem:[%s19893_s3 + $0x20] sm:$0xff]  ;;  %v12977_v47 = vld [vmem:[%s19893_s3 + $0xb8] sm:$0xff] }
  0xb4   : > { %v988_v55 = vpop.permute.xlu0 %987 }
  0xb5   : > { %v990_v57 = vsel %vm19885_vm9, %v13464_v51, %v988_v55  ;;  %v992_v58 = vsel %vm19885_vm9, %v988_v55, %v13463_v52 }
  0xb6   : > { %10927 = vmatmul.msk.bf16.vlgmr.msra.gmra.mxu0 %vm19884_vm1, %v585_v54  ;;  %v991_v54 = vsel %vm19885_vm9, %v13463_v52, %v13464_v51  ;;  %v995_v60 = vpack.c.bf16 %v990_v57, %v990_v57  ;;  %v996_v61 = vpack.c.bf16 %v992_v58, %v992_v58  ;;  %v12957_v51 = vld [vmem:[%s19893_s3 + $0x18] sm:$0xff]  ;;  %v12976_v52 = vld [vmem:[%s19893_s3 + $0xb0] sm:$0xff]  ;;  %v12975_v57 = vld [vmem:[%s19893_s3 + $0xa8] sm:$0xff] }
  0xb7   : > { %825 = vmatpush.bf16.msra.mxu0 %v800_v7  ;;  %v994_v56 = vpack.c.bf16 %v991_v54, %v991_v54 }
  0xb8   : > { %v1004_v63 = vsel %vm475_vm0, %v995_v60, 0  ;;  %v1007_v0 = vsel %vm475_vm0, %v996_v61, 0  ;;  %v12955_v61 = vld [vmem:[%s19893_s3 + $0x8] sm:$0xff] }
  0xb9   : > { %v1001_v59 = vsel %vm475_vm0, %v994_v56, 0  ;;  %v12956_v56 = vld [vmem:[%s19893_s3 + $0x10] sm:$0xff] }
  0xbc   : > { %10928 = vmatmul.msk.bf16.vlgmr.msra.gmra.mxu1 %vm19884_vm1, %v653_v15  ;;  %10929 = vmatmul.msk.bf16.vlgmr.msra.gmra.mxu2 %vm19884_vm1, %v653_v15 }
  0xbd   : > { %838 = vmatpush.bf16.msra.mxu1 %v803_v35  ;;  %880 = vmatpush.bf16.msra.mxu2 %v865_v37  ;;  %v12961_v35 = vld [vmem:[%s19893_s3 + $0x38] sm:$0xff] }
  0xbe   : > { %10934 = vmatmul.msk.bf16.vlgmr.msrb.gmra.mxu3 %vm19884_vm1, %v789_v34 }
  0xbf   : > { %974 = vmatpush.bf16.msrb.mxu3 %v939_v38  ;;  %v12960_v38 = vld [vmem:[%s19893_s3 + $0x30] sm:$0xff] }
  0xc6   : > { %10931 = vmatmul.msk.bf16.vlgmr.msrb.gmra.mxu0 %vm19884_vm1, %v721_v42 }
  0xc7   : > { %906 = vmatpush.bf16.msrb.mxu0 %v871_v44 }
  0xcc   : > { %10932 = vmatmul.msk.bf16.vlgmr.msrb.gmra.mxu1 %vm19884_vm1, %v721_v42  ;;  %10933 = vmatmul.msk.bf16.vlgmr.msrb.gmra.mxu2 %vm19884_vm1, %v721_v42  ;;  %v12959_v42 = vld [vmem:[%s19893_s3 + $0x28] sm:$0xff] }
  0xcd   : > { %948 = vmatpush.bf16.msrb.mxu1 %v933_v50  ;;  %961 = vmatpush.bf16.msrb.mxu2 %v936_v53  ;;  %v12966_v53 = vld [vmem:[%s19893_s3 + $0x60] sm:$0xff] }
  0xce   : > { %10938 = vmatmul.msk.bf16.vlgmr.msra.gmra.mxu3 %vm19884_vm1, %v857_v49 }
  0xcf   : > { %1264 = vmatpush.bf16.msra.mxu3 %v12961_v35 }
  0xd3   : > { %1265 = vmatpush.bf16.msra.mxu3 %v12960_v38 }
  0xd6   : > { %10935 = vmatmul.msk.bf16.vlgmr.msra.gmra.mxu0 %vm19884_vm1, %v789_v34 }
  0xd7   : > { %1016 = vmatpush.bf16.msra.mxu0 %v1001_v59  ;;  %1266 = vmatpush.bf16.msra.mxu3 %v12959_v42  ;;  %v12965_v59 = vld [vmem:[%s19893_s3 + $0x58] sm:$0xff] }
  0xdb   : > { %1267 = vmatpush.bf16.msra.mxu3 %v12958_v46 }
  0xdc   : > { %10936 = vmatmul.msk.bf16.vlgmr.msra.gmra.mxu1 %vm19884_vm1, %v789_v34  ;;  %10937 = vmatmul.msk.bf16.vlgmr.msra.gmra.mxu2 %vm19884_vm1, %v857_v49 }
  0xdd   : > { %1029 = vmatpush.bf16.msra.mxu1 %v1004_v63  ;;  %1042 = vmatpush.bf16.msra.mxu2 %v1007_v0  ;;  %v12964_v63 = vld [vmem:[%s19893_s3 + $0x50] sm:$0xff] }
  0xde   : > { %10942 = vmatmul.msk.bf16.vlgmr.msrb.gmra.mxu3 %vm19884_vm1, %v925_v62 }
  0xdf   : > { %1268 = vmatpush.bf16.msra.mxu3 %v12957_v51 }
  0xe3   : > { %1269 = vmatpush.bf16.msra.mxu3 %v12956_v56 }
  0xe6   : > { %10939 = vmatmul.msk.bf16.vlgmr.msrb.gmra.mxu0 %vm19884_vm1, %v857_v49  ;;  %v12967_v49 = vld [vmem:[%s19893_s3 + $0x68] sm:$0xff] }
  0xe7   : > { %1277 = vmatpush.bf16.msrb.mxu0 %v12969_v40  ;;  %1270 = vmatpush.bf16.msra.mxu3 %v12955_v61 }
  0xeb   : > { %1278 = vmatpush.bf16.msrb.mxu0 %v12968_v43  ;;  %1271 = vmatpush.bf16.msra.mxu3 %v12954_v2 }
  0xec   : > { %10940 = vmatmul.msk.bf16.vlgmr.msrb.gmra.mxu1 %vm19884_vm1, %v925_v62  ;;  %10941 = vmatmul.msk.bf16.vlgmr.msrb.gmra.mxu2 %vm19884_vm1, %v925_v62  ;;  %v12974_v62 = vld [vmem:[%s19893_s3 + $0xa0] sm:$0xff] }
  0xed   : > { %1290 = vmatpush.bf16.msrb.mxu1 %v12977_v47 }
  0xef   : > { %1279 = vmatpush.bf16.msrb.mxu0 %v12967_v49 }
  0xf1   : > { %1291 = vmatpush.bf16.msrb.mxu1 %v12976_v52 }
  0xf3   : > { %1280 = vmatpush.bf16.msrb.mxu0 %v12966_v53 }
  0xf5   : > { %1292 = vmatpush.bf16.msrb.mxu1 %v12975_v57 }
  0xf6   : > { %10943 = vmatmul.msk.bf16.vlgmr.msra.gmra.mxu0 %vm19884_vm1, %v993_v3 }
  0xf7   : > { %1281 = vmatpush.bf16.msrb.mxu0 %v12965_v59 }
  0xf9   : > { %1293 = vmatpush.bf16.msrb.mxu1 %v12974_v62 }
  0xfb   : > { %1282 = vmatpush.bf16.msrb.mxu0 %v12964_v63 }
  0xfc   : > { %10944 = vmatmul.msk.bf16.vlgmr.msra.gmra.mxu1 %vm19884_vm1, %v993_v3  ;;  %10945 = vmatmul.msk.bf16.vlgmr.msra.gmra.mxu2 %vm19884_vm1, %v993_v3  ;;  %v12973_v3 = vld [vmem:[%s19893_s3 + $0x98] sm:$0xff] }
  0xfd   : > { %1294 = vmatpush.bf16.msrb.mxu1 %v12973_v3 }
  0xff   : > { %1283 = vmatpush.bf16.msrb.mxu0 %v12963_v5 }
 0x113   : > { %v494_v8 = vpop.f32.mrf.mxu0 }
 0x114   : > { %v14947_v9 = vadd.f32 %v545_v4, %v494_v8 }
 0x116   : > { %v1055_v40 = vpop.permute.xlu1 %1054 }
 0x119   : > { %v507_v11 = vpop.f32.mrf.mxu1 }
 0x11b   : > { %v496_v12 = vpop.f32.mrf.mxu0 }
 0x11c   : > { %v12962_v12 = vld [vmem:[%s19893_s3 + $0x40] sm:$0xff] }
 0x11d   : > { %1284 = vmatpush.bf16.msrb.mxu0 %v12962_v12 }
 0x11f   : > { %v520_v13 = vpop.f32.mrf.mxu2 }
 0x121   : > { %v623_v14 = vpop.f32.mrf.mxu3  ;;  %v509_v15 = vpop.f32.mrf.mxu1 }
 0x122   : > { %v12971_v15 = vld [vmem:[%s19893_s3 + $0x88] sm:$0xff] }
 0x123   : > { %v558_v16 = vpop.f32.mrf.mxu0 }
 0x124   : > { %v559_v17 = vadd.f32 %v558_v16, %v507_v11  ;;  %v12972_v11 = vld [vmem:[%s19893_s3 + $0x90] sm:$0xff] }
 0x125   : > { %1295 = vmatpush.bf16.msrb.mxu1 %v12972_v11 }
 0x126   : > { %v14949_v18 = vadd.f32 %v623_v14, %v559_v17 }
 0x127   : > { %v522_v19 = vpop.f32.mrf.mxu2 }
 0x128   : > { %v12970_v19 = vld [vmem:[%s19893_s3 + $0x80] sm:$0xff] }
 0x129   : > { %v625_v20 = vpop.f32.mrf.mxu3  ;;  %v571_v21 = vpop.f32.mrf.mxu1  ;;  %1296 = vmatpush.bf16.msrb.mxu1 %v12971_v15  ;;  %v12978_v15 = vld [vmem:[%s19831_s1 + $0x24] sm:$0xff] }
 0x12a   : > { %v572_v22 = vadd.f32 %v571_v21, %v520_v13 }
 0x12b   : > { %v560_v23 = vpop.f32.mrf.mxu0 }
 0x12d   : > { %1297 = vmatpush.bf16.msrb.mxu1 %v12970_v19 }
 0x12f   : > { %v14951_v24 = vpop.f32.mrf.mxu2 }
 0x130   : > { %v640_v20 = vadd.f32 %v14951_v24, %v14947_v9 }
 0x131   : > { %v704_v7 = vpop.f32.mrf.mxu3  ;;  %v573_v26 = vpop.f32.mrf.mxu1 }
 0x133   : > { %v636_v27 = vpop.f32.mrf.mxu0 }
 0x134   : > { %v642_v28 = vadd.f32 %v636_v27, %v572_v22 }
 0x136   : > { %v14953_v29 = vadd.f32 %v704_v7, %v642_v28 }
 0x137   : > { %v612_v30 = vpop.f32.mrf.mxu2 }
 0x139   : > { %v706_v31 = vpop.f32.mrf.mxu3  ;;  %v14955_v32 = vpop.f32.mrf.mxu1 }
 0x13a   : > { %v708_v22 = vadd.f32 %v14955_v32, %v640_v20 }
 0x13b   : > { %v638_v34 = vpop.f32.mrf.mxu0 }
 0x13f   : > { %v14960_v36 = vpop.f32.mrf.mxu2 }
 0x140   : > { %v709_v28 = vadd.f32 %v14960_v36, %v14949_v18 }
 0x141   : > { %v14962_v37 = vpop.f32.mrf.mxu3  ;;  %v680_v39 = vpop.f32.mrf.mxu1 }
 0x143   : > { %v14970_v41 = vpop.f32.mrf.mxu0 }
 0x144   : > { %v776_v26 = vadd.f32 %v14970_v41, %v708_v22 }
 0x146   : > { %v844_v30 = vadd.f32 %v14962_v37, %v776_v26  ;;  %v12984_v26 = vld [vmem:[%s19831_s1 + $0x54] sm:$0xff] }
 0x147   : > { %v693_v44 = vpop.f32.mrf.mxu2 }
 0x149   : > { %v816_v45 = vpop.f32.mrf.mxu3  ;;  %v759_v48 = vpop.f32.mrf.mxu1 }
 0x14a   : > { %v777_v34 = vadd.f32 %v759_v48, %v709_v28 }
 0x14b   : > { %v748_v50 = vpop.f32.mrf.mxu0 }
 0x14f   : > { %v772_v54 = vpop.f32.mrf.mxu2 }
 0x150   : > { %v778_v32 = vadd.f32 %v772_v54, %v14953_v29 }
 0x151   : > { %v895_v55 = vpop.f32.mrf.mxu3  ;;  %v761_v58 = vpop.f32.mrf.mxu1 }
 0x153   : > { %v827_v60 = vpop.f32.mrf.mxu0 }
 0x154   : > { %v845_v39 = vadd.f32 %v827_v60, %v777_v34 }
 0x156   : > { %v913_v43 = vadd.f32 %v895_v55, %v845_v39 }
 0x157   : > { %v774_v0 = vpop.f32.mrf.mxu2 }
 0x159   : > { %v897_v1 = vpop.f32.mrf.mxu3  ;;  %v840_v4 = vpop.f32.mrf.mxu1 }
 0x15a   : > { %v846_v45 = vadd.f32 %v840_v4, %v778_v32 }
 0x15b   : > { %v829_v8 = vpop.f32.mrf.mxu0 }
 0x15f   : > { %v882_v13 = vpop.f32.mrf.mxu2 }
 0x160   : > { %v912_v35 = vadd.f32 %v882_v13, %v844_v30  ;;  %v1736_v13 = vld [vmem:[%s19832_s2 + $0x8] sm:$0xff] }
 0x161   : > { %v976_v14 = vpop.f32.mrf.mxu3  ;;  %v842_v16 = vpop.f32.mrf.mxu1 }
 0x162   : > { %v12979_v16 = vld [vmem:[%s19831_s1 + $0x2c] sm:$0xff] }
 0x163   : > { %v908_v17 = vpop.f32.mrf.mxu0 }
 0x164   : > { %v914_v36 = vadd.f32 %v908_v17, %v846_v45 }
 0x166   : > { %v982_v52 = vadd.f32 %v976_v14, %v914_v36  ;;  %v1739_v14 = vld [vmem:[%s19832_s2 + $0x20] sm:$0xff] }
 0x167   : > { %v884_v21 = vpop.f32.mrf.mxu2 }
 0x168   : > { %v12980_v21 = vld [vmem:[%s19831_s1 + $0x34] sm:$0xff] }
 0x169   : > { %v978_v23 = vpop.f32.mrf.mxu3  ;;  %v950_v7 = vpop.f32.mrf.mxu1 }
 0x16a   : > { %v980_v9 = vadd.f32 %v950_v7, %v912_v35 }
 0x16b   : > { %v910_v27 = vpop.f32.mrf.mxu0 }
 0x16c   : > { %v12981_v27 = vld [vmem:[%s19831_s1 + $0x3c] sm:$0xff] }
 0x16f   : > { %v963_v31 = vpop.f32.mrf.mxu2 }
 0x170   : > { %v981_v46 = vadd.f32 %v963_v31, %v913_v43 }
 0x171   : > { %v952_v38 = vpop.f32.mrf.mxu1 }
 0x173   : > { %v1018_v24 = vpop.f32.mrf.mxu0 }
 0x174   : > { %v1048_v42 = vadd.f32 %v1018_v24, %v980_v9  ;;  %v12982_v24 = vld [vmem:[%s19831_s1 + $0x44] sm:$0xff] }
 0x176   : > { %v1057_v44 = vadd.f32 %v1055_v40, %v1048_v42  ;;  %v12985_v42 = vld [vmem:[%s19831_s1 + $0x5c] sm:$0xff] }
 0x177   : > { %v965_v41 = vpop.f32.mrf.mxu2 }
 0x178   : > { %v1063_v47 = vmul.f32 0.2, %v1057_v44  ;;  %vm1060_vm10 = vcmp.ge.f32.partialorder %v1057_v44, 0.0 }
 0x179   : > { %v1031_v18 = vpop.f32.mrf.mxu1 }
 0x17a   : > { %v1049_v37 = vadd.f32 %v1031_v18, %v981_v46  ;;  %v1066_v48 = vsel %vm1060_vm10, %v1057_v44, %v1063_v47  ;;  %v12988_v47 = vld [vmem:[%s19831_s1 + $0x74] sm:$0xff]  ;;  %v12986_v18 = vld [vmem:[%s19831_s1 + $0x64] sm:$0xff] }
 0x17b   : > { %v1020_v49 = vpop.f32.mrf.mxu0  ;;  %v1069_v50 = vpack.c.bf16 %v1066_v48, %v1066_v48 }
 0x17c   : > { %v1058_v51 = vadd.f32 %v1055_v40, %v1049_v37  ;;  %v12983_v49 = vld [vmem:[%s19831_s1 + $0x4c] sm:$0xff] }
 0x17d   : > { %1272 = vmatmul.bf16.vlgmr.msra.gmra.mxu3 %v1069_v50  ;;  %v12992_v50 = vld [vmem:[%s19831_s1 + $0x94] sm:$0xff] }
 0x17e   : > { %vm1061_vm11 = vcmp.ge.f32.partialorder %v1058_v51, 0.0  ;;  %v1064_v53 = vmul.f32 0.2, %v1058_v51 }
 0x17f   : > { %v1044_v56 = vpop.f32.mrf.mxu2 }
 0x180   : > { %v1067_v29 = vsel %vm1061_vm11, %v1058_v51, %v1064_v53  ;;  %v1050_v54 = vadd.f32 %v1044_v56, %v982_v52  ;;  %v12989_v51 = vld [vmem:[%s19831_s1 + $0x7c] sm:$0xff]  ;;  %v12987_v52 = vld [vmem:[%s19831_s1 + $0x6c] sm:$0xff]  ;;  %vm1899_vm11 = vcmask 261120  }
 0x181   : > { %v1070_v55 = vpack.c.bf16 %v1067_v29, %v1067_v29  ;;  %v1033_v57 = vpop.f32.mrf.mxu1  ;;  %v1738_v53 = vld [vmem:[%s19832_s2 + $0x18] sm:$0xff]  ;;  %v1737_v56 = vld [vmem:[%s19832_s2 + $0x10] sm:$0xff]  ;;  %v12990_v29 = vld [vmem:[%s19831_s1 + $0x84] sm:$0xff] }
 0x182   : > { %v1059_v58 = vadd.f32 %v1055_v40, %v1050_v54  ;;  %v12993_v54 = vld [vmem:[%s19831_s1 + $0x9c] sm:$0xff]  ;;  %v12991_v57 = vld [vmem:[%s19831_s1 + $0x8c] sm:$0xff] }
 0x183   : > { %1285 = vmatmul.bf16.vlgmr.msrb.gmra.mxu0 %v1070_v55  ;;  %v12994_v55 = vld [vmem:[%s19831_s1 + $0xa4] sm:$0xff] }
 0x184   : > { %vm1062_vm12 = vcmp.ge.f32.partialorder %v1059_v58, 0.0  ;;  %v1065_v59 = vmul.f32 0.2, %v1059_v58 }
 0x186   : > { %v1068_v60 = vsel %vm1062_vm12, %v1059_v58, %v1065_v59  ;;  %v12995_v58 = vld [vmem:[%s19831_s1 + $0xac] sm:$0xff] }
 0x187   : > { %v1071_v61 = vpack.c.bf16 %v1068_v60, %v1068_v60  ;;  %v1046_v62 = vpop.f32.mrf.mxu2 }
 0x189   : > { %1298 = vmatmul.bf16.vlgmr.msrb.gmra.mxu1 %v1071_v61 }
 0x200   : > { %v1273_v63 = vpop.f32.mrf.mxu3  ;;  %v1286_v0 = vpop.f32.mrf.mxu0 }
 0x201   : > { %v1287_v1 = vadd.f32 %v1286_v0, %v1273_v63 }
 0x206   : > { %v1299_v2 = vpop.f32.mrf.mxu1 }
 0x207   : > { %v15043_v3 = vadd.f32 %v1299_v2, %v1287_v1  ;;  %v13003_v1 = vld [vmem:[%s19894_s4 + $0x38] sm:$0xff] }
 0x208   : > { %v1275_v4 = vpop.f32.mrf.mxu3  ;;  %v1288_v5 = vpop.f32.mrf.mxu0 }
 0x209   : > { %1393 = vrot.lane.b32.xlu1 %v15043_v3, %s19872_s15  ;;  %1491 = vrot.lane.b32.xlu0 %v15043_v3, %s19860_s20  ;;  %v1309_v8 = vpack.c.bf16 %v15043_v3, %v15043_v3  ;;  %v13002_v4 = vld [vmem:[%s19894_s4 + $0x30] sm:$0xff]  ;;  %s14668_s20 = smov 124  }
 0x20a   : > { %1310 = vrot.lane.b32.xlu2 %v15043_v3, %s19880_s14 }
 0x20b   : > { %v15054_v11 = vsel %vm475_vm0, %v1309_v8, 0 }
 0x20c   : > { %1381 = vmatpush.bf16.msrb.mxu3 %v15054_v11 }
 0x20e   : > { %v1301_v12 = vpop.f32.mrf.mxu1 }
 0x20f   : > { %11060 = vmatmul.msk.bf16.vlgmr.msrb.gmra.mxu3 %vm19884_vm1, %v12978_v15 }
 0x211   : > { %1687 = vrot.lane.b32.xlu1 %v15043_v3, %s19858_s21  ;;  %1540 = vrot.lane.b32.xlu0 %v15043_v3, %s19864_s28  ;;  %s19868_s21 = smov 114  }
 0x212   : > { %1442 = vrot.lane.b32.xlu2 %v15043_v3, %s19876_s29 }
 0x219   : > { %1742 = vperm.xlu1 %13465, %v1736_v13   ;;  %1638 = vrot.lane.b32.xlu0 %v15043_v3, %s19856_s24  ;;  %v13001_v13 = vld [vmem:[%s19894_s4 + $0x28] sm:$0xff]  ;;  %s19866_s24 = smov 121  }
 0x21a   : > { %1589 = vrot.lane.b32.xlu2 %v15043_v3, %s19854_s18  ;;  %s19878_s18 = smov 122  }
 0x21f   : > { %11061 = vmatmul.msk.bf16.gmra.mxu3 %vm19884_vm1, %v12979_v16 }
 0x221   : > { %1757 = vperm.xlu1 %13465, %v1739_v14   ;;  %1752 = vperm.xlu0 %13467, %v1738_v53   ;;  %v13000_v14 = vld [vmem:[%s19894_s4 + $0x20] sm:$0xff] }
 0x222   : > { %1747 = vperm.xlu2 %13466, %v1737_v56  }
 0x264   : > { %v1311_v17 = vpop.permute.xlu2 %1310 }
 0x265   : > { %v1316_v19 = vpack.c.bf16 %v1311_v17, %v1311_v17 }
 0x267   : > { %v1334_v20 = vsel %vm475_vm0, %v1316_v19, 0  ;;  %v12999_v19 = vld [vmem:[%s19894_s4 + $0x18] sm:$0xff] }
 0x268   : > { %1343 = vmatpush.bf16.msrb.mxu2 %v1334_v20 }
 0x26b   : > { %11050 = vmatmul.msk.bf16.vlgmr.msrb.gmra.mxu2 %vm19884_vm1, %v12980_v21  ;;  %v12998_v21 = vld [vmem:[%s19894_s4 + $0x10] sm:$0xff] }
 0x26c   : > { %v1443_v22 = vpop.permute.xlu2 %1442 }
 0x26d   : > { %v1448_v23 = vpack.c.bf16 %v1443_v22, %v1443_v22 }
 0x26f   : > { %v1466_v7 = vsel %vm475_vm0, %v1448_v23, 0 }
 0x270   : > { %1475 = vmatpush.bf16.msra.mxu1 %v1466_v7 }
 0x273   : > { %11080 = vmatmul.msk.bf16.vlgmr.msra.gmra.mxu1 %vm19884_vm1, %v12984_v26  ;;  %v12997_v26 = vld [vmem:[%s19894_s4 + $0x8] sm:$0xff] }
 0x274   : > { %v1590_v28 = vpop.permute.xlu2 %1589 }
 0x275   : > { %v1595_v30 = vpack.c.bf16 %v1590_v28, %v1590_v28  ;;  %v12996_v28 = vld [vmem:[%s19894_s4] sm:$0xff] }
 0x277   : > { %v1613_v40 = vsel %vm475_vm0, %v1595_v30, 0 }
 0x27b   : > { %11051 = vmatmul.msk.bf16.gmra.mxu2 %vm19884_vm1, %v12981_v27  ;;  %v1394_v31 = vpop.permute.xlu1 %1393  ;;  %v1492_v34 = vpop.permute.xlu0 %1491 }
 0x27c   : > { %v1399_v35 = vpack.c.bf16 %v1394_v31, %v1394_v31  ;;  %v1497_v38 = vpack.c.bf16 %v1492_v34, %v1492_v34 }
 0x27e   : > { %v1417_v39 = vsel %vm475_vm0, %v1399_v35, 0  ;;  %v1515_v9 = vsel %vm475_vm0, %v1497_v38, 0 }
 0x27f   : > { %1426 = vmatpush.bf16.msra.mxu0 %v1417_v39  ;;  %1524 = vmatpush.bf16.msra.mxu2 %v1515_v9 }
 0x282   : > { %11070 = vmatmul.msk.bf16.vlgmr.msra.gmra.mxu0 %vm19884_vm1, %v12982_v24 }
 0x283   : > { %1622 = vmatpush.bf16.msrb.mxu0 %v1613_v40  ;;  %v1688_v32 = vpop.permute.xlu1 %1687  ;;  %v1541_v43 = vpop.permute.xlu0 %1540  ;;  %11081 = vmatmul.msk.bf16.gmra.mxu1 %vm19884_vm1, %v12985_v42 }
 0x284   : > { %v1693_v44 = vpack.c.bf16 %v1688_v32, %v1688_v32  ;;  %v1546_v41 = vpack.c.bf16 %v1541_v43, %v1541_v43 }
 0x286   : > { %v1564_v45 = vsel %vm475_vm0, %v1546_v41, 0  ;;  %v1711_v46 = vsel %vm475_vm0, %v1693_v44, 0 }
 0x287   : > { %1573 = vmatpush.bf16.msra.mxu3 %v1564_v45  ;;  %1720 = vmatpush.bf16.msrb.mxu2 %v1711_v46 }
 0x28a   : > { %11100 = vmatmul.msk.bf16.vlgmr.msra.gmra.mxu3 %vm19884_vm1, %v12988_v47 }
 0x28b   : > { %11090 = vmatmul.msk.bf16.vlgmr.msra.gmra.mxu2 %vm19884_vm1, %v12986_v18  ;;  %v1639_v36 = vpop.permute.xlu0 %1638  ;;  %1842 = vmatpush.bf16.msrb.mxu3 %v13003_v1 }
 0x28c   : > { %v1644_v37 = vpack.c.bf16 %v1639_v36, %v1639_v36 }
 0x28e   : > { %v1662_v48 = vsel %vm475_vm0, %v1644_v37, 0 }
 0x28f   : > { %1671 = vmatpush.bf16.msrb.mxu1 %v1662_v48  ;;  %1843 = vmatpush.bf16.msrb.mxu3 %v13002_v4 }
 0x292   : > { %11071 = vmatmul.msk.bf16.gmra.mxu0 %vm19884_vm1, %v12983_v49  ;;  %v1383_v61 = vpop.f32.mrf.mxu3 }
 0x293   : > { %11120 = vmatmul.msk.bf16.vlgmr.msrb.gmra.mxu1 %vm19884_vm1, %v12992_v50  ;;  %1844 = vmatpush.bf16.msrb.mxu3 %v13001_v13 }
 0x297   : > { %1845 = vmatpush.bf16.msrb.mxu3 %v13000_v14 }
 0x29a   : > { %11101 = vmatmul.msk.bf16.gmra.mxu3 %vm19884_vm1, %v12989_v51  ;;  %v1385_v2 = vpop.f32.mrf.mxu3 }
 0x29b   : > { %11091 = vmatmul.msk.bf16.gmra.mxu2 %vm19884_vm1, %v12987_v52  ;;  %1846 = vmatpush.bf16.msrb.mxu3 %v12999_v19 }
 0x29f   : > { %1847 = vmatpush.bf16.msrb.mxu3 %v12998_v21 }
 0x2a2   : > { %11110 = vmatmul.msk.bf16.vlgmr.msrb.gmra.mxu0 %vm19884_vm1, %v12990_v29  ;;  %v1388_v15 = vpop.f32.mrf.mxu3 }
 0x2a3   : > { %11121 = vmatmul.msk.bf16.gmra.mxu1 %vm19884_vm1, %v12993_v54  ;;  %1848 = vmatpush.bf16.msrb.mxu3 %v12997_v26  ;;  %v1743_v54 = vpop.permute.xlu1 %1742 }
 0x2a7   : > { %1849 = vmatpush.bf16.msrb.mxu3 %v12996_v28 }
 0x2aa   : > { %v1390_v22 = vpop.f32.mrf.mxu3 }
 0x2ab   : > { %11130 = vmatmul.msk.bf16.vlgmr.msrb.gmra.mxu2 %vm19884_vm1, %v12994_v55 }
 0x2b2   : > { %11111 = vmatmul.msk.bf16.gmra.mxu0 %vm19884_vm1, %v12991_v57 }
 0x2bb   : > { %11131 = vmatmul.msk.bf16.gmra.mxu2 %vm19884_vm1, %v12995_v58 }
 0x2ee   : > { %v1345_v59 = vpop.f32.mrf.mxu2 }
 0x2ef   : > { %v1384_v30 = vadd.f32 %v1383_v61, %v1345_v59 }
 0x2f0   : > { %v1477_v62 = vpop.f32.mrf.mxu1 }
 0x2f6   : > { %v1347_v60 = vpop.f32.mrf.mxu2 }
 0x2f7   : > { %v1386_v39 = vadd.f32 %v1385_v2, %v1347_v60 }
 0x2f8   : > { %v1479_v8 = vpop.f32.mrf.mxu1 }
 0x2fe   : > { %v1350_v63 = vpop.f32.mrf.mxu2 }
 0x2ff   : > { %v1428_v0 = vpop.f32.mrf.mxu0  ;;  %v1389_v18 = vadd.f32 %v1388_v15, %v1350_v63 }
 0x300   : > { %v1482_v20 = vpop.f32.mrf.mxu1  ;;  %v1438_v35 = vadd.f32 %v1428_v0, %v1384_v30 }
 0x302   : > { %v1487_v9 = vadd.f32 %v1477_v62, %v1438_v35  ;;  %v1748_v62 = vpop.permute.xlu2 %1747  ;;  %v1758_v35 = vpop.permute.xlu1 %1757 }
 0x306   : > { %v1352_v5 = vpop.f32.mrf.mxu2 }
 0x307   : > { %v1430_v12 = vpop.f32.mrf.mxu0  ;;  %v1391_v56 = vadd.f32 %v1390_v22, %v1352_v5 }
 0x308   : > { %v1484_v27 = vpop.f32.mrf.mxu1  ;;  %v1439_v40 = vadd.f32 %v1430_v12, %v1386_v39 }
 0x30a   : > { %v1488_v44 = vadd.f32 %v1479_v8, %v1439_v40 }
 0x30d   : > { %v1575_v31 = vpop.f32.mrf.mxu3 }
 0x30e   : > { %v1526_v16 = vpop.f32.mrf.mxu2 }
 0x30f   : > { %v1433_v17 = vpop.f32.mrf.mxu0  ;;  %v1536_v42 = vadd.f32 %v1526_v16, %v1487_v9 }
 0x310   : > { %v1673_v24 = vpop.f32.mrf.mxu1  ;;  %v1440_v48 = vadd.f32 %v1433_v17, %v1389_v18 }
 0x311   : > { %v1585_v41 = vadd.f32 %v1575_v31, %v1536_v42 }
 0x312   : > { %v1489_v29 = vadd.f32 %v1482_v20, %v1440_v48  ;;  %v2333_v48 = vld [vmem:[%s19832_s2 + $0x38] sm:$0xff] }
 0x315   : > { %v1577_v43 = vpop.f32.mrf.mxu3 }
 0x316   : > { %v1528_v23 = vpop.f32.mrf.mxu2 }
 0x317   : > { %v1435_v7 = vpop.f32.mrf.mxu0  ;;  %v1537_v46 = vadd.f32 %v1528_v23, %v1488_v44 }
 0x318   : > { %v1675_v36 = vpop.f32.mrf.mxu1  ;;  %v1441_v57 = vadd.f32 %v1435_v7, %v1391_v56 }
 0x319   : > { %v1586_v49 = vadd.f32 %v1577_v43, %v1537_v46 }
 0x31a   : > { %v1490_v1 = vadd.f32 %v1484_v27, %v1441_v57  ;;  %v1753_v27 = vpop.permute.xlu0 %1752 }
 0x31d   : > { %v1580_v53 = vpop.f32.mrf.mxu3 }
 0x31e   : > { %v1531_v34 = vpop.f32.mrf.mxu2 }
 0x31f   : > { %v1624_v38 = vpop.f32.mrf.mxu0  ;;  %v1538_v58 = vadd.f32 %v1531_v34, %v1489_v29 }
 0x320   : > { %v1634_v47 = vadd.f32 %v1624_v38, %v1585_v41  ;;  %v1678_v63 = vpop.f32.mrf.mxu1 }
 0x321   : > { %v1587_v2 = vadd.f32 %v1580_v53, %v1538_v58 }
 0x322   : > { %v1683_v50 = vadd.f32 %v1673_v24, %v1634_v47 }
 0x325   : > { %v1582_v14 = vpop.f32.mrf.mxu3 }
 0x326   : > { %v1533_v32 = vpop.f32.mrf.mxu2 }
 0x327   : > { %v1626_v45 = vpop.f32.mrf.mxu0  ;;  %v1539_v12 = vadd.f32 %v1533_v32, %v1490_v1 }
 0x328   : > { %v1635_v51 = vadd.f32 %v1626_v45, %v1586_v49  ;;  %v1680_v26 = vpop.f32.mrf.mxu1  ;;  %v2332_v49 = vld [vmem:[%s19832_s2 + $0x30] sm:$0xff] }
 0x329   : > { %v1588_v21 = vadd.f32 %v1582_v14, %v1539_v12  ;;  %v13008_v12 = vld [vmem:[%s19831_s1 + $0xd4] sm:$0xff] }
 0x32a   : > { %v1684_v59 = vadd.f32 %v1675_v36, %v1635_v51  ;;  %v2331_v36 = vld [vmem:[%s19832_s2 + $0x28] sm:$0xff]  ;;  %v13005_v51 = vld [vmem:[%s19831_s1 + $0xbc] sm:$0xff] }
 0x32e   : > { %v1722_v37 = vpop.f32.mrf.mxu2 }
 0x32f   : > { %v1732_v52 = vadd.f32 %v1722_v37, %v1683_v50  ;;  %v1629_v55 = vpop.f32.mrf.mxu0  ;;  %v2334_v37 = vld [vmem:[%s19832_s2 + $0x40] sm:$0xff]  ;;  %v13004_v50 = vld [vmem:[%s19831_s1 + $0xb4] sm:$0xff] }
 0x330   : > { %v1636_v13 = vadd.f32 %v1629_v55, %v1587_v2 }
 0x331   : > { %v1760_v60 = vadd.f32 %v1743_v54, %v1732_v52 }
 0x332   : > { %v1685_v22 = vadd.f32 %v1678_v63, %v1636_v13 }
 0x333   : > { %v1768_v4 = vmul.f32 0.2, %v1760_v60  ;;  %vm1764_vm13 = vcmp.ge.f32.partialorder %v1760_v60, 0.0 }
 0x335   : > { %v1772_v15 = vsel %vm1764_vm13, %v1760_v60, %v1768_v4 }
 0x336   : > { %v1724_v61 = vpop.f32.mrf.mxu2 }
 0x337   : > { %v1733_v0 = vadd.f32 %v1724_v61, %v1684_v59  ;;  %v1631_v17 = vpop.f32.mrf.mxu0 }
 0x338   : > { %v1637_v23 = vadd.f32 %v1631_v17, %v1588_v21 }
 0x339   : > { %v1761_v8 = vadd.f32 %v1748_v62, %v1733_v0  ;;  %v13006_v0 = vld [vmem:[%s19831_s1 + $0xc4] sm:$0xff] }
 0x33a   : > { %v1686_v28 = vadd.f32 %v1680_v26, %v1637_v23 }
 0x33b   : > { %vm1765_vm14 = vcmp.ge.f32.partialorder %v1761_v8, 0.0  ;;  %v1769_v5 = vmul.f32 0.2, %v1761_v8 }
 0x33d   : > { %v1773_v16 = vsel %vm1765_vm14, %v1761_v8, %v1769_v5 }
 0x33e   : > { %v1776_v19 = vpack.c.bf16 %v1773_v16, %v1772_v15  ;;  %v1727_v20 = vpop.f32.mrf.mxu2 }
 0x33f   : > { %v1734_v7 = vadd.f32 %v1727_v20, %v1685_v22 }
 0x340   : > { %1850 = vmatmul.bf16.vlgmr.msrb.gmra.mxu3 %v1776_v19 }
 0x341   : > { %v1762_v30 = vadd.f32 %v1753_v27, %v1734_v7  ;;  %v13007_v7 = vld [vmem:[%s19831_s1 + $0xcc] sm:$0xff] }
 0x343   : > { %v1770_v38 = vmul.f32 0.2, %v1762_v30  ;;  %vm1766_vm15 = vcmp.ge.f32.partialorder %v1762_v30, 0.0 }
 0x345   : > { %v1774_v24 = vsel %vm1766_vm15, %v1762_v30, %v1770_v38  ;;  %v13010_v30 = vld [vmem:[%s19831_s1 + $0xe4] sm:$0xff] }
 0x346   : > { %v1729_v31 = vpop.f32.mrf.mxu2 }
 0x347   : > { %v1735_v34 = vadd.f32 %v1729_v31, %v1686_v28 }
 0x349   : > { %v1763_v39 = vadd.f32 %v1758_v35, %v1735_v34 }
 0x34b   : > { %v1771_v9 = vmul.f32 0.2, %v1763_v39  ;;  %vm1767_vm10 = vcmp.ge.f32.partialorder %v1763_v39, 0.0 }
 0x34d   : > { %v1775_v40 = vsel %vm1767_vm10, %v1763_v39, %v1771_v9 }
 0x34e   : > { %v1777_v42 = vpack.c.bf16 %v1775_v40, %v1774_v24 }
 0x350   : > { %1855 = vmatmul.bf16.gmra.mxu3 %v1777_v42 }
 0x3c3   : > { %v1851_v32 = vpop.f32.mrf.mxu3 }
 0x3cb   : > { %v1853_v43 = vpop.f32.mrf.mxu3 }
 0x3cc   : > { %v15183_v44 = vpack.i.bf16 %v1853_v43, %v1851_v32  ;;  %v15200_v18 = vpack.c.bf16 %v1853_v43, %v1851_v32 }
 0x3ce   : > { %13474 = vrot.lane.b32.xlu1 %v15183_v44, %s19880_s14 }
 0x3d3   : > { %v1856_v41 = vpop.f32.mrf.mxu3 }
 0x3d6   : > { %13479 = vrot.lane.b32.xlu1 %v15183_v44, %s19872_s15 }
 0x3db   : > { %v1858_v45 = vpop.f32.mrf.mxu3 }
 0x3dc   : > { %v15189_v46 = vpack.i.bf16 %v1858_v45, %v1856_v41  ;;  %v15191_v47 = vpack.c.bf16 %v1858_v45, %v1856_v41  ;;  %v13009_v45 = vld [vmem:[%s19831_s1 + $0xdc] sm:$0xff] }
 0x3de   : > { %13504 = vrot.lane.b32.xlu1 %v15183_v44, %s19866_s24  ;;  %13494 = vrot.lane.b32.xlu0 %v15189_v46, %s19878_s18 }
 0x3df   : > { %13469 = vrot.lane.b32.xlu2 %v15189_v46, %s19880_s14  ;;  %1947 = vmatpush.bf16.msra.mxu1 %v15191_v47 }
 0x3e3   : > { %1948 = vmatpush.bf16.msra.mxu1 %v15200_v18 }
 0x3e6   : > { %13529 = vrot.lane.b32.xlu1 %v15189_v46, %s19870_s23  ;;  %13499 = vrot.lane.b32.xlu0 %v15189_v46, %s19866_s24  ;;  %s19901_s24 = smov 121  }
 0x3e7   : > { %13484 = vrot.lane.b32.xlu2 %v15189_v46, %s19872_s15  ;;  %11182 = vmatmul.msk.bf16.vlgmr.msra.gmra.mxu1 %vm1899_vm11, %v13004_v50 }
 0x3ee   : > { %13534 = vrot.lane.b32.xlu1 %v15183_v44, %s19870_s23  ;;  %13519 = vrot.lane.b32.xlu0 %v15189_v46, %s19862_s27 }
 0x3ef   : > { %13489 = vrot.lane.b32.xlu2 %v15183_v44, %s19878_s18 }
 0x3f6   : > { %2337 = vperm.xlu1 %13465, %v2331_v36   ;;  %13524 = vrot.lane.b32.xlu0 %v15183_v44, %s19862_s27  ;;  %s14669_s27 = smov 123  }
 0x3f7   : > { %13509 = vrot.lane.b32.xlu2 %v15189_v46, %s19864_s28  ;;  %11183 = vmatmul.msk.bf16.gmra.mxu1 %vm1899_vm11, %v13005_v51 }
 0x3fe   : > { %2352 = vperm.xlu1 %13465, %v2334_v37   ;;  %13544 = vrot.lane.b32.xlu0 %v15183_v44, %s19868_s21 }
 0x3ff   : > { %13514 = vrot.lane.b32.xlu2 %v15183_v44, %s19864_s28  ;;  %s19914_s28 = smov 90  }
 0x406   : > { %2347 = vperm.xlu0 %13467, %v2333_v48  }
 0x407   : > { %13539 = vrot.lane.b32.xlu2 %v15189_v46, %s19868_s21  ;;  %s19898_s21 = smov 126  }
 0x40f   : > { %2342 = vperm.xlu2 %13466, %v2332_v49  }
 0x439   : > { %v13470_v52 = vpop.permute.xlu2 %13469 }
 0x43a   : > { %v13472_v53 = vunpack.i.h.bf16 %v13470_v52  ;;  %v13471_v56 = vunpack.i.l.bf16 %v13470_v52 }
 0x43c   : > { %v1888_v29 = vpack.c.bf16 %v13472_v53, %v13471_v56 }
 0x43e   : > { %1912 = vmatpush.bf16.msra.mxu0 %v1888_v29 }
 0x440   : > { %v13475_v54 = vpop.permute.xlu1 %13474 }
 0x441   : > { %v13477_v55 = vunpack.i.h.bf16 %v13475_v54  ;;  %v13476_v57 = vunpack.i.l.bf16 %v13475_v54  ;;  %v13485_v58 = vpop.permute.xlu2 %13484 }
 0x442   : > { %v13487_v59 = vunpack.i.h.bf16 %v13485_v58  ;;  %v13486_v60 = vunpack.i.l.bf16 %v13485_v58  ;;  %v13012_v58 = vld [vmem:[%s19831_s1 + $0xf4] sm:$0xff] }
 0x443   : > { %v1887_v61 = vpack.c.bf16 %v13477_v55, %v13476_v57 }
 0x444   : > { %v1973_v62 = vpack.c.bf16 %v13487_v59, %v13486_v60  ;;  %v13014_v59 = vld [vmem:[%s19831_s1 + $0x104] sm:$0xff] }
 0x445   : > { %1913 = vmatpush.bf16.msra.mxu0 %v1887_v61  ;;  %v13011_v61 = vld [vmem:[%s19831_s1 + $0xec] sm:$0xff] }
 0x446   : > { %1996 = vmatpush.bf16.msra.mxu2 %v1973_v62 }
 0x448   : > { %v13480_v63 = vpop.permute.xlu1 %13479  ;;  %11172 = vmatmul.msk.bf16.vlgmr.msra.gmra.mxu0 %vm1899_vm11, %v13006_v0 }
 0x449   : > { %v13482_v1 = vunpack.i.h.bf16 %v13480_v63  ;;  %v13481_v2 = vunpack.i.l.bf16 %v13480_v63  ;;  %v13490_v4 = vpop.permute.xlu2 %13489 }
 0x44a   : > { %v13492_v20 = vunpack.i.h.bf16 %v13490_v4  ;;  %v13491_v21 = vunpack.i.l.bf16 %v13490_v4 }
 0x44b   : > { %v1972_v8 = vpack.c.bf16 %v13482_v1, %v13481_v2  ;;  %v13016_v1 = vld [vmem:[%s19831_s1 + $0x114] sm:$0xff] }
 0x44c   : > { %v2025_v26 = vpack.c.bf16 %v13492_v20, %v13491_v21 }
 0x44d   : > { %1997 = vmatpush.bf16.msra.mxu2 %v1972_v8 }
 0x450   : > { %v13505_v13 = vpop.permute.xlu1 %13504  ;;  %v13495_v5 = vpop.permute.xlu0 %13494  ;;  %11192 = vmatmul.msk.bf16.vlgmr.msra.gmra.mxu2 %vm1899_vm11, %v13008_v12 }
 0x451   : > { %v13497_v14 = vunpack.i.h.bf16 %v13495_v5  ;;  %v13496_v15 = vunpack.i.l.bf16 %v13495_v5  ;;  %v13510_v16 = vpop.permute.xlu2 %13509  ;;  %v13507_v40 = vunpack.i.h.bf16 %v13505_v13  ;;  %v13506_v42 = vunpack.i.l.bf16 %v13505_v13  ;;  %v13013_v13 = vld [vmem:[%s19831_s1 + $0xfc] sm:$0xff]  ;;  %v13015_v5 = vld [vmem:[%s19831_s1 + $0x10c] sm:$0xff] }
 0x452   : > { %v13512_v17 = vunpack.i.h.bf16 %v13510_v16  ;;  %v13511_v19 = vunpack.i.l.bf16 %v13510_v16  ;;  %v13020_v16 = vld [vmem:[%s19831_s1 + $0x134] sm:$0xff] }
 0x453   : > { %v2026_v22 = vpack.c.bf16 %v13497_v14, %v13496_v15  ;;  %v2078_v36 = vpack.c.bf16 %v13507_v40, %v13506_v42  ;;  %v13018_v14 = vld [vmem:[%s19831_s1 + $0x124] sm:$0xff]  ;;  %v13017_v15 = vld [vmem:[%s19831_s1 + $0x11c] sm:$0xff] }
 0x454   : > { %v2185_v23 = vpack.c.bf16 %v13512_v17, %v13511_v19  ;;  %v13019_v17 = vld [vmem:[%s19831_s1 + $0x12c] sm:$0xff]  ;;  %v13021_v19 = vld [vmem:[%s19831_s1 + $0x13c] sm:$0xff] }
 0x455   : > { %2049 = vmatpush.bf16.msra.mxu3 %v2026_v22  ;;  %v13025_v42 = vld [vmem:[%s19895_s5 + $0x18] sm:$0xff] }
 0x456   : > { %2208 = vmatpush.bf16.msrb.mxu2 %v2185_v23 }
 0x458   : > { %v13530_v27 = vpop.permute.xlu1 %13529  ;;  %v13500_v28 = vpop.permute.xlu0 %13499  ;;  %11173 = vmatmul.msk.bf16.gmra.mxu0 %vm1899_vm11, %v13007_v7 }
 0x459   : > { %v13532_v31 = vunpack.i.h.bf16 %v13530_v27  ;;  %v13531_v34 = vunpack.i.l.bf16 %v13530_v27  ;;  %v13502_v35 = vunpack.i.h.bf16 %v13500_v28  ;;  %v13501_v38 = vunpack.i.l.bf16 %v13500_v28  ;;  %v13515_v39 = vpop.permute.xlu2 %13514  ;;  %2050 = vmatpush.bf16.msra.mxu3 %v2025_v26  ;;  %v13029_v26 = vld [vmem:[%s19895_s5 + $0x38] sm:$0xff] }
 0x45a   : > { %v13517_v9 = vunpack.i.h.bf16 %v13515_v39  ;;  %v13516_v24 = vunpack.i.l.bf16 %v13515_v39  ;;  %v13026_v39 = vld [vmem:[%s19895_s5 + $0x20] sm:$0xff] }
 0x45b   : > { %v2132_v32 = vpack.c.bf16 %v13532_v31, %v13531_v34  ;;  %v2079_v43 = vpack.c.bf16 %v13502_v35, %v13501_v38  ;;  %v13027_v35 = vld [vmem:[%s19895_s5 + $0x28] sm:$0xff] }
 0x45c   : > { %11202 = vmatmul.msk.bf16.vlgmr.msra.gmra.mxu3 %vm1899_vm11, %v13010_v30  ;;  %v2184_v41 = vpack.c.bf16 %v13517_v9, %v13516_v24  ;;  %v13028_v30 = vld [vmem:[%s19895_s5 + $0x30] sm:$0xff] }
 0x45d   : > { %2102 = vmatpush.bf16.msrb.mxu0 %v2079_v43  ;;  %2155 = vmatpush.bf16.msrb.mxu1 %v2132_v32  ;;  %v13024_v32 = vld [vmem:[%s19895_s5 + $0x10] sm:$0xff] }
 0x45e   : > { %2209 = vmatpush.bf16.msrb.mxu2 %v2184_v41 }
 0x460   : > { %v13535_v37 = vpop.permute.xlu1 %13534  ;;  %v13520_v48 = vpop.permute.xlu0 %13519  ;;  %11193 = vmatmul.msk.bf16.gmra.mxu2 %vm1899_vm11, %v13009_v45 }
 0x461   : > { %v13537_v49 = vunpack.i.h.bf16 %v13535_v37  ;;  %v13536_v50 = vunpack.i.l.bf16 %v13535_v37  ;;  %v13522_v51 = vunpack.i.h.bf16 %v13520_v48  ;;  %v13521_v52 = vunpack.i.l.bf16 %v13520_v48  ;;  %v13540_v53 = vpop.permute.xlu2 %13539  ;;  %2103 = vmatpush.bf16.msrb.mxu0 %v2078_v36  ;;  %v13023_v37 = vld [vmem:[%s19895_s5 + $0x8] sm:$0xff]  ;;  %v13022_v48 = vld [vmem:[%s19895_s5] sm:$0xff] }
 0x462   : > { %v13542_v56 = vunpack.i.h.bf16 %v13540_v53  ;;  %v13541_v29 = vunpack.i.l.bf16 %v13540_v53 }
 0x463   : > { %v2238_v54 = vpack.c.bf16 %v13522_v51, %v13521_v52  ;;  %v2131_v55 = vpack.c.bf16 %v13537_v49, %v13536_v50 }
 0x464   : > { %v2291_v57 = vpack.c.bf16 %v13542_v56, %v13541_v29  ;;  %v1950_v22 = vpop.f32.mrf.mxu1 }
 0x465   : > { %2156 = vmatpush.bf16.msrb.mxu1 %v2131_v55  ;;  %2261 = vmatpush.bf16.msrb.mxu3 %v2238_v54 }
 0x466   : > { %2314 = vmatpush.bf16.msra.mxu0 %v2291_v57 }
 0x468   : > { %v13525_v60 = vpop.permute.xlu0 %13524  ;;  %11212 = vmatmul.msk.bf16.vlgmr.msrb.gmra.mxu0 %vm1899_vm11, %v13012_v58  ;;  %11222 = vmatmul.msk.bf16.vlgmr.msrb.gmra.mxu1 %vm1899_vm11, %v13014_v59 }
 0x469   : > { %v13527_v62 = vunpack.i.h.bf16 %v13525_v60  ;;  %v13526_v0 = vunpack.i.l.bf16 %v13525_v60  ;;  %2437 = vmatpush.bf16.msra.mxu1 %v13029_v26 }
 0x46b   : > { %v2237_v63 = vpack.c.bf16 %v13527_v62, %v13526_v0 }
 0x46c   : > { %11203 = vmatmul.msk.bf16.gmra.mxu3 %vm1899_vm11, %v13011_v61  ;;  %v1952_v27 = vpop.f32.mrf.mxu1 }
 0x46d   : > { %2262 = vmatpush.bf16.msrb.mxu3 %v2237_v63  ;;  %2438 = vmatpush.bf16.msra.mxu1 %v13028_v30  ;;  %v2343_v30 = vpop.permute.xlu2 %2342 }
 0x470   : > { %v13545_v2 = vpop.permute.xlu0 %13544  ;;  %11232 = vmatmul.msk.bf16.vlgmr.msrb.gmra.mxu2 %vm1899_vm11, %v13016_v1 }
 0x471   : > { %v13547_v4 = vunpack.i.h.bf16 %v13545_v2  ;;  %v13546_v8 = vunpack.i.l.bf16 %v13545_v2  ;;  %2439 = vmatpush.bf16.msra.mxu1 %v13027_v35 }
 0x473   : > { %v2290_v12 = vpack.c.bf16 %v13547_v4, %v13546_v8 }
 0x474   : > { %v1955_v38 = vpop.f32.mrf.mxu1 }
 0x475   : > { %2315 = vmatpush.bf16.msra.mxu0 %v2290_v12  ;;  %2440 = vmatpush.bf16.msra.mxu1 %v13026_v39 }
 0x478   : > { %11213 = vmatmul.msk.bf16.gmra.mxu0 %vm1899_vm11, %v13013_v13  ;;  %11223 = vmatmul.msk.bf16.gmra.mxu1 %vm1899_vm11, %v13015_v5 }
 0x479   : > { %2441 = vmatpush.bf16.msra.mxu1 %v13025_v42 }
 0x47c   : > { %11242 = vmatmul.msk.bf16.vlgmr.msrb.gmra.mxu3 %vm1899_vm11, %v13018_v14  ;;  %v1957_v41 = vpop.f32.mrf.mxu1 }
 0x47d   : > { %2442 = vmatpush.bf16.msra.mxu1 %v13024_v32 }
 0x480   : > { %11233 = vmatmul.msk.bf16.gmra.mxu2 %vm1899_vm11, %v13017_v15 }
 0x481   : > { %2443 = vmatpush.bf16.msra.mxu1 %v13023_v37 }
 0x485   : > { %2444 = vmatpush.bf16.msra.mxu1 %v13022_v48 }
 0x488   : > { %11252 = vmatmul.msk.bf16.vlgmr.msra.gmra.mxu0 %vm1899_vm11, %v13020_v16  ;;  %v2338_v16 = vpop.permute.xlu1 %2337 }
 0x48c   : > { %11243 = vmatmul.msk.bf16.gmra.mxu3 %vm1899_vm11, %v13019_v17 }
 0x498   : > { %11253 = vmatmul.msk.bf16.gmra.mxu0 %vm1899_vm11, %v13021_v19 }
 0x4c5   : > { %v1915_v20 = vpop.f32.mrf.mxu0 }
 0x4c6   : > { %v1951_v52 = vadd.f32 %v1950_v22, %v1915_v20 }
 0x4cd   : > { %v1917_v21 = vpop.f32.mrf.mxu0 }
 0x4ce   : > { %v1953_v55 = vadd.f32 %v1952_v27, %v1917_v21 }
 0x4d3   : > { %v1999_v23 = vpop.f32.mrf.mxu2 }
 0x4d4   : > { %v2009_v56 = vadd.f32 %v1999_v23, %v1951_v52 }
 0x4d5   : > { %v1920_v7 = vpop.f32.mrf.mxu0 }
 0x4d6   : > { %v1956_v12 = vadd.f32 %v1955_v38, %v1920_v7 }
 0x4db   : > { %v2001_v28 = vpop.f32.mrf.mxu2 }
 0x4dc   : > { %v2010_v59 = vadd.f32 %v2001_v28, %v1953_v55 }
 0x4dd   : > { %v1922_v31 = vpop.f32.mrf.mxu0 }
 0x4de   : > { %v1958_v26 = vadd.f32 %v1957_v41, %v1922_v31 }
 0x4df   : > { %v2052_v34 = vpop.f32.mrf.mxu3 }
 0x4e0   : > { %v2062_v29 = vadd.f32 %v2052_v34, %v2009_v56 }
 0x4e3   : > { %v2004_v9 = vpop.f32.mrf.mxu2 }
 0x4e4   : > { %v2011_v14 = vadd.f32 %v2004_v9, %v1956_v12 }
 0x4e5   : > { %v2105_v24 = vpop.f32.mrf.mxu0  ;;  %v2158_v50 = vpop.f32.mrf.mxu1 }
 0x4e6   : > { %v2115_v57 = vadd.f32 %v2105_v24, %v2062_v29 }
 0x4e7   : > { %v2054_v40 = vpop.f32.mrf.mxu3 }
 0x4e8   : > { %v2063_v61 = vadd.f32 %v2054_v40, %v2010_v59  ;;  %v2168_v62 = vadd.f32 %v2158_v50, %v2115_v57  ;;  %v2353_v57 = vpop.permute.xlu1 %2352 }
 0x4eb   : > { %v2006_v45 = vpop.f32.mrf.mxu2 }
 0x4ec   : > { %v2012_v35 = vadd.f32 %v2006_v45, %v1958_v26 }
 0x4ed   : > { %v2107_v43 = vpop.f32.mrf.mxu0  ;;  %v2160_v60 = vpop.f32.mrf.mxu1 }
 0x4ee   : > { %v2116_v63 = vadd.f32 %v2107_v43, %v2063_v61 }
 0x4ef   : > { %v2057_v36 = vpop.f32.mrf.mxu3 }
 0x4f0   : > { %v2169_v13 = vadd.f32 %v2160_v60, %v2116_v63  ;;  %v2064_v19 = vadd.f32 %v2057_v36, %v2011_v14  ;;  %v2928_v14 = vld [vmem:[%s19832_s2 + $0x60] sm:$0xff] }
 0x4f3   : > { %v2211_v53 = vpop.f32.mrf.mxu2 }
 0x4f4   : > { %v2221_v1 = vadd.f32 %v2211_v53, %v2168_v62  ;;  %v2348_v53 = vpop.permute.xlu0 %2347 }
 0x4f5   : > { %v2110_v49 = vpop.f32.mrf.mxu0  ;;  %v2163_v17 = vpop.f32.mrf.mxu1 }
 0x4f6   : > { %v2117_v27 = vadd.f32 %v2110_v49, %v2064_v19  ;;  %v3075_v19 = vld [vmem:[%s19832_s2 + $0x80] sm:$0xff] }
 0x4f7   : > { %v2059_v51 = vpop.f32.mrf.mxu3 }
 0x4f8   : > { %v2065_v7 = vadd.f32 %v2059_v51, %v2012_v35  ;;  %v2170_v38 = vadd.f32 %v2163_v17, %v2117_v27  ;;  %v2927_v17 = vld [vmem:[%s19832_s2 + $0x58] sm:$0xff] }
 0x4fb   : > { %v2213_v0 = vpop.f32.mrf.mxu2 }
 0x4fc   : > { %v2222_v15 = vadd.f32 %v2213_v0, %v2169_v13 }
 0x4fd   : > { %v2112_v54 = vpop.f32.mrf.mxu0  ;;  %v2165_v36 = vpop.f32.mrf.mxu1 }
 0x4fe   : > { %v2118_v40 = vadd.f32 %v2112_v54, %v2065_v7 }
 0x4ff   : > { %v2264_v58 = vpop.f32.mrf.mxu3 }
 0x500   : > { %v2274_v4 = vadd.f32 %v2264_v58, %v2221_v1  ;;  %v2171_v49 = vadd.f32 %v2165_v36, %v2118_v40  ;;  %v13034_v36 = vld [vmem:[%s19831_s1 + $0x164] sm:$0xff] }
 0x503   : > { %v2216_v22 = vpop.f32.mrf.mxu2 }
 0x504   : > { %v2223_v42 = vadd.f32 %v2216_v22, %v2170_v38 }
 0x505   : > { %v2317_v2 = vpop.f32.mrf.mxu0 }
 0x506   : > { %v2327_v5 = vadd.f32 %v2317_v2, %v2274_v4 }
 0x507   : > { %v2266_v8 = vpop.f32.mrf.mxu3 }
 0x508   : > { %v2355_v20 = vadd.f32 %v2338_v16, %v2327_v5  ;;  %v2275_v21 = vadd.f32 %v2266_v8, %v2222_v15  ;;  %v2925_v5 = vld [vmem:[%s19832_s2 + $0x48] sm:$0xff]  ;;  %v2926_v15 = vld [vmem:[%s19832_s2 + $0x50] sm:$0xff] }
 0x509   : > { %v3072_v16 = vld [vmem:[%s19832_s2 + $0x68] sm:$0xff] }
 0x50a   : > { %v2363_v39 = vmul.f32 0.2, %v2355_v20  ;;  %vm2359_vm12 = vcmp.ge.f32.partialorder %v2355_v20, 0.0 }
 0x50b   : > { %v2218_v41 = vpop.f32.mrf.mxu2 }
 0x50c   : > { %v2367_v32 = vsel %vm2359_vm12, %v2355_v20, %v2363_v39  ;;  %v2224_v52 = vadd.f32 %v2218_v41, %v2171_v49  ;;  %v13030_v20 = vld [vmem:[%s19831_s1 + $0x144] sm:$0xff] }
 0x50d   : > { %v2319_v23 = vpop.f32.mrf.mxu0 }
 0x50e   : > { %v2328_v28 = vadd.f32 %v2319_v23, %v2275_v21  ;;  %v13031_v21 = vld [vmem:[%s19831_s1 + $0x14c] sm:$0xff] }
 0x50f   : > { %v2269_v34 = vpop.f32.mrf.mxu3 }
 0x510   : > { %v2356_v24 = vadd.f32 %v2343_v30, %v2328_v28  ;;  %v2276_v31 = vadd.f32 %v2269_v34, %v2223_v42 }
 0x512   : > { %vm2360_vm13 = vcmp.ge.f32.partialorder %v2356_v24, 0.0  ;;  %v2364_v9 = vmul.f32 0.2, %v2356_v24 }
 0x514   : > { %v2368_v43 = vsel %vm2360_vm13, %v2356_v24, %v2364_v9  ;;  %v13032_v9 = vld [vmem:[%s19831_s1 + $0x154] sm:$0xff] }
 0x515   : > { %v2371_v37 = vpack.c.bf16 %v2368_v43, %v2367_v32  ;;  %v2322_v48 = vpop.f32.mrf.mxu0 }
 0x516   : > { %v2329_v50 = vadd.f32 %v2322_v48, %v2276_v31 }
 0x517   : > { %2445 = vmatmul.bf16.vlgmr.msra.gmra.mxu1 %v2371_v37  ;;  %v2271_v45 = vpop.f32.mrf.mxu3 }
 0x518   : > { %v2357_v56 = vadd.f32 %v2348_v53, %v2329_v50  ;;  %v2277_v51 = vadd.f32 %v2271_v45, %v2224_v52 }
 0x51a   : > { %v2365_v54 = vmul.f32 0.2, %v2357_v56  ;;  %vm2361_vm14 = vcmp.ge.f32.partialorder %v2357_v56, 0.0 }
 0x51c   : > { %v2369_v60 = vsel %vm2361_vm14, %v2357_v56, %v2365_v54  ;;  %v13033_v56 = vld [vmem:[%s19831_s1 + $0x15c] sm:$0xff] }
 0x51d   : > { %v2324_v29 = vpop.f32.mrf.mxu0 }
 0x51e   : > { %v2330_v55 = vadd.f32 %v2324_v29, %v2277_v51 }
 0x520   : > { %v2358_v58 = vadd.f32 %v2353_v57, %v2330_v55 }
 0x522   : > { %v2366_v59 = vmul.f32 0.2, %v2358_v58  ;;  %vm2362_vm15 = vcmp.ge.f32.partialorder %v2358_v58, 0.0 }
 0x524   : > { %v2370_v61 = vsel %vm2362_vm15, %v2358_v58, %v2366_v59 }
 0x525   : > { %v2372_v62 = vpack.c.bf16 %v2370_v61, %v2369_v60 }
 0x527   : > { %2450 = vmatmul.bf16.gmra.mxu1 %v2372_v62 }
 0x594   : > { %v2446_v0 = vpop.f32.mrf.mxu1 }
 0x59c   : > { %v2448_v63 = vpop.f32.mrf.mxu1 }
 0x59d   : > { %v15333_v1 = vpack.i.bf16 %v2448_v63, %v2446_v0  ;;  %v15348_v13 = vpack.c.bf16 %v2448_v63, %v2446_v0 }
 0x59f   : > { %13554 = vrot.lane.b32.xlu0 %v15333_v1, %s19880_s14 }
 0x5a4   : > { %v2451_v2 = vpop.f32.mrf.mxu1 }
 0x5ac   : > { %v2453_v4 = vpop.f32.mrf.mxu1 }
 0x5ad   : > { %v15337_v8 = vpack.i.bf16 %v2453_v4, %v2451_v2  ;;  %v15339_v12 = vpack.c.bf16 %v2453_v4, %v2451_v2  ;;  %v13036_v2 = vld [vmem:[%s19831_s1 + $0x174] sm:$0xff]  ;;  %v13035_v4 = vld [vmem:[%s19831_s1 + $0x16c] sm:$0xff] }
 0x5af   : > { %13579 = vrot.lane.b32.xlu0 %v15337_v8, %s14668_s20  ;;  %13559 = vrot.lane.b32.xlu1 %v15337_v8, %s14669_s27 }
 0x5b0   : > { %13549 = vrot.lane.b32.xlu2 %v15337_v8, %s19880_s14  ;;  %2541 = vmatpush.bf16.msra.mxu3 %v15339_v12 }
 0x5b4   : > { %2542 = vmatpush.bf16.msra.mxu3 %v15348_v13 }
 0x5b7   : > { %13584 = vrot.lane.b32.xlu0 %v15333_v1, %s14668_s20  ;;  %13564 = vrot.lane.b32.xlu1 %v15333_v1, %s14669_s27 }
 0x5b8   : > { %13569 = vrot.lane.b32.xlu2 %v15337_v8, %s19872_s15  ;;  %11304 = vmatmul.msk.bf16.vlgmr.msra.gmra.mxu3 %vm1899_vm11, %v13030_v20 }
 0x5bf   : > { %13599 = vrot.lane.b32.xlu0 %v15337_v8, %s19876_s29  ;;  %13594 = vrot.lane.b32.xlu1 %v15337_v8, %s19878_s18 }
 0x5c0   : > { %13574 = vrot.lane.b32.xlu2 %v15333_v1, %s19872_s15  ;;  %s19902_s15 = smov 116  }
 0x5c7   : > { %13604 = vrot.lane.b32.xlu0 %v15333_v1, %s19876_s29  ;;  %13609 = vrot.lane.b32.xlu1 %v15337_v8, %s19870_s23  ;;  %s19908_s29 = smov 107  }
 0x5c8   : > { %13589 = vrot.lane.b32.xlu2 %v15333_v1, %s19878_s18  ;;  %11305 = vmatmul.msk.bf16.gmra.mxu3 %vm1899_vm11, %v13031_v21 }
 0x5cf   : > { %2931 = vperm.xlu0 %13467, %v2925_v5   ;;  %13614 = vrot.lane.b32.xlu1 %v15333_v1, %s19870_s23  ;;  %s12953_s23 = sshll.u32 %s19986_s26, 2 }
 0x5d0   : > { %13619 = vrot.lane.b32.xlu2 %v15337_v8, %s19874_s16  ;;  %s440_s4 = scalar_lea.vmem %s19843_s13, %s12953_s23 }
 0x5d7   : > { %2946 = vperm.xlu0 %13467, %v2928_v14   ;;  %2936 = vperm.xlu1 %13465, %v2926_v15  }
 0x5d8   : > { %13624 = vrot.lane.b32.xlu2 %v15333_v1, %s19874_s16  ;;  %s19913_s16 = smov 91  }
 0x5df   : > { %3078 = vperm.xlu0 %13467, %v3072_v16  }
 0x5e0   : > { %2941 = vperm.xlu2 %13466, %v2927_v17  }
 0x5e7   : > { %3093 = vperm.xlu0 %13467, %v3075_v19  }
 0x60a   : > { %v13550_v22 = vpop.permute.xlu2 %13549 }
 0x60b   : > { %v13552_v23 = vunpack.i.h.bf16 %v13550_v22  ;;  %v13551_v26 = vunpack.i.l.bf16 %v13550_v22 }
 0x60d   : > { %v2483_v27 = vpack.c.bf16 %v13552_v23, %v13551_v26 }
 0x60f   : > { %2506 = vmatpush.bf16.msra.mxu2 %v2483_v27 }
 0x611   : > { %v13555_v28 = vpop.permute.xlu0 %13554 }
 0x612   : > { %v13557_v30 = vunpack.i.h.bf16 %v13555_v28  ;;  %v13556_v34 = vunpack.i.l.bf16 %v13555_v28  ;;  %v13570_v35 = vpop.permute.xlu2 %13569 }
 0x613   : > { %v13572_v39 = vunpack.i.h.bf16 %v13570_v35  ;;  %v13571_v24 = vunpack.i.l.bf16 %v13570_v35  ;;  %v13055_v35 = vld [vmem:[%s19896_s6 + $0x38] sm:$0xff] }
 0x614   : > { %v2482_v7 = vpack.c.bf16 %v13557_v30, %v13556_v34  ;;  %v13038_v34 = vld [vmem:[%s19831_s1 + $0x184] sm:$0xff] }
 0x615   : > { %v2567_v38 = vpack.c.bf16 %v13572_v39, %v13571_v24 }
 0x616   : > { %2507 = vmatpush.bf16.msra.mxu2 %v2482_v7 }
 0x617   : > { %2590 = vmatpush.bf16.msrb.mxu0 %v2567_v38  ;;  %v13040_v38 = vld [vmem:[%s19831_s1 + $0x194] sm:$0xff] }
 0x619   : > { %11294 = vmatmul.msk.bf16.vlgmr.msra.gmra.mxu2 %vm1899_vm11, %v13032_v9 }
 0x61a   : > { %v13575_v40 = vpop.permute.xlu2 %13574 }
 0x61b   : > { %v13577_v42 = vunpack.i.h.bf16 %v13575_v40  ;;  %v13576_v32 = vunpack.i.l.bf16 %v13575_v40 }
 0x61d   : > { %v2566_v43 = vpack.c.bf16 %v13577_v42, %v13576_v32 }
 0x61f   : > { %2591 = vmatpush.bf16.msrb.mxu0 %v2566_v43  ;;  %v13054_v43 = vld [vmem:[%s19896_s6 + $0x30] sm:$0xff] }
 0x621   : > { %v13580_v37 = vpop.permute.xlu0 %13579  ;;  %v13560_v48 = vpop.permute.xlu1 %13559 }
 0x622   : > { %v13582_v31 = vunpack.i.h.bf16 %v13580_v37  ;;  %v13581_v41 = vunpack.i.l.bf16 %v13580_v37  ;;  %v13562_v49 = vunpack.i.h.bf16 %v13560_v48  ;;  %v13561_v50 = vunpack.i.l.bf16 %v13560_v48  ;;  %v13590_v45 = vpop.permute.xlu2 %13589  ;;  %11314 = vmatmul.msk.bf16.vlgmr.msrb.gmra.mxu0 %vm1899_vm11, %v13034_v36  ;;  %v13037_v48 = vld [vmem:[%s19831_s1 + $0x17c] sm:$0xff] }
 0x623   : > { %v13592_v23 = vunpack.i.h.bf16 %v13590_v45  ;;  %v13591_v26 = vunpack.i.l.bf16 %v13590_v45  ;;  %v13052_v45 = vld [vmem:[%s19896_s6 + $0x20] sm:$0xff] }
 0x624   : > { %v2620_v52 = vpack.c.bf16 %v13582_v31, %v13581_v41  ;;  %v2673_v53 = vpack.c.bf16 %v13562_v49, %v13561_v50  ;;  %v13053_v31 = vld [vmem:[%s19896_s6 + $0x28] sm:$0xff] }
 0x625   : > { %v2725_v39 = vpack.c.bf16 %v13592_v23, %v13591_v26 }
 0x626   : > { %2643 = vmatpush.bf16.msrb.mxu1 %v2620_v52  ;;  %2696 = vmatpush.bf16.msrb.mxu2 %v2673_v53  ;;  %v13039_v53 = vld [vmem:[%s19831_s1 + $0x18c] sm:$0xff] }
 0x629   : > { %v13585_v51 = vpop.permute.xlu0 %13584  ;;  %v13565_v29 = vpop.permute.xlu1 %13564  ;;  %11295 = vmatmul.msk.bf16.gmra.mxu2 %vm1899_vm11, %v13033_v56  ;;  %v13042_v56 = vld [vmem:[%s19831_s1 + $0x1a4] sm:$0xff] }
 0x62a   : > { %v13587_v55 = vunpack.i.h.bf16 %v13585_v51  ;;  %v13586_v57 = vunpack.i.l.bf16 %v13585_v51  ;;  %v13567_v54 = vunpack.i.h.bf16 %v13565_v29  ;;  %v13566_v58 = vunpack.i.l.bf16 %v13565_v29  ;;  %v13620_v59 = vpop.permute.xlu2 %13619  ;;  %v13051_v51 = vld [vmem:[%s19896_s6 + $0x18] sm:$0xff] }
 0x62b   : > { %v13622_v60 = vunpack.i.h.bf16 %v13620_v59  ;;  %v13621_v61 = vunpack.i.l.bf16 %v13620_v59  ;;  %v13041_v29 = vld [vmem:[%s19831_s1 + $0x19c] sm:$0xff]  ;;  %v13043_v59 = vld [vmem:[%s19831_s1 + $0x1ac] sm:$0xff] }
 0x62c   : > { %v2619_v62 = vpack.c.bf16 %v13587_v55, %v13586_v57  ;;  %v2672_v0 = vpack.c.bf16 %v13567_v54, %v13566_v58  ;;  %v13050_v55 = vld [vmem:[%s19896_s6 + $0x10] sm:$0xff]  ;;  %v13049_v54 = vld [vmem:[%s19896_s6 + $0x8] sm:$0xff]  ;;  %v13048_v58 = vld [vmem:[%s19896_s6] sm:$0xff] }
 0x62d   : > { %v2832_v63 = vpack.c.bf16 %v13622_v60, %v13621_v61  ;;  %v13044_v57 = vld [vmem:[%s19831_s1 + $0x1b4] sm:$0xff]  ;;  %v13046_v60 = vld [vmem:[%s19831_s1 + $0x1c4] sm:$0xff]  ;;  %v13045_v61 = vld [vmem:[%s19831_s1 + $0x1bc] sm:$0xff] }
 0x62e   : > { %2644 = vmatpush.bf16.msrb.mxu1 %v2619_v62  ;;  %2697 = vmatpush.bf16.msrb.mxu2 %v2672_v0  ;;  %v13047_v62 = vld [vmem:[%s19831_s1 + $0x1cc] sm:$0xff] }
 0x631   : > { %v13600_v5 = vpop.permute.xlu0 %13599  ;;  %11324 = vmatmul.msk.bf16.vlgmr.msrb.gmra.mxu1 %vm1899_vm11, %v13036_v2  ;;  %v13595_v14 = vpop.permute.xlu1 %13594 }
 0x632   : > { %2855 = vmatpush.bf16.msra.mxu1 %v2832_v63  ;;  %v13602_v15 = vunpack.i.h.bf16 %v13600_v5  ;;  %v13601_v16 = vunpack.i.l.bf16 %v13600_v5  ;;  %v13597_v17 = vunpack.i.h.bf16 %v13595_v14  ;;  %v13596_v19 = vunpack.i.l.bf16 %v13595_v14  ;;  %v13625_v20 = vpop.permute.xlu2 %13624  ;;  %11315 = vmatmul.msk.bf16.gmra.mxu0 %vm1899_vm11, %v13035_v4 }
 0x633   : > { %v13627_v21 = vunpack.i.h.bf16 %v13625_v20  ;;  %v13626_v22 = vunpack.i.l.bf16 %v13625_v20 }
 0x634   : > { %v2885_v27 = vpack.c.bf16 %v13602_v15, %v13601_v16  ;;  %v2726_v28 = vpack.c.bf16 %v13597_v17, %v13596_v19 }
 0x635   : > { %v2831_v30 = vpack.c.bf16 %v13627_v21, %v13626_v22 }
 0x636   : > { %2749 = vmatpush.bf16.msrb.mxu3 %v2726_v28  ;;  %2908 = vmatpush.bf16.msra.mxu2 %v2885_v27 }
 0x637   : > { %2856 = vmatpush.bf16.msra.mxu1 %v2831_v30 }
 0x639   : > { %v13605_v24 = vpop.permute.xlu0 %13604  ;;  %v13610_v7 = vpop.permute.xlu1 %13609  ;;  %11334 = vmatmul.msk.bf16.vlgmr.msrb.gmra.mxu2 %vm1899_vm11, %v13038_v34 }
 0x63a   : > { %v13607_v9 = vunpack.i.h.bf16 %v13605_v24  ;;  %v13606_v40 = vunpack.i.l.bf16 %v13605_v24  ;;  %v13612_v42 = vunpack.i.h.bf16 %v13610_v7  ;;  %v13611_v32 = vunpack.i.l.bf16 %v13610_v7  ;;  %2750 = vmatpush.bf16.msrb.mxu3 %v2725_v39 }
 0x63b   : > { %v2544_v63 = vpop.f32.mrf.mxu3 }
 0x63c   : > { %v2779_v36 = vpack.c.bf16 %v13612_v42, %v13611_v32  ;;  %v2884_v37 = vpack.c.bf16 %v13607_v9, %v13606_v40 }
 0x63d   : > { %11344 = vmatmul.msk.bf16.vlgmr.msrb.gmra.mxu3 %vm1899_vm11, %v13040_v38 }
 0x63e   : > { %3031 = vmatpush.bf16.msra.mxu3 %v13055_v35  ;;  %2802 = vmatpush.bf16.msra.mxu0 %v2779_v36 }
 0x63f   : > { %2909 = vmatpush.bf16.msra.mxu2 %v2884_v37 }
 0x641   : > { %11325 = vmatmul.msk.bf16.gmra.mxu1 %vm1899_vm11, %v13037_v48  ;;  %v13615_v41 = vpop.permute.xlu1 %13614 }
 0x642   : > { %3032 = vmatpush.bf16.msra.mxu3 %v13054_v43  ;;  %v13617_v49 = vunpack.i.h.bf16 %v13615_v41  ;;  %v13616_v50 = vunpack.i.l.bf16 %v13615_v41 }
 0x643   : > { %v2546_v14 = vpop.f32.mrf.mxu3 }
 0x644   : > { %v2778_v52 = vpack.c.bf16 %v13617_v49, %v13616_v50 }
 0x646   : > { %3033 = vmatpush.bf16.msra.mxu3 %v13053_v31  ;;  %2803 = vmatpush.bf16.msra.mxu0 %v2778_v52 }
 0x649   : > { %11335 = vmatmul.msk.bf16.gmra.mxu2 %vm1899_vm11, %v13039_v53  ;;  %11354 = vmatmul.msk.bf16.vlgmr.msra.gmra.mxu0 %vm1899_vm11, %v13042_v56 }
 0x64a   : > { %3034 = vmatpush.bf16.msra.mxu3 %v13052_v45 }
 0x64b   : > { %v2549_v17 = vpop.f32.mrf.mxu3 }
 0x64d   : > { %11345 = vmatmul.msk.bf16.gmra.mxu3 %vm1899_vm11, %v13041_v29 }
 0x64e   : > { %3035 = vmatpush.bf16.msra.mxu3 %v13051_v51  ;;  %v2932_v51 = vpop.permute.xlu0 %2931 }
 0x651   : > { %11364 = vmatmul.msk.bf16.vlgmr.msra.gmra.mxu1 %vm1899_vm11, %v13044_v57 }
 0x652   : > { %3036 = vmatpush.bf16.msra.mxu3 %v13050_v55 }
 0x653   : > { %v2551_v23 = vpop.f32.mrf.mxu3 }
 0x656   : > { %3037 = vmatpush.bf16.msra.mxu3 %v13049_v54 }
 0x659   : > { %11355 = vmatmul.msk.bf16.gmra.mxu0 %vm1899_vm11, %v13043_v59  ;;  %11374 = vmatmul.msk.bf16.vlgmr.msra.gmra.mxu2 %vm1899_vm11, %v13046_v60 }
 0x65a   : > { %3038 = vmatpush.bf16.msra.mxu3 %v13048_v58 }
 0x65e   : > { %3328 = vmatpush.bf16.msrb.mxu3 %v15339_v12 }
 0x661   : > { %11365 = vmatmul.msk.bf16.gmra.mxu1 %vm1899_vm11, %v13045_v61 }
 0x662   : > { %3329 = vmatpush.bf16.msrb.mxu3 %v15348_v13 }
 0x669   : > { %11375 = vmatmul.msk.bf16.gmra.mxu2 %vm1899_vm11, %v13047_v62 }
 0x69c   : > { %v2509_v0 = vpop.f32.mrf.mxu2 }
 0x69d   : > { %v2545_v34 = vadd.f32 %v2544_v63, %v2509_v0  ;;  %v2937_v0 = vpop.permute.xlu1 %2936 }
 0x69f   : > { %v2593_v2 = vpop.f32.mrf.mxu0 }
 0x6a0   : > { %v2603_v24 = vadd.f32 %v2593_v2, %v2545_v34 }
 0x6a4   : > { %v2511_v12 = vpop.f32.mrf.mxu2 }
 0x6a5   : > { %v2547_v38 = vadd.f32 %v2546_v14, %v2511_v12 }
 0x6a7   : > { %v2595_v13 = vpop.f32.mrf.mxu0 }
 0x6a8   : > { %v2604_v32 = vadd.f32 %v2595_v13, %v2547_v38  ;;  %v2942_v38 = vpop.permute.xlu2 %2941 }
 0x6ac   : > { %v2514_v4 = vpop.f32.mrf.mxu2 }
 0x6ad   : > { %v2550_v45 = vadd.f32 %v2549_v17, %v2514_v4 }
 0x6ae   : > { %v2646_v5 = vpop.f32.mrf.mxu1 }
 0x6af   : > { %v2598_v20 = vpop.f32.mrf.mxu0  ;;  %v2656_v9 = vadd.f32 %v2646_v5, %v2603_v24 }
 0x6b0   : > { %v2605_v55 = vadd.f32 %v2598_v20, %v2550_v45  ;;  %v3074_v45 = vld [vmem:[%s19832_s2 + $0x78] sm:$0xff] }
 0x6b4   : > { %v2516_v15 = vpop.f32.mrf.mxu2 }
 0x6b5   : > { %v2552_v60 = vadd.f32 %v2551_v23, %v2516_v15 }
 0x6b6   : > { %v2648_v16 = vpop.f32.mrf.mxu1 }
 0x6b7   : > { %v2600_v26 = vpop.f32.mrf.mxu0  ;;  %v2657_v37 = vadd.f32 %v2648_v16, %v2604_v32 }
 0x6b8   : > { %v2606_v4 = vadd.f32 %v2600_v26, %v2552_v60 }
 0x6bc   : > { %v2699_v19 = vpop.f32.mrf.mxu2 }
 0x6bd   : > { %v2709_v40 = vadd.f32 %v2699_v19, %v2656_v9 }
 0x6be   : > { %v2651_v21 = vpop.f32.mrf.mxu1 }
 0x6bf   : > { %v2658_v61 = vadd.f32 %v2651_v21, %v2605_v55  ;;  %v13064_v55 = vld [vmem:[%s19837_s7 + $0x30] sm:$0xff] }
 0x6c0   : > { %v2752_v30 = vpop.f32.mrf.mxu3 }
 0x6c1   : > { %v2762_v43 = vadd.f32 %v2752_v30, %v2709_v40 }
 0x6c4   : > { %v2701_v22 = vpop.f32.mrf.mxu2 }
 0x6c5   : > { %v2710_v49 = vadd.f32 %v2701_v22, %v2657_v37 }
 0x6c6   : > { %v2653_v27 = vpop.f32.mrf.mxu1  ;;  %v2805_v35 = vpop.f32.mrf.mxu0 }
 0x6c7   : > { %v2815_v48 = vadd.f32 %v2805_v35, %v2762_v43  ;;  %v2659_v16 = vadd.f32 %v2653_v27, %v2606_v4  ;;  %v2947_v27 = vpop.permute.xlu0 %2946 }
 0x6c8   : > { %v2754_v42 = vpop.f32.mrf.mxu3 }
 0x6c9   : > { %v2763_v52 = vadd.f32 %v2754_v42, %v2710_v49 }
 0x6cc   : > { %v2704_v28 = vpop.f32.mrf.mxu2 }
 0x6cd   : > { %v2711_v63 = vadd.f32 %v2704_v28, %v2658_v61 }
 0x6ce   : > { %v2858_v39 = vpop.f32.mrf.mxu1  ;;  %v2807_v36 = vpop.f32.mrf.mxu0 }
 0x6cf   : > { %v2868_v50 = vadd.f32 %v2858_v39, %v2815_v48  ;;  %v2816_v56 = vadd.f32 %v2807_v36, %v2763_v52 }
 0x6d0   : > { %v2757_v29 = vpop.f32.mrf.mxu3 }
 0x6d1   : > { %v2764_v14 = vadd.f32 %v2757_v29, %v2711_v63  ;;  %v13065_v29 = vld [vmem:[%s19837_s7 + $0x38] sm:$0xff] }
 0x6d2   : > { %3209 = vmatpush.bf16.msrb.mxu1 %v13065_v29 }
 0x6d4   : > { %v2706_v7 = vpop.f32.mrf.mxu2 }
 0x6d5   : > { %v2712_v15 = vadd.f32 %v2706_v7, %v2659_v16 }
 0x6d6   : > { %v2860_v31 = vpop.f32.mrf.mxu1  ;;  %v2810_v58 = vpop.f32.mrf.mxu0  ;;  %3210 = vmatpush.bf16.msrb.mxu1 %v13064_v55 }
 0x6d7   : > { %v2869_v57 = vadd.f32 %v2860_v31, %v2816_v56  ;;  %v2817_v17 = vadd.f32 %v2810_v58, %v2764_v14  ;;  %v3073_v56 = vld [vmem:[%s19832_s2 + $0x70] sm:$0xff] }
 0x6d8   : > { %v2759_v22 = vpop.f32.mrf.mxu3 }
 0x6d9   : > { %v2765_v35 = vadd.f32 %v2759_v22, %v2712_v15  ;;  %v13060_v15 = vld [vmem:[%s19837_s7 + $0x10] sm:$0xff] }
 0x6dc   : > { %v2911_v41 = vpop.f32.mrf.mxu2 }
 0x6dd   : > { %v2921_v53 = vadd.f32 %v2911_v41, %v2868_v50 }
 0x6de   : > { %v2863_v12 = vpop.f32.mrf.mxu1  ;;  %v2812_v23 = vpop.f32.mrf.mxu0 }
 0x6df   : > { %v2949_v54 = vadd.f32 %v2932_v51, %v2921_v53  ;;  %v2870_v21 = vadd.f32 %v2863_v12, %v2817_v17  ;;  %v2818_v24 = vadd.f32 %v2812_v23, %v2765_v35  ;;  %v13062_v12 = vld [vmem:[%s19837_s7 + $0x20] sm:$0xff] }
 0x6e0   : > { %v13058_v23 = vld [vmem:[%s19837_s7] sm:$0xff] }
 0x6e1   : > { %v2957_v2 = vmul.f32 0.2, %v2949_v54  ;;  %vm2953_vm10 = vcmp.ge.f32.partialorder %v2949_v54, 0.0 }
 0x6e3   : > { %v2961_v19 = vsel %vm2953_vm10, %v2949_v54, %v2957_v2 }
 0x6e4   : > { %v2913_v59 = vpop.f32.mrf.mxu2 }
 0x6e5   : > { %v2922_v62 = vadd.f32 %v2913_v59, %v2869_v57  ;;  %v13063_v59 = vld [vmem:[%s19837_s7 + $0x28] sm:$0xff] }
 0x6e6   : > { %v2865_v39 = vpop.f32.mrf.mxu1  ;;  %3211 = vmatpush.bf16.msrb.mxu1 %v13063_v59 }
 0x6e7   : > { %v2950_v5 = vadd.f32 %v2937_v0, %v2922_v62  ;;  %v2871_v26 = vadd.f32 %v2865_v39, %v2818_v24 }
 0x6e9   : > { %vm2954_vm12 = vcmp.ge.f32.partialorder %v2950_v5, 0.0  ;;  %v2958_v13 = vmul.f32 0.2, %v2950_v5 }
 0x6ea   : > { %3212 = vmatpush.bf16.msrb.mxu1 %v13062_v12 }
 0x6eb   : > { %v2962_v20 = vsel %vm2954_vm12, %v2950_v5, %v2958_v13  ;;  %v13056_v5 = vld [vmem:[%s19831_s1 + $0x214] sm:$0xff] }
 0x6ec   : > { %v2965_v30 = vpack.c.bf16 %v2962_v20, %v2961_v19  ;;  %v2916_v34 = vpop.f32.mrf.mxu2 }
 0x6ed   : > { %v2923_v28 = vadd.f32 %v2916_v34, %v2870_v21  ;;  %v13061_v34 = vld [vmem:[%s19837_s7 + $0x18] sm:$0xff]  ;;  %v13059_v21 = vld [vmem:[%s19837_s7 + $0x8] sm:$0xff] }
 0x6ee   : > { %3039 = vmatmul.bf16.vlgmr.msra.gmra.mxu3 %v2965_v30  ;;  %v13057_v30 = vld [vmem:[%s19831_s1 + $0x21c] sm:$0xff]  ;;  %3213 = vmatpush.bf16.msrb.mxu1 %v13061_v34 }
 0x6ef   : > { %v2951_v9 = vadd.f32 %v2942_v38, %v2923_v28  ;;  %v3079_v28 = vpop.permute.xlu0 %3078 }
 0x6f1   : > { %v2959_v32 = vmul.f32 0.2, %v2951_v9  ;;  %vm2955_vm13 = vcmp.ge.f32.partialorder %v2951_v9, 0.0 }
 0x6f2   : > { %3214 = vmatpush.bf16.msrb.mxu1 %v13060_v15 }
 0x6f3   : > { %v2963_v37 = vsel %vm2955_vm13, %v2951_v9, %v2959_v32 }
 0x6f4   : > { %v2918_v40 = vpop.f32.mrf.mxu2 }
 0x6f5   : > { %v2924_v42 = vadd.f32 %v2918_v40, %v2871_v26 }
 0x6f6   : > { %3215 = vmatpush.bf16.msrb.mxu1 %v13059_v21 }
 0x6f7   : > { %v2952_v43 = vadd.f32 %v2947_v27, %v2924_v42 }
 0x6f9   : > { %v2960_v36 = vmul.f32 0.2, %v2952_v43  ;;  %vm2956_vm14 = vcmp.ge.f32.partialorder %v2952_v43, 0.0 }
 0x6fa   : > { %3216 = vmatpush.bf16.msrb.mxu1 %v13058_v23 }
 0x6fb   : > { %v2964_v7 = vsel %vm2956_vm14, %v2952_v43, %v2960_v36  ;;  %v3094_v36 = vpop.permute.xlu0 %3093  ;;  %vm3282_vm14 = vcmask 523264  }
 0x6fc   : > { %v2966_v48 = vpack.c.bf16 %v2964_v7, %v2963_v37 }
 0x6fe   : > { %3044 = vmatmul.bf16.gmra.mxu3 %v2966_v48 }
 0x771   : > { %v3040_v31 = vpop.f32.mrf.mxu3 }
 0x779   : > { %v3042_v41 = vpop.f32.mrf.mxu3 }
 0x77a   : > { %v13633_v49 = vpack.i.bf16 %v3042_v41, %v3040_v31 }
 0x77c   : > { %13634 = vrot.lane.b32.xlu2 %v13633_v49, %s14668_s20 }
 0x781   : > { %v3045_v50 = vpop.f32.mrf.mxu3 }
 0x784   : > { %3088 = vperm.xlu2 %13466, %v3074_v45  }
 0x789   : > { %v3047_v52 = vpop.f32.mrf.mxu3 }
 0x78a   : > { %v13628_v53 = vpack.i.bf16 %v3047_v52, %v3045_v50 }
 0x78c   : > { %13644 = vrot.lane.b32.xlu2 %v15333_v1, %s19880_s14  ;;  %13629 = vrot.lane.b32.xlu1 %v13628_v53, %s14668_s20 }
 0x794   : > { %13649 = vrot.lane.b32.xlu2 %v15337_v8, %s14669_s27  ;;  %3083 = vperm.xlu1 %13465, %v3073_v56  }
 0x79c   : > { %13674 = vrot.lane.b32.xlu2 %v15333_v1, %s14669_s27  ;;  %13639 = vrot.lane.b32.xlu1 %v15337_v8, %s19880_s14 }
 0x7d6   : > { %v13635_v51 = vpop.permute.xlu2 %13634 }
 0x7d7   : > { %v13637_v60 = vunpack.i.h.bf16 %v13635_v51  ;;  %v13636_v61 = vunpack.i.l.bf16 %v13635_v51 }
 0x7d9   : > { %v3070_v63 = vpack.c.bf16 %v13637_v60, %v13636_v61  ;;  %v3784_v60 = vld [vmem:[%s19832_s2 + $0x88] sm:$0xff] }
 0x7de   : > { %v3089_v0 = vpop.permute.xlu2 %3088 }
 0x7e6   : > { %v13645_v4 = vpop.permute.xlu2 %13644 }
 0x7e7   : > { %v13647_v17 = vunpack.i.h.bf16 %v13645_v4  ;;  %v13646_v19 = vunpack.i.l.bf16 %v13645_v4 }
 0x7e9   : > { %v3270_v22 = vpack.c.bf16 %v13647_v17, %v13646_v19  ;;  %v13067_v19 = vld [vmem:[%s19831_s1 + $0x26c] sm:$0xff] }
 0x7fe   : > { %v13630_v57 = vpop.permute.xlu1 %13629 }
 0x7ff   : > { %v13632_v54 = vunpack.i.h.bf16 %v13630_v57  ;;  %v13631_v58 = vunpack.i.l.bf16 %v13630_v57 }
 0x801   : > { %v3071_v62 = vpack.c.bf16 %v13632_v54, %v13631_v58  ;;  %v3786_v54 = vld [vmem:[%s19832_s2 + $0x98] sm:$0xff]  ;;  %v13650_v58 = vpop.permute.xlu2 %13649 }
 0x803   : > { %3118 = vmatpush.bf16.msrb.mxu0 %v3071_v62 }
 0x806   : > { %v3084_v2 = vpop.permute.xlu1 %3083 }
 0x807   : > { %3119 = vmatpush.bf16.msrb.mxu0 %v3070_v63  ;;  %v3787_v63 = vld [vmem:[%s19832_s2 + $0xa0] sm:$0xff] }
 0x809   : > { %v15588_v59 = vpop.permute.xlu2 %13674 }
 0x80a   : > { %11416 = vmatmul.msk.bf16.vlgmr.msrb.gmra.mxu0 %vm1899_vm11, %v13056_v5 }
 0x80e   : > { %v13640_v14 = vpop.permute.xlu1 %13639 }
 0x80f   : > { %v13642_v13 = vunpack.i.h.bf16 %v13640_v14  ;;  %v13641_v16 = vunpack.i.l.bf16 %v13640_v14 }
 0x811   : > { %v3271_v20 = vpack.c.bf16 %v13642_v13, %v13641_v16 }
 0x813   : > { %3293 = vmatpush.bf16.msrb.mxu2 %v3271_v20 }
 0x817   : > { %3294 = vmatpush.bf16.msrb.mxu2 %v3270_v22 }
 0x81a   : > { %11417 = vmatmul.msk.bf16.gmra.mxu0 %vm1899_vm11, %v13057_v30 }
 0x887   : > { %v3121_v35 = vpop.f32.mrf.mxu0 }
 0x888   : > { %v3122_v39 = vadd.f32 %v3121_v35, %v3079_v28 }
 0x88a   : > { %v3135_v38 = vmul.f32 0.2, %v3122_v39  ;;  %vm3131_vm15 = vcmp.ge.f32.partialorder %v3122_v39, 0.0 }
 0x88c   : > { %v3139_v40 = vsel %vm3131_vm15, %v3122_v39, %v3135_v38  ;;  %v13652_v38 = vunpack.i.h.bf16 %v13650_v58 }
 0x88f   : > { %v3123_v24 = vpop.f32.mrf.mxu0 }
 0x890   : > { %v3124_v26 = vadd.f32 %v3123_v24, %v3084_v2  ;;  %v13066_v2 = vld [vmem:[%s19831_s1 + $0x264] sm:$0xff] }
 0x892   : > { %vm3132_vm10 = vcmp.ge.f32.partialorder %v3124_v26, 0.0  ;;  %v3136_v9 = vmul.f32 0.2, %v3124_v26 }
 0x894   : > { %v3140_v42 = vsel %vm3132_vm10, %v3124_v26, %v3136_v9  ;;  %v13651_v26 = vunpack.i.l.bf16 %v13650_v58 }
 0x895   : > { %v3143_v27 = vpack.c.bf16 %v3140_v42, %v3139_v40 }
 0x896   : > { %v3492_v42 = vpack.c.bf16 %v13652_v38, %v13651_v26 }
 0x897   : > { %v3126_v32 = vpop.f32.mrf.mxu0  ;;  %3217 = vmatmul.bf16.vlgmr.msrb.gmra.mxu1 %v3143_v27  ;;  %v13677_v27 = vunpack.i.h.bf16 %v15588_v59 }
 0x898   : > { %v3127_v43 = vadd.f32 %v3126_v32, %v3089_v0  ;;  %v13676_v32 = vunpack.i.l.bf16 %v15588_v59 }
 0x89a   : > { %v3137_v7 = vmul.f32 0.2, %v3127_v43  ;;  %vm3133_vm12 = vcmp.ge.f32.partialorder %v3127_v43, 0.0 }
 0x89c   : > { %v3141_v41 = vsel %vm3133_vm12, %v3127_v43, %v3137_v7 }
 0x89f   : > { %v3128_v37 = vpop.f32.mrf.mxu0 }
 0x8a0   : > { %v3129_v48 = vadd.f32 %v3128_v37, %v3094_v36  ;;  %v13068_v36 = vld [vmem:[%s19831_s1 + $0x274] sm:$0xff] }
 0x8a2   : > { %vm3134_vm13 = vcmp.ge.f32.partialorder %v3129_v48, 0.0  ;;  %v3138_v31 = vmul.f32 0.2, %v3129_v48 }
 0x8a4   : > { %v3142_v49 = vsel %vm3134_vm13, %v3129_v48, %v3138_v31 }
 0x8a5   : > { %v3144_v50 = vpack.c.bf16 %v3142_v49, %v3141_v41 }
 0x8a7   : > { %3222 = vmatmul.bf16.gmra.mxu1 %v3144_v50  ;;  %v3491_v50 = vpack.c.bf16 %v13677_v27, %v13676_v32 }
 0x914   : > { %v3218_v45 = vpop.f32.mrf.mxu1 }
 0x91c   : > { %v3220_v52 = vpop.f32.mrf.mxu1 }
 0x91d   : > { %v13688_v53 = vpack.i.bf16 %v3220_v52, %v3218_v45  ;;  %v3244_v57 = vpack.c.bf16 %v3220_v52, %v3218_v45 }
 0x91f   : > { %13689 = vrot.lane.b32.xlu2 %v13688_v53, %s14669_s27  ;;  %13654 = vrot.lane.b32.xlu1 %v13688_v53, %s19880_s14 }
 0x924   : > { %v3223_v56 = vpop.f32.mrf.mxu1 }
 0x927   : > { %13704 = vrot.lane.b32.xlu2 %v15337_v8, %s19878_s18  ;;  %13669 = vrot.lane.b32.xlu1 %v15337_v8, %s14668_s20 }
 0x92c   : > { %v3225_v51 = vpop.f32.mrf.mxu1 }
 0x92d   : > { %v13708_v29 = vpack.i.bf16 %v3225_v51, %v3223_v56  ;;  %v3245_v55 = vpack.c.bf16 %v3225_v51, %v3223_v56 }
 0x92f   : > { %13684 = vrot.lane.b32.xlu1 %v15333_v1, %s14668_s20  ;;  %13709 = vrot.lane.b32.xlu2 %v13708_v29, %s14669_s27  ;;  %s19905_s27 = smov 115  }
 0x930   : > { %13659 = vrot.lane.b32.xlu0 %v13708_v29, %s19880_s14  ;;  %3330 = vmatpush.bf16.msrb.mxu3 %v3245_v55 }
 0x934   : > { %3331 = vmatpush.bf16.msrb.mxu3 %v3244_v57 }
 0x937   : > { %13699 = vrot.lane.b32.xlu1 %v13688_v53, %s14668_s20  ;;  %13744 = vrot.lane.b32.xlu2 %v15333_v1, %s19897_s19 }
 0x938   : > { %13664 = vrot.lane.b32.xlu0 %v15337_v8, %s19898_s21  ;;  %11468 = vmatmul.msk.bf16.vlgmr.msrb.gmra.mxu3 %vm3282_vm14, %v13066_v2 }
 0x93f   : > { %13724 = vrot.lane.b32.xlu1 %v13708_v29, %s14668_s20  ;;  %13759 = vrot.lane.b32.xlu2 %v15333_v1, %s19899_s22  ;;  %s19900_s20 = smov 120  }
 0x940   : > { %13679 = vrot.lane.b32.xlu0 %v15333_v1, %s19898_s21 }
 0x947   : > { %13729 = vrot.lane.b32.xlu1 %v15337_v8, %s19897_s19  ;;  %13764 = vrot.lane.b32.xlu2 %v13708_v29, %s19878_s18 }
 0x948   : > { %13694 = vrot.lane.b32.xlu0 %v13688_v53, %s19898_s21  ;;  %11469 = vmatmul.msk.bf16.gmra.mxu3 %vm3282_vm14, %v13067_v19 }
 0x94f   : > { %13739 = vrot.lane.b32.xlu1 %v15337_v8, %s19899_s22  ;;  %13789 = vrot.lane.b32.xlu2 %v13708_v29, %s19899_s22 }
 0x950   : > { %13714 = vrot.lane.b32.xlu0 %v13708_v29, %s19898_s21 }
 0x957   : > { %13754 = vrot.lane.b32.xlu1 %v15333_v1, %s19900_s20  ;;  %13794 = vrot.lane.b32.xlu2 %v13688_v53, %s19899_s22  ;;  %s19904_s22 = smov 114  }
 0x958   : > { %13719 = vrot.lane.b32.xlu0 %v15333_v1, %s19878_s18  ;;  %v3785_v1 = vld [vmem:[%s19832_s2 + $0x90] sm:$0xff] }
 0x95f   : > { %13779 = vrot.lane.b32.xlu1 %v13708_v29, %s19900_s20  ;;  %3800 = vperm.xlu2 %13466, %v3786_v54  }
 0x960   : > { %13734 = vrot.lane.b32.xlu0 %v15337_v8, %s19900_s20 }
 0x967   : > { %13784 = vrot.lane.b32.xlu1 %v13688_v53, %s19900_s20  ;;  %13804 = vrot.lane.b32.xlu2 %v15183_v44, %s19880_s14 }
 0x968   : > { %13749 = vrot.lane.b32.xlu0 %v13688_v53, %s19878_s18 }
 0x96f   : > { %3795 = vperm.xlu1 %13465, %v3785_v1   ;;  %13809 = vrot.lane.b32.xlu2 %v15189_v46, %s19898_s21 }
 0x970   : > { %13769 = vrot.lane.b32.xlu0 %v13708_v29, %s19897_s19 }
 0x977   : > { %13799 = vrot.lane.b32.xlu1 %v15189_v46, %s19880_s14  ;;  %13824 = vrot.lane.b32.xlu2 %v15183_v44, %s19878_s18 }
 0x978   : > { %13774 = vrot.lane.b32.xlu0 %v13688_v53, %s19897_s19 }
 0x979   : > { %v15595_v8 = vpop.permute.xlu2 %13689 }
 0x97a   : > { %v13692_v45 = vunpack.i.h.bf16 %v15595_v8  ;;  %v13691_v53 = vunpack.i.l.bf16 %v15595_v8  ;;  %v13072_v8 = vld [vmem:[%s19831_s1 + $0x294] sm:$0xff] }
 0x97f   : > { %13819 = vrot.lane.b32.xlu1 %v15183_v44, %s19898_s21  ;;  %13829 = vrot.lane.b32.xlu2 %v15189_v46, %s19901_s24 }
 0x980   : > { %3790 = vperm.xlu0 %13467, %v3784_v60  }
 0x981   : > { %v13705_v61 = vpop.permute.xlu2 %13704 }
 0x982   : > { %v13707_v62 = vunpack.i.h.bf16 %v13705_v61  ;;  %v13706_v0 = vunpack.i.l.bf16 %v13705_v61 }
 0x984   : > { %v3555_v12 = vpack.c.bf16 %v13707_v62, %v13706_v0  ;;  %v3489_v62 = vpack.c.bf16 %v13692_v45, %v13691_v53 }
 0x986   : > { %3576 = vmatpush.bf16.msra.mxu3 %v3555_v12 }
 0x987   : > { %13854 = vrot.lane.b32.xlu2 %v15183_v44, %s19901_s24 }
 0x988   : > { %3805 = vperm.xlu0 %13467, %v3787_v63  }
 0x989   : > { %v13710_v4 = vpop.permute.xlu2 %13709 }
 0x98a   : > { %v13712_v41 = vunpack.i.h.bf16 %v13710_v4  ;;  %v13711_v49 = vunpack.i.l.bf16 %v13710_v4  ;;  %v13069_v4 = vld [vmem:[%s19831_s1 + $0x27c] sm:$0xff] }
 0x98c   : > { %v3490_v55 = vpack.c.bf16 %v13712_v41, %v13711_v49 }
 0x98f   : > { %13864 = vrot.lane.b32.xlu2 %v15189_v46, %s19902_s15 }
 0x990   : > { %13814 = vrot.lane.b32.xlu0 %v15189_v46, %s19878_s18  ;;  %s19909_s18 = smov 108  }
 0x991   : > { %v13655_v5 = vpop.permute.xlu1 %13654  ;;  %v15623_v20 = vpop.permute.xlu2 %13744 }
 0x992   : > { %v13657_v28 = vunpack.i.h.bf16 %v13655_v5  ;;  %v13656_v39 = vunpack.i.l.bf16 %v13655_v5 }
 0x994   : > { %v3268_v40 = vpack.c.bf16 %v13657_v28, %v13656_v39 }
 0x997   : > { %13889 = vrot.lane.b32.xlu2 %v15183_v44, %s19902_s15 }
 0x999   : > { %v13670_v14 = vpop.permute.xlu1 %13669  ;;  %v15630_v37 = vpop.permute.xlu2 %13759 }
 0x99a   : > { %v13672_v13 = vunpack.i.h.bf16 %v13670_v14  ;;  %v13671_v16 = vunpack.i.l.bf16 %v13670_v14  ;;  %v13761_v28 = vunpack.i.l.bf16 %v15630_v37 }
 0x99c   : > { %v3429_v17 = vpack.c.bf16 %v13672_v13, %v13671_v16  ;;  %v13747_v13 = vunpack.i.h.bf16 %v15623_v20  ;;  %v13746_v16 = vunpack.i.l.bf16 %v15623_v20 }
 0x99e   : > { %3450 = vmatpush.bf16.msra.mxu1 %v3429_v17 }
 0x9a1   : > { %v13685_v22 = vpop.permute.xlu1 %13684  ;;  %v15635_v60 = vpop.permute.xlu2 %13764 }
 0x9a2   : > { %v13687_v30 = vunpack.i.h.bf16 %v13685_v22  ;;  %v13686_v34 = vunpack.i.l.bf16 %v13685_v22  ;;  %v13660_v15 = vpop.permute.xlu0 %13659  ;;  %v3743_v22 = vpack.c.bf16 %v13747_v13, %v13746_v16  ;;  %v13767_v41 = vunpack.i.h.bf16 %v15635_v60 }
 0x9a3   : > { %v13662_v21 = vunpack.i.h.bf16 %v13660_v15  ;;  %v13661_v23 = vunpack.i.l.bf16 %v13660_v15  ;;  %v13766_v49 = vunpack.i.l.bf16 %v15635_v60 }
 0x9a4   : > { %v3428_v35 = vpack.c.bf16 %v13687_v30, %v13686_v34 }
 0x9a5   : > { %v3269_v24 = vpack.c.bf16 %v13662_v21, %v13661_v23 }
 0x9a6   : > { %3451 = vmatpush.bf16.msra.mxu1 %v3428_v35  ;;  %v13762_v35 = vunpack.i.h.bf16 %v15630_v37  ;;  %v13070_v37 = vld [vmem:[%s19831_s1 + $0x284] sm:$0xff] }
 0x9a7   : > { %3295 = vmatpush.bf16.msrb.mxu2 %v3269_v24 }
 0x9a8   : > { %v3680_v26 = vpack.c.bf16 %v13762_v35, %v13761_v28  ;;  %v13089_v28 = vld [vmem:[%s19838_s8 + $0x28] sm:$0xff] }
 0x9a9   : > { %v13700_v9 = vpop.permute.xlu1 %13699  ;;  %v13790_v17 = vpop.permute.xlu2 %13789 }
 0x9aa   : > { %v13665_v43 = vpop.permute.xlu0 %13664  ;;  %v13702_v58 = vunpack.i.h.bf16 %v13700_v9  ;;  %v13701_v1 = vunpack.i.l.bf16 %v13700_v9  ;;  %v13792_v9 = vunpack.i.h.bf16 %v13790_v17 }
 0x9ab   : > { %v13667_v7 = vunpack.i.h.bf16 %v13665_v43  ;;  %v13666_v48 = vunpack.i.l.bf16 %v13665_v43  ;;  %3296 = vmatpush.bf16.msrb.mxu2 %v3268_v40  ;;  %v13791_v40 = vunpack.i.l.bf16 %v13790_v17  ;;  %v13073_v43 = vld [vmem:[%s19831_s1 + $0x29c] sm:$0xff] }
 0x9ac   : > { %v3426_v0 = vpack.c.bf16 %v13702_v58, %v13701_v1 }
 0x9ad   : > { %v3366_v31 = vpack.c.bf16 %v13667_v7, %v13666_v48  ;;  %v13074_v7 = vld [vmem:[%s19831_s1 + $0x2a4] sm:$0xff]  ;;  %v3679_v53 = vpack.c.bf16 %v13792_v9, %v13791_v40 }
 0x9ae   : > { %11458 = vmatmul.msk.bf16.vlgmr.msrb.gmra.mxu2 %vm3282_vm14, %v13068_v36 }
 0x9af   : > { %3513 = vmatpush.bf16.msra.mxu2 %v3492_v42  ;;  %3387 = vmatpush.bf16.msra.mxu0 %v3366_v31 }
 0x9b1   : > { %v13725_v52 = vpop.permute.xlu1 %13724  ;;  %v13795_v42 = vpop.permute.xlu2 %13794 }
 0x9b2   : > { %v13727_v56 = vunpack.i.h.bf16 %v13725_v52  ;;  %v13726_v51 = vunpack.i.l.bf16 %v13725_v52  ;;  %v13680_v29 = vpop.permute.xlu0 %13679  ;;  %v13796_v45 = vunpack.i.l.bf16 %v13795_v42 }
 0x9b3   : > { %3514 = vmatpush.bf16.msra.mxu2 %v3491_v50  ;;  %v13682_v57 = vunpack.i.h.bf16 %v13680_v29  ;;  %v13681_v54 = vunpack.i.l.bf16 %v13680_v29  ;;  %v13797_v50 = vunpack.i.h.bf16 %v13795_v42 }
 0x9b4   : > { %v3427_v59 = vpack.c.bf16 %v13727_v56, %v13726_v51  ;;  %v3553_v51 = vpack.c.bf16 %v13767_v41, %v13766_v49 }
 0x9b5   : > { %v3365_v61 = vpack.c.bf16 %v13682_v57, %v13681_v54  ;;  %v3678_v29 = vpack.c.bf16 %v13797_v50, %v13796_v45  ;;  %v13077_v45 = vld [vmem:[%s19831_s1 + $0x2bc] sm:$0xff] }
 0x9b6   : > { %3452 = vmatpush.bf16.msra.mxu1 %v3427_v59 }
 0x9b7   : > { %3515 = vmatpush.bf16.msra.mxu2 %v3490_v55  ;;  %3388 = vmatpush.bf16.msra.mxu0 %v3365_v61 }
 0x9b9   : > { %v13730_v12 = vpop.permute.xlu1 %13729  ;;  %v15663_v57 = vpop.permute.xlu2 %3800 }
 0x9ba   : > { %v13732_v63 = vunpack.i.h.bf16 %v13730_v12  ;;  %v13731_v2 = vunpack.i.l.bf16 %v13730_v12  ;;  %v13695_v5 = vpop.permute.xlu0 %13694  ;;  %3453 = vmatpush.bf16.msra.mxu1 %v3426_v0 }
 0x9bb   : > { %3516 = vmatpush.bf16.msra.mxu2 %v3489_v62  ;;  %v13697_v20 = vunpack.i.h.bf16 %v13695_v5  ;;  %v13696_v24 = vunpack.i.l.bf16 %v13695_v5 }
 0x9bc   : > { %v3744_v14 = vpack.c.bf16 %v13732_v63, %v13731_v2  ;;  %v13071_v2 = vld [vmem:[%s19831_s1 + $0x28c] sm:$0xff] }
 0x9bd   : > { %11488 = vmatmul.msk.bf16.vlgmr.msra.gmra.mxu1 %vm3282_vm14, %v13072_v8  ;;  %v3363_v32 = vpack.c.bf16 %v13697_v20, %v13696_v24  ;;  %v13080_v8 = vld [vmem:[%s19831_s1 + $0x2d4] sm:$0xff]  ;;  %v13088_v24 = vld [vmem:[%s19838_s8 + $0x20] sm:$0xff] }
 0x9be   : > { %11459 = vmatmul.msk.bf16.gmra.mxu2 %vm3282_vm14, %v13069_v4 }
 0x9bf   : > { %3765 = vmatpush.bf16.msrb.mxu2 %v3744_v14 }
 0x9c1   : > { %v13740_v19 = vpop.permute.xlu1 %13739  ;;  %v13805_v14 = vpop.permute.xlu2 %13804 }
 0x9c2   : > { %v13742_v30 = vunpack.i.h.bf16 %v13740_v19  ;;  %v13741_v34 = vunpack.i.l.bf16 %v13740_v19  ;;  %v13715_v15 = vpop.permute.xlu0 %13714  ;;  %v13806_v41 = vunpack.i.l.bf16 %v13805_v14 }
 0x9c3   : > { %v13717_v21 = vunpack.i.h.bf16 %v13715_v15  ;;  %v13716_v23 = vunpack.i.l.bf16 %v13715_v15  ;;  %3766 = vmatpush.bf16.msrb.mxu2 %v3743_v22  ;;  %v13076_v22 = vld [vmem:[%s19831_s1 + $0x2b4] sm:$0xff] }
 0x9c4   : > { %v3681_v39 = vpack.c.bf16 %v13742_v30, %v13741_v34  ;;  %v13090_v30 = vld [vmem:[%s19838_s8 + $0x30] sm:$0xff] }
 0x9c5   : > { %v3364_v38 = vpack.c.bf16 %v13717_v21, %v13716_v23 }
 0x9c6   : > { %3702 = vmatpush.bf16.msrb.mxu1 %v3681_v39 }
 0x9c7   : > { %3389 = vmatpush.bf16.msra.mxu0 %v3364_v38 }
 0x9c9   : > { %v13755_v27 = vpop.permute.xlu1 %13754  ;;  %v13810_v20 = vpop.permute.xlu2 %13809 }
 0x9ca   : > { %v13720_v36 = vpop.permute.xlu0 %13719  ;;  %3703 = vmatpush.bf16.msrb.mxu1 %v3680_v26  ;;  %v13757_v1 = vunpack.i.h.bf16 %v13755_v27  ;;  %v13756_v59 = vunpack.i.l.bf16 %v13755_v27  ;;  %v13081_v26 = vld [vmem:[%s19831_s1 + $0x2dc] sm:$0xff]  ;;  %v13812_v9 = vunpack.i.h.bf16 %v13810_v20  ;;  %v13811_v40 = vunpack.i.l.bf16 %v13810_v20 }
 0x9cb   : > { %v13722_v48 = vunpack.i.h.bf16 %v13720_v36  ;;  %v13721_v31 = vunpack.i.l.bf16 %v13720_v36  ;;  %3390 = vmatpush.bf16.msra.mxu0 %v3363_v32 }
 0x9cc   : > { %v3617_v12 = vpack.c.bf16 %v13757_v1, %v13756_v59  ;;  %v4046_v50 = vpack.c.bf16 %v13812_v9, %v13811_v40  ;;  %v13085_v1 = vld [vmem:[%s19838_s8 + $0x8] sm:$0xff]  ;;  %v13084_v59 = vld [vmem:[%s19838_s8] sm:$0xff] }
 0x9cd   : > { %v3554_v52 = vpack.c.bf16 %v13722_v48, %v13721_v31  ;;  %11489 = vmatmul.msk.bf16.gmra.mxu1 %vm3282_vm14, %v13073_v43  ;;  %v13078_v43 = vld [vmem:[%s19831_s1 + $0x2c4] sm:$0xff]  ;;  %v13087_v48 = vld [vmem:[%s19838_s8 + $0x18] sm:$0xff]  ;;  %v13807_v31 = vunpack.i.h.bf16 %v13805_v14 }
 0x9ce   : > { %11478 = vmatmul.msk.bf16.vlgmr.msra.gmra.mxu0 %vm3282_vm14, %v13070_v37  ;;  %11498 = vmatmul.msk.bf16.vlgmr.msra.gmra.mxu2 %vm3282_vm14, %v13074_v7 }
 0x9cf   : > { %3577 = vmatpush.bf16.msra.mxu3 %v3554_v52  ;;  %3704 = vmatpush.bf16.msrb.mxu1 %v3679_v53  ;;  %v13082_v52 = vld [vmem:[%s19831_s1 + $0x2e4] sm:$0xff]  ;;  %v13086_v53 = vld [vmem:[%s19838_s8 + $0x10] sm:$0xff] }
 0x9d1   : > { %v13780_v56 = vpop.permute.xlu1 %13779 }
 0x9d2   : > { %v13735_v55 = vpop.permute.xlu0 %13734  ;;  %v13782_v61 = vunpack.i.h.bf16 %v13780_v56  ;;  %v13781_v62 = vunpack.i.l.bf16 %v13780_v56 }
 0x9d3   : > { %v13737_v54 = vunpack.i.h.bf16 %v13735_v55  ;;  %v13736_v58 = vunpack.i.l.bf16 %v13735_v55  ;;  %3578 = vmatpush.bf16.msra.mxu3 %v3553_v51  ;;  %3705 = vmatpush.bf16.msrb.mxu1 %v3678_v29  ;;  %v3951_v51 = vpack.c.bf16 %v13807_v31, %v13806_v41 }
 0x9d4   : > { %v3616_v19 = vpack.c.bf16 %v13782_v61, %v13781_v62  ;;  %v13079_v61 = vld [vmem:[%s19831_s1 + $0x2cc] sm:$0xff] }
 0x9d5   : > { %v3618_v60 = vpack.c.bf16 %v13737_v54, %v13736_v58  ;;  %v13083_v62 = vld [vmem:[%s19831_s1 + $0x2ec] sm:$0xff] }
 0x9d7   : > { %4008 = vmatpush.bf16.msra.mxu1 %v15191_v47  ;;  %3639 = vmatpush.bf16.msrb.mxu0 %v3618_v60  ;;  %v13075_v47 = vld [vmem:[%s19831_s1 + $0x2ac] sm:$0xff] }
 0x9d9   : > { %v13785_v0 = vpop.permute.xlu1 %13784 }
 0x9da   : > { %v13750_v63 = vpop.permute.xlu0 %13749  ;;  %v13787_v13 = vunpack.i.h.bf16 %v13785_v0  ;;  %v13786_v16 = vunpack.i.l.bf16 %v13785_v0  ;;  %v13825_v0 = vpop.permute.xlu2 %13824 }
 0x9db   : > { %4009 = vmatpush.bf16.msra.mxu1 %v15200_v18  ;;  %v13752_v5 = vunpack.i.h.bf16 %v13750_v63  ;;  %v13751_v4 = vunpack.i.l.bf16 %v13750_v63  ;;  %3640 = vmatpush.bf16.msrb.mxu0 %v3617_v12  ;;  %v13091_v18 = vld [vmem:[%s19838_s8 + $0x38] sm:$0xff] }
 0x9dc   : > { %v3615_v15 = vpack.c.bf16 %v13787_v13, %v13786_v16  ;;  %v3333_v13 = vpop.f32.mrf.mxu3 }
 0x9dd   : > { %v3552_v17 = vpack.c.bf16 %v13752_v5, %v13751_v4  ;;  %11528 = vmatmul.msk.bf16.vlgmr.msrb.gmra.mxu1 %vm3282_vm14, %v13080_v8 }
 0x9de   : > { %11479 = vmatmul.msk.bf16.gmra.mxu0 %vm3282_vm14, %v13071_v2  ;;  %11499 = vmatmul.msk.bf16.gmra.mxu2 %vm3282_vm14, %v13075_v47  ;;  %v13827_v2 = vunpack.i.h.bf16 %v13825_v0  ;;  %v13826_v47 = vunpack.i.l.bf16 %v13825_v0 }
 0x9df   : > { %3579 = vmatpush.bf16.msra.mxu3 %v3552_v17  ;;  %3641 = vmatpush.bf16.msrb.mxu0 %v3616_v19 }
 0x9e0   : > { %v4108_v4 = vpack.c.bf16 %v13827_v2, %v13826_v47 }
 0x9e1   : > { %v15688_v34 = vpop.permute.xlu1 %3795 }
 0x9e2   : > { %v13770_v21 = vpop.permute.xlu0 %13769  ;;  %11508 = vmatmul.msk.bf16.vlgmr.msra.gmra.mxu3 %vm3282_vm14, %v13076_v22 }
 0x9e3   : > { %3890 = vmatpush.bf16.msrb.mxu3 %v13091_v18  ;;  %v13772_v23 = vunpack.i.h.bf16 %v13770_v21  ;;  %v13771_v35 = vunpack.i.l.bf16 %v13770_v21  ;;  %3642 = vmatpush.bf16.msrb.mxu0 %v3615_v15 }
 0x9e4   : > { %v3335_v19 = vpop.f32.mrf.mxu3 }
 0x9e5   : > { %v3742_v39 = vpack.c.bf16 %v13772_v23, %v13771_v35 }
 0x9e7   : > { %3891 = vmatpush.bf16.msrb.mxu3 %v13090_v30  ;;  %3767 = vmatpush.bf16.msrb.mxu2 %v3742_v39 }
 0x9e9   : > { %v13800_v38 = vpop.permute.xlu1 %13799 }
 0x9ea   : > { %v13802_v42 = vunpack.i.h.bf16 %v13800_v38  ;;  %v13801_v27 = vunpack.i.l.bf16 %v13800_v38  ;;  %v13775_v32 = vpop.permute.xlu0 %13774 }
 0x9eb   : > { %3892 = vmatpush.bf16.msrb.mxu3 %v13089_v28  ;;  %v13777_v36 = vunpack.i.h.bf16 %v13775_v32  ;;  %v13776_v37 = vunpack.i.l.bf16 %v13775_v32 }
 0x9ec   : > { %v3952_v7 = vpack.c.bf16 %v13802_v42, %v13801_v27  ;;  %v3338_v23 = vpop.f32.mrf.mxu3 }
 0x9ed   : > { %v3741_v49 = vpack.c.bf16 %v13777_v36, %v13776_v37  ;;  %11529 = vmatmul.msk.bf16.gmra.mxu1 %vm3282_vm14, %v13081_v26 }
 0x9ee   : > { %11518 = vmatmul.msk.bf16.vlgmr.msrb.gmra.mxu0 %vm3282_vm14, %v13078_v43 }
 0x9ef   : > { %3893 = vmatpush.bf16.msrb.mxu3 %v13088_v24  ;;  %3768 = vmatpush.bf16.msrb.mxu2 %v3741_v49 }
 0x9f0   : > { %3973 = vmatpush.bf16.msra.mxu0 %v3952_v7 }
 0x9f1   : > { %v13820_v56 = vpop.permute.xlu1 %13819 }
 0x9f2   : > { %v13822_v29 = vunpack.i.h.bf16 %v13820_v56  ;;  %v13821_v55 = vunpack.i.l.bf16 %v13820_v56  ;;  %v15717_v54 = vpop.permute.xlu0 %3790  ;;  %11509 = vmatmul.msk.bf16.gmra.mxu3 %vm3282_vm14, %v13077_v45  ;;  %11538 = vmatmul.msk.bf16.vlgmr.msrb.gmra.mxu2 %vm3282_vm14, %v13082_v52 }
 0x9f3   : > { %4067 = vmatpush.bf16.msra.mxu2 %v4046_v50  ;;  %3894 = vmatpush.bf16.msrb.mxu3 %v13087_v48 }
 0x9f4   : > { %3974 = vmatpush.bf16.msra.mxu0 %v3951_v51  ;;  %v4045_v58 = vpack.c.bf16 %v13822_v29, %v13821_v55  ;;  %v3340_v24 = vpop.f32.mrf.mxu3 }
 0x9f7   : > { %3895 = vmatpush.bf16.msrb.mxu3 %v13086_v53  ;;  %4068 = vmatpush.bf16.msra.mxu2 %v4045_v58 }
 0x9fa   : > { %v15727_v60 = vpop.permute.xlu0 %3805 }
 0x9fb   : > { %3896 = vmatpush.bf16.msrb.mxu3 %v13085_v1 }
 0x9fe   : > { %11519 = vmatmul.msk.bf16.gmra.mxu0 %vm3282_vm14, %v13079_v61 }
 0x9ff   : > { %3897 = vmatpush.bf16.msrb.mxu3 %v13084_v59 }
 0xa02   : > { %v13815_v12 = vpop.permute.xlu0 %13814  ;;  %11539 = vmatmul.msk.bf16.gmra.mxu2 %vm3282_vm14, %v13083_v62 }
 0xa03   : > { %v13817_v8 = vunpack.i.h.bf16 %v13815_v12  ;;  %v13816_v63 = vunpack.i.l.bf16 %v13815_v12 }
 0xa05   : > { %v4109_v5 = vpack.c.bf16 %v13817_v8, %v13816_v63 }
 0xa07   : > { %4130 = vmatpush.bf16.msra.mxu3 %v4109_v5 }
 0xa0b   : > { %4131 = vmatpush.bf16.msra.mxu3 %v4108_v4 }
 0xa31   : > { %v3298_v18 = vpop.f32.mrf.mxu2 }
 0xa32   : > { %v3334_v42 = vadd.f32 %v3333_v13, %v3298_v18 }
 0xa39   : > { %v3300_v14 = vpop.f32.mrf.mxu2 }
 0xa3a   : > { %v3455_v17 = vpop.f32.mrf.mxu1  ;;  %v3336_v43 = vadd.f32 %v3335_v19, %v3300_v14 }
 0xa41   : > { %v3303_v16 = vpop.f32.mrf.mxu2 }
 0xa42   : > { %v3457_v15 = vpop.f32.mrf.mxu1  ;;  %v3339_v51 = vadd.f32 %v3338_v23, %v3303_v16 }
 0xa49   : > { %v3305_v22 = vpop.f32.mrf.mxu2 }
 0xa4a   : > { %v3460_v28 = vpop.f32.mrf.mxu1  ;;  %v3341_v12 = vadd.f32 %v3340_v24, %v3305_v22 }
 0xa4b   : > { %v3392_v30 = vpop.f32.mrf.mxu0 }
 0xa4c   : > { %v3402_v27 = vadd.f32 %v3392_v30, %v3334_v42 }
 0xa4e   : > { %v3465_v36 = vadd.f32 %v3455_v17, %v3402_v27 }
 0xa51   : > { %v3518_v21 = vpop.f32.mrf.mxu2 }
 0xa52   : > { %v3462_v38 = vpop.f32.mrf.mxu1  ;;  %v3528_v48 = vadd.f32 %v3518_v21, %v3465_v36 }
 0xa53   : > { %v3394_v35 = vpop.f32.mrf.mxu0 }
 0xa54   : > { %v3403_v31 = vadd.f32 %v3394_v35, %v3336_v43 }
 0xa56   : > { %v3466_v50 = vadd.f32 %v3457_v15, %v3403_v31 }
 0xa59   : > { %v3520_v39 = vpop.f32.mrf.mxu2 }
 0xa5a   : > { %v3707_v7 = vpop.f32.mrf.mxu1  ;;  %v3529_v53 = vadd.f32 %v3520_v39, %v3466_v50 }
 0xa5b   : > { %v3397_v20 = vpop.f32.mrf.mxu0 }
 0xa5c   : > { %v3404_v1 = vadd.f32 %v3397_v20, %v3339_v51  ;;  %v13830_v51 = vpop.permute.xlu2 %13829 }
 0xa5e   : > { %v3467_v8 = vadd.f32 %v3460_v28, %v3404_v1 }
 0xa61   : > { %v3523_v26 = vpop.f32.mrf.mxu2 }
 0xa62   : > { %v3709_v58 = vpop.f32.mrf.mxu1  ;;  %v3530_v5 = vadd.f32 %v3523_v26, %v3467_v8 }
 0xa63   : > { %v3399_v9 = vpop.f32.mrf.mxu0 }
 0xa64   : > { %v3405_v4 = vadd.f32 %v3399_v9, %v3341_v12 }
 0xa65   : > { %v3581_v40 = vpop.f32.mrf.mxu3 }
 0xa66   : > { %v3591_v49 = vadd.f32 %v3581_v40, %v3528_v48  ;;  %v3468_v19 = vadd.f32 %v3462_v38, %v3405_v4 }
 0xa69   : > { %v3525_v37 = vpop.f32.mrf.mxu2 }
 0xa6a   : > { %v3712_v17 = vpop.f32.mrf.mxu1  ;;  %v3531_v22 = vadd.f32 %v3525_v37, %v3468_v19 }
 0xa6b   : > { %v3644_v32 = vpop.f32.mrf.mxu0 }
 0xa6c   : > { %v3654_v45 = vadd.f32 %v3644_v32, %v3591_v49 }
 0xa6d   : > { %v3583_v41 = vpop.f32.mrf.mxu3 }
 0xa6e   : > { %v3592_v29 = vadd.f32 %v3583_v41, %v3529_v53  ;;  %v3717_v55 = vadd.f32 %v3707_v7, %v3654_v45  ;;  %v4466_v53 = vld [vmem:[%s19832_s2 + $0xb8] sm:$0xff] }
 0xa72   : > { %v3714_v40 = vpop.f32.mrf.mxu1 }
 0xa73   : > { %v3646_v52 = vpop.f32.mrf.mxu0 }
 0xa74   : > { %v3655_v59 = vadd.f32 %v3646_v52, %v3592_v29  ;;  %v13092_v29 = vld [vmem:[%s19831_s1 + $0x2f4] sm:$0xff] }
 0xa75   : > { %v3770_v56 = vpop.f32.mrf.mxu2  ;;  %v3586_v62 = vpop.f32.mrf.mxu3 }
 0xa76   : > { %v3780_v61 = vadd.f32 %v3770_v56, %v3717_v55  ;;  %v3718_v63 = vadd.f32 %v3709_v58, %v3655_v59  ;;  %v3593_v14 = vadd.f32 %v3586_v62, %v3530_v5  ;;  %v4465_v56 = vld [vmem:[%s19832_s2 + $0xb0] sm:$0xff]  ;;  %v13855_v58 = vpop.permute.xlu2 %13854 }
 0xa77   : > { %v13856_v19 = vunpack.i.l.bf16 %v13855_v58 }
 0xa78   : > { %v3808_v2 = vadd.f32 %v15717_v54, %v3780_v61  ;;  %v13093_v61 = vld [vmem:[%s19831_s1 + $0x2fc] sm:$0xff] }
 0xa7a   : > { %v3816_v13 = vmul.f32 0.2, %v3808_v2  ;;  %vm3812_vm15 = vcmp.ge.f32.partialorder %v3808_v2, 0.0 }
 0xa7b   : > { %v3649_v0 = vpop.f32.mrf.mxu0 }
 0xa7c   : > { %v3656_v30 = vadd.f32 %v3649_v0, %v3593_v14  ;;  %v3820_v23 = vsel %vm3812_vm15, %v3808_v2, %v3816_v13  ;;  %v13831_v2 = vunpack.i.l.bf16 %v13830_v51 }
 0xa7d   : > { %v3772_v47 = vpop.f32.mrf.mxu2  ;;  %v3588_v21 = vpop.f32.mrf.mxu3 }
 0xa7e   : > { %v3781_v18 = vadd.f32 %v3772_v47, %v3718_v63  ;;  %v3594_v20 = vadd.f32 %v3588_v21, %v3531_v22  ;;  %v3719_v24 = vadd.f32 %v3712_v17, %v3656_v30  ;;  %v15785_v59 = vpop.permute.xlu2 %13864  ;;  %v13832_v63 = vunpack.i.h.bf16 %v13830_v51  ;;  %v13094_v22 = vld [vmem:[%s19831_s1 + $0x304] sm:$0xff] }
 0xa7f   : > { %v13857_v17 = vunpack.i.h.bf16 %v13855_v58 }
 0xa80   : > { %v3809_v16 = vadd.f32 %v15688_v34, %v3781_v18  ;;  %v4172_v14 = vpack.c.bf16 %v13832_v63, %v13831_v2 }
 0xa82   : > { %vm3813_vm10 = vcmp.ge.f32.partialorder %v3809_v16, 0.0  ;;  %v3817_v15 = vmul.f32 0.2, %v3809_v16 }
 0xa83   : > { %v3651_v54 = vpop.f32.mrf.mxu0 }
 0xa84   : > { %v3821_v35 = vsel %vm3813_vm10, %v3809_v16, %v3817_v15  ;;  %v3657_v26 = vadd.f32 %v3651_v54, %v3594_v20  ;;  %v4171_v54 = vpack.c.bf16 %v13857_v17, %v13856_v19 }
 0xa85   : > { %v3824_v28 = vpack.c.bf16 %v3821_v35, %v3820_v23  ;;  %v3775_v39 = vpop.f32.mrf.mxu2 }
 0xa86   : > { %v3782_v9 = vadd.f32 %v3775_v39, %v3719_v24  ;;  %v3720_v34 = vadd.f32 %v3714_v40, %v3657_v26  ;;  %v15793_v18 = vpop.permute.xlu2 %13889  ;;  %v13098_v26 = vld [vmem:[%s19831_s1 + $0x324] sm:$0xff] }
 0xa87   : > { %3898 = vmatmul.bf16.vlgmr.msrb.gmra.mxu3 %v3824_v28  ;;  %v13892_v51 = vunpack.i.h.bf16 %v15793_v18 }
 0xa88   : > { %v3810_v42 = vadd.f32 %v15663_v57, %v3782_v9 }
 0xa8a   : > { %v3818_v32 = vmul.f32 0.2, %v3810_v42  ;;  %vm3814_vm12 = vcmp.ge.f32.partialorder %v3810_v42, 0.0 }
 0xa8c   : > { %v3822_v37 = vsel %vm3814_vm12, %v3810_v42, %v3818_v32 }
 0xa8d   : > { %v3777_v38 = vpop.f32.mrf.mxu2 }
 0xa8e   : > { %v3783_v27 = vadd.f32 %v3777_v38, %v3720_v34 }
 0xa90   : > { %v3811_v43 = vadd.f32 %v15727_v60, %v3783_v27 }
 0xa92   : > { %v3819_v36 = vmul.f32 0.2, %v3811_v43  ;;  %vm3815_vm13 = vcmp.ge.f32.partialorder %v3811_v43, 0.0 }
 0xa94   : > { %v3823_v7 = vsel %vm3815_vm13, %v3811_v43, %v3819_v36  ;;  %vm4632_vm13 = vcmask 326656  }
 0xa95   : > { %v3825_v48 = vpack.c.bf16 %v3823_v7, %v3822_v37 }
 0xa97   : > { %3903 = vmatmul.bf16.gmra.mxu3 %v3825_v48 }
 0xb0a   : > { %v3899_v31 = vpop.f32.mrf.mxu3 }
 0xb12   : > { %v3901_v41 = vpop.f32.mrf.mxu3 }
 0xb13   : > { %v13833_v49 = vpack.i.bf16 %v3901_v41, %v3899_v31  ;;  %v3925_v60 = vpack.c.bf16 %v3901_v41, %v3899_v31  ;;  %v13095_v31 = vld [vmem:[%s19831_s1 + $0x30c] sm:$0xff] }
 0xb15   : > { %13834 = vrot.lane.b32.xlu1 %v13833_v49, %s19880_s14 }
 0xb1a   : > { %v3904_v50 = vpop.f32.mrf.mxu3 }
 0xb1d   : > { %13849 = vrot.lane.b32.xlu1 %v13833_v49, %s19903_s17 }
 0xb22   : > { %v3906_v57 = vpop.f32.mrf.mxu3 }
 0xb23   : > { %v13923_v45 = vpack.i.bf16 %v3906_v57, %v3904_v50  ;;  %v3926_v52 = vpack.c.bf16 %v3906_v57, %v3904_v50 }
 0xb25   : > { %13859 = vrot.lane.b32.xlu1 %v13833_v49, %s19901_s24  ;;  %13924 = vrot.lane.b32.xlu2 %v13923_v45, %s19902_s15 }
 0xb26   : > { %13839 = vrot.lane.b32.xlu0 %v13923_v45, %s19880_s14  ;;  %4010 = vmatpush.bf16.msra.mxu1 %v3926_v52 }
 0xb2a   : > { %4011 = vmatpush.bf16.msra.mxu1 %v3925_v60 }
 0xb2d   : > { %13934 = vrot.lane.b32.xlu2 %v13923_v45, %s19900_s20  ;;  %13879 = vrot.lane.b32.xlu1 %v13923_v45, %s19903_s17 }
 0xb2e   : > { %13844 = vrot.lane.b32.xlu0 %v13833_v49, %s19898_s21  ;;  %11590 = vmatmul.msk.bf16.vlgmr.msra.gmra.mxu1 %vm3282_vm14, %v13092_v29  ;;  %v13891_v29 = vunpack.i.l.bf16 %v15793_v18 }
 0xb35   : > { %13939 = vrot.lane.b32.xlu2 %v15183_v44, %s19904_s22  ;;  %13884 = vrot.lane.b32.xlu1 %v15189_v46, %s19900_s20 }
 0xb36   : > { %13869 = vrot.lane.b32.xlu0 %v15189_v46, %s19905_s27 }
 0xb3d   : > { %13954 = vrot.lane.b32.xlu2 %v13833_v49, %s19904_s22  ;;  %13904 = vrot.lane.b32.xlu1 %v15183_v44, %s19900_s20 }
 0xb3e   : > { %13874 = vrot.lane.b32.xlu0 %v13923_v45, %s19898_s21  ;;  %11591 = vmatmul.msk.bf16.gmra.mxu1 %vm3282_vm14, %v13093_v61 }
 0xb45   : > { %4480 = vperm.xlu2 %13466, %v4466_v53   ;;  %13909 = vrot.lane.b32.xlu1 %v15189_v46, %s19904_s22  ;;  %v4464_v46 = vld [vmem:[%s19832_s2 + $0xa8] sm:$0xff] }
 0xb46   : > { %13894 = vrot.lane.b32.xlu0 %v13923_v45, %s19901_s24 }
 0xb4d   : > { %13919 = vrot.lane.b32.xlu1 %v13833_v49, %s19905_s27 }
 0xb4e   : > { %13899 = vrot.lane.b32.xlu0 %v15183_v44, %s19905_s27  ;;  %v4467_v44 = vld [vmem:[%s19832_s2 + $0xc0] sm:$0xff] }
 0xb55   : > { %13949 = vrot.lane.b32.xlu1 %v13923_v45, %s19904_s22  ;;  %s19931_s22 = smov 127  }
 0xb56   : > { %13914 = vrot.lane.b32.xlu0 %v13833_v49, %s19902_s15 }
 0xb5d   : > { %4475 = vperm.xlu1 %13465, %v4465_v56   ;;  %v13867_v56 = vunpack.i.h.bf16 %v15785_v59 }
 0xb5e   : > { %13929 = vrot.lane.b32.xlu0 %v13923_v45, %s19905_s27  ;;  %s19907_s27 = smov 106  }
 0xb66   : > { %13944 = vrot.lane.b32.xlu0 %v13833_v49, %s19900_s20  ;;  %s19906_s20 = smov 117  }
 0xb6e   : > { %4470 = vperm.xlu0 %13467, %v4464_v46   ;;  %v13866_v46 = vunpack.i.l.bf16 %v15785_v59  ;;  %v13096_v59 = vld [vmem:[%s19831_s1 + $0x314] sm:$0xff] }
 0xb70   : > { %v4298_v61 = vpack.c.bf16 %v13867_v56, %v13866_v46 }
 0xb76   : > { %4485 = vperm.xlu0 %13467, %v4467_v44  }
 0xb7f   : > { %v15799_v39 = vpop.permute.xlu2 %13924 }
 0xb80   : > { %v13926_v18 = vunpack.i.l.bf16 %v15799_v39 }
 0xb87   : > { %v13835_v55 = vpop.permute.xlu1 %13834  ;;  %v13935_v43 = vpop.permute.xlu2 %13934 }
 0xb88   : > { %v13837_v47 = vunpack.i.h.bf16 %v13835_v55  ;;  %v13836_v5 = vunpack.i.l.bf16 %v13835_v55  ;;  %v13937_v50 = vunpack.i.h.bf16 %v13935_v43  ;;  %v13936_v57 = vunpack.i.l.bf16 %v13935_v43 }
 0xb8a   : > { %v3949_v16 = vpack.c.bf16 %v13837_v47, %v13836_v5  ;;  %v4233_v44 = vpack.c.bf16 %v13937_v50, %v13936_v57  ;;  %v4297_v5 = vpack.c.bf16 %v13892_v51, %v13891_v29  ;;  %v13102_v51 = vld [vmem:[%s19831_s1 + $0x344] sm:$0xff]  ;;  %v13108_v29 = vld [vmem:[%s19831_s1 + $0x374] sm:$0xff] }
 0xb8f   : > { %v13850_v1 = vpop.permute.xlu1 %13849 }
 0xb90   : > { %v13852_v23 = vunpack.i.h.bf16 %v13850_v1  ;;  %v13851_v35 = vunpack.i.l.bf16 %v13850_v1  ;;  %v13099_v1 = vld [vmem:[%s19831_s1 + $0x32c] sm:$0xff] }
 0xb92   : > { %v4106_v20 = vpack.c.bf16 %v13852_v23, %v13851_v35  ;;  %v13100_v23 = vld [vmem:[%s19831_s1 + $0x334] sm:$0xff] }
 0xb97   : > { %v15791_v62 = vpop.permute.xlu1 %13859 }
 0xb98   : > { %v13840_v0 = vpop.permute.xlu0 %13839  ;;  %v13862_v63 = vunpack.i.h.bf16 %v15791_v62  ;;  %v13861_v2 = vunpack.i.l.bf16 %v15791_v62 }
 0xb99   : > { %v13842_v12 = vunpack.i.h.bf16 %v13840_v0  ;;  %v13841_v8 = vunpack.i.l.bf16 %v13840_v0 }
 0xb9a   : > { %v4169_v19 = vpack.c.bf16 %v13862_v63, %v13861_v2 }
 0xb9b   : > { %v3950_v4 = vpack.c.bf16 %v13842_v12, %v13841_v8 }
 0xb9d   : > { %3975 = vmatpush.bf16.msra.mxu0 %v3950_v4  ;;  %v13927_v4 = vunpack.i.h.bf16 %v15799_v39 }
 0xb9f   : > { %v13880_v13 = vpop.permute.xlu1 %13879 }
 0xba0   : > { %v13882_v30 = vunpack.i.h.bf16 %v13880_v13  ;;  %v13881_v15 = vunpack.i.l.bf16 %v13880_v13  ;;  %v13845_v21 = vpop.permute.xlu0 %13844 }
 0xba1   : > { %3976 = vmatpush.bf16.msra.mxu0 %v3949_v16  ;;  %v13847_v52 = vunpack.i.h.bf16 %v13845_v21  ;;  %v13846_v60 = vunpack.i.l.bf16 %v13845_v21  ;;  %v13940_v16 = vpop.permute.xlu2 %13939 }
 0xba2   : > { %v4107_v28 = vpack.c.bf16 %v13882_v30, %v13881_v15  ;;  %v13942_v30 = vunpack.i.h.bf16 %v13940_v16  ;;  %v13941_v15 = vunpack.i.l.bf16 %v13940_v16 }
 0xba3   : > { %v4043_v58 = vpack.c.bf16 %v13847_v52, %v13846_v60  ;;  %v13104_v60 = vld [vmem:[%s19831_s1 + $0x354] sm:$0xff] }
 0xba4   : > { %11580 = vmatmul.msk.bf16.vlgmr.msra.gmra.mxu0 %vm3282_vm14, %v13094_v22  ;;  %4132 = vmatpush.bf16.msra.mxu3 %v4107_v28  ;;  %v4296_v22 = vpack.c.bf16 %v13927_v4, %v13926_v18  ;;  %v4423_v39 = vpack.c.bf16 %v13942_v30, %v13941_v15  ;;  %v13112_v15 = vld [vmem:[%s19839_s9 + $0x10] sm:$0xff] }
 0xba5   : > { %4193 = vmatpush.bf16.msrb.mxu0 %v4172_v14 }
 0xba7   : > { %v13885_v24 = vpop.permute.xlu1 %13884 }
 0xba8   : > { %v13887_v9 = vunpack.i.h.bf16 %v13885_v24  ;;  %v13886_v40 = vunpack.i.l.bf16 %v13885_v24  ;;  %v13870_v34 = vpop.permute.xlu0 %13869  ;;  %4133 = vmatpush.bf16.msra.mxu3 %v4106_v20 }
 0xba9   : > { %4194 = vmatpush.bf16.msrb.mxu0 %v4171_v54  ;;  %v13872_v42 = vunpack.i.h.bf16 %v13870_v34  ;;  %v13871_v38 = vunpack.i.l.bf16 %v13870_v34  ;;  %v13955_v20 = vpop.permute.xlu2 %13954  ;;  %v13097_v34 = vld [vmem:[%s19831_s1 + $0x31c] sm:$0xff] }
 0xbaa   : > { %v4235_v27 = vpack.c.bf16 %v13887_v9, %v13886_v40 }
 0xbab   : > { %v4361_v32 = vpack.c.bf16 %v13872_v42, %v13871_v38  ;;  %11610 = vmatmul.msk.bf16.vlgmr.msra.gmra.mxu3 %vm3282_vm14, %v13098_v26 }
 0xbac   : > { %4256 = vmatpush.bf16.msrb.mxu1 %v4235_v27  ;;  %v13957_v27 = vunpack.i.h.bf16 %v13955_v20 }
 0xbad   : > { %4382 = vmatpush.bf16.msrb.mxu3 %v4361_v32  ;;  %v13956_v32 = vunpack.i.l.bf16 %v13955_v20 }
 0xbaf   : > { %v13905_v36 = vpop.permute.xlu1 %13904 }
 0xbb0   : > { %v13907_v37 = vunpack.i.h.bf16 %v13905_v36  ;;  %v13906_v7 = vunpack.i.l.bf16 %v13905_v36  ;;  %v13875_v48 = vpop.permute.xlu0 %13874 }
 0xbb1   : > { %v13877_v41 = vunpack.i.h.bf16 %v13875_v48  ;;  %v13876_v49 = vunpack.i.l.bf16 %v13875_v48  ;;  %v13101_v48 = vld [vmem:[%s19831_s1 + $0x33c] sm:$0xff] }
 0xbb2   : > { %v4234_v45 = vpack.c.bf16 %v13907_v37, %v13906_v7  ;;  %v4421_v37 = vpack.c.bf16 %v13957_v27, %v13956_v32 }
 0xbb3   : > { %v4044_v53 = vpack.c.bf16 %v13877_v41, %v13876_v49 }
 0xbb4   : > { %11581 = vmatmul.msk.bf16.gmra.mxu0 %vm3282_vm14, %v13095_v31  ;;  %4257 = vmatpush.bf16.msrb.mxu1 %v4234_v45 }
 0xbb5   : > { %4069 = vmatpush.bf16.msra.mxu2 %v4044_v53  ;;  %v13106_v53 = vld [vmem:[%s19831_s1 + $0x364] sm:$0xff] }
 0xbb7   : > { %v13910_v55 = vpop.permute.xlu1 %13909 }
 0xbb8   : > { %v13895_v0 = vpop.permute.xlu0 %13894  ;;  %4258 = vmatpush.bf16.msrb.mxu1 %v4233_v44  ;;  %v13912_v14 = vunpack.i.h.bf16 %v13910_v55  ;;  %v13911_v13 = vunpack.i.l.bf16 %v13910_v55  ;;  %v13107_v55 = vld [vmem:[%s19831_s1 + $0x36c] sm:$0xff] }
 0xbb9   : > { %v13897_v12 = vunpack.i.h.bf16 %v13895_v0  ;;  %v13896_v8 = vunpack.i.l.bf16 %v13895_v0  ;;  %4070 = vmatpush.bf16.msra.mxu2 %v4043_v58  ;;  %v13103_v58 = vld [vmem:[%s19831_s1 + $0x34c] sm:$0xff] }
 0xbba   : > { %v4424_v62 = vpack.c.bf16 %v13912_v14, %v13911_v13  ;;  %v13114_v13 = vld [vmem:[%s19839_s9 + $0x20] sm:$0xff] }
 0xbbb   : > { %v4170_v47 = vpack.c.bf16 %v13897_v12, %v13896_v8  ;;  %11611 = vmatmul.msk.bf16.gmra.mxu3 %vm3282_vm14, %v13099_v1  ;;  %v13109_v1 = vld [vmem:[%s19831_s1 + $0x37c] sm:$0xff]  ;;  %v4013_v8 = vpop.f32.mrf.mxu1 }
 0xbbc   : > { %11600 = vmatmul.msk.bf16.vlgmr.msra.gmra.mxu2 %vm3282_vm14, %v13096_v59  ;;  %v13117_v12 = vld [vmem:[%s19839_s9 + $0x38] sm:$0xff] }
 0xbbd   : > { %4319 = vmatpush.bf16.msrb.mxu2 %v4298_v61  ;;  %4195 = vmatpush.bf16.msrb.mxu0 %v4170_v47  ;;  %v13116_v47 = vld [vmem:[%s19839_s9 + $0x30] sm:$0xff] }
 0xbbf   : > { %v13920_v17 = vpop.permute.xlu1 %13919 }
 0xbc0   : > { %v13900_v21 = vpop.permute.xlu0 %13899  ;;  %v13922_v49 = vunpack.i.h.bf16 %v13920_v17  ;;  %v13921_v50 = vunpack.i.l.bf16 %v13920_v17  ;;  %v13113_v17 = vld [vmem:[%s19839_s9 + $0x18] sm:$0xff] }
 0xbc1   : > { %4320 = vmatpush.bf16.msrb.mxu2 %v4297_v5  ;;  %v13902_v35 = vunpack.i.h.bf16 %v13900_v21  ;;  %v13901_v28 = vunpack.i.l.bf16 %v13900_v21  ;;  %4196 = vmatpush.bf16.msrb.mxu0 %v4169_v19  ;;  %v13115_v5 = vld [vmem:[%s19839_s9 + $0x28] sm:$0xff] }
 0xbc2   : > { %v4358_v45 = vpack.c.bf16 %v13922_v49, %v13921_v50 }
 0xbc3   : > { %v4360_v54 = vpack.c.bf16 %v13902_v35, %v13901_v28  ;;  %v4015_v18 = vpop.f32.mrf.mxu1 }
 0xbc4   : > { %11620 = vmatmul.msk.bf16.vlgmr.msrb.gmra.mxu0 %vm3282_vm14, %v13100_v23 }
 0xbc5   : > { %4321 = vmatpush.bf16.msrb.mxu2 %v4296_v22  ;;  %4445 = vmatpush.bf16.msra.mxu0 %v4424_v62  ;;  %v13111_v22 = vld [vmem:[%s19839_s9 + $0x8] sm:$0xff] }
 0xbc6   : > { %4383 = vmatpush.bf16.msrb.mxu3 %v4360_v54  ;;  %v13110_v54 = vld [vmem:[%s19839_s9] sm:$0xff] }
 0xbc7   : > { %v13950_v24 = vpop.permute.xlu1 %13949 }
 0xbc8   : > { %v13952_v26 = vunpack.i.h.bf16 %v13950_v24  ;;  %v13951_v9 = vunpack.i.l.bf16 %v13950_v24  ;;  %v13915_v40 = vpop.permute.xlu0 %13914 }
 0xbc9   : > { %4446 = vmatpush.bf16.msra.mxu0 %v4423_v39  ;;  %v13917_v42 = vunpack.i.h.bf16 %v13915_v40  ;;  %v13916_v38 = vunpack.i.l.bf16 %v13915_v40 }
 0xbca   : > { %v4422_v43 = vpack.c.bf16 %v13952_v26, %v13951_v9 }
 0xbcb   : > { %v4295_v36 = vpack.c.bf16 %v13917_v42, %v13916_v38  ;;  %v4018_v62 = vpop.f32.mrf.mxu1 }
 0xbcc   : > { %11601 = vmatmul.msk.bf16.gmra.mxu2 %vm3282_vm14, %v13097_v34 }
 0xbcd   : > { %4447 = vmatpush.bf16.msra.mxu0 %v4422_v43  ;;  %4322 = vmatpush.bf16.msrb.mxu2 %v4295_v36 }
 0xbd0   : > { %v13930_v7 = vpop.permute.xlu0 %13929 }
 0xbd1   : > { %4448 = vmatpush.bf16.msra.mxu0 %v4421_v37  ;;  %v13932_v31 = vunpack.i.h.bf16 %v13930_v7  ;;  %v13931_v41 = vunpack.i.l.bf16 %v13930_v7 }
 0xbd3   : > { %v4359_v57 = vpack.c.bf16 %v13932_v31, %v13931_v41  ;;  %v4020_v20 = vpop.f32.mrf.mxu1 }
 0xbd4   : > { %11621 = vmatmul.msk.bf16.gmra.mxu0 %vm3282_vm14, %v13101_v48 }
 0xbd5   : > { %4384 = vmatpush.bf16.msrb.mxu3 %v4359_v57 }
 0xbd8   : > { %v13945_v52 = vpop.permute.xlu0 %13944 }
 0xbd9   : > { %v13947_v56 = vunpack.i.h.bf16 %v13945_v52  ;;  %v13946_v46 = vunpack.i.l.bf16 %v13945_v52  ;;  %4385 = vmatpush.bf16.msrb.mxu3 %v4358_v45 }
 0xbdb   : > { %v4232_v44 = vpack.c.bf16 %v13947_v56, %v13946_v46 }
 0xbdc   : > { %11640 = vmatmul.msk.bf16.vlgmr.msrb.gmra.mxu2 %vm3282_vm14, %v13104_v60  ;;  %11650 = vmatmul.msk.bf16.vlgmr.msrb.gmra.mxu3 %vm3282_vm14, %v13106_v53 }
 0xbdd   : > { %4685 = vmatpush.bf16.msra.mxu3 %v15054_v11  ;;  %4259 = vmatpush.bf16.msrb.mxu1 %v4232_v44  ;;  %v13105_v11 = vld [vmem:[%s19831_s1 + $0x35c] sm:$0xff] }
 0xbe0   : > { %11630 = vmatmul.msk.bf16.vlgmr.msrb.gmra.mxu1 %vm3282_vm14, %v13102_v51  ;;  %v4471_v44 = vpop.permute.xlu0 %4470 }
 0xbe1   : > { %4570 = vmatpush.bf16.msra.mxu1 %v13117_v12 }
 0xbe4   : > { %11660 = vmatmul.msk.bf16.vlgmr.msra.gmra.mxu0 %vm3282_vm14, %v13108_v29 }
 0xbe5   : > { %4571 = vmatpush.bf16.msra.mxu1 %v13116_v47 }
 0xbe9   : > { %4572 = vmatpush.bf16.msra.mxu1 %v13115_v5 }
 0xbec   : > { %11641 = vmatmul.msk.bf16.gmra.mxu2 %vm3282_vm14, %v13105_v11  ;;  %11651 = vmatmul.msk.bf16.gmra.mxu3 %vm3282_vm14, %v13107_v55 }
 0xbed   : > { %4573 = vmatpush.bf16.msra.mxu1 %v13114_v13 }
 0xbf0   : > { %11631 = vmatmul.msk.bf16.gmra.mxu1 %vm3282_vm14, %v13103_v58 }
 0xbf1   : > { %4574 = vmatpush.bf16.msra.mxu1 %v13113_v17 }
 0xbf4   : > { %11661 = vmatmul.msk.bf16.gmra.mxu0 %vm3282_vm14, %v13109_v1 }
 0xbf5   : > { %4575 = vmatpush.bf16.msra.mxu1 %v13112_v15 }
 0xbf9   : > { %4576 = vmatpush.bf16.msra.mxu1 %v13111_v22 }
 0xbfd   : > { %4577 = vmatpush.bf16.msra.mxu1 %v13110_v54 }
 0xc21   : > { %v3978_v61 = vpop.f32.mrf.mxu0 }
 0xc22   : > { %v4014_v28 = vadd.f32 %v4013_v8, %v3978_v61 }
 0xc29   : > { %v3980_v0 = vpop.f32.mrf.mxu0 }
 0xc2a   : > { %v4016_v34 = vadd.f32 %v4015_v18, %v3980_v0  ;;  %v4476_v0 = vpop.permute.xlu1 %4475 }
 0xc2e   : > { %v4135_v2 = vpop.f32.mrf.mxu3 }
 0xc31   : > { %v3983_v59 = vpop.f32.mrf.mxu0 }
 0xc32   : > { %v4019_v31 = vadd.f32 %v4018_v62, %v3983_v59 }
 0xc36   : > { %v4137_v16 = vpop.f32.mrf.mxu3 }
 0xc39   : > { %v3985_v63 = vpop.f32.mrf.mxu0 }
 0xc3a   : > { %v4021_v29 = vadd.f32 %v4020_v20, %v3985_v63 }
 0xc3e   : > { %v4140_v21 = vpop.f32.mrf.mxu3 }
 0xc3f   : > { %v4072_v4 = vpop.f32.mrf.mxu2 }
 0xc40   : > { %v4082_v39 = vadd.f32 %v4072_v4, %v4014_v28 }
 0xc41   : > { %v4198_v14 = vpop.f32.mrf.mxu0 }
 0xc42   : > { %v4145_v9 = vadd.f32 %v4135_v2, %v4082_v39 }
 0xc44   : > { %v4208_v42 = vadd.f32 %v4198_v14, %v4145_v9 }
 0xc46   : > { %v4142_v24 = vpop.f32.mrf.mxu3 }
 0xc47   : > { %v4074_v19 = vpop.f32.mrf.mxu2 }
 0xc48   : > { %v4083_v38 = vadd.f32 %v4074_v19, %v4016_v34 }
 0xc49   : > { %v4200_v30 = vpop.f32.mrf.mxu0 }
 0xc4a   : > { %v4146_v37 = vadd.f32 %v4137_v16, %v4083_v38 }
 0xc4c   : > { %v4209_v49 = vadd.f32 %v4200_v30, %v4146_v37 }
 0xc4f   : > { %v4077_v23 = vpop.f32.mrf.mxu2 }
 0xc50   : > { %v4084_v50 = vadd.f32 %v4077_v23, %v4019_v31 }
 0xc51   : > { %v4203_v35 = vpop.f32.mrf.mxu0 }
 0xc52   : > { %v4147_v56 = vadd.f32 %v4140_v21, %v4084_v50  ;;  %v5115_v50 = vld [vmem:[%s19832_s2 + $0xe0] sm:$0xff] }
 0xc54   : > { %v4210_v58 = vadd.f32 %v4203_v35, %v4147_v56  ;;  %v4481_v35 = vpop.permute.xlu2 %4480 }
 0xc57   : > { %v4079_v26 = vpop.f32.mrf.mxu2 }
 0xc58   : > { %v4085_v1 = vadd.f32 %v4079_v26, %v4021_v29  ;;  %v4486_v26 = vpop.permute.xlu0 %4485 }
 0xc59   : > { %v4205_v40 = vpop.f32.mrf.mxu0 }
 0xc5a   : > { %v4148_v4 = vadd.f32 %v4142_v24, %v4085_v1  ;;  %v13119_v1 = vld [vmem:[%s19831_s1 + $0x38c] sm:$0xff] }
 0xc5c   : > { %v4211_v30 = vadd.f32 %v4205_v40, %v4148_v4 }
 0xc5d   : > { %v4261_v27 = vpop.f32.mrf.mxu1 }
 0xc5e   : > { %v4271_v32 = vadd.f32 %v4261_v27, %v4208_v42 }
 0xc5f   : > { %v4324_v43 = vpop.f32.mrf.mxu2  ;;  %v4387_v36 = vpop.f32.mrf.mxu3 }
 0xc60   : > { %v4334_v7 = vadd.f32 %v4324_v43, %v4271_v32 }
 0xc61   : > { %v4450_v48 = vpop.f32.mrf.mxu0 }
 0xc62   : > { %v4397_v41 = vadd.f32 %v4387_v36, %v4334_v7 }
 0xc64   : > { %v4460_v45 = vadd.f32 %v4450_v48, %v4397_v41 }
 0xc65   : > { %v4263_v57 = vpop.f32.mrf.mxu1 }
 0xc66   : > { %v4272_v52 = vadd.f32 %v4263_v57, %v4209_v49  ;;  %v4488_v11 = vadd.f32 %v4471_v44, %v4460_v45  ;;  %v5112_v49 = vld [vmem:[%s19832_s2 + $0xc8] sm:$0xff]  ;;  %v5113_v57 = vld [vmem:[%s19832_s2 + $0xd0] sm:$0xff] }
 0xc67   : > { %v4326_v60 = vpop.f32.mrf.mxu2  ;;  %v4389_v53 = vpop.f32.mrf.mxu3 }
 0xc68   : > { %v4335_v46 = vadd.f32 %v4326_v60, %v4272_v52  ;;  %v4496_v12 = vmul.f32 0.2, %v4488_v11  ;;  %vm4492_vm14 = vcmp.ge.f32.partialorder %v4488_v11, 0.0  ;;  %v13118_v52 = vld [vmem:[%s19831_s1 + $0x384] sm:$0xff] }
 0xc69   : > { %v4452_v51 = vpop.f32.mrf.mxu0 }
 0xc6a   : > { %v4398_v55 = vadd.f32 %v4389_v53, %v4335_v46  ;;  %v4500_v16 = vsel %vm4492_vm14, %v4488_v11, %v4496_v12 }
 0xc6c   : > { %v4461_v61 = vadd.f32 %v4452_v51, %v4398_v55 }
 0xc6d   : > { %v4266_v59 = vpop.f32.mrf.mxu1 }
 0xc6e   : > { %v4489_v8 = vadd.f32 %v4476_v0, %v4461_v61  ;;  %v4273_v2 = vadd.f32 %v4266_v59, %v4210_v58 }
 0xc6f   : > { %v4329_v47 = vpop.f32.mrf.mxu2  ;;  %v4392_v5 = vpop.f32.mrf.mxu3 }
 0xc70   : > { %vm4493_vm15 = vcmp.ge.f32.partialorder %v4489_v8, 0.0  ;;  %v4497_v18 = vmul.f32 0.2, %v4489_v8  ;;  %v4336_v14 = vadd.f32 %v4329_v47, %v4273_v2 }
 0xc71   : > { %v4455_v13 = vpop.f32.mrf.mxu0 }
 0xc72   : > { %v4501_v63 = vsel %vm4493_vm15, %v4489_v8, %v4497_v18  ;;  %v4399_v17 = vadd.f32 %v4392_v5, %v4336_v14 }
 0xc73   : > { %v4504_v19 = vpack.c.bf16 %v4501_v63, %v4500_v16 }
 0xc74   : > { %v4462_v62 = vadd.f32 %v4455_v13, %v4399_v17 }
 0xc75   : > { %v4268_v15 = vpop.f32.mrf.mxu1  ;;  %4578 = vmatmul.bf16.vlgmr.msra.gmra.mxu1 %v4504_v19 }
 0xc76   : > { %v4274_v21 = vadd.f32 %v4268_v15, %v4211_v30  ;;  %v4490_v54 = vadd.f32 %v4481_v35, %v4462_v62 }
 0xc77   : > { %v4331_v22 = vpop.f32.mrf.mxu2  ;;  %v4394_v28 = vpop.f32.mrf.mxu3 }
 0xc78   : > { %v4337_v23 = vadd.f32 %v4331_v22, %v4274_v21  ;;  %v4498_v9 = vmul.f32 0.2, %v4490_v54  ;;  %vm4494_vm10 = vcmp.ge.f32.partialorder %v4490_v54, 0.0 }
 0xc79   : > { %v4457_v20 = vpop.f32.mrf.mxu0 }
 0xc7a   : > { %v4400_v39 = vadd.f32 %v4394_v28, %v4337_v23  ;;  %v4502_v38 = vsel %vm4494_vm10, %v4490_v54, %v4498_v9  ;;  %v13122_v23 = vld [vmem:[%s19831_s1 + $0x3a4] sm:$0xff]  ;;  %v13120_v54 = vld [vmem:[%s19831_s1 + $0x394] sm:$0xff] }
 0xc7c   : > { %v4463_v24 = vadd.f32 %v4457_v20, %v4400_v39 }
 0xc7e   : > { %v4491_v34 = vadd.f32 %v4486_v26, %v4463_v24 }
 0xc80   : > { %v4499_v42 = vmul.f32 0.2, %v4491_v34  ;;  %vm4495_vm12 = vcmp.ge.f32.partialorder %v4491_v34, 0.0 }
 0xc82   : > { %v4503_v40 = vsel %vm4495_vm12, %v4491_v34, %v4499_v42  ;;  %v13124_v42 = vld [vmem:[%s19831_s1 + $0x3b4] sm:$0xff] }
 0xc83   : > { %v4505_v27 = vpack.c.bf16 %v4503_v40, %v4502_v38 }
 0xc85   : > { %4583 = vmatmul.bf16.gmra.mxu1 %v4505_v27 }
 0xcf2   : > { %v4579_v32 = vpop.f32.mrf.mxu1 }
 0xcfa   : > { %v4581_v43 = vpop.f32.mrf.mxu1 }
 0xcfb   : > { %4607 = vrot.lane.b32.xlu0 %v4581_v43, %s19880_s14  ;;  %v4602_v41 = vpack.c.bf16 %v4581_v43, %v4579_v32 }
 0xd02   : > { %v4584_v36 = vpop.f32.mrf.mxu1 }
 0xd03   : > { %v13978_v37 = vpack.i.bf16 %v4584_v36, %v15043_v3  ;;  %v5114_v3 = vld [vmem:[%s19832_s2 + $0xd8] sm:$0xff] }
 0xd05   : > { %13979 = vrot.lane.b32.xlu0 %v13978_v37, %s19897_s19  ;;  %13959 = vrot.lane.b32.xlu1 %v13978_v37, %s19880_s14 }
 0xd0a   : > { %v4586_v7 = vpop.f32.mrf.mxu1 }
 0xd0b   : > { %v13993_v48 = vpack.i.bf16 %v4579_v32, %v4586_v7  ;;  %v4603_v31 = vpack.c.bf16 %v4586_v7, %v4584_v36 }
 0xd0d   : > { %13969 = vrot.lane.b32.xlu1 %v13978_v37, %s19906_s20  ;;  %13994 = vrot.lane.b32.xlu0 %v13993_v48, %s19897_s19 }
 0xd0e   : > { %13964 = vrot.lane.b32.xlu2 %v13993_v48, %s19880_s14  ;;  %4686 = vmatpush.bf16.msra.mxu3 %v4603_v31 }
 0xd12   : > { %4687 = vmatpush.bf16.msra.mxu3 %v4602_v41 }
 0xd15   : > { %4760 = vrot.lane.b32.xlu0 %v4581_v43, %s19897_s19  ;;  %13984 = vrot.lane.b32.xlu1 %v13993_v48, %s19906_s20 }
 0xd16   : > { %13974 = vrot.lane.b32.xlu2 %v13978_v37, %s19898_s21  ;;  %11712 = vmatmul.msk.bf16.vlgmr.msra.gmra.mxu3 %vm4632_vm13, %v13118_v52 }
 0xd1d   : > { %14004 = vrot.lane.b32.xlu0 %v13978_v37, %s19907_s27  ;;  %4819 = vrot.lane.b32.xlu1 %v4581_v43, %s19906_s20  ;;  %s19911_s20 = smov 109  }
 0xd1e   : > { %13989 = vrot.lane.b32.xlu2 %v13993_v48, %s19898_s21 }
 0xd25   : > { %14014 = vrot.lane.b32.xlu0 %v13978_v37, %s19908_s29  ;;  %13999 = vrot.lane.b32.xlu1 %v13978_v37, %s19902_s15 }
 0xd26   : > { %4701 = vrot.lane.b32.xlu2 %v4581_v43, %s19898_s21  ;;  %11713 = vmatmul.msk.bf16.gmra.mxu3 %vm4632_vm13, %v13119_v1 }
 0xd2d   : > { %14034 = vrot.lane.b32.xlu0 %v13993_v48, %s19908_s29  ;;  %14009 = vrot.lane.b32.xlu1 %v13978_v37, %s19909_s18 }
 0xd2e   : > { %4878 = vrot.lane.b32.xlu2 %v4581_v43, %s19902_s15 }
 0xd35   : > { %4996 = vrot.lane.b32.xlu0 %v4581_v43, %s19908_s29  ;;  %14024 = vrot.lane.b32.xlu1 %v13993_v48, %s19907_s27 }
 0xd36   : > { %14019 = vrot.lane.b32.xlu2 %v13993_v48, %s19902_s15 }
 0xd3d   : > { %5128 = vperm.xlu0 %13467, %v5114_v3   ;;  %5055 = vrot.lane.b32.xlu1 %v4581_v43, %s19907_s27  ;;  %v13121_v3 = vld [vmem:[%s19831_s1 + $0x39c] sm:$0xff]  ;;  %s19912_s27 = smov 92  }
 0xd3e   : > { %14029 = vrot.lane.b32.xlu2 %v13993_v48, %s19909_s18  ;;  %v13123_v48 = vld [vmem:[%s19831_s1 + $0x3ac] sm:$0xff] }
 0xd45   : > { %5118 = vperm.xlu1 %13465, %v5112_v49  }
 0xd46   : > { %4937 = vrot.lane.b32.xlu2 %v4581_v43, %s19909_s18 }
 0xd4d   : > { %5133 = vperm.xlu1 %13465, %v5115_v50  }
 0xd4e   : > { %5123 = vperm.xlu2 %13466, %v5113_v57  }
 0xd68   : > { %v13965_v45 = vpop.permute.xlu2 %13964 }
 0xd69   : > { %v13966_v4 = vunpack.i.l.bf16 %v13965_v45  ;;  %v13967_v15 = vunpack.i.h.bf16 %v13965_v45 }
 0xd6d   : > { %v4608_v60 = vpop.permute.xlu0 %4607 }
 0xd6e   : > { %v4619_v35 = vpack.c.bf16 %v4608_v60, %v13967_v15 }
 0xd70   : > { %v13975_v53 = vpop.permute.xlu2 %13974 }
 0xd71   : > { %v13976_v56 = vunpack.i.l.bf16 %v13975_v53  ;;  %v13977_v61 = vunpack.i.h.bf16 %v13975_v53  ;;  %v13125_v53 = vld [vmem:[%s19831_s1 + $0x3bc] sm:$0xff] }
 0xd73   : > { %v4715_v46 = vpack.c.bf16 %v13976_v56, %v13976_v56 }
 0xd75   : > { %v4733_v44 = vsel %vm475_vm0, %v4715_v46, 0 }
 0xd76   : > { %4740 = vmatpush.bf16.msrb.mxu0 %v4733_v44 }
 0xd77   : > { %v13980_v51 = vpop.permute.xlu0 %13979  ;;  %v13960_v29 = vpop.permute.xlu1 %13959 }
 0xd78   : > { %v13981_v11 = vunpack.i.l.bf16 %v13980_v51  ;;  %v13961_v55 = vunpack.i.l.bf16 %v13960_v29  ;;  %v13990_v58 = vpop.permute.xlu2 %13989  ;;  %v13962_v8 = vunpack.i.h.bf16 %v13960_v29  ;;  %v13982_v63 = vunpack.i.h.bf16 %v13980_v51 }
 0xd79   : > { %v13991_v0 = vunpack.i.l.bf16 %v13990_v58  ;;  %v13992_v18 = vunpack.i.h.bf16 %v13990_v58 }
 0xd7a   : > { %v4774_v59 = vpack.c.bf16 %v13981_v11, %v13981_v11  ;;  %v4621_v12 = vpack.c.bf16 %v13961_v55, %v13961_v55  ;;  %v4620_v16 = vpack.c.bf16 %v13966_v4, %v13962_v8  ;;  %v13126_v4 = vld [vmem:[%s19831_s1 + $0x3c4] sm:$0xff] }
 0xd7b   : > { %v4714_v2 = vpack.c.bf16 %v13991_v0, %v13977_v61 }
 0xd7c   : > { %v4640_v47 = vsel %vm475_vm0, %v4621_v12, 0  ;;  %v4792_v5 = vsel %vm475_vm0, %v4774_v59, 0 }
 0xd7d   : > { %4741 = vmatpush.bf16.msrb.mxu0 %v4714_v2  ;;  %4647 = vmatpush.bf16.msra.mxu2 %v4640_v47 }
 0xd7e   : > { %4799 = vmatpush.bf16.msrb.mxu1 %v4792_v5 }
 0xd7f   : > { %v13970_v14 = vpop.permute.xlu1 %13969  ;;  %v13995_v13 = vpop.permute.xlu0 %13994 }
 0xd80   : > { %v13971_v17 = vunpack.i.l.bf16 %v13970_v14  ;;  %v13996_v19 = vunpack.i.l.bf16 %v13995_v13  ;;  %v4702_v30 = vpop.permute.xlu2 %4701  ;;  %v13997_v39 = vunpack.i.h.bf16 %v13995_v13  ;;  %v13972_v26 = vunpack.i.h.bf16 %v13970_v14 }
 0xd81   : > { %v4713_v62 = vpack.c.bf16 %v4702_v30, %v13992_v18  ;;  %4648 = vmatpush.bf16.msra.mxu2 %v4620_v16  ;;  %v13128_v18 = vld [vmem:[%s19831_s1 + $0x3d4] sm:$0xff] }
 0xd82   : > { %v4833_v21 = vpack.c.bf16 %v13971_v17, %v13971_v17  ;;  %v4773_v22 = vpack.c.bf16 %v13996_v19, %v13982_v63 }
 0xd83   : > { %4742 = vmatpush.bf16.msrb.mxu0 %v4713_v62 }
 0xd84   : > { %4800 = vmatpush.bf16.msrb.mxu1 %v4773_v22  ;;  %v4851_v28 = vsel %vm475_vm0, %v4833_v21, 0 }
 0xd85   : > { %4649 = vmatpush.bf16.msra.mxu2 %v4619_v35 }
 0xd86   : > { %11722 = vmatmul.msk.bf16.vlgmr.msrb.gmra.mxu0 %vm4632_vm13, %v13122_v23  ;;  %v13132_v23 = vld [vmem:[%s19831_s1 + $0x3f4] sm:$0xff] }
 0xd87   : > { %v4761_v20 = vpop.permute.xlu0 %4760  ;;  %v13985_v24 = vpop.permute.xlu1 %13984 }
 0xd88   : > { %v4772_v9 = vpack.c.bf16 %v4761_v20, %v13997_v39  ;;  %v13986_v34 = vunpack.i.l.bf16 %v13985_v24  ;;  %11702 = vmatmul.msk.bf16.vlgmr.msra.gmra.mxu2 %vm4632_vm13, %v13120_v54  ;;  %v4879_v38 = vpop.permute.xlu2 %4878  ;;  %v13987_v27 = vunpack.i.h.bf16 %v13985_v24  ;;  %v13127_v24 = vld [vmem:[%s19831_s1 + $0x3cc] sm:$0xff] }
 0xd89   : > { %4858 = vmatpush.bf16.msrb.mxu2 %v4851_v28  ;;  %v13130_v28 = vld [vmem:[%s19831_s1 + $0x3e4] sm:$0xff] }
 0xd8a   : > { %4801 = vmatpush.bf16.msrb.mxu1 %v4772_v9  ;;  %v4832_v40 = vpack.c.bf16 %v13986_v34, %v13972_v26  ;;  %v13129_v26 = vld [vmem:[%s19831_s1 + $0x3dc] sm:$0xff]  ;;  %v13131_v34 = vld [vmem:[%s19831_s1 + $0x3ec] sm:$0xff] }
 0xd8b   : > { %v13133_v9 = vld [vmem:[%s19831_s1 + $0x3fc] sm:$0xff] }
 0xd8d   : > { %4859 = vmatpush.bf16.msrb.mxu2 %v4832_v40  ;;  %11732 = vmatmul.msk.bf16.vlgmr.msrb.gmra.mxu1 %vm4632_vm13, %v13124_v42  ;;  %v13134_v42 = vld [vmem:[%s19831_s1 + $0x404] sm:$0xff] }
 0xd8f   : > { %v14005_v32 = vpop.permute.xlu0 %14004  ;;  %v4820_v43 = vpop.permute.xlu1 %4819 }
 0xd90   : > { %v14006_v36 = vunpack.i.l.bf16 %v14005_v32  ;;  %v4831_v37 = vpack.c.bf16 %v4820_v43, %v13987_v27  ;;  %v14020_v31 = vpop.permute.xlu2 %14019  ;;  %v14007_v19 = vunpack.i.h.bf16 %v14005_v32 }
 0xd91   : > { %v14021_v51 = vunpack.i.l.bf16 %v14020_v31  ;;  %v14022_v11 = vunpack.i.h.bf16 %v14020_v31  ;;  %v13158_v31 = vld [vmem:[%s19840_s10 + $0xb0] sm:$0xf0] }
 0xd92   : > { %v5069_v7 = vpack.c.bf16 %v14006_v36, %v14006_v36  ;;  %4860 = vmatpush.bf16.msrb.mxu2 %v4831_v37 }
 0xd93   : > { %v4890_v47 = vpack.c.bf16 %v4879_v38, %v14022_v11  ;;  %v13135_v38 = vld [vmem:[%s19831_s1 + $0x40c] sm:$0xff]  ;;  %v13156_v11 = vld [vmem:[%s19840_s10 + $0xa0] sm:$0xf0] }
 0xd94   : > { %v5087_v41 = vsel %vm475_vm0, %v5069_v7, 0 }
 0xd96   : > { %5094 = vmatpush.bf16.msra.mxu2 %v5087_v41  ;;  %11723 = vmatmul.msk.bf16.gmra.mxu0 %vm4632_vm13, %v13123_v48  ;;  %v11870_v48 = vld [vmem:[%s19840_s10 + $0xa8] sm:$0xf]  ;;  %v13157_v41 = vld [vmem:[%s19840_s10 + $0xac] sm:$0xf] }
 0xd97   : > { %v14015_v49 = vpop.permute.xlu0 %14014  ;;  %v14000_v50 = vpop.permute.xlu1 %13999 }
 0xd98   : > { %v14016_v57 = vunpack.i.l.bf16 %v14015_v49  ;;  %v14001_v45 = vunpack.i.l.bf16 %v14000_v50  ;;  %11703 = vmatmul.msk.bf16.gmra.mxu2 %vm4632_vm13, %v13121_v3  ;;  %v14002_v56 = vunpack.i.h.bf16 %v14000_v50  ;;  %v14030_v29 = vpop.permute.xlu2 %14029  ;;  %v14017_v61 = vunpack.i.h.bf16 %v14015_v49  ;;  %v11872_v49 = vld [vmem:[%s19840_s10 + $0xb4] sm:$0xf0]  ;;  %v11878_v50 = vld [vmem:[%s19840_s10 + $0xb0] sm:$0xf] }
 0xd99   : > { %v14031_v14 = vunpack.i.l.bf16 %v14030_v29  ;;  %v14032_v21 = vunpack.i.h.bf16 %v14030_v29  ;;  %v16013_v27 = vpop.f32.mrf.mxu3  ;;  %v11871_v3 = vor.u32 %v13158_v31, %v11870_v48  ;;  %v11866_v29 = vld [vmem:[%s19840_s10 + $0x98] sm:$0xf]  ;;  %v11810_v48 = vld [vmem:[%s19840_s10 + $0x30] sm:$0xf]  ;;  %v13143_v31 = vld [vmem:[%s19840_s10 + $0x38] sm:$0xf0] }
 0xd9a   : > { %v5010_v52 = vpack.c.bf16 %v14016_v57, %v14016_v57  ;;  %v4892_v60 = vpack.c.bf16 %v14001_v45, %v14001_v45  ;;  %v4891_v1 = vpack.c.bf16 %v14021_v51, %v14002_v56  ;;  %v13159_v57 = vld [vmem:[%s19840_s10 + $0xb8] sm:$0xf0]  ;;  %v11875_v45 = vor.u32 %v13157_v41, %v11872_v49  ;;  %v11860_v51 = vld [vmem:[%s19840_s10 + $0x9c] sm:$0xf0]  ;;  %v13142_v41 = vld [vmem:[%s19840_s10 + $0x34] sm:$0xf] }
 0xd9b   : > { %v13155_v56 = vld [vmem:[%s19840_s10 + $0x98] sm:$0xf0]  ;;  %v11812_v49 = vld [vmem:[%s19840_s10 + $0x3c] sm:$0xf0] }
 0xd9c   : > { %v4910_v46 = vsel %vm475_vm0, %v4892_v60, 0  ;;  %v5028_v44 = vsel %vm475_vm0, %v5010_v52, 0  ;;  %v11879_v52 = vor.u32 %v13159_v57, %v11878_v50  ;;  %v11818_v50 = vld [vmem:[%s19840_s10 + $0x38] sm:$0xf]  ;;  %v13144_v57 = vld [vmem:[%s19840_s10 + $0x40] sm:$0xf0] }
 0xd9d   : > { %4917 = vmatpush.bf16.msrb.mxu3 %v4910_v46  ;;  %5035 = vmatpush.bf16.msra.mxu1 %v5028_v44  ;;  %v13154_v46 = vld [vmem:[%s19840_s10 + $0x94] sm:$0xf] }
 0xd9e   : > { %11733 = vmatmul.msk.bf16.gmra.mxu1 %vm4632_vm13, %v13125_v53  ;;  %v11858_v53 = vld [vmem:[%s19840_s10 + $0x90] sm:$0xf] }
 0xd9f   : > { %v14035_v55 = vpop.permute.xlu0 %14034  ;;  %v14010_v58 = vpop.permute.xlu1 %14009  ;;  %v11859_v44 = vor.u32 %v13155_v56, %v11858_v53  ;;  %v11819_v53 = vor.u32 %v13144_v57, %v11818_v50 }
 0xda0   : > { %v14036_v0 = vunpack.i.l.bf16 %v14035_v55  ;;  %v14011_v59 = vunpack.i.l.bf16 %v14010_v58  ;;  %v14012_v2 = vunpack.i.h.bf16 %v14010_v58  ;;  %v14037_v13 = vunpack.i.h.bf16 %v14035_v55  ;;  %v4938_v30 = vpop.permute.xlu2 %4937 }
 0xda1   : > { %4918 = vmatpush.bf16.msrb.mxu3 %v4891_v1  ;;  %v4949_v35 = vpack.c.bf16 %v4938_v30, %v14032_v21  ;;  %v16023_v7 = vpop.f32.mrf.mxu3  ;;  %v11863_v58 = vor.u32 %v13154_v46, %v11860_v51  ;;  %v11867_v1 = vor.u32 %v13156_v11, %v11866_v29  ;;  %v11842_v30 = vld [vmem:[%s19840_s10 + $0x68] sm:$0xf]  ;;  %v11798_v46 = vld [vmem:[%s19840_s10 + $0x18] sm:$0xf]  ;;  %v13139_v51 = vld [vmem:[%s19840_s10 + $0x1c] sm:$0xf] }
 0xda2   : > { %v4951_v12 = vpack.c.bf16 %v14011_v59, %v14011_v59  ;;  %v5009_v8 = vpack.c.bf16 %v14036_v0, %v14017_v61  ;;  %v4950_v17 = vpack.c.bf16 %v14031_v14, %v14012_v2  ;;  %v11846_v0 = vld [vmem:[%s19840_s10 + $0x78] sm:$0xf]  ;;  %v13152_v59 = vld [vmem:[%s19840_s10 + $0x80] sm:$0xf0]  ;;  %v11848_v2 = vld [vmem:[%s19840_s10 + $0x84] sm:$0xf0] }
 0xda4   : > { %5036 = vmatpush.bf16.msra.mxu1 %v5009_v8  ;;  %v4969_v5 = vsel %vm475_vm0, %v4951_v12, 0  ;;  %v13151_v12 = vld [vmem:[%s19840_s10 + $0x7c] sm:$0xf]  ;;  %v11847_v8 = vor.u32 %v13152_v59, %v11846_v0  ;;  %v13141_v0 = vld [vmem:[%s19840_s10 + $0x28] sm:$0xf0] }
 0xda5   : > { %4919 = vmatpush.bf16.msrb.mxu3 %v4890_v47  ;;  %4976 = vmatpush.bf16.msra.mxu0 %v4969_v5  ;;  %v11854_v47 = vld [vmem:[%s19840_s10 + $0x80] sm:$0xf]  ;;  %v13153_v5 = vld [vmem:[%s19840_s10 + $0x88] sm:$0xf0] }
 0xda6   : > { %v11855_v14 = vor.u32 %v13153_v5, %v11854_v47  ;;  %v13136_v47 = vld [vmem:[%s19840_s10 + $0x4] sm:$0xf] }
 0xda7   : > { %v4997_v16 = vpop.permute.xlu0 %4996  ;;  %v14025_v63 = vpop.permute.xlu1 %14024 }
 0xda8   : > { %v5008_v15 = vpack.c.bf16 %v4997_v16, %v14037_v13  ;;  %v14026_v62 = vunpack.i.l.bf16 %v14025_v63  ;;  %11742 = vmatmul.msk.bf16.vlgmr.msrb.gmra.mxu2 %vm4632_vm13, %v13126_v4  ;;  %11752 = vmatmul.msk.bf16.vlgmr.msrb.gmra.mxu3 %vm4632_vm13, %v13128_v18  ;;  %v14027_v54 = vunpack.i.h.bf16 %v14025_v63  ;;  %v11851_v18 = vor.u32 %v13151_v12, %v11848_v2  ;;  %v11834_v13 = vld [vmem:[%s19840_s10 + $0x60] sm:$0xf]  ;;  %v13149_v16 = vld [vmem:[%s19840_s10 + $0x68] sm:$0xf0]  ;;  %v13148_v63 = vld [vmem:[%s19840_s10 + $0x64] sm:$0xf] }
 0xda9   : > { %4977 = vmatpush.bf16.msra.mxu0 %v4950_v17  ;;  %5314 = vmatpush.bf16.msra.mxu3 %v11871_v3  ;;  %v16085_v4 = vpop.f32.mrf.mxu3  ;;  %v11835_v17 = vor.u32 %v13149_v16, %v11834_v13  ;;  %v11811_v3 = vor.u32 %v13143_v31, %v11810_v48  ;;  %v11794_v13 = vld [vmem:[%s19840_s10 + $0x8] sm:$0xf]  ;;  %v13138_v16 = vld [vmem:[%s19840_s10 + $0x10] sm:$0xf0] }
 0xdaa   : > { %5037 = vmatpush.bf16.msra.mxu1 %v5008_v15  ;;  %v5068_v22 = vpack.c.bf16 %v14026_v62, %v14007_v19  ;;  %v11836_v19 = vld [vmem:[%s19840_s10 + $0x6c] sm:$0xf0]  ;;  %v13150_v15 = vld [vmem:[%s19840_s10 + $0x70] sm:$0xf0] }
 0xdac   : > { %5095 = vmatpush.bf16.msra.mxu2 %v5068_v22  ;;  %v11839_v22 = vor.u32 %v13148_v63, %v11836_v19  ;;  %v11795_v19 = vor.u32 %v13138_v16, %v11794_v13 }
 0xdad   : > { %4978 = vmatpush.bf16.msra.mxu0 %v4949_v35  ;;  %5315 = vmatpush.bf16.msra.mxu3 %v11859_v44  ;;  %v11822_v35 = vld [vmem:[%s19840_s10 + $0x48] sm:$0xf]  ;;  %v13140_v44 = vld [vmem:[%s19840_s10 + $0x20] sm:$0xf0] }
 0xdae   : > { %11772 = vmatmul.msk.bf16.vlgmr.msra.gmra.mxu1 %vm4632_vm13, %v13132_v23  ;;  %v11843_v23 = vor.u32 %v13150_v15, %v11842_v30  ;;  %v11799_v11 = vor.u32 %v13140_v44, %v11798_v46  ;;  %v5124_v46 = vpop.permute.xlu2 %5123 }
 0xdaf   : > { %v5056_v39 = vpop.permute.xlu1 %5055  ;;  %5352 = vmatpush.bf16.msrb.mxu1 %v11879_v52  ;;  %v11815_v52 = vor.u32 %v13142_v41, %v11812_v49 }
 0xdb0   : > { %v5067_v20 = vpack.c.bf16 %v5056_v39, %v14027_v54  ;;  %11762 = vmatmul.msk.bf16.vlgmr.msra.gmra.mxu0 %vm4632_vm13, %v13130_v28  ;;  %v13146_v28 = vld [vmem:[%s19840_s10 + $0x50] sm:$0xf0]  ;;  %v13145_v54 = vld [vmem:[%s19840_s10 + $0x4c] sm:$0xf] }
 0xdb1   : > { %5333 = vmatpush.bf16.msrb.mxu0 %v11875_v45  ;;  %5316 = vmatpush.bf16.msra.mxu3 %v11847_v8  ;;  %v11823_v39 = vor.u32 %v13146_v28, %v11822_v35 }
 0xdb2   : > { %5096 = vmatpush.bf16.msra.mxu2 %v5067_v20  ;;  %v11824_v20 = vld [vmem:[%s19840_s10 + $0x54] sm:$0xf0] }
 0xdb3   : > { %5353 = vmatpush.bf16.msrb.mxu1 %v11867_v1  ;;  %v11806_v1 = vld [vmem:[%s19840_s10 + $0x20] sm:$0xf] }
 0xdb4   : > { %v11807_v12 = vor.u32 %v13141_v0, %v11806_v1 }
 0xdb5   : > { %5334 = vmatpush.bf16.msrb.mxu0 %v11863_v58  ;;  %5317 = vmatpush.bf16.msra.mxu3 %v11835_v17  ;;  %v11800_v58 = vld [vmem:[%s19840_s10 + $0x24] sm:$0xf0] }
 0xdb6   : > { %v11803_v59 = vor.u32 %v13139_v51, %v11800_v58 }
 0xdb7   : > { %5354 = vmatpush.bf16.msrb.mxu1 %v11855_v14  ;;  %v11788_v14 = vld [vmem:[%s19840_s10 + $0xc] sm:$0xf0] }
 0xdb8   : > { %11743 = vmatmul.msk.bf16.gmra.mxu2 %vm4632_vm13, %v13127_v24  ;;  %11753 = vmatmul.msk.bf16.gmra.mxu3 %vm4632_vm13, %v13129_v26  ;;  %v11830_v24 = vld [vmem:[%s19840_s10 + $0x50] sm:$0xf]  ;;  %v13147_v26 = vld [vmem:[%s19840_s10 + $0x58] sm:$0xf0]  ;;  %v11791_v17 = vor.u32 %v13136_v47, %v11788_v14  ;;  %v5129_v47 = vpop.permute.xlu0 %5128 }
 0xdb9   : > { %5335 = vmatpush.bf16.msrb.mxu0 %v11851_v18  ;;  %5318 = vmatpush.bf16.msra.mxu3 %v11823_v39 }
 0xdbb   : > { %5355 = vmatpush.bf16.msrb.mxu1 %v11843_v23 }
 0xdbd   : > { %5336 = vmatpush.bf16.msrb.mxu0 %v11839_v22  ;;  %5319 = vmatpush.bf16.msra.mxu3 %v11811_v3 }
 0xdbe   : > { %11773 = vmatmul.msk.bf16.gmra.mxu1 %vm4632_vm13, %v13133_v9 }
 0xdc0   : > { %11763 = vmatmul.msk.bf16.gmra.mxu0 %vm4632_vm13, %v13131_v34  ;;  %v11827_v34 = vor.u32 %v13145_v54, %v11824_v20 }
 0xdc1   : > { %5320 = vmatpush.bf16.msra.mxu3 %v11799_v11 }
 0xdc2   : > { %5337 = vmatpush.bf16.msrb.mxu0 %v11827_v34 }
 0xdc6   : > { %5338 = vmatpush.bf16.msrb.mxu0 %v11815_v52 }
 0xdc8   : > { %11782 = vmatmul.msk.bf16.vlgmr.msra.gmra.mxu2 %vm4632_vm13, %v13134_v42  ;;  %v11831_v42 = vor.u32 %v13147_v26, %v11830_v24 }
 0xdca   : > { %5356 = vmatpush.bf16.msrb.mxu1 %v11831_v42  ;;  %5339 = vmatpush.bf16.msrb.mxu0 %v11803_v59 }
 0xdce   : > { %5357 = vmatpush.bf16.msrb.mxu1 %v11819_v53  ;;  %5340 = vmatpush.bf16.msrb.mxu0 %v11791_v17 }
 0xdd2   : > { %5358 = vmatpush.bf16.msrb.mxu1 %v11807_v12 }
 0xdd6   : > { %5359 = vmatpush.bf16.msrb.mxu1 %v11795_v19 }
 0xdd8   : > { %11783 = vmatmul.msk.bf16.gmra.mxu2 %vm4632_vm13, %v13135_v38  ;;  %v16129_v38 = vpop.f32.mrf.mxu3 }
 0xdda   : > { %5581 = vmatpush.bf16.msra.mxu1 %v14785_v6 }
 0xe03   : > { %v16017_v43 = vpop.f32.mrf.mxu0 }
 0xe0a   : > { %v16019_v36 = vpop.f32.mrf.mxu1 }
 0xe0b   : > { %v16011_v40 = vpop.f32.mrf.mxu2  ;;  %v16043_v60 = vpop.f32.mrf.mxu0 }
 0xe0c   : > { %v4690_v29 = vadd.f32 %v16013_v27, %v16011_v40  ;;  %v11786_v40 = vld [vmem:[%s19840_s10] sm:$0xf]  ;;  %v13137_v27 = vld [vmem:[%s19840_s10 + $0x8] sm:$0xf0] }
 0xe0d   : > { %v11787_v18 = vor.u32 %v13137_v27, %v11786_v40 }
 0xe0e   : > { %v4754_v5 = vadd.f32 %v16017_v43, %v4690_v29 }
 0xe0f   : > { %5321 = vmatpush.bf16.msra.mxu3 %v11787_v18 }
 0xe10   : > { %v4813_v15 = vadd.f32 %v16019_v36, %v4754_v5 }
 0xe12   : > { %v16065_v61 = vpop.f32.mrf.mxu1 }
 0xe13   : > { %v16015_v32 = vpop.f32.mrf.mxu2  ;;  %v16105_v62 = vpop.f32.mrf.mxu0 }
 0xe14   : > { %v4692_v30 = vadd.f32 %v16023_v7, %v16015_v32 }
 0xe16   : > { %v4755_v22 = vadd.f32 %v16043_v60, %v4692_v30 }
 0xe18   : > { %v4814_v39 = vadd.f32 %v16065_v61, %v4755_v22  ;;  %v16202_v22 = vld [vmem:[%s14755_s30] sm:$0xff] }
 0xe1b   : > { %v16021_v37 = vpop.f32.mrf.mxu2  ;;  %v16127_v9 = vpop.f32.mrf.mxu1 }
 0xe1c   : > { %v4751_v56 = vpop.f32.mrf.mxu0  ;;  %v4695_v32 = vadd.f32 %v16085_v4, %v16021_v37  ;;  %v5119_v37 = vpop.permute.xlu1 %5118 }
 0xe1e   : > { %v4756_v36 = vadd.f32 %v16105_v62, %v4695_v32 }
 0xe20   : > { %v4815_v31 = vadd.f32 %v16127_v9, %v4756_v36 }
 0xe23   : > { %v16063_v55 = vpop.f32.mrf.mxu2  ;;  %v4810_v8 = vpop.f32.mrf.mxu1 }
 0xe24   : > { %v4697_v60 = vadd.f32 %v16129_v38, %v16063_v55  ;;  %v5134_v16 = vpop.permute.xlu1 %5133 }
 0xe26   : > { %v4757_v3 = vadd.f32 %v4751_v56, %v4697_v60 }
 0xe28   : > { %v4816_v62 = vadd.f32 %v4810_v8, %v4757_v3 }
 0xe2b   : > { %v16107_v21 = vpop.f32.mrf.mxu2  ;;  %v4921_v2 = vpop.f32.mrf.mxu3 }
 0xe2c   : > { %v4872_v23 = vadd.f32 %v16107_v21, %v4813_v15  ;;  %v5039_v35 = vpop.f32.mrf.mxu1 }
 0xe2d   : > { %v4980_v43 = vpop.f32.mrf.mxu0 }
 0xe2e   : > { %v4931_v20 = vadd.f32 %v4921_v2, %v4872_v23  ;;  %v16205_v23 = vld [vmem:[%s14755_s30 + $0x8] sm:$0xff] }
 0xe30   : > { %v4990_v26 = vadd.f32 %v4980_v43, %v4931_v20 }
 0xe32   : > { %v5049_v21 = vadd.f32 %v5039_v35, %v4990_v26  ;;  %v16209_v35 = vpack.i.bf16 %v16205_v23, %v16202_v22 }
 0xe33   : > { %v4864_v45 = vpop.f32.mrf.mxu2  ;;  %v4923_v28 = vpop.f32.mrf.mxu3 }
 0xe34   : > { %v4873_v7 = vadd.f32 %v4864_v45, %v4814_v39  ;;  %v5041_v6 = vpop.f32.mrf.mxu1  ;;  %14039 = vrot.lane.b32.xlu2 %v16209_v35, %s19880_s14 }
 0xe35   : > { %v4982_v24 = vpop.f32.mrf.mxu0 }
 0xe36   : > { %v4932_v34 = vadd.f32 %v4923_v28, %v4873_v7 }
 0xe38   : > { %v4991_v61 = vadd.f32 %v4982_v24, %v4932_v34 }
 0xe3a   : > { %v5050_v50 = vadd.f32 %v5041_v6, %v4991_v61 }
 0xe3b   : > { %v4867_v63 = vpop.f32.mrf.mxu2  ;;  %v4926_v48 = vpop.f32.mrf.mxu3 }
 0xe3c   : > { %v4874_v49 = vadd.f32 %v4867_v63, %v4815_v31  ;;  %v5044_v44 = vpop.f32.mrf.mxu1 }
 0xe3d   : > { %v4985_v4 = vpop.f32.mrf.mxu0 }
 0xe3e   : > { %v4933_v52 = vadd.f32 %v4926_v48, %v4874_v49 }
 0xe40   : > { %v4992_v9 = vadd.f32 %v4985_v4, %v4933_v52 }
 0xe42   : > { %v5051_v2 = vadd.f32 %v5044_v44, %v4992_v9 }
 0xe43   : > { %v4869_v54 = vpop.f32.mrf.mxu2  ;;  %v4928_v29 = vpop.f32.mrf.mxu3 }
 0xe44   : > { %v4875_v51 = vadd.f32 %v4869_v54, %v4816_v62  ;;  %v5046_v27 = vpop.f32.mrf.mxu1 }
 0xe45   : > { %v4987_v0 = vpop.f32.mrf.mxu0 }
 0xe46   : > { %v4934_v56 = vadd.f32 %v4928_v29, %v4875_v51 }
 0xe48   : > { %v4993_v8 = vadd.f32 %v4987_v0, %v4934_v56 }
 0xe4a   : > { %v5052_v5 = vadd.f32 %v5046_v27, %v4993_v8 }
 0xe4b   : > { %v5098_v42 = vpop.f32.mrf.mxu2 }
 0xe4c   : > { %v5108_v41 = vadd.f32 %v5098_v42, %v5049_v21 }
 0xe4e   : > { %v5136_v57 = vadd.f32 %v5119_v37, %v5108_v41  ;;  %v14640_v41 = vld [vmem:[%s14755_s30 + $0x10] sm:$0xff]  ;;  %s19910_s30 = smov 110  }
 0xe50   : > { %v5144_v55 = vmul.f32 0.2, %v5136_v57  ;;  %vm5140_vm14 = vcmp.ge.f32.partialorder %v5136_v57, 0.0 }
 0xe52   : > { %v5148_v58 = vsel %vm5140_vm14, %v5136_v57, %v5144_v55 }
 0xe53   : > { %v5100_v45 = vpop.f32.mrf.mxu2 }
 0xe54   : > { %v5109_v53 = vadd.f32 %v5100_v45, %v5050_v50 }
 0xe56   : > { %v5137_v38 = vadd.f32 %v5124_v46, %v5109_v53  ;;  %v14178_v46 = vpack.i.bf16 %v14640_v41, %v16205_v23 }
 0xe58   : > { %vm5141_vm15 = vcmp.ge.f32.partialorder %v5137_v38, 0.0  ;;  %v5145_v11 = vmul.f32 0.2, %v5137_v38 }
 0xe5a   : > { %v5149_v1 = vsel %vm5141_vm15, %v5137_v38, %v5145_v11 }
 0xe5b   : > { %v5152_v59 = vpack.c.bf16 %v5149_v1, %v5148_v58  ;;  %v5103_v12 = vpop.f32.mrf.mxu2 }
 0xe5c   : > { %v5110_v40 = vadd.f32 %v5103_v12, %v5051_v2  ;;  %v16369_v2 = vld [vmem:[%s19831_s1 + $0x414] sm:$0xff] }
 0xe5d   : > { %5322 = vmatmul.bf16.vlgmr.msra.gmra.mxu3 %v5152_v59  ;;  %5341 = vmatmul.bf16.vlgmr.msrb.gmra.mxu0 %v5152_v59 }
 0xe5e   : > { %5360 = vmatmul.bf16.vlgmr.msrb.gmra.mxu1 %v5152_v59  ;;  %v5138_v18 = vadd.f32 %v5129_v47, %v5110_v40 }
 0xe60   : > { %v5146_v63 = vmul.f32 0.2, %v5138_v18  ;;  %vm5142_vm10 = vcmp.ge.f32.partialorder %v5138_v18, 0.0 }
 0xe62   : > { %v5150_v30 = vsel %vm5142_vm10, %v5138_v18, %v5146_v63 }
 0xe63   : > { %v5105_v14 = vpop.f32.mrf.mxu2 }
 0xe64   : > { %v5111_v13 = vadd.f32 %v5105_v14, %v5052_v5 }
 0xe66   : > { %v5139_v17 = vadd.f32 %v5134_v16, %v5111_v13 }
 0xe68   : > { %v5147_v19 = vmul.f32 0.2, %v5139_v17  ;;  %vm5143_vm12 = vcmp.ge.f32.partialorder %v5139_v17, 0.0 }
 0xe6a   : > { %v5151_v43 = vsel %vm5143_vm12, %v5139_v17, %v5147_v19 }
 0xe6b   : > { %v5153_v15 = vpack.c.bf16 %v5151_v43, %v5150_v30 }
 0xe6d   : > { %5327 = vmatmul.bf16.gmra.mxu3 %v5153_v15  ;;  %5346 = vmatmul.bf16.gmra.mxu0 %v5153_v15 }
 0xe6e   : > { %5365 = vmatmul.bf16.gmra.mxu1 %v5153_v15 }
 0xe8e   : > { %v14040_v53 = vpop.permute.xlu2 %14039 }
 0xe8f   : > { %v14042_v51 = vunpack.i.h.bf16 %v14040_v53  ;;  %v14041_v55 = vunpack.i.l.bf16 %v14040_v53 }
 0xe91   : > { %v5450_v29 = vsel %vm463_vm2, %v14041_v55, %v14042_v51 }
 0xe92   : > { %v5466_v9 = vpack.c.bf16 %v5450_v29, %v5450_v29 }
 0xe94   : > { %v5486_v11 = vsel %vm475_vm0, %v5466_v9, 0 }
 0xe95   : > { %5499 = vmatpush.bf16.msrb.mxu2 %v5486_v11 }
 0xeda   : > { %v16213_v28 = vpop.f32.mrf.mxu0 }
 0xedb   : > { %v16215_v54 = vpop.f32.mrf.mxu1 }
 0xee0   : > { %v16217_v39 = vpop.f32.mrf.mxu3 }
 0xee2   : > { %v16219_v20 = vpop.f32.mrf.mxu0 }
 0xee3   : > { %v16221_v32 = vpop.f32.mrf.mxu1  ;;  %v16271_v4 = vpack.i.bf16 %v16219_v20, %v16213_v28  ;;  %v16292_v62 = vpack.i.bf16 %v16215_v54, %v16219_v20 }
 0xee4   : > { %v14198_v44 = vpack.i.bf16 %v16221_v32, %v16215_v54 }
 0xee8   : > { %v16223_v7 = vpop.f32.mrf.mxu3 }
 0xee9   : > { %v16227_v24 = vpack.i.bf16 %v16223_v7, %v16217_v39  ;;  %v5402_v37 = vpack.c.bf16 %v16223_v7, %v16217_v39  ;;  %v14093_v45 = vpack.i.bf16 %v16213_v28, %v16223_v7 }
 0xeea   : > { %v16229_v26 = vpop.f32.mrf.mxu0 }
 0xeeb   : > { %v16231_v36 = vpop.f32.mrf.mxu1  ;;  %14049 = vrot.lane.b32.xlu2 %v16227_v24, %s19880_s14 }
 0xeec   : > { %v16261_v3 = vpack.i.bf16 %v16231_v36, %v14640_v41 }
 0xef0   : > { %v16235_v34 = vpop.f32.mrf.mxu3 }
 0xef1   : > { %v14078_v49 = vpack.i.bf16 %v16235_v34, %v14640_v41  ;;  %v14203_v59 = vpack.i.bf16 %v16235_v34, %v16202_v22 }
 0xef2   : > { %v16237_v6 = vpop.f32.mrf.mxu0 }
 0xef3   : > { %v16239_v42 = vpop.f32.mrf.mxu1  ;;  %v16243_v60 = vpack.i.bf16 %v16237_v6, %v16229_v26  ;;  %v14083_v57 = vpack.i.bf16 %v16231_v36, %v16237_v6 }
 0xef4   : > { %v16247_v21 = vpack.i.bf16 %v16215_v54, %v16239_v42  ;;  %v14088_v50 = vpack.i.bf16 %v16217_v39, %v16239_v42  ;;  %v14188_v58 = vpack.i.bf16 %v16239_v42, %v16231_v36 }
 0xef5   : > { %14044 = vrot.lane.b32.xlu1 %v16243_v60, %s19880_s14 }
 0xef6   : > { %14069 = vrot.lane.b32.xlu2 %v16247_v21, %s19880_s14 }
 0xef8   : > { %v5330_v48 = vpop.f32.mrf.mxu3 }
 0xef9   : > { %v16254_v31 = vpack.i.bf16 %v5330_v48, %v16235_v34  ;;  %v5405_v61 = vpack.c.bf16 %v5330_v48, %v16235_v34  ;;  %v14103_v52 = vpack.i.bf16 %v16229_v26, %v5330_v48  ;;  %v14213_v1 = vpack.i.bf16 %v16217_v39, %v5330_v48 }
 0xefb   : > { %14054 = vrot.lane.b32.xlu0 %v16254_v31, %s19880_s14  ;;  %5582 = vmatpush.bf16.msra.mxu1 %v5405_v61 }
 0xefd   : > { %14064 = vrot.lane.b32.xlu1 %v16261_v3, %s19880_s14 }
 0xefe   : > { %14079 = vrot.lane.b32.xlu2 %v14078_v49, %s19898_s21 }
 0xeff   : > { %5583 = vmatpush.bf16.msra.mxu1 %v5402_v37 }
 0xf02   : > { %11902 = vmatmul.msk.bf16.vlgmr.msra.gmra.mxu1 %vm4632_vm13, %v16369_v2 }
 0xf03   : > { %14059 = vrot.lane.b32.xlu0 %v16271_v4, %s19880_s14 }
 0xf05   : > { %14074 = vrot.lane.b32.xlu1 %v16209_v35, %s19898_s21 }
 0xf06   : > { %14089 = vrot.lane.b32.xlu2 %v14088_v50, %s19898_s21 }
 0xf0b   : > { %5433 = vrot.lane.b32.xlu0 %v16221_v32, %s19880_s14 }
 0xf0d   : > { %14084 = vrot.lane.b32.xlu1 %v14083_v57, %s19898_s21 }
 0xf0e   : > { %5655 = vrot.lane.b32.xlu2 %v16221_v32, %s19898_s21 }
 0xf13   : > { %14094 = vrot.lane.b32.xlu0 %v14093_v45, %s19898_s21 }
 0xf15   : > { %14099 = vrot.lane.b32.xlu1 %v16292_v62, %s19898_s21 }
 0xf16   : > { %14114 = vrot.lane.b32.xlu2 %v16243_v60, %s19910_s30 }
 0xf1b   : > { %14104 = vrot.lane.b32.xlu0 %v14103_v52, %s19898_s21 }
 0xf1d   : > { %14124 = vrot.lane.b32.xlu1 %v16254_v31, %s19910_s30 }
 0xf1e   : > { %14134 = vrot.lane.b32.xlu2 %v16261_v3, %s19910_s30 }
 0xf23   : > { %14109 = vrot.lane.b32.xlu0 %v16209_v35, %s19910_s30 }
 0xf25   : > { %14129 = vrot.lane.b32.xlu1 %v16271_v4, %s19910_s30 }
 0xf26   : > { %14154 = vrot.lane.b32.xlu2 %v16254_v31, %s19911_s20 }
 0xf2b   : > { %14119 = vrot.lane.b32.xlu0 %v16227_v24, %s19910_s30 }
 0xf2d   : > { %14144 = vrot.lane.b32.xlu1 %v16247_v21, %s19910_s30 }
 0xf2e   : > { %14159 = vrot.lane.b32.xlu2 %v16227_v24, %s19911_s20 }
 0xf33   : > { %14139 = vrot.lane.b32.xlu0 %v16209_v35, %s19911_s20 }
 0xf35   : > { %5807 = vrot.lane.b32.xlu1 %v16221_v32, %s19910_s30 }
 0xf36   : > { %14174 = vrot.lane.b32.xlu2 %v16247_v21, %s19911_s20 }
 0xf3b   : > { %14149 = vrot.lane.b32.xlu0 %v16243_v60, %s19911_s20 }
 0xf3d   : > { %14169 = vrot.lane.b32.xlu1 %v16261_v3, %s19911_s20 }
 0xf3e   : > { %14184 = vrot.lane.b32.xlu2 %v16243_v60, %s19909_s18 }
 0xf43   : > { %14164 = vrot.lane.b32.xlu0 %v16271_v4, %s19911_s20 }
 0xf45   : > { %14179 = vrot.lane.b32.xlu1 %v14178_v46, %s19909_s18  ;;  %v16335_v38 = vpop.permute.xlu2 %14049 }
 0xf46   : > { %14199 = vrot.lane.b32.xlu2 %v14198_v44, %s19909_s18  ;;  %v14052_v48 = vunpack.i.h.bf16 %v16335_v38  ;;  %v14051_v61 = vunpack.i.l.bf16 %v16335_v38 }
 0xf4b   : > { %5959 = vrot.lane.b32.xlu0 %v16221_v32, %s19911_s20 }
 0xf4d   : > { %14194 = vrot.lane.b32.xlu1 %v16271_v4, %s19909_s18 }
 0xf4e   : > { %6091 = vrot.lane.b32.xlu2 %v16223_v7, %s19909_s18 }
 0xf50   : > { %v16346_v56 = vpop.permute.xlu2 %14069 }
 0xf51   : > { %v14071_v7 = vunpack.i.l.bf16 %v16346_v56  ;;  %v14072_v9 = vunpack.i.h.bf16 %v16346_v56 }
 0xf53   : > { %14189 = vrot.lane.b32.xlu0 %v14188_v58, %s19909_s18 }
 0xf55   : > { %14214 = vrot.lane.b32.xlu1 %v14213_v1, %s19909_s18 }
 0xf56   : > { %14234 = vrot.lane.b32.xlu2 %v14093_v45, %s19912_s27 }
 0xf58   : > { %v16354_v0 = vpop.permute.xlu2 %14079 }
 0xf59   : > { %v14081_v53 = vunpack.i.l.bf16 %v16354_v0 }
 0xf5b   : > { %14204 = vrot.lane.b32.xlu0 %v14203_v59, %s19909_s18 }
 0xf5d   : > { %14219 = vrot.lane.b32.xlu1 %v14078_v49, %s19912_s27 }
 0xf5e   : > { %14244 = vrot.lane.b32.xlu2 %v14103_v52, %s19912_s27 }
 0xf60   : > { %v16361_v12 = vpop.permute.xlu2 %14089 }
 0xf63   : > { %14209 = vrot.lane.b32.xlu0 %v16209_v35, %s19912_s27 }
 0xf65   : > { %14229 = vrot.lane.b32.xlu1 %v14088_v50, %s19912_s27  ;;  %v16406_v50 = vld [vmem:[%s19831_s1 + $0x41c] sm:$0xff] }
 0xf66   : > { %14249 = vrot.lane.b32.xlu2 %v16209_v35, %s19913_s16  ;;  %11903 = vmatmul.msk.bf16.gmra.mxu1 %vm4632_vm13, %v16406_v50 }
 0xf67   : > { %v14045_v8 = vpop.permute.xlu1 %14044 }
 0xf68   : > { %v16375_v40 = vpop.permute.xlu2 %5655  ;;  %v14047_v47 = vunpack.i.h.bf16 %v14045_v8  ;;  %v14046_v5 = vunpack.i.l.bf16 %v14045_v8 }
 0xf6b   : > { %14224 = vrot.lane.b32.xlu0 %v14083_v57, %s19912_s27 }
 0xf6d   : > { %6263 = vrot.lane.b32.xlu1 %v16221_v32, %s19912_s27  ;;  %v14055_v27 = vpop.permute.xlu0 %14054 }
 0xf6e   : > { %14259 = vrot.lane.b32.xlu2 %v16227_v24, %s19913_s16  ;;  %v14057_v18 = vunpack.i.h.bf16 %v14055_v27  ;;  %v14056_v14 = vunpack.i.l.bf16 %v14055_v27  ;;  %v13162_v27 = vld [vmem:[%s19831_s1 + $0x424] sm:$0xff] }
 0xf6f   : > { %v14065_v13 = vpop.permute.xlu1 %14064 }
 0xf70   : > { %v14067_v16 = vunpack.i.h.bf16 %v14065_v13  ;;  %v14066_v63 = vunpack.i.l.bf16 %v14065_v13  ;;  %v16382_v17 = vpop.permute.xlu2 %14114  ;;  %v5448_v19 = vsel %vm463_vm2, %v14056_v14, %v14046_v5  ;;  %v5449_v30 = vsel %vm463_vm2, %v14057_v18, %v14047_v47 }
 0xf71   : > { %v5463_v43 = vpack.c.bf16 %v5449_v30, %v5448_v19 }
 0xf72   : > { %v5445_v15 = vsel %vm463_vm2, %v14042_v51, %v14066_v63  ;;  %v5455_v22 = vsel %vm463_vm2, %v14066_v63, %v14041_v55  ;;  %v5443_v34 = vsel %vm463_vm2, %v14046_v5, %v14067_v16  ;;  %v5453_v52 = vsel %vm463_vm2, %v14067_v16, %v14056_v14 }
 0xf73   : > { %14239 = vrot.lane.b32.xlu0 %v16292_v62, %s19912_s27  ;;  %5500 = vmatpush.bf16.msrb.mxu2 %v5463_v43  ;;  %v5467_v23 = vpack.c.bf16 %v5445_v15, %v5445_v15  ;;  %v5468_v39 = vpack.c.bf16 %v5455_v22, %v5455_v22  ;;  %v5444_v62 = vsel %vm463_vm2, %v14047_v47, %v14071_v7 }
 0xf74   : > { %v5464_v44 = vpack.c.bf16 %v5444_v62, %v5443_v34  ;;  %v5454_v51 = vsel %vm463_vm2, %v14071_v7, %v14057_v18  ;;  %v5451_v5 = vsel %vm463_vm2, %v14072_v9, %v14051_v61  ;;  %v5406_v43 = vpack.c.bf16 %v16237_v6, %v16229_v26 }
 0xf75   : > { %14254 = vrot.lane.b32.xlu1 %v16243_v60, %s19913_s16  ;;  %v14060_v41 = vpop.permute.xlu0 %14059  ;;  %v5489_v49 = vsel %vm475_vm0, %v5467_v23, 0  ;;  %v5492_v37 = vsel %vm475_vm0, %v5468_v39, 0  ;;  %v5465_v11 = vpack.c.bf16 %v5454_v51, %v5453_v52  ;;  %v5403_v23 = vpack.c.bf16 %v16219_v20, %v16213_v28 }
 0xf76   : > { %14279 = vrot.lane.b32.xlu2 %v16209_v35, %s19914_s28  ;;  %v14062_v57 = vunpack.i.h.bf16 %v14060_v41  ;;  %v14061_v45 = vunpack.i.l.bf16 %v14060_v41  ;;  %5518 = vmatpush.bf16.msrb.mxu3 %v5489_v49  ;;  %v5407_v6 = vpack.c.bf16 %v16239_v42, %v16231_v36  ;;  %v5404_v20 = vpack.c.bf16 %v16221_v32, %v16215_v54  ;;  %v13163_v36 = vld [vmem:[%s19831_s1 + $0x42c] sm:$0xff] }
 0xf77   : > { %5537 = vmatpush.bf16.msra.mxu0 %v5492_v37  ;;  %v14075_v46 = vpop.permute.xlu1 %14074  ;;  %v14092_v37 = vunpack.i.h.bf16 %v16361_v12 }
 0xf78   : > { %v14077_v35 = vunpack.i.h.bf16 %v14075_v46  ;;  %v14076_v55 = vunpack.i.l.bf16 %v14075_v46  ;;  %v5446_v38 = vsel %vm463_vm2, %v14051_v61, %v14061_v45  ;;  %v5447_v29 = vsel %vm463_vm2, %v14052_v48, %v14062_v57  ;;  %v16424_v1 = vpop.permute.xlu2 %14134 }
 0xf79   : > { %v5460_v58 = vpack.c.bf16 %v5447_v29, %v5446_v38  ;;  %v5441_v13 = vsel %vm463_vm2, %v14061_v45, %v14072_v9  ;;  %v6699_v9 = vld [vmem:[%s19832_s2 + $0xf8] sm:$0xff] }
 0xf7a   : > { %5519 = vmatpush.bf16.msrb.mxu3 %v5464_v44  ;;  %v5667_v59 = vsel %vm581_vm4, %v14077_v35, %v14081_v53  ;;  %v5672_v8 = vsel %vm581_vm4, %v14076_v55, %v14077_v35 }
 0xf7b   : > { %5538 = vmatpush.bf16.msra.mxu0 %v5465_v11  ;;  %14264 = vrot.lane.b32.xlu0 %v16254_v31, %s19913_s16  ;;  %v5689_v56 = vpack.c.bf16 %v5667_v59, %v5667_v59  ;;  %v5688_v47 = vpack.c.bf16 %v5672_v8, %v5672_v8  ;;  %v14136_v59 = vunpack.i.l.bf16 %v16424_v1 }
 0xf7c   : > { %5501 = vmatpush.bf16.msrb.mxu2 %v5460_v58 }
 0xf7d   : > { %14274 = vrot.lane.b32.xlu1 %v16261_v3, %s19913_s16  ;;  %v5434_v18 = vpop.permute.xlu0 %5433  ;;  %v5711_v14 = vsel %vm475_vm0, %v5689_v56, 0  ;;  %v5708_v15 = vsel %vm475_vm0, %v5688_v47, 0 }
 0xf7e   : > { %14289 = vrot.lane.b32.xlu2 %v16243_v60, %s19914_s28  ;;  %v5442_v16 = vsel %vm463_vm2, %v14062_v57, %v5434_v18  ;;  %5740 = vmatpush.bf16.msrb.mxu1 %v5711_v14  ;;  %v5677_v60 = vsel %vm581_vm4, %v14081_v53, %v14076_v55 }
 0xf7f   : > { %v5461_v63 = vpack.c.bf16 %v5442_v16, %v5441_v13  ;;  %11888 = vmatmul.msk.bf16.vlgmr.msrb.gmra.mxu2 %vm4632_vm13, %v13162_v27  ;;  %v14085_v30 = vpop.permute.xlu1 %14084  ;;  %v5690_v22 = vpack.c.bf16 %v5677_v60, %v5677_v60  ;;  %v16541_v60 = vld [vmem:[%s19831_s1 + $0x434] sm:$0xff] }
 0xf80   : > { %5600 = vmatpush.bf16.msra.mxu2 %v14808_v25  ;;  %v5452_v25 = vsel %vm463_vm2, %v5434_v18, %v14052_v48  ;;  %v16460_v39 = vpop.permute.xlu2 %14154  ;;  %v14086_v42 = vunpack.i.l.bf16 %v14085_v30  ;;  %v14091_v48 = vunpack.i.l.bf16 %v16361_v12 }
 0xf81   : > { %v5462_v19 = vpack.c.bf16 %v5452_v25, %v5451_v5  ;;  %5520 = vmatpush.bf16.msrb.mxu3 %v5461_v63  ;;  %v14117_v25 = vunpack.i.h.bf16 %v16382_v17  ;;  %v14116_v63 = vunpack.i.l.bf16 %v16382_v17 }
 0xf82   : > { %v5666_v53 = vsel %vm581_vm4, %v14086_v42, %v14091_v48 }
 0xf83   : > { %5539 = vmatpush.bf16.msra.mxu0 %v5462_v19  ;;  %14269 = vrot.lane.b32.xlu0 %v16271_v4, %s19913_s16 }
 0xf84   : > { %5601 = vmatpush.bf16.msra.mxu2 %v5406_v43  ;;  %11890 = vmatmul.msk.bf16.vlgmr.msrb.gmra.mxu3 %vm4632_vm13, %v13162_v27 }
 0xf85   : > { %5619 = vmatpush.bf16.msra.mxu3 %v14820_v33  ;;  %v14095_v26 = vpop.permute.xlu0 %14094  ;;  %14294 = vrot.lane.b32.xlu1 %v16254_v31, %s19914_s28  ;;  %v5714_v33 = vsel %vm475_vm0, %v5690_v22, 0  ;;  %v14087_v31 = vunpack.i.h.bf16 %v14085_v30 }
 0xf86   : > { %11892 = vmatmul.msk.bf16.vlgmr.msra.gmra.mxu0 %vm4632_vm13, %v13162_v27  ;;  %14304 = vrot.lane.b32.xlu2 %v16271_v4, %s19914_s28  ;;  %v14082_v4 = vunpack.i.h.bf16 %v16354_v0  ;;  %v14096_v57 = vunpack.i.l.bf16 %v14095_v26  ;;  %v14097_v45 = vunpack.i.h.bf16 %v14095_v26 }
 0xf87   : > { %5721 = vmatpush.bf16.msrb.mxu0 %v5708_v15  ;;  %v14100_v28 = vpop.permute.xlu1 %14099 }
 0xf88   : > { %5602 = vmatpush.bf16.msra.mxu2 %v5403_v23  ;;  %v14101_v7 = vunpack.i.l.bf16 %v14100_v28  ;;  %v14102_v61 = vunpack.i.h.bf16 %v14100_v28  ;;  %v16480_v41 = vpop.permute.xlu2 %14159  ;;  %v5675_v12 = vsel %vm581_vm4, %v14087_v31, %v14082_v4  ;;  %v5668_v11 = vsel %vm581_vm4, %v14092_v37, %v14097_v45 }
 0xf89   : > { %5620 = vmatpush.bf16.msra.mxu3 %v5407_v6  ;;  %v5674_v56 = vsel %vm581_vm4, %v16375_v40, %v14096_v57  ;;  %v14137_v28 = vunpack.i.h.bf16 %v16424_v1  ;;  %v6697_v1 = vld [vmem:[%s19832_s2 + $0xe8] sm:$0xff] }
 0xf8a   : > { %v5669_v44 = vsel %vm581_vm4, %v14096_v57, %v14101_v7  ;;  %v5663_v55 = vsel %vm581_vm4, %v14097_v45, %v14102_v61  ;;  %v5664_v38 = vsel %vm581_vm4, %v14101_v7, %v16375_v40  ;;  %v5673_v58 = vsel %vm581_vm4, %v14102_v61, %v14092_v37 }
 0xf8b   : > { %14284 = vrot.lane.b32.xlu0 %v16247_v21, %s19913_s16  ;;  %v5682_v8 = vpack.c.bf16 %v5669_v44, %v5668_v11  ;;  %v5683_v27 = vpack.c.bf16 %v5664_v38, %v5663_v55  ;;  %v5684_v16 = vpack.c.bf16 %v5674_v56, %v5673_v58  ;;  %v5817_v57 = vsel %vm649_vm3, %v14116_v63, %v14137_v28 }
 0xf8c   : > { %5759 = vmatpush.bf16.msrb.mxu2 %v5714_v33  ;;  %v6698_v33 = vld [vmem:[%s19832_s2 + $0xf0] sm:$0xff] }
 0xf8d   : > { %5621 = vmatpush.bf16.msra.mxu3 %v5404_v20  ;;  %v14105_v34 = vpop.permute.xlu0 %14104  ;;  %14299 = vrot.lane.b32.xlu1 %v16227_v24, %s19914_s28 }
 0xf8e   : > { %6567 = vrot.lane.b32.xlu2 %v16221_v32, %s19914_s28  ;;  %v14107_v54 = vunpack.i.h.bf16 %v14105_v34  ;;  %v14106_v49 = vunpack.i.l.bf16 %v14105_v34 }
 0xf8f   : > { %11889 = vmatmul.msk.bf16.gmra.mxu2 %vm4632_vm13, %v13163_v36  ;;  %v16488_v0 = vpop.permute.xlu1 %14124 }
 0xf90   : > { %v5670_v62 = vsel %vm581_vm4, %v14082_v4, %v14107_v54  ;;  %v5671_v52 = vsel %vm581_vm4, %v14106_v49, %v14086_v42  ;;  %v5665_v46 = vsel %vm581_vm4, %v14107_v54, %v14087_v31  ;;  %v5676_v35 = vsel %vm581_vm4, %v14091_v48, %v14106_v49  ;;  %v16532_v19 = vpop.permute.xlu2 %14174 }
 0xf91   : > { %v5685_v24 = vpack.c.bf16 %v5671_v52, %v5670_v62  ;;  %v5686_v51 = vpack.c.bf16 %v5666_v53, %v5665_v46  ;;  %v5687_v29 = vpack.c.bf16 %v5676_v35, %v5675_v12  ;;  %v14127_v47 = vunpack.i.h.bf16 %v16488_v0 }
 0xf92   : > { %v14126_v5 = vunpack.i.l.bf16 %v16488_v0 }
 0xf93   : > { %6415 = vrot.lane.b32.xlu0 %v16221_v32, %s19913_s16  ;;  %5722 = vmatpush.bf16.msrb.mxu0 %v5685_v24  ;;  %v5823_v22 = vsel %vm649_vm3, %v14127_v47, %v14117_v25 }
 0xf94   : > { %5741 = vmatpush.bf16.msrb.mxu1 %v5686_v51  ;;  %11891 = vmatmul.msk.bf16.gmra.mxu3 %vm4632_vm13, %v13163_v36  ;;  %v5822_v15 = vsel %vm649_vm3, %v14126_v5, %v14116_v63  ;;  %v5827_v45 = vsel %vm649_vm3, %v14137_v28, %v14126_v5  ;;  %v14156_v5 = vunpack.i.l.bf16 %v16460_v39 }
 0xf95   : > { %5760 = vmatpush.bf16.msrb.mxu2 %v5687_v29  ;;  %v14110_v32 = vpop.permute.xlu0 %14109  ;;  %14314 = vrot.lane.b32.xlu1 %v16247_v21, %s19914_s28  ;;  %v6700_v29 = vld [vmem:[%s19832_s2 + $0x100] sm:$0xff] }
 0xf96   : > { %11893 = vmatmul.msk.bf16.gmra.mxu0 %vm4632_vm13, %v13163_v36  ;;  %6713 = vperm.xlu2 %13466, %v6699_v9   ;;  %v14112_v18 = vunpack.i.h.bf16 %v14110_v32  ;;  %v14111_v14 = vunpack.i.l.bf16 %v14110_v32 }
 0xf97   : > { %v16528_v13 = vpop.permute.xlu1 %14129  ;;  %5723 = vmatpush.bf16.msrb.mxu0 %v5682_v8  ;;  %v16602_v8 = vld [vmem:[%s19831_s1 + $0x43c] sm:$0xff] }
 0xf98   : > { %5742 = vmatpush.bf16.msrb.mxu1 %v5683_v27  ;;  %v5824_v40 = vsel %vm649_vm3, %v14111_v14, %v14112_v18  ;;  %v5819_v30 = vsel %vm649_vm3, %v14112_v18, %v14136_v59  ;;  %v5829_v17 = vsel %vm649_vm3, %v14136_v59, %v14111_v14  ;;  %v14132_v42 = vunpack.i.h.bf16 %v16528_v13  ;;  %v16571_v37 = vpop.permute.xlu2 %14184 }
 0xf99   : > { %5761 = vmatpush.bf16.msrb.mxu2 %v5684_v16  ;;  %v5840_v21 = vpack.c.bf16 %v5824_v40, %v5824_v40  ;;  %v5841_v43 = vpack.c.bf16 %v5819_v30, %v5819_v30  ;;  %v5842_v6 = vpack.c.bf16 %v5829_v17, %v5829_v17  ;;  %v14131_v4 = vunpack.i.l.bf16 %v16528_v13 }
 0xf9b   : > { %14309 = vrot.lane.b32.xlu0 %v16261_v3, %s19914_s28  ;;  %v5860_v23 = vsel %vm475_vm0, %v5840_v21, 0  ;;  %v5863_v26 = vsel %vm475_vm0, %v5841_v43, 0  ;;  %11918 = vmatmul.msk.bf16.vlgmr.msrb.gmra.mxu1 %vm4632_vm13, %v16541_v60  ;;  %v5866_v20 = vsel %vm475_vm0, %v5842_v6, 0  ;;  %v5837_v3 = vpack.c.bf16 %v5823_v22, %v5822_v15 }
 0xf9c   : > { %5873 = vmatpush.bf16.msrb.mxu3 %v5860_v23  ;;  %5892 = vmatpush.bf16.msra.mxu0 %v5863_v26  ;;  %v14176_v21 = vunpack.i.l.bf16 %v16532_v19  ;;  %v14162_v26 = vunpack.i.h.bf16 %v16480_v41  ;;  %v14161_v6 = vunpack.i.l.bf16 %v16480_v41 }
 0xf9d   : > { %v14120_v36 = vpop.permute.xlu0 %14119  ;;  %5911 = vmatpush.bf16.msra.mxu1 %v5866_v20  ;;  %6708 = vperm.xlu1 %13465, %v6698_v33  }
 0xf9e   : > { %v14122_v31 = vunpack.i.h.bf16 %v14120_v36  ;;  %v14121_v7 = vunpack.i.l.bf16 %v14120_v36 }
 0xf9f   : > { %11904 = vmatmul.msk.bf16.vlgmr.msra.gmra.mxu2 %vm4632_vm13, %v16369_v2  ;;  %v14145_v34 = vpop.permute.xlu1 %14144 }
 0xfa0   : > { %v14146_v48 = vunpack.i.l.bf16 %v14145_v34  ;;  %5874 = vmatpush.bf16.msrb.mxu3 %v5837_v3  ;;  %v5820_v61 = vsel %vm649_vm3, %v14121_v7, %v14131_v4  ;;  %v5821_v54 = vsel %vm649_vm3, %v14122_v31, %v14132_v42  ;;  %v14147_v52 = vunpack.i.h.bf16 %v14145_v34  ;;  %v16604_v27 = vpop.permute.xlu2 %14199 }
 0xfa1   : > { %v5834_v49 = vpack.c.bf16 %v5821_v54, %v5820_v61 }
 0xfa2   : > { %v5818_v0 = vsel %vm649_vm3, %v14117_v25, %v14146_v48  ;;  %v5828_v62 = vsel %vm649_vm3, %v14146_v48, %v14127_v47  ;;  %v5815_v35 = vsel %vm649_vm3, %v14131_v4, %v14147_v52  ;;  %v5825_v38 = vsel %vm649_vm3, %v14147_v52, %v14121_v7 }
 0xfa3   : > { %6703 = vperm.xlu0 %13467, %v6697_v1   ;;  %v5838_v53 = vpack.c.bf16 %v5818_v0, %v5817_v57  ;;  %v5839_v24 = vpack.c.bf16 %v5828_v62, %v5827_v45  ;;  %v14157_v47 = vunpack.i.h.bf16 %v16460_v39  ;;  %v13166_v0 = vld [vmem:[%s19831_s1 + $0x444] sm:$0xff] }
 0xfa4   : > { %11906 = vmatmul.msk.bf16.vlgmr.msra.gmra.mxu3 %vm4632_vm13, %v16369_v2 }
 0xfa5   : > { %5875 = vmatpush.bf16.msrb.mxu3 %v5834_v49  ;;  %v14140_v46 = vpop.permute.xlu0 %14139  ;;  %5893 = vmatpush.bf16.msra.mxu0 %v5838_v53  ;;  %v5980_v41 = vsel %vm717_vm6, %v14176_v21, %v14157_v47  ;;  %v14177_v49 = vunpack.i.h.bf16 %v16532_v19 }
 0xfa6   : > { %11916 = vmatmul.msk.bf16.vlgmr.msrb.gmra.mxu0 %vm4632_vm13, %v16541_v60  ;;  %v14142_v12 = vunpack.i.h.bf16 %v14140_v46  ;;  %v14141_v44 = vunpack.i.l.bf16 %v14140_v46  ;;  %5912 = vmatpush.bf16.msra.mxu1 %v5839_v24 }
 0xfa7   : > { %v5808_v51 = vpop.permute.xlu1 %5807  ;;  %v5977_v53 = vsel %vm717_vm6, %v14177_v49, %v14161_v6 }
 0xfa8   : > { %v5816_v55 = vsel %vm649_vm3, %v14132_v42, %v5808_v51  ;;  %v5826_v2 = vsel %vm649_vm3, %v5808_v51, %v14122_v31  ;;  %v5976_v9 = vsel %vm717_vm6, %v14141_v44, %v14142_v12  ;;  %v16633_v36 = vpop.permute.xlu2 %6091 }
 0xfa9   : > { %v5835_v11 = vpack.c.bf16 %v5816_v55, %v5815_v35  ;;  %v5836_v58 = vpack.c.bf16 %v5826_v2, %v5825_v38  ;;  %v5992_v59 = vpack.c.bf16 %v5976_v9, %v5976_v9  ;;  %v14187_v38 = vunpack.i.h.bf16 %v16571_v37 }
 0xfaa   : > { %v14186_v2 = vunpack.i.l.bf16 %v16571_v37 }
 0xfab   : > { %6718 = vperm.xlu0 %13467, %v6700_v29   ;;  %5894 = vmatpush.bf16.msra.mxu0 %v5835_v11  ;;  %v6012_v32 = vsel %vm475_vm0, %v5992_v59, 0 }
 0xfac   : > { %5913 = vmatpush.bf16.msra.mxu1 %v5836_v58  ;;  %6025 = vmatpush.bf16.msra.mxu2 %v6012_v32 }
 0xfad   : > { %v14150_v56 = vpop.permute.xlu0 %14149  ;;  %11919 = vmatmul.msk.bf16.gmra.mxu1 %vm4632_vm13, %v16602_v8 }
 0xfae   : > { %v14152_v18 = vunpack.i.h.bf16 %v14150_v56  ;;  %v14151_v14 = vunpack.i.l.bf16 %v14150_v56  ;;  %v14202_v56 = vunpack.i.h.bf16 %v16604_v27 }
 0xfaf   : > { %11905 = vmatmul.msk.bf16.gmra.mxu2 %vm4632_vm13, %v16406_v50  ;;  %v14170_v13 = vpop.permute.xlu1 %14169 }
 0xfb0   : > { %v14172_v16 = vunpack.i.h.bf16 %v14170_v13  ;;  %v14171_v25 = vunpack.i.l.bf16 %v14170_v13  ;;  %v5974_v63 = vsel %vm717_vm6, %v14156_v5, %v14151_v14  ;;  %v5975_v40 = vsel %vm717_vm6, %v14157_v47, %v14152_v18  ;;  %v16663_v35 = vpop.permute.xlu2 %14234  ;;  %v13167_v13 = vld [vmem:[%s19831_s1 + $0x44c] sm:$0xff] }
 0xfb1   : > { %v5989_v30 = vpack.c.bf16 %v5975_v40, %v5974_v63  ;;  %v5970_v42 = vsel %vm717_vm6, %v14152_v18, %v14176_v21  ;;  %v14201_v47 = vunpack.i.l.bf16 %v16604_v27 }
 0xfb2   : > { %v5971_v39 = vsel %vm717_vm6, %v14142_v12, %v14171_v25  ;;  %v5981_v43 = vsel %vm717_vm6, %v14171_v25, %v14141_v44  ;;  %v5969_v22 = vsel %vm717_vm6, %v14151_v14, %v14172_v16  ;;  %v5979_v23 = vsel %vm717_vm6, %v14172_v16, %v14156_v5 }
 0xfb3   : > { %6026 = vmatpush.bf16.msra.mxu2 %v5989_v30  ;;  %v5993_v17 = vpack.c.bf16 %v5971_v39, %v5971_v39  ;;  %v5994_v15 = vpack.c.bf16 %v5981_v43, %v5981_v43  ;;  %v5990_v31 = vpack.c.bf16 %v5970_v42, %v5969_v22  ;;  %v5991_v7 = vpack.c.bf16 %v5980_v41, %v5979_v23 }
 0xfb4   : > { %11907 = vmatmul.msk.bf16.gmra.mxu3 %vm4632_vm13, %v16406_v50 }
 0xfb5   : > { %v14165_v33 = vpop.permute.xlu0 %14164  ;;  %v6015_v28 = vsel %vm475_vm0, %v5993_v17, 0  ;;  %v6018_v20 = vsel %vm475_vm0, %v5994_v15, 0 }
 0xfb6   : > { %11917 = vmatmul.msk.bf16.gmra.mxu0 %vm4632_vm13, %v16602_v8  ;;  %v14167_v50 = vunpack.i.h.bf16 %v14165_v33  ;;  %v14166_v3 = vunpack.i.l.bf16 %v14165_v33  ;;  %6044 = vmatpush.bf16.msra.mxu3 %v6015_v28 }
 0xfb7   : > { %6063 = vmatpush.bf16.msrb.mxu0 %v6018_v20  ;;  %v14180_v4 = vpop.permute.xlu1 %14179 }
 0xfb8   : > { %v14182_v34 = vunpack.i.h.bf16 %v14180_v4  ;;  %v14181_v48 = vunpack.i.l.bf16 %v14180_v4  ;;  %v5972_v1 = vsel %vm717_vm6, %v14161_v6, %v14166_v3  ;;  %v5973_v61 = vsel %vm717_vm6, %v14162_v26, %v14167_v50  ;;  %v16677_v18 = vpop.permute.xlu2 %14244 }
 0xfb9   : > { %v5986_v54 = vpack.c.bf16 %v5973_v61, %v5972_v1  ;;  %v5967_v19 = vsel %vm717_vm6, %v14166_v3, %v14177_v49 }
 0xfba   : > { %6045 = vmatpush.bf16.msra.mxu3 %v5990_v31  ;;  %v6123_v57 = vsel %vm785_vm5, %v14181_v48, %v14182_v34 }
 0xfbb   : > { %6064 = vmatpush.bf16.msrb.mxu0 %v5991_v7  ;;  %6027 = vmatpush.bf16.msra.mxu2 %v5986_v54  ;;  %v6145_v45 = vpack.c.bf16 %v6123_v57, %v6123_v57 }
 0xfbd   : > { %v5960_v62 = vpop.permute.xlu0 %5959  ;;  %11934 = vmatmul.msk.bf16.vlgmr.msra.gmra.mxu1 %vm4632_vm13, %v13166_v0  ;;  %v6167_v52 = vsel %vm475_vm0, %v6145_v45, 0 }
 0xfbe   : > { %v5968_v24 = vsel %vm717_vm6, %v14167_v50, %v5960_v62  ;;  %v5978_v46 = vsel %vm717_vm6, %v5960_v62, %v14162_v26 }
 0xfbf   : > { %v5987_v12 = vpack.c.bf16 %v5968_v24, %v5967_v19  ;;  %v5988_v44 = vpack.c.bf16 %v5978_v46, %v5977_v53  ;;  %11920 = vmatmul.msk.bf16.vlgmr.msrb.gmra.mxu2 %vm4632_vm13, %v16541_v60  ;;  %v16661_v51 = vpop.permute.xlu1 %14194  ;;  %v13168_v19 = vld [vmem:[%s19831_s1 + $0x454] sm:$0xff] }
 0xfc0   : > { %6196 = vmatpush.bf16.msrb.mxu2 %v6167_v52  ;;  %v14197_v60 = vunpack.i.h.bf16 %v16661_v51  ;;  %v14196_v11 = vunpack.i.l.bf16 %v16661_v51  ;;  %v16699_v26 = vpop.permute.xlu2 %14249  ;;  %v14247_v51 = vunpack.i.h.bf16 %v16677_v18 }
 0xfc1   : > { %6046 = vmatpush.bf16.msra.mxu3 %v5987_v12  ;;  %6065 = vmatpush.bf16.msrb.mxu0 %v5988_v44  ;;  %v14252_v4 = vunpack.i.h.bf16 %v16699_v26  ;;  %v16737_v12 = vld [vmem:[%s19831_s1 + $0x464] sm:$0xff] }
 0xfc2   : > { %v6119_v37 = vsel %vm785_vm5, %v14196_v11, %v14201_v47  ;;  %v6120_v14 = vsel %vm785_vm5, %v14197_v60, %v14202_v56  ;;  %v6125_v49 = vsel %vm785_vm5, %v16633_v36, %v14197_v60 }
 0xfc3   : > { %v6139_v63 = vpack.c.bf16 %v6120_v14, %v6119_v37 }
 0xfc4   : > { %11930 = vmatmul.msk.bf16.vlgmr.msrb.gmra.mxu3 %vm4632_vm13, %v13166_v0 }
 0xfc5   : > { %v14190_v55 = vpop.permute.xlu0 %14189 }
 0xfc6   : > { %11932 = vmatmul.msk.bf16.vlgmr.msra.gmra.mxu0 %vm4632_vm13, %v13166_v0  ;;  %v14192_v29 = vunpack.i.h.bf16 %v14190_v55  ;;  %v14191_v9 = vunpack.i.l.bf16 %v14190_v55  ;;  %v6130_v0 = vsel %vm785_vm5, %v14202_v56, %v16633_v36 }
 0xfc7   : > { %v14215_v58 = vpop.permute.xlu1 %14214 }
 0xfc8   : > { %v6121_v59 = vsel %vm785_vm5, %v14186_v2, %v14191_v9  ;;  %v6122_v32 = vsel %vm785_vm5, %v14187_v38, %v14192_v29  ;;  %v14216_v39 = vunpack.i.l.bf16 %v14215_v58  ;;  %v14217_v15 = vunpack.i.h.bf16 %v14215_v58 }
 0xfc9   : > { %v6142_v5 = vpack.c.bf16 %v6122_v32, %v6121_v59 }
 0xfca   : > { %v6127_v28 = vsel %vm785_vm5, %v14216_v39, %v14187_v38  ;;  %v6132_v20 = vsel %vm785_vm5, %v14192_v29, %v14216_v39  ;;  %v6129_v1 = vsel %vm785_vm5, %v14201_v47, %v14217_v15  ;;  %v16749_v29 = vpop.permute.xlu2 %14259 }
 0xfcb   : > { %6197 = vmatpush.bf16.msrb.mxu2 %v6142_v5  ;;  %v6140_v52 = vpack.c.bf16 %v6130_v0, %v6129_v1 }
 0xfcd   : > { %v14205_v16 = vpop.permute.xlu0 %14204  ;;  %11935 = vmatmul.msk.bf16.gmra.mxu1 %vm4632_vm13, %v13167_v13 }
 0xfce   : > { %v14206_v25 = vunpack.i.l.bf16 %v14205_v16  ;;  %v14207_v27 = vunpack.i.h.bf16 %v14205_v16 }
 0xfcf   : > { %11921 = vmatmul.msk.bf16.gmra.mxu2 %vm4632_vm13, %v16602_v8  ;;  %v16689_v40 = vpop.permute.xlu1 %14219 }
 0xfd0   : > { %6198 = vmatpush.bf16.msrb.mxu2 %v6139_v63  ;;  %v6128_v30 = vsel %vm785_vm5, %v14206_v25, %v14181_v48  ;;  %v6133_v21 = vsel %vm785_vm5, %v14182_v34, %v14206_v25  ;;  %v6126_v8 = vsel %vm785_vm5, %v14207_v27, %v14186_v2  ;;  %v6131_v6 = vsel %vm785_vm5, %v14191_v9, %v14207_v27 }
 0xfd1   : > { %v6144_v43 = vpack.c.bf16 %v6128_v30, %v6128_v30  ;;  %v6146_v17 = vpack.c.bf16 %v6133_v21, %v6133_v21  ;;  %v14221_v50 = vunpack.i.l.bf16 %v16689_v40  ;;  %v6141_v41 = vpack.c.bf16 %v6127_v28, %v6126_v8 }
 0xfd2   : > { %v6143_v7 = vpack.c.bf16 %v6132_v20, %v6131_v6  ;;  %v6124_v34 = vsel %vm785_vm5, %v14217_v15, %v14196_v11  ;;  %v14251_v48 = vunpack.i.l.bf16 %v16699_v26  ;;  %v14222_v36 = vunpack.i.h.bf16 %v16689_v40  ;;  %v16776_v15 = vpop.permute.xlu2 %14279 }
 0xfd3   : > { %v6164_v22 = vsel %vm475_vm0, %v6144_v43, 0  ;;  %v6170_v23 = vsel %vm475_vm0, %v6146_v17, 0  ;;  %v6138_v45 = vpack.c.bf16 %v6125_v49, %v6124_v34  ;;  %v14246_v2 = vunpack.i.l.bf16 %v16677_v18 }
 0xfd4   : > { %11931 = vmatmul.msk.bf16.gmra.mxu3 %vm4632_vm13, %v13167_v13  ;;  %6177 = vmatpush.bf16.msrb.mxu1 %v6164_v22  ;;  %v6432_v44 = vsel %vm921_vm8, %v14251_v48, %v14252_v4  ;;  %v6278_v56 = vsel %vm853_vm7, %v14222_v36, %v14247_v51  ;;  %v14237_v30 = vunpack.i.h.bf16 %v16663_v35  ;;  %v14236_v21 = vunpack.i.l.bf16 %v16663_v35 }
 0xfd5   : > { %6215 = vmatpush.bf16.msrb.mxu3 %v6170_v23  ;;  %v14210_v33 = vpop.permute.xlu0 %14209  ;;  %v6448_v32 = vpack.c.bf16 %v6432_v44, %v6432_v44  ;;  %v14262_v44 = vunpack.i.h.bf16 %v16749_v29  ;;  %v14261_v26 = vunpack.i.l.bf16 %v16749_v29 }
 0xfd6   : > { %11933 = vmatmul.msk.bf16.gmra.mxu0 %vm4632_vm13, %v13167_v13  ;;  %v14212_v3 = vunpack.i.h.bf16 %v14210_v33  ;;  %v14211_v42 = vunpack.i.l.bf16 %v14210_v33 }
 0xfd7   : > { %v16711_v31 = vpop.permute.xlu1 %14229  ;;  %v6468_v63 = vsel %vm475_vm0, %v6448_v32, 0 }
 0xfd8   : > { %6178 = vmatpush.bf16.msrb.mxu1 %v6141_v41  ;;  %v6275_v61 = vsel %vm853_vm7, %v14212_v3, %v14221_v50  ;;  %v6285_v54 = vsel %vm853_vm7, %v14221_v50, %v14211_v42  ;;  %v6280_v62 = vsel %vm853_vm7, %v14211_v42, %v14212_v3  ;;  %v14231_v9 = vunpack.i.l.bf16 %v16711_v31  ;;  %v13169_v3 = vld [vmem:[%s19831_s1 + $0x45c] sm:$0xff]  ;;  %v16796_v42 = vld [vmem:[%s19831_s1 + $0x46c] sm:$0xff] }
 0xfd9   : > { %6216 = vmatpush.bf16.msrb.mxu3 %v6143_v7  ;;  %v6297_v57 = vpack.c.bf16 %v6275_v61, %v6275_v61  ;;  %v6298_v24 = vpack.c.bf16 %v6285_v54, %v6285_v54  ;;  %v6296_v46 = vpack.c.bf16 %v6280_v62, %v6280_v62  ;;  %v14232_v27 = vunpack.i.h.bf16 %v16711_v31 }
 0xfda   : > { %v6284_v16 = vsel %vm853_vm7, %v14231_v9, %v14246_v2  ;;  %v14281_v62 = vunpack.i.l.bf16 %v16776_v15 }
 0xfdb   : > { %v6319_v53 = vsel %vm475_vm0, %v6297_v57, 0  ;;  %v6316_v38 = vsel %vm475_vm0, %v6296_v46, 0  ;;  %v6322_v58 = vsel %vm475_vm0, %v6298_v24, 0  ;;  %v6276_v22 = vsel %vm853_vm7, %v14232_v27, %v14237_v30  ;;  %v5585_v24 = vpop.f32.mrf.mxu1 }
 0xfdc   : > { %6179 = vmatpush.bf16.msrb.mxu1 %v6138_v45  ;;  %6329 = vmatpush.bf16.msra.mxu0 %v6316_v38  ;;  %v14282_v45 = vunpack.i.h.bf16 %v16776_v15 }
 0xfdd   : > { %6217 = vmatpush.bf16.msrb.mxu3 %v6140_v52  ;;  %v14225_v55 = vpop.permute.xlu0 %14224  ;;  %v16813_v52 = vpop.permute.xlu2 %14289 }
 0xfde   : > { %v14227_v60 = vunpack.i.h.bf16 %v14225_v55  ;;  %v14226_v11 = vunpack.i.l.bf16 %v14225_v55 }
 0xfdf   : > { %11944 = vmatmul.msk.bf16.vlgmr.msra.gmra.mxu2 %vm4632_vm13, %v13168_v19  ;;  %v6264_v59 = vpop.permute.xlu1 %6263  ;;  %11958 = vmatmul.msk.bf16.vlgmr.msrb.gmra.mxu1 %vm4632_vm13, %v16737_v12 }
 0xfe0   : > { %6348 = vmatpush.bf16.msra.mxu1 %v6319_v53  ;;  %6367 = vmatpush.bf16.msra.mxu2 %v6322_v58  ;;  %v6279_v47 = vsel %vm853_vm7, %v14246_v2, %v14226_v11  ;;  %v6273_v5 = vsel %vm853_vm7, %v14247_v51, %v14227_v60  ;;  %v6274_v18 = vsel %vm853_vm7, %v14226_v11, %v14231_v9 }
 0xfe1   : > { %v6293_v37 = vpack.c.bf16 %v6279_v47, %v6278_v56  ;;  %v6294_v14 = vpack.c.bf16 %v6274_v18, %v6273_v5  ;;  %v6283_v13 = vsel %vm853_vm7, %v14227_v60, %v14222_v36  ;;  %v6282_v6 = vsel %vm853_vm7, %v6264_v59, %v14236_v21 }
 0xfe2   : > { %v6295_v25 = vpack.c.bf16 %v6284_v16, %v6283_v13  ;;  %v14292_v18 = vunpack.i.h.bf16 %v16813_v52  ;;  %v16853_v16 = vld [vmem:[%s19831_s1 + $0x474] sm:$0xff] }
 0xfe3   : > { %6330 = vmatpush.bf16.msra.mxu0 %v6293_v37  ;;  %v16845_v5 = vpop.f32.mrf.mxu1  ;;  %v14291_v37 = vunpack.i.l.bf16 %v16813_v52 }
 0xfe4   : > { %6349 = vmatpush.bf16.msra.mxu1 %v6294_v14  ;;  %11946 = vmatmul.msk.bf16.vlgmr.msra.gmra.mxu3 %vm4632_vm13, %v13168_v19 }
 0xfe5   : > { %6368 = vmatpush.bf16.msra.mxu2 %v6295_v25  ;;  %v14240_v40 = vpop.permute.xlu0 %14239  ;;  %6481 = vmatpush.bf16.msra.mxu3 %v6468_v63  ;;  %v16843_v56 = vpop.permute.xlu2 %14304 }
 0xfe6   : > { %11948 = vmatmul.msk.bf16.vlgmr.msrb.gmra.mxu0 %vm4632_vm13, %v13168_v19  ;;  %v14242_v39 = vunpack.i.h.bf16 %v14240_v40  ;;  %v14241_v43 = vunpack.i.l.bf16 %v14240_v40  ;;  %v14307_v63 = vunpack.i.h.bf16 %v16843_v56 }
 0xfe7   : > { %v16774_v17 = vpop.permute.xlu1 %14254 }
 0xfe8   : > { %v6277_v23 = vsel %vm853_vm7, %v14236_v21, %v14241_v43  ;;  %v6271_v8 = vsel %vm853_vm7, %v14237_v30, %v14242_v39  ;;  %v6272_v33 = vsel %vm853_vm7, %v14241_v43, %v6264_v59  ;;  %v6281_v28 = vsel %vm853_vm7, %v14242_v39, %v14232_v27 }
 0xfe9   : > { %v6290_v35 = vpack.c.bf16 %v6277_v23, %v6276_v22  ;;  %v6291_v20 = vpack.c.bf16 %v6272_v33, %v6271_v8  ;;  %v6292_v50 = vpack.c.bf16 %v6282_v6, %v6281_v28  ;;  %v14257_v31 = vunpack.i.h.bf16 %v16774_v17 }
 0xfea   : > { %v14256_v7 = vunpack.i.l.bf16 %v16774_v17  ;;  %v14306_v27 = vunpack.i.l.bf16 %v16843_v56 }
 0xfeb   : > { %6331 = vmatpush.bf16.msra.mxu0 %v6290_v35  ;;  %6350 = vmatpush.bf16.msra.mxu1 %v6291_v20 }
 0xfec   : > { %6369 = vmatpush.bf16.msra.mxu2 %v6292_v50 }
 0xfed   : > { %v16798_v41 = vpop.permute.xlu0 %14264 }
 0xfee   : > { %v14267_v34 = vunpack.i.h.bf16 %v16798_v41  ;;  %v14266_v1 = vunpack.i.l.bf16 %v16798_v41 }
 0xfef   : > { %11945 = vmatmul.msk.bf16.gmra.mxu2 %vm4632_vm13, %v13169_v3  ;;  %v14275_v61 = vpop.permute.xlu1 %14274  ;;  %11959 = vmatmul.msk.bf16.gmra.mxu1 %vm4632_vm13, %v16796_v42 }
 0xff0   : > { %v14276_v54 = vunpack.i.l.bf16 %v14275_v61  ;;  %v6430_v49 = vsel %vm921_vm8, %v14266_v1, %v14256_v7  ;;  %v6431_v57 = vsel %vm921_vm8, %v14267_v34, %v14257_v31  ;;  %v14277_v47 = vunpack.i.h.bf16 %v14275_v61 }
 0xff1   : > { %v6445_v0 = vpack.c.bf16 %v6431_v57, %v6430_v49  ;;  %v5590_v57 = vpop.f32.mrf.mxu1 }
 0xff2   : > { %v6427_v53 = vsel %vm921_vm8, %v14252_v4, %v14276_v54  ;;  %v6437_v19 = vsel %vm921_vm8, %v14276_v54, %v14251_v48  ;;  %v6584_v48 = vsel %vm19885_vm9, %v14281_v62, %v14282_v45  ;;  %v6425_v39 = vsel %vm921_vm8, %v14256_v7, %v14277_v47 }
 0xff3   : > { %6482 = vmatpush.bf16.msra.mxu3 %v6445_v0  ;;  %v6449_v46 = vpack.c.bf16 %v6427_v53, %v6427_v53  ;;  %v6450_v36 = vpack.c.bf16 %v6437_v19, %v6437_v19  ;;  %v6600_v58 = vpack.c.bf16 %v6584_v48, %v6584_v48  ;;  %v6435_v17 = vsel %vm921_vm8, %v14277_v47, %v14266_v1 }
 0xff4   : > { %11947 = vmatmul.msk.bf16.gmra.mxu3 %vm4632_vm13, %v13169_v3 }
 0xff5   : > { %v14270_v51 = vpop.permute.xlu0 %14269  ;;  %v6471_v55 = vsel %vm475_vm0, %v6449_v46, 0  ;;  %v6474_v4 = vsel %vm475_vm0, %v6450_v36, 0  ;;  %v6620_v13 = vsel %vm475_vm0, %v6600_v58, 0  ;;  %v13173_v36 = vld [vmem:[%s19831_s1 + $0x47c] sm:$0xff] }
 0xff6   : > { %11949 = vmatmul.msk.bf16.gmra.mxu0 %vm4632_vm13, %v13169_v3  ;;  %v14272_v38 = vunpack.i.h.bf16 %v14270_v51  ;;  %v14271_v2 = vunpack.i.l.bf16 %v14270_v51  ;;  %6519 = vmatpush.bf16.msrb.mxu1 %v6474_v4 }
 0xff7   : > { %6500 = vmatpush.bf16.msrb.mxu0 %v6471_v55  ;;  %v16835_v9 = vpop.permute.xlu1 %14294 }
 0xff8   : > { %v6428_v60 = vsel %vm921_vm8, %v14261_v26, %v14271_v2  ;;  %v6429_v11 = vsel %vm921_vm8, %v14262_v44, %v14272_v38  ;;  %v14297_v59 = vunpack.i.h.bf16 %v16835_v9  ;;  %v14296_v32 = vunpack.i.l.bf16 %v16835_v9 }
 0xff9   : > { %v6442_v29 = vpack.c.bf16 %v6429_v11, %v6428_v60 }
 0xffa   : > { %v6582_v40 = vsel %vm19885_vm9, %v14296_v32, %v14291_v37  ;;  %v6583_v30 = vsel %vm19885_vm9, %v14297_v59, %v14292_v18 }
 0xffb   : > { %6483 = vmatpush.bf16.msra.mxu3 %v6442_v29  ;;  %v6597_v50 = vpack.c.bf16 %v6583_v30, %v6582_v40  ;;  %v6568_v40 = vpop.permute.xlu2 %6567 }
 0xffd   : > { %v14285_v14 = vpop.permute.xlu0 %14284 }
 0xffe   : > { %v14286_v25 = vunpack.i.l.bf16 %v14285_v14  ;;  %v14287_v33 = vunpack.i.h.bf16 %v14285_v14 }
 0xfff   : > { %11960 = vmatmul.msk.bf16.vlgmr.msrb.gmra.mxu2 %vm4632_vm13, %v16737_v12  ;;  %11974 = vmatmul.msk.bf16.vlgmr.msra.gmra.mxu1 %vm4632_vm13, %v16853_v16  ;;  %v16873_v21 = vpop.permute.xlu1 %14299 }
0x1000   : > { %6633 = vmatpush.bf16.msrb.mxu2 %v6620_v13  ;;  %v6426_v43 = vsel %vm921_vm8, %v14257_v31, %v14286_v25  ;;  %v6436_v22 = vsel %vm921_vm8, %v14286_v25, %v14267_v34  ;;  %v14302_v23 = vunpack.i.h.bf16 %v16873_v21  ;;  %v14301_v8 = vunpack.i.l.bf16 %v16873_v21 }
0x1001   : > { %v6446_v6 = vpack.c.bf16 %v6426_v43, %v6425_v39  ;;  %v6447_v35 = vpack.c.bf16 %v6436_v22, %v6435_v17  ;;  %v6423_v1 = vsel %vm921_vm8, %v14271_v2, %v14287_v33  ;;  %v6433_v54 = vsel %vm921_vm8, %v14287_v33, %v14261_v26  ;;  %v16933_v2 = vpop.f32.mrf.mxu1 }
0x1002   : > { %v5503_v28 = vpop.f32.mrf.mxu2  ;;  %v6580_v41 = vsel %vm19885_vm9, %v14301_v8, %v14306_v27  ;;  %v6581_v31 = vsel %vm19885_vm9, %v14302_v23, %v14307_v63  ;;  %v6586_v52 = vsel %vm19885_vm9, %v6568_v40, %v14302_v23 }
0x1003   : > { %v16885_v20 = vpop.f32.mrf.mxu0  ;;  %v16887_v3 = vadd.f32 %v5585_v24, %v5503_v28  ;;  %6501 = vmatpush.bf16.msrb.mxu0 %v6446_v6  ;;  %6520 = vmatpush.bf16.msrb.mxu1 %v6447_v35  ;;  %v6594_v7 = vpack.c.bf16 %v6581_v31, %v6580_v41 }
0x1004   : > { %6634 = vmatpush.bf16.msrb.mxu2 %v6597_v50  ;;  %11962 = vmatmul.msk.bf16.vlgmr.msrb.gmra.mxu3 %vm4632_vm13, %v16737_v12 }
0x1005   : > { %v6416_v34 = vpop.permute.xlu0 %6415 }
0x1006   : > { %11972 = vmatmul.msk.bf16.vlgmr.msra.gmra.mxu0 %vm4632_vm13, %v16853_v16  ;;  %v6424_v61 = vsel %vm921_vm8, %v14272_v38, %v6416_v34  ;;  %v6434_v49 = vsel %vm921_vm8, %v6416_v34, %v14262_v44 }
0x1007   : > { %v6443_v0 = vpack.c.bf16 %v6424_v61, %v6423_v1  ;;  %v6444_v12 = vpack.c.bf16 %v6434_v49, %v6433_v54  ;;  %v5522_v53 = vpop.f32.mrf.mxu3  ;;  %v14315_v51 = vpop.permute.xlu1 %14314 }
0x1008   : > { %6635 = vmatpush.bf16.msrb.mxu2 %v6594_v7  ;;  %v14316_v48 = vunpack.i.l.bf16 %v14315_v51  ;;  %v14317_v29 = vunpack.i.h.bf16 %v14315_v51  ;;  %v13175_v7 = vld [vmem:[%s19831_s1 + $0x48c] sm:$0xff] }
0x1009   : > { %6502 = vmatpush.bf16.msrb.mxu0 %v6443_v0  ;;  %6521 = vmatpush.bf16.msrb.mxu1 %v6444_v12 }
0x100a   : > { %v16913_v19 = vpop.f32.mrf.mxu2  ;;  %v6575_v9 = vsel %vm19885_vm9, %v14306_v27, %v14317_v29  ;;  %v13174_v27 = vld [vmem:[%s19831_s1 + $0x484] sm:$0xff] }
0x100b   : > { %v16915_v24 = vpop.f32.mrf.mxu0 }
0x100d   : > { %v14310_v46 = vpop.permute.xlu0 %14309 }
0x100e   : > { %v14311_v55 = vunpack.i.l.bf16 %v14310_v46  ;;  %v14312_v4 = vunpack.i.h.bf16 %v14310_v46  ;;  %v13176_v46 = vld [vmem:[%s19831_s1 + $0x494] sm:$0xff] }
0x100f   : > { %11961 = vmatmul.msk.bf16.gmra.mxu2 %vm4632_vm13, %v16796_v42  ;;  %v16922_v44 = vpop.f32.mrf.mxu3  ;;  %11975 = vmatmul.msk.bf16.gmra.mxu1 %vm4632_vm13, %v13173_v36 }
0x1010   : > { %v6579_v26 = vsel %vm19885_vm9, %v14282_v45, %v14311_v55  ;;  %v6589_v38 = vsel %vm19885_vm9, %v14311_v55, %v14281_v62  ;;  %v6587_v15 = vsel %vm19885_vm9, %v14312_v4, %v14296_v32  ;;  %v6577_v45 = vsel %vm19885_vm9, %v14291_v37, %v14312_v4 }
0x1011   : > { %v6601_v60 = vpack.c.bf16 %v6579_v26, %v6579_v26  ;;  %v6602_v11 = vpack.c.bf16 %v6589_v38, %v6589_v38  ;;  %v6588_v62 = vsel %vm19885_vm9, %v14316_v48, %v14297_v59  ;;  %v6578_v32 = vsel %vm19885_vm9, %v14292_v18, %v14316_v48 }
0x1012   : > { %v5508_v58 = vpop.f32.mrf.mxu2  ;;  %v6598_v39 = vpack.c.bf16 %v6578_v32, %v6577_v45  ;;  %v6585_v37 = vsel %vm19885_vm9, %v14317_v29, %v14301_v8  ;;  %v6576_v18 = vsel %vm19885_vm9, %v14307_v63, %v6568_v40 }
0x1013   : > { %v5546_v47 = vpop.f32.mrf.mxu0  ;;  %v5591_v14 = vadd.f32 %v5590_v57, %v5508_v58  ;;  %v6623_v13 = vsel %vm475_vm0, %v6601_v60, 0  ;;  %v6626_v25 = vsel %vm475_vm0, %v6602_v11, 0  ;;  %v6596_v22 = vpack.c.bf16 %v6586_v52, %v6585_v37 }
0x1014   : > { %11963 = vmatmul.msk.bf16.gmra.mxu3 %vm4632_vm13, %v16796_v42  ;;  %6671 = vmatpush.bf16.msra.mxu0 %v6626_v25  ;;  %v6599_v42 = vpack.c.bf16 %v6588_v62, %v6587_v15  ;;  %v6595_v8 = vpack.c.bf16 %v6576_v18, %v6575_v9 }
0x1015   : > { %6652 = vmatpush.bf16.msrb.mxu3 %v6623_v13 }
0x1016   : > { %11973 = vmatmul.msk.bf16.gmra.mxu0 %vm4632_vm13, %v13173_v36 }
0x1017   : > { %v5527_v30 = vpop.f32.mrf.mxu3 }
0x1018   : > { %6672 = vmatpush.bf16.msra.mxu0 %v6599_v42  ;;  %v5744_v59 = vpop.f32.mrf.mxu1 }
0x1019   : > { %6653 = vmatpush.bf16.msrb.mxu3 %v6598_v39 }
0x101a   : > { %v16972_v43 = vpop.f32.mrf.mxu2 }
0x101b   : > { %v16974_v17 = vpop.f32.mrf.mxu0 }
0x101c   : > { %6673 = vmatpush.bf16.msra.mxu0 %v6596_v22 }
0x101d   : > { %6654 = vmatpush.bf16.msrb.mxu3 %v6595_v8 }
0x101f   : > { %11976 = vmatmul.msk.bf16.vlgmr.msra.gmra.mxu2 %vm4632_vm13, %v16853_v16  ;;  %v16981_v21 = vpop.f32.mrf.mxu3  ;;  %11990 = vmatmul.msk.bf16.vlgmr.msrb.gmra.mxu1 %vm4632_vm13, %v13174_v27 }
0x1020   : > { %v16984_v56 = vpop.f32.mrf.mxu1 }
0x1022   : > { %v5604_v63 = vpop.f32.mrf.mxu2 }
0x1023   : > { %v5725_v23 = vpop.f32.mrf.mxu0  ;;  %v5605_v6 = vadd.f32 %v5604_v63, %v5522_v53 }
0x1024   : > { %v5773_v35 = vadd.f32 %v5725_v23, %v16887_v3  ;;  %11986 = vmatmul.msk.bf16.vlgmr.msra.gmra.mxu3 %vm4632_vm13, %v13174_v27 }
0x1025   : > { %v5774_v33 = vadd.f32 %v5744_v59, %v5605_v6 }
0x1026   : > { %11988 = vmatmul.msk.bf16.vlgmr.msrb.gmra.mxu0 %vm4632_vm13, %v13174_v27 }
0x1027   : > { %v5623_v28 = vpop.f32.mrf.mxu3 }
0x1028   : > { %v5624_v50 = vadd.f32 %v5623_v28, %v16885_v20 }
0x102a   : > { %v16990_v16 = vpop.f32.mrf.mxu2  ;;  %v5749_v31 = vpop.f32.mrf.mxu1 }
0x102b   : > { %v16992_v41 = vpop.f32.mrf.mxu0 }
0x102f   : > { %11977 = vmatmul.msk.bf16.gmra.mxu2 %vm4632_vm13, %v13173_v36  ;;  %v16998_v3 = vpop.f32.mrf.mxu3  ;;  %11991 = vmatmul.msk.bf16.gmra.mxu1 %vm4632_vm13, %v13175_v7 }
0x1032   : > { %v5609_v34 = vpop.f32.mrf.mxu2  ;;  %v17001_v20 = vpop.f32.mrf.mxu1 }
0x1033   : > { %v5730_v1 = vpop.f32.mrf.mxu0  ;;  %v5610_v61 = vadd.f32 %v5609_v34, %v5527_v30 }
0x1034   : > { %v5779_v54 = vadd.f32 %v5730_v1, %v5591_v14  ;;  %11987 = vmatmul.msk.bf16.gmra.mxu3 %vm4632_vm13, %v13175_v7  ;;  %v13177_v14 = vld [vmem:[%s19831_s1 + $0x49c] sm:$0xff] }
0x1035   : > { %v5780_v49 = vadd.f32 %v5749_v31, %v5610_v61 }
0x1036   : > { %11989 = vmatmul.msk.bf16.gmra.mxu0 %vm4632_vm13, %v13175_v7 }
0x1037   : > { %v5628_v57 = vpop.f32.mrf.mxu3 }
0x1038   : > { %v5629_v0 = vadd.f32 %v5628_v57, %v5546_v47 }
0x103a   : > { %v17005_v12 = vpop.f32.mrf.mxu2  ;;  %v5915_v36 = vpop.f32.mrf.mxu1 }
0x103b   : > { %v17007_v53 = vpop.f32.mrf.mxu0 }
0x103f   : > { %12000 = vmatmul.msk.bf16.vlgmr.msrb.gmra.mxu2 %vm4632_vm13, %v13176_v46  ;;  %v17013_v51 = vpop.f32.mrf.mxu3 }
0x1042   : > { %v5763_v55 = vpop.f32.mrf.mxu2  ;;  %v17015_v48 = vpop.f32.mrf.mxu1 }
0x1043   : > { %v5896_v4 = vpop.f32.mrf.mxu0  ;;  %v5775_v26 = vadd.f32 %v5763_v55, %v5624_v50 }
0x1044   : > { %v5926_v38 = vadd.f32 %v5896_v4, %v5774_v33  ;;  %12002 = vmatmul.msk.bf16.vlgmr.msrb.gmra.mxu3 %vm4632_vm13, %v13176_v46 }
0x1045   : > { %v5927_v60 = vadd.f32 %v5915_v36, %v5775_v26 }
0x1046   : > { %12004 = vmatmul.msk.bf16.vlgmr.msra.gmra.mxu0 %vm4632_vm13, %v13176_v46 }
0x1047   : > { %v5877_v11 = vpop.f32.mrf.mxu3 }
0x1048   : > { %v5925_v29 = vadd.f32 %v5877_v11, %v5773_v35 }
0x104a   : > { %v17019_v58 = vpop.f32.mrf.mxu2  ;;  %v5920_v13 = vpop.f32.mrf.mxu1 }
0x104b   : > { %v17021_v47 = vpop.f32.mrf.mxu0 }
0x104f   : > { %12001 = vmatmul.msk.bf16.gmra.mxu2 %vm4632_vm13, %v13177_v14  ;;  %v17027_v25 = vpop.f32.mrf.mxu3 }
0x1052   : > { %v5768_v15 = vpop.f32.mrf.mxu2  ;;  %v17029_v42 = vpop.f32.mrf.mxu1 }
0x1053   : > { %v5901_v45 = vpop.f32.mrf.mxu0  ;;  %v5781_v62 = vadd.f32 %v5768_v15, %v5629_v0 }
0x1054   : > { %v5932_v32 = vadd.f32 %v5901_v45, %v5780_v49  ;;  %12003 = vmatmul.msk.bf16.gmra.mxu3 %vm4632_vm13, %v13177_v14 }
0x1055   : > { %v5933_v40 = vadd.f32 %v5920_v13, %v5781_v62 }
0x1056   : > { %12005 = vmatmul.msk.bf16.gmra.mxu0 %vm4632_vm13, %v13177_v14 }
0x1057   : > { %v5882_v30 = vpop.f32.mrf.mxu3 }
0x1058   : > { %v5931_v39 = vadd.f32 %v5882_v30, %v5779_v54  ;;  %v12092_v30 = vld [vmem:[%s19841_s11 + $0xa8] sm:$0xf] }
0x105a   : > { %v17033_v37 = vpop.f32.mrf.mxu2 }
0x105b   : > { %v17035_v9 = vpop.f32.mrf.mxu0 }
0x105c   : > { %v6181_v59 = vpop.f32.mrf.mxu1 }
0x105f   : > { %v17037_v52 = vpop.f32.mrf.mxu3 }
0x1062   : > { %v6029_v18 = vpop.f32.mrf.mxu2 }
0x1063   : > { %v6067_v22 = vpop.f32.mrf.mxu0  ;;  %v6077_v8 = vadd.f32 %v6029_v18, %v5925_v29 }
0x1064   : > { %v17039_v27 = vadd.f32 %v6067_v22, %v5927_v60  ;;  %v17041_v6 = vpop.f32.mrf.mxu1  ;;  %v13248_v22 = vld [vmem:[%s19841_s11 + $0x230] sm:$0xf0] }
0x1065   : > { %v6229_v63 = vadd.f32 %v6181_v59, %v6077_v8  ;;  %v12284_v59 = vld [vmem:[%s19841_s11 + $0x228] sm:$0xf]  ;;  %v13199_v8 = vld [vmem:[%s19841_s11 + $0xac] sm:$0xf] }
0x1067   : > { %v6048_v23 = vpop.f32.mrf.mxu3 }
0x1068   : > { %v6078_v35 = vadd.f32 %v6048_v23, %v5926_v38 }
0x106a   : > { %v17043_v33 = vpop.f32.mrf.mxu2 }
0x106b   : > { %v17045_v28 = vpop.f32.mrf.mxu0 }
0x106c   : > { %v6186_v31 = vpop.f32.mrf.mxu1 }
0x106f   : > { %v17047_v50 = vpop.f32.mrf.mxu3 }
0x1072   : > { %v6034_v7 = vpop.f32.mrf.mxu2 }
0x1073   : > { %v6072_v34 = vpop.f32.mrf.mxu0  ;;  %v6083_v1 = vadd.f32 %v6034_v7, %v5931_v39  ;;  %v13200_v39 = vld [vmem:[%s19841_s11 + $0xb0] sm:$0xf0]  ;;  %v12080_v7 = vld [vmem:[%s19841_s11 + $0x90] sm:$0xf] }
0x1074   : > { %v17049_v61 = vadd.f32 %v6072_v34, %v5933_v40  ;;  %v17061_v60 = vpop.f32.mrf.mxu1  ;;  %v12093_v18 = vor.u32 %v13200_v39, %v12092_v30  ;;  %v13197_v34 = vld [vmem:[%s19841_s11 + $0x98] sm:$0xf0] }
0x1075   : > { %v6235_v54 = vadd.f32 %v6186_v31, %v6083_v1  ;;  %v12272_v1 = vld [vmem:[%s19841_s11 + $0x210] sm:$0xf] }
0x1076   : > { %7255 = vmatpush.bf16.msra.mxu1 %v12093_v18  ;;  %v13224_v18 = vld [vmem:[%s19841_s11 + $0x170] sm:$0xf0] }
0x1077   : > { %v6053_v49 = vpop.f32.mrf.mxu3 }
0x1078   : > { %v6084_v57 = vadd.f32 %v6053_v49, %v5932_v32  ;;  %v12081_v49 = vor.u32 %v13197_v34, %v12080_v7  ;;  %v13242_v7 = vld [vmem:[%s19841_s11 + $0x200] sm:$0xf0]  ;;  %v13193_v34 = vld [vmem:[%s19841_s11 + $0x7c] sm:$0xf] }
0x107a   : > { %v17051_v0 = vpop.f32.mrf.mxu2  ;;  %7256 = vmatpush.bf16.msra.mxu1 %v12081_v49 }
0x107b   : > { %v17053_v46 = vpop.f32.mrf.mxu0 }
0x107c   : > { %v17069_v13 = vpop.f32.mrf.mxu1 }
0x107f   : > { %v17055_v36 = vpop.f32.mrf.mxu3 }
0x1080   : > { %19915 = vst [vmem:[#allocation11_spill] sm:$0xff] %v17055_v36 }
0x1082   : > { %v6200_v55 = vpop.f32.mrf.mxu2 }
0x1083   : > { %v6333_v4 = vpop.f32.mrf.mxu0  ;;  %v17057_v26 = vadd.f32 %v6200_v55, %v6078_v35  ;;  %v12285_v35 = vor.u32 %v13248_v22, %v12284_v59  ;;  %v13196_v55 = vld [vmem:[%s19841_s11 + $0x94] sm:$0xf]  ;;  %v12188_v59 = vld [vmem:[%s19841_s11 + $0x168] sm:$0xf] }
0x1084   : > { %v17059_v38 = vadd.f32 %v6333_v4, %v6229_v63  ;;  %v12094_v63 = vld [vmem:[%s19841_s11 + $0xb4] sm:$0xf0]  ;;  %v12082_v4 = vld [vmem:[%s19841_s11 + $0x9c] sm:$0xf0]  ;;  %v12189_v22 = vor.u32 %v13224_v18, %v12188_v59  ;;  %v13191_v18 = vld [vmem:[%s19841_s11 + $0x68] sm:$0xf0] }
0x1085   : > { %v12097_v31 = vor.u32 %v13199_v8, %v12094_v63  ;;  %7293 = vmatpush.bf16.msra.mxu3 %v12285_v35  ;;  %v12085_v39 = vor.u32 %v13196_v55, %v12082_v4  ;;  %v12068_v8 = vld [vmem:[%s19841_s11 + $0x78] sm:$0xf]  ;;  %v13194_v63 = vld [vmem:[%s19841_s11 + $0x80] sm:$0xf0]  ;;  %v12176_v4 = vld [vmem:[%s19841_s11 + $0x150] sm:$0xf] }
0x1086   : > { %v12260_v35 = vld [vmem:[%s19841_s11 + $0x1f8] sm:$0xf]  ;;  %7274 = vmatpush.bf16.msra.mxu2 %v12189_v22  ;;  %v12056_v59 = vld [vmem:[%s19841_s11 + $0x60] sm:$0xf] }
0x1087   : > { %v17063_v11 = vpop.f32.mrf.mxu3  ;;  %7312 = vmatpush.bf16.msrb.mxu0 %v12097_v31  ;;  %v12069_v31 = vor.u32 %v13194_v63, %v12068_v8  ;;  %v12248_v22 = vld [vmem:[%s19841_s11 + $0x1e0] sm:$0xf]  ;;  %v12057_v8 = vor.u32 %v13191_v18, %v12056_v59  ;;  %v13239_v63 = vld [vmem:[%s19841_s11 + $0x1e8] sm:$0xf0]  ;;  %v13188_v18 = vld [vmem:[%s19841_s11 + $0x50] sm:$0xf0] }
0x1089   : > { %7257 = vmatpush.bf16.msra.mxu1 %v12069_v31  ;;  %v12058_v31 = vld [vmem:[%s19841_s11 + $0x6c] sm:$0xf0] }
0x108a   : > { %v17065_v29 = vpop.f32.mrf.mxu2 }
0x108b   : > { %v17067_v14 = vpop.f32.mrf.mxu0  ;;  %7313 = vmatpush.bf16.msrb.mxu0 %v12085_v39 }
0x108d   : > { %7258 = vmatpush.bf16.msra.mxu1 %v12057_v8  ;;  %v13236_v8 = vld [vmem:[%s19841_s11 + $0x1d0] sm:$0xf0] }
0x108f   : > { %v17071_v15 = vpop.f32.mrf.mxu3 }
0x1092   : > { %v6205_v45 = vpop.f32.mrf.mxu2 }
0x1093   : > { %v6338_v62 = vpop.f32.mrf.mxu0  ;;  %v17073_v32 = vadd.f32 %v6205_v45, %v6084_v57  ;;  %v13245_v57 = vld [vmem:[%s19841_s11 + $0x218] sm:$0xf0] }
0x1094   : > { %v17075_v40 = vadd.f32 %v6338_v62, %v6235_v54  ;;  %v17106_v54 = vpop.f32.mrf.mxu1  ;;  %v12273_v30 = vor.u32 %v13245_v57, %v12272_v1  ;;  %v12070_v1 = vld [vmem:[%s19841_s11 + $0x84] sm:$0xf0]  ;;  %v12261_v57 = vor.u32 %v13242_v7, %v12260_v35  ;;  %v13190_v35 = vld [vmem:[%s19841_s11 + $0x64] sm:$0xf] }
0x1095   : > { %19916 = vst [vmem:[#allocation12_spill] sm:$0xff] %v17073_v32  ;;  %v12073_v55 = vor.u32 %v13193_v34, %v12070_v1  ;;  %v12249_v1 = vor.u32 %v13239_v63, %v12248_v22  ;;  %v12236_v22 = vld [vmem:[%s19841_s11 + $0x1c8] sm:$0xf] }
0x1096   : > { %19917 = vst [vmem:[#allocation13_spill] sm:$0xff] %v17075_v40  ;;  %7294 = vmatpush.bf16.msra.mxu3 %v12273_v30  ;;  %v13221_v30 = vld [vmem:[%s19841_s11 + $0x158] sm:$0xf0]  ;;  %v5626_v40 = vadd.f32 %v16998_v3, %v16915_v24  ;;  %v5593_v24 = vadd.f32 %v16933_v2, %v16972_v43  ;;  %v5631_v2 = vadd.f32 %v17013_v51, %v16974_v17 }
0x1097   : > { %v17095_v23 = vpop.f32.mrf.mxu3  ;;  %v12177_v39 = vor.u32 %v13221_v30, %v12176_v4  ;;  %7314 = vmatpush.bf16.msrb.mxu0 %v12073_v55  ;;  %v12164_v4 = vld [vmem:[%s19841_s11 + $0x138] sm:$0xf]  ;;  %v13218_v30 = vld [vmem:[%s19841_s11 + $0x140] sm:$0xf0] }
0x1098   : > { %v12165_v59 = vor.u32 %v13218_v30, %v12164_v4  ;;  %v12152_v30 = vld [vmem:[%s19841_s11 + $0x120] sm:$0xf]  ;;  %v5778_v43 = vadd.f32 %v17019_v58, %v5626_v40  ;;  %v5782_v51 = vadd.f32 %v17007_v53, %v5593_v24  ;;  %v5784_v58 = vadd.f32 %v17033_v37, %v5631_v2  ;;  %v13217_v40 = vld [vmem:[%s19841_s11 + $0x13c] sm:$0xf] }
0x1099   : > { %7275 = vmatpush.bf16.msra.mxu2 %v12177_v39  ;;  %v12044_v39 = vld [vmem:[%s19841_s11 + $0x48] sm:$0xf] }
0x109a   : > { %v17117_v45 = vpop.f32.mrf.mxu2  ;;  %7295 = vmatpush.bf16.msra.mxu3 %v12261_v57  ;;  %v12061_v57 = vor.u32 %v13190_v35, %v12058_v31  ;;  %v12045_v63 = vor.u32 %v13188_v18, %v12044_v39  ;;  %v13187_v35 = vld [vmem:[%s19841_s11 + $0x4c] sm:$0xf]  ;;  %v12046_v31 = vld [vmem:[%s19841_s11 + $0x54] sm:$0xf0]  ;;  %v12032_v18 = vld [vmem:[%s19841_s11 + $0x30] sm:$0xf] }
0x109b   : > { %19918 = vst [vmem:[#allocation14_spill] sm:$0xff] %v17117_v45  ;;  %v17119_v62 = vpop.f32.mrf.mxu0  ;;  %v12049_v4 = vor.u32 %v13187_v35, %v12046_v31  ;;  %v12020_v45 = vld [vmem:[%s19841_s11 + $0x18] sm:$0xf] }
0x109c   : > { %19919 = vst [vmem:[#allocation15_spill] sm:$0xff] %v17119_v62  ;;  %v17175_v55 = vpop.f32.mrf.mxu1  ;;  %7315 = vmatpush.bf16.msrb.mxu0 %v12061_v57  ;;  %v12237_v57 = vor.u32 %v13236_v8, %v12236_v22  ;;  %7259 = vmatpush.bf16.msra.mxu1 %v12045_v63  ;;  %v13185_v22 = vld [vmem:[%s19841_s11 + $0x38] sm:$0xf0]  ;;  %v12224_v8 = vld [vmem:[%s19841_s11 + $0x1b0] sm:$0xf] }
0x109d   : > { %19920 = vst [vmem:[#allocation16_spill] sm:$0xff] %v17175_v55  ;;  %7276 = vmatpush.bf16.msra.mxu2 %v12165_v59  ;;  %v13215_v59 = vld [vmem:[%s19841_s11 + $0x128] sm:$0xf0]  ;;  %v12033_v63 = vor.u32 %v13185_v22, %v12032_v18  ;;  %v12140_v62 = vld [vmem:[%s19841_s11 + $0x108] sm:$0xf] }
0x109e   : > { %7296 = vmatpush.bf16.msra.mxu3 %v12249_v1  ;;  %v12153_v39 = vor.u32 %v13215_v59, %v12152_v30  ;;  %v12034_v30 = vld [vmem:[%s19841_s11 + $0x3c] sm:$0xf0] }
0x109f   : > { %v17145_v49 = vpop.f32.mrf.mxu3 }
0x10a0   : > { %7316 = vmatpush.bf16.msrb.mxu0 %v12049_v4  ;;  %v13184_v4 = vld [vmem:[%s19841_s11 + $0x34] sm:$0xf]  ;;  %7260 = vmatpush.bf16.msra.mxu1 %v12033_v63  ;;  %v12022_v63 = vld [vmem:[%s19841_s11 + $0x24] sm:$0xf0] }
0x10a1   : > { %7277 = vmatpush.bf16.msra.mxu2 %v12153_v39  ;;  %v12037_v10 = vor.u32 %v13184_v4, %v12034_v30  ;;  %v13212_v39 = vld [vmem:[%s19841_s11 + $0x110] sm:$0xf0] }
0x10a2   : > { %v17171_v7 = vpop.f32.mrf.mxu2  ;;  %7297 = vmatpush.bf16.msra.mxu3 %v12237_v57  ;;  %v13233_v57 = vld [vmem:[%s19841_s11 + $0x1b8] sm:$0xf0]  ;;  %v12141_v18 = vor.u32 %v13212_v39, %v12140_v62  ;;  %v13230_v62 = vld [vmem:[%s19841_s11 + $0x1a0] sm:$0xf0] }
0x10a3   : > { %v17173_v34 = vpop.f32.mrf.mxu0  ;;  %v12225_v59 = vor.u32 %v13233_v57, %v12224_v8  ;;  %v13182_v8 = vld [vmem:[%s19841_s11 + $0x20] sm:$0xf0]  ;;  %v12212_v57 = vld [vmem:[%s19841_s11 + $0x198] sm:$0xf] }
0x10a4   : > { %v17237_v22 = vpop.f32.mrf.mxu1  ;;  %7317 = vmatpush.bf16.msrb.mxu0 %v12037_v10  ;;  %v12021_v4 = vor.u32 %v13182_v8, %v12020_v45  ;;  %v13181_v10 = vld [vmem:[%s19841_s11 + $0x1c] sm:$0xf]  ;;  %v12128_v45 = vld [vmem:[%s19841_s11 + $0xf0] sm:$0xf] }
0x10a5   : > { %19921 = vst [vmem:[#allocation17_spill] sm:$0xff] %v17237_v22  ;;  %7278 = vmatpush.bf16.msra.mxu2 %v12141_v18  ;;  %v12025_v39 = vor.u32 %v13181_v10, %v12022_v63  ;;  %v13209_v18 = vld [vmem:[%s19841_s11 + $0xf8] sm:$0xf0]  ;;  %v12008_v22 = vld [vmem:[%s19841_s11] sm:$0xf] }
0x10a6   : > { %7298 = vmatpush.bf16.msra.mxu3 %v12225_v59  ;;  %v12213_v59 = vor.u32 %v13230_v62, %v12212_v57  ;;  %7261 = vmatpush.bf16.msra.mxu1 %v12021_v4  ;;  %v12129_v8 = vor.u32 %v13209_v18, %v12128_v45  ;;  %v13179_v57 = vld [vmem:[%s19841_s11 + $0x8] sm:$0xf0]  ;;  %v12200_v62 = vld [vmem:[%s19841_s11 + $0x180] sm:$0xf]  ;;  %v12010_v45 = vld [vmem:[%s19841_s11 + $0xc] sm:$0xf0] }
0x10a7   : > { %v17201_v1 = vpop.f32.mrf.mxu3  ;;  %v12009_v4 = vor.u32 %v13179_v57, %v12008_v22  ;;  %v13206_v22 = vld [vmem:[%s19841_s11 + $0xe0] sm:$0xf0]  ;;  %v13223_v57 = vld [vmem:[%s19841_s11 + $0x16c] sm:$0xf] }
0x10a8   : > { %7318 = vmatpush.bf16.msrb.mxu0 %v12025_v39  ;;  %v13178_v39 = vld [vmem:[%s19841_s11 + $0x4] sm:$0xf] }
0x10a9   : > { %7279 = vmatpush.bf16.msra.mxu2 %v12129_v8  ;;  %v12013_v55 = vor.u32 %v13178_v39, %v12010_v45 }
0x10aa   : > { %v17218_v35 = vpop.f32.mrf.mxu2  ;;  %7299 = vmatpush.bf16.msra.mxu3 %v12213_v59  ;;  %v13227_v59 = vld [vmem:[%s19841_s11 + $0x188] sm:$0xf0]  ;;  %7262 = vmatpush.bf16.msra.mxu1 %v12009_v4  ;;  %v13225_v4 = vld [vmem:[%s19841_s11 + $0x178] sm:$0xf0] }
0x10ab   : > { %v17220_v31 = vpop.f32.mrf.mxu0  ;;  %v12201_v18 = vor.u32 %v13227_v59, %v12200_v62  ;;  %v12190_v62 = vld [vmem:[%s19841_s11 + $0x174] sm:$0xf0]  ;;  %v12100_v59 = vld [vmem:[%s19841_s11 + $0xb0] sm:$0xf] }
0x10ac   : > { %7319 = vmatpush.bf16.msrb.mxu0 %v12013_v55  ;;  %v12193_v39 = vor.u32 %v13223_v57, %v12190_v62  ;;  %v12196_v55 = vld [vmem:[%s19841_s11 + $0x170] sm:$0xf]  ;;  %v17311_v45 = vpop.f32.mrf.mxu1  ;;  %v13203_v57 = vld [vmem:[%s19841_s11 + $0xc8] sm:$0xf0]  ;;  %v5607_v62 = vadd.f32 %v16990_v16, %v16922_v44  ;;  %v5588_v44 = vadd.f32 %v16845_v5, %v16913_v19  ;;  %v5612_v16 = vadd.f32 %v17005_v12, %v16981_v21  ;;  %v12184_v5 = vld [vmem:[%s19841_s11 + $0x158] sm:$0xf] }
0x10ad   : > { %v12197_v32 = vor.u32 %v13225_v4, %v12196_v55  ;;  %v12088_v55 = vld [vmem:[%s19841_s11 + $0x98] sm:$0xf]  ;;  %v13198_v4 = vld [vmem:[%s19841_s11 + $0xa0] sm:$0xf0] }
0x10ae   : > { %7300 = vmatpush.bf16.msra.mxu3 %v12201_v18  ;;  %7331 = vmatpush.bf16.msrb.mxu1 %v12193_v39  ;;  %v13222_v19 = vld [vmem:[%s19841_s11 + $0x160] sm:$0xf0]  ;;  %v12089_v21 = vor.u32 %v13198_v4, %v12088_v55  ;;  %v13219_v55 = vld [vmem:[%s19841_s11 + $0x148] sm:$0xf0]  ;;  %v12274_v4 = vld [vmem:[%s19841_s11 + $0x21c] sm:$0xf0] }
0x10af   : > { %v17257_v30 = vpop.f32.mrf.mxu3  ;;  %v12185_v12 = vor.u32 %v13222_v19, %v12184_v5  ;;  %v5934_v5 = vadd.f32 %v17037_v52, %v5782_v51  ;;  %v13214_v52 = vld [vmem:[%s19841_s11 + $0x124] sm:$0xf]  ;;  %v12262_v51 = vld [vmem:[%s19841_s11 + $0x204] sm:$0xf0] }
0x10b0   : > { %7388 = vmatpush.bf16.msra.mxu0 %v12197_v32 }
0x10b2   : > { %v17274_v10 = vpop.f32.mrf.mxu2 }
0x10b3   : > { %v17276_v63 = vpop.f32.mrf.mxu0 }
0x10b4   : > { %19922 = vst [vmem:[#allocation18_spill] sm:$0xff] %v17276_v63  ;;  %v12116_v63 = vld [vmem:[%s19841_s11 + $0xd8] sm:$0xf]  ;;  %7389 = vmatpush.bf16.msra.mxu0 %v12185_v12 }
0x10b5   : > { %v12117_v8 = vor.u32 %v13206_v22, %v12116_v63  ;;  %v13201_v63 = vld [vmem:[%s19841_s11 + $0xb8] sm:$0xf0] }
0x10b6   : > { %v12101_v22 = vor.u32 %v13201_v63, %v12100_v59  ;;  %v13220_v59 = vld [vmem:[%s19841_s11 + $0x154] sm:$0xf]  ;;  %v12178_v63 = vld [vmem:[%s19841_s11 + $0x15c] sm:$0xf0] }
0x10b7   : > { %7280 = vmatpush.bf16.msra.mxu2 %v12117_v8  ;;  %v17313_v18 = vpop.f32.mrf.mxu3  ;;  %v12104_v8 = vld [vmem:[%s19841_s11 + $0xc0] sm:$0xf]  ;;  %v12181_v39 = vor.u32 %v13220_v59, %v12178_v63  ;;  %v6231_v59 = vadd.f32 %v17063_v11, %v17039_v27 }
0x10b8   : > { %v12105_v36 = vor.u32 %v13203_v57, %v12104_v8  ;;  %7369 = vmatpush.bf16.msrb.mxu3 %v12101_v22  ;;  %v12286_v22 = vld [vmem:[%s19841_s11 + $0x234] sm:$0xf0]  ;;  %v5776_v8 = vadd.f32 %v16992_v41, %v5588_v44  ;;  %v5777_v57 = vadd.f32 %v16984_v56, %v5607_v62  ;;  %v12166_v41 = vld [vmem:[%s19841_s11 + $0x144] sm:$0xf0]  ;;  %v12076_v56 = vld [vmem:[%s19841_s11 + $0x80] sm:$0xf] }
0x10b9   : > { %7332 = vmatpush.bf16.msrb.mxu1 %v12181_v39  ;;  %v6383_v37 = vadd.f32 %v17171_v7, %v6231_v59  ;;  %v12169_v11 = vor.u32 %v13217_v40, %v12166_v41  ;;  %v13195_v62 = vld [vmem:[%s19841_s11 + $0x88] sm:$0xf0]  ;;  %v12172_v63 = vld [vmem:[%s19841_s11 + $0x140] sm:$0xf]  ;;  %v13244_v39 = vld [vmem:[%s19841_s11 + $0x214] sm:$0xf] }
0x10ba   : > { %v17340_v3 = vpop.f32.mrf.mxu2  ;;  %v5929_v27 = vadd.f32 %v17021_v47, %v5777_v57  ;;  %v5928_v53 = vadd.f32 %v17027_v25, %v5776_v8  ;;  %v5783_v47 = vadd.f32 %v17001_v20, %v5612_v16  ;;  %v5930_v25 = vadd.f32 %v17015_v48, %v5778_v43  ;;  %v12160_v8 = vld [vmem:[%s19841_s11 + $0x128] sm:$0xf] }
0x10bb   : > { %v17342_v32 = vpop.f32.mrf.mxu0  ;;  %7281 = vmatpush.bf16.msra.mxu2 %v12105_v36  ;;  %v13247_v36 = vld [vmem:[%s19841_s11 + $0x22c] sm:$0xf]  ;;  %v12077_v7 = vor.u32 %v13195_v62, %v12076_v56  ;;  %v12173_v24 = vor.u32 %v13219_v55, %v12172_v63  ;;  %v12277_v48 = vor.u32 %v13244_v39, %v12274_v4  ;;  %v5936_v16 = vadd.f32 %v17029_v42, %v5784_v58  ;;  %v12064_v42 = vld [vmem:[%s19841_s11 + $0x68] sm:$0xf]  ;;  %v17434_v58 = vpop.permute.xlu0 %6703  ;;  %v13189_v55 = vld [vmem:[%s19841_s11 + $0x58] sm:$0xf0] }
0x10bc   : > { %v12289_v17 = vor.u32 %v13247_v36, %v12286_v22  ;;  %7370 = vmatpush.bf16.msrb.mxu3 %v12089_v21  ;;  %v6080_v19 = vadd.f32 %v17043_v33, %v5928_v53  ;;  %v6081_v20 = vadd.f32 %v17047_v50, %v5929_v27  ;;  %v6082_v2 = vadd.f32 %v17045_v28, %v5930_v25  ;;  %v6525_v21 = vpop.f32.mrf.mxu1  ;;  %v12154_v33 = vld [vmem:[%s19841_s11 + $0x12c] sm:$0xf0]  ;;  %v13192_v22 = vld [vmem:[%s19841_s11 + $0x70] sm:$0xf0] }
0x10bd   : > { %7333 = vmatpush.bf16.msrb.mxu1 %v12169_v11  ;;  %v6533_v43 = vadd.f32 %v17201_v1, %v17059_v38  ;;  %7390 = vmatpush.bf16.msra.mxu0 %v12173_v24  ;;  %v6086_v28 = vadd.f32 %v17051_v0, %v5934_v5  ;;  %v6535_v38 = vadd.f32 %v17311_v45, %v6383_v37  ;;  %v13216_v0 = vld [vmem:[%s19841_s11 + $0x130] sm:$0xf0]  ;;  %v13211_v11 = vld [vmem:[%s19841_s11 + $0x10c] sm:$0xf] }
0x10be   : > { %v6233_v50 = vadd.f32 %v17065_v29, %v6081_v20  ;;  %v12157_v36 = vor.u32 %v13214_v52, %v12154_v33  ;;  %v6234_v29 = vadd.f32 %v17071_v15, %v6082_v2  ;;  %v12065_v45 = vor.u32 %v13192_v22, %v12064_v42  ;;  %v13186_v2 = vld [vmem:[%s19841_s11 + $0x40] sm:$0xf0]  ;;  %v12136_v33 = vld [vmem:[%s19841_s11 + $0xf8] sm:$0xf]  ;;  %v13205_v22 = vld [vmem:[%s19841_s11 + $0xdc] sm:$0xf] }
0x10bf   : > { %7350 = vmatpush.bf16.msrb.mxu2 %v12289_v17  ;;  %v17391_v44 = vpop.f32.mrf.mxu3  ;;  %v12161_v59 = vor.u32 %v13216_v0, %v12160_v8  ;;  %v13241_v17 = vld [vmem:[%s19841_s11 + $0x1fc] sm:$0xf]  ;;  %v17437_v40 = vadd.f32 %v17035_v9, %v5783_v47  ;;  %v6232_v41 = vadd.f32 %v17041_v6, %v6080_v19  ;;  %v6088_v27 = vadd.f32 %v17053_v46, %v5936_v16  ;;  %v12142_v9 = vld [vmem:[%s19841_s11 + $0x114] sm:$0xf0]  ;;  %v12052_v6 = vld [vmem:[%s19841_s11 + $0x50] sm:$0xf]  ;;  %v6709_v0 = vpop.permute.xlu1 %6708 }
0x10c0   : > { %7371 = vmatpush.bf16.msrb.mxu3 %v12077_v7  ;;  %v12265_v15 = vor.u32 %v13241_v17, %v12262_v51  ;;  %v6386_v53 = vadd.f32 %v17218_v35, %v6234_v29  ;;  %v17455_v46 = vadd.f32 %v17061_v60, %v6086_v28  ;;  %v6382_v35 = vadd.f32 %v17069_v13, %v17057_v26  ;;  %v12148_v47 = vld [vmem:[%s19841_s11 + $0x110] sm:$0xf]  ;;  %v13213_v60 = vld [vmem:[%s19841_s11 + $0x118] sm:$0xf0]  ;;  %v12040_v16 = vld [vmem:[%s19841_s11 + $0x38] sm:$0xf] }
0x10c1   : > { %7334 = vmatpush.bf16.msrb.mxu1 %v12157_v36  ;;  %7391 = vmatpush.bf16.msra.mxu0 %v12161_v59  ;;  %v6384_v62 = vadd.f32 %v17067_v14, %v6232_v41  ;;  %v12145_v63 = vor.u32 %v13211_v11, %v12142_v9  ;;  %v6385_v25 = vadd.f32 %v17106_v54, %v6233_v50  ;;  %v13238_v54 = vld [vmem:[%s19841_s11 + $0x1e4] sm:$0xf]  ;;  %v13235_v28 = vld [vmem:[%s19841_s11 + $0x1cc] sm:$0xf]  ;;  %v12238_v36 = vld [vmem:[%s19841_s11 + $0x1d4] sm:$0xf0] }
0x10c2   : > { %v6637_v1 = vpop.f32.mrf.mxu2  ;;  %v6237_v26 = vadd.f32 %v17095_v23, %v17049_v61  ;;  %v6534_v7 = vadd.f32 %v17173_v34, %v6382_v35  ;;  %v12053_v39 = vor.u32 %v13189_v55, %v12052_v6  ;;  %v12149_v4 = vor.u32 %v13213_v60, %v12148_v47  ;;  %v12250_v61 = vld [vmem:[%s19841_s11 + $0x1ec] sm:$0xf0]  ;;  %v13208_v23 = vld [vmem:[%s19841_s11 + $0xf4] sm:$0xf]  ;;  %v13210_v42 = vld [vmem:[%s19841_s11 + $0x100] sm:$0xf0] }
0x10c3   : > { %v6675_v12 = vpop.f32.mrf.mxu0  ;;  %7351 = vmatpush.bf16.msrb.mxu2 %v12277_v48  ;;  %v6685_v57 = vadd.f32 %v6637_v1, %v6533_v43  ;;  %v17490_v34 = vadd.f32 %v17145_v49, %v6088_v27  ;;  %v6538_v5 = vadd.f32 %v6525_v21, %v6386_v53  ;;  %v6536_v19 = vadd.f32 %v17257_v30, %v6384_v62  ;;  %v12130_v48 = vld [vmem:[%s19841_s11 + $0xfc] sm:$0xf0]  ;;  %v12118_v8 = vld [vmem:[%s19841_s11 + $0xe4] sm:$0xf0]  ;;  %v19923_v51 = vld [vmem:[#allocation13_spill] sm:$0xff] }
0x10c4   : > { %v6687_v56 = vadd.f32 %v6675_v12, %v6535_v38  ;;  %7372 = vmatpush.bf16.msrb.mxu3 %v12065_v45  ;;  %v12253_v20 = vor.u32 %v13238_v54, %v12250_v61  ;;  %v12133_v21 = vor.u32 %v13208_v23, %v12130_v48  ;;  %v12041_v30 = vor.u32 %v13186_v2, %v12040_v16  ;;  %v6528_v29 = vpop.f32.mrf.mxu1  ;;  %v12028_v59 = vld [vmem:[%s19841_s11 + $0x20] sm:$0xf]  ;;  %v13183_v27 = vld [vmem:[%s19841_s11 + $0x28] sm:$0xf0]  ;;  %v13232_v6 = vld [vmem:[%s19841_s11 + $0x1b4] sm:$0xf] }
0x10c5   : > { %v17443_v37 = vadd.f32 %v17434_v58, %v6685_v57  ;;  %7335 = vmatpush.bf16.msrb.mxu1 %v12145_v63  ;;  %7392 = vmatpush.bf16.msra.mxu0 %v12149_v4  ;;  %v6537_v50 = vadd.f32 %v17220_v31, %v6385_v25  ;;  %v12137_v12 = vor.u32 %v13210_v42, %v12136_v33  ;;  %v12124_v53 = vld [vmem:[%s19841_s11 + $0xe0] sm:$0xf]  ;;  %v13207_v11 = vld [vmem:[%s19841_s11 + $0xe8] sm:$0xf0]  ;;  %v13202_v62 = vld [vmem:[%s19841_s11 + $0xc4] sm:$0xf] }
0x10c6   : > { %v17478_v24 = vadd.f32 %v17434_v58, %v6687_v56  ;;  %v12241_v57 = vor.u32 %v13235_v28, %v12238_v36  ;;  %v12121_v45 = vor.u32 %v13205_v22, %v12118_v8  ;;  %v6389_v17 = vadd.f32 %v17274_v10, %v6237_v26  ;;  %v12226_v35 = vld [vmem:[%s19841_s11 + $0x1bc] sm:$0xf0]  ;;  %v13204_v61 = vld [vmem:[%s19841_s11 + $0xd0] sm:$0xf0]  ;;  %v13229_v23 = vld [vmem:[%s19841_s11 + $0x19c] sm:$0xf] }
0x10c7   : > { %7352 = vmatpush.bf16.msrb.mxu2 %v12265_v15  ;;  %vm6733_vm13 = vcmp.ge.f32.partialorder %v17443_v37, 0.0  ;;  %v17474_v14 = vmul.f32 0.2, %v17443_v37  ;;  %v6656_v13 = vpop.f32.mrf.mxu3  ;;  %v6539_v41 = vadd.f32 %v17313_v18, %v19923_v51  ;;  %v12029_v10 = vor.u32 %v13183_v27, %v12028_v59  ;;  %v13249_v22 = vld [vmem:[%s19841_s11 + $0x238] sm:$0xf0]  ;;  %v6714_v59 = vpop.permute.xlu2 %6713 }
0x10c8   : > { %v6686_v43 = vadd.f32 %v6656_v13, %v6534_v7  ;;  %7373 = vmatpush.bf16.msrb.mxu3 %v12053_v39  ;;  %vm6735_vm14 = vcmp.ge.f32.partialorder %v17478_v24, 0.0  ;;  %v6747_v31 = vmul.f32 0.2, %v17478_v24  ;;  %v12125_v18 = vor.u32 %v13207_v11, %v12124_v53  ;;  %v12106_v13 = vld [vmem:[%s19841_s11 + $0xcc] sm:$0xf0]  ;;  %v19929_v53 = vld [vmem:[#allocation18_spill] sm:$0xff] }
0x10c9   : > { %7336 = vmatpush.bf16.msrb.mxu1 %v12133_v21  ;;  %7393 = vmatpush.bf16.msra.mxu0 %v12137_v12  ;;  %v6757_v47 = vsel %vm6733_vm13, %v17443_v37, %v17474_v14  ;;  %v12229_v26 = vor.u32 %v13232_v6, %v12226_v35  ;;  %v12016_v7 = vld [vmem:[%s19841_s11 + $0x8] sm:$0xf]  ;;  %v13180_v39 = vld [vmem:[%s19841_s11 + $0x10] sm:$0xf0]  ;;  %v12109_v4 = vor.u32 %v13202_v62, %v12106_v13  ;;  %v13226_v8 = vld [vmem:[%s19841_s11 + $0x184] sm:$0xf] }
0x10ca   : > { %v6639_v52 = vpop.f32.mrf.mxu2  ;;  %v6722_v9 = vadd.f32 %v17434_v58, %v6686_v43  ;;  %v6759_v60 = vsel %vm6735_vm14, %v17478_v24, %v6747_v31  ;;  %v12017_v54 = vor.u32 %v13180_v39, %v12016_v7  ;;  %v12112_v24 = vld [vmem:[%s19841_s11 + $0xc8] sm:$0xf]  ;;  %v6392_v12 = vadd.f32 %v17340_v3, %v17490_v34  ;;  %v12202_v31 = vld [vmem:[%s19841_s11 + $0x18c] sm:$0xf0]  ;;  %v19930_v13 = vld [vmem:[#allocation17_spill] sm:$0xff] }
0x10cb   : > { %v6677_v49 = vpop.f32.mrf.mxu0  ;;  %v6688_v38 = vadd.f32 %v6639_v52, %v6536_v19  ;;  %7353 = vmatpush.bf16.msrb.mxu2 %v12253_v20  ;;  %v12214_v43 = vld [vmem:[%s19841_s11 + $0x1a4] sm:$0xf0]  ;;  %v6541_v52 = vadd.f32 %v6528_v29, %v6389_v17  ;;  %v19927_v17 = vld [vmem:[#allocation14_spill] sm:$0xff] }
0x10cc   : > { %v6690_v1 = vadd.f32 %v6677_v49, %v6538_v5  ;;  %7374 = vmatpush.bf16.msrb.mxu3 %v12041_v30  ;;  %v6746_v5 = vmul.f32 0.2, %v6722_v9  ;;  %vm6734_vm12 = vcmp.ge.f32.partialorder %v6722_v9, 0.0  ;;  %v12113_v49 = vor.u32 %v13204_v61, %v12112_v24  ;;  %v19924_v30 = vld [vmem:[#allocation11_spill] sm:$0xff] }
0x10cd   : > { %v6724_v56 = vadd.f32 %v6709_v0, %v6688_v38  ;;  %7337 = vmatpush.bf16.msrb.mxu1 %v12121_v45  ;;  %7394 = vmatpush.bf16.msra.mxu0 %v12125_v18  ;;  %v12217_v21 = vor.u32 %v13229_v23, %v12214_v43  ;;  %v6087_v33 = vadd.f32 %v19924_v30, %v17437_v40  ;;  %v19926_v38 = vld [vmem:[#allocation16_spill] sm:$0xff]  ;;  %v13246_v45 = vld [vmem:[%s19841_s11 + $0x220] sm:$0xf0]  ;;  %v12256_v61 = vld [vmem:[%s19841_s11 + $0x1e8] sm:$0xf] }
0x10ce   : > { %v6726_v15 = vadd.f32 %v6709_v0, %v6690_v1  ;;  %v12292_v40 = vld [vmem:[%s19841_s11 + $0x230] sm:$0xf]  ;;  %v6758_v29 = vsel %vm6734_vm12, %v6722_v9, %v6746_v5  ;;  %v13240_v23 = vld [vmem:[%s19841_s11 + $0x1f0] sm:$0xf0] }
0x10cf   : > { %vm6736_vm15 = vcmp.ge.f32.partialorder %v6724_v56, 0.0  ;;  %v6748_v63 = vmul.f32 0.2, %v6724_v56  ;;  %v6658_v55 = vpop.f32.mrf.mxu3  ;;  %7354 = vmatpush.bf16.msrb.mxu2 %v12241_v57  ;;  %v12293_v34 = vor.u32 %v13249_v22, %v12292_v40  ;;  %v12280_v57 = vld [vmem:[%s19841_s11 + $0x218] sm:$0xf]  ;;  %v6239_v51 = vadd.f32 %v19927_v17, %v6087_v33 }
0x10d0   : > { %vm6738_vm10 = vcmp.ge.f32.partialorder %v6726_v15, 0.0  ;;  %v6750_v58 = vmul.f32 0.2, %v6726_v15  ;;  %v6689_v25 = vadd.f32 %v6658_v55, %v6537_v50  ;;  %7375 = vmatpush.bf16.msrb.mxu3 %v12029_v10  ;;  %v19925_v50 = vld [vmem:[#allocation12_spill] sm:$0xff]  ;;  %v12205_v10 = vor.u32 %v13226_v8, %v12202_v31  ;;  %v12232_v22 = vld [vmem:[%s19841_s11 + $0x1b8] sm:$0xf] }
0x10d1   : > { %v6760_v37 = vsel %vm6736_vm15, %v6724_v56, %v6748_v63  ;;  %v6388_v1 = vadd.f32 %v19926_v38, %v19925_v50  ;;  %7338 = vmatpush.bf16.msrb.mxu1 %v12109_v4  ;;  %7395 = vmatpush.bf16.msra.mxu0 %v12113_v49  ;;  %v12281_v18 = vor.u32 %v13246_v45, %v12280_v57  ;;  %v13243_v63 = vld [vmem:[%s19841_s11 + $0x208] sm:$0xf0]  ;;  %v12244_v38 = vld [vmem:[%s19841_s11 + $0x1d0] sm:$0xf]  ;;  %v13234_v8 = vld [vmem:[%s19841_s11 + $0x1c0] sm:$0xf0] }
0x10d2   : > { %v6762_v14 = vsel %vm6738_vm10, %v6726_v15, %v6750_v58  ;;  %v17573_v19 = vpack.c.bf16 %v6760_v37, %v6757_v47  ;;  %v6725_v48 = vadd.f32 %v6709_v0, %v6689_v25  ;;  %v6642_v16 = vpop.f32.mrf.mxu2  ;;  %v6530_v0 = vpop.f32.mrf.mxu1  ;;  %v12208_v57 = vld [vmem:[%s19841_s11 + $0x188] sm:$0xf]  ;;  %v13228_v45 = vld [vmem:[%s19841_s11 + $0x190] sm:$0xf0] }
0x10d3   : > { %v17575_v20 = vpack.c.bf16 %v6762_v14, %v6759_v60  ;;  %v6680_v2 = vpop.f32.mrf.mxu0  ;;  %7355 = vmatpush.bf16.msrb.mxu2 %v12229_v26  ;;  %v6691_v28 = vadd.f32 %v6642_v16, %v6539_v41  ;;  %v19928_v41 = vld [vmem:[#allocation15_spill] sm:$0xff]  ;;  %v6540_v11 = vadd.f32 %v19929_v53, %v6388_v1  ;;  %v6544_v6 = vadd.f32 %v6530_v0, %v6392_v12  ;;  %v6719_v26 = vpop.permute.xlu0 %6718  ;;  %v13237_v1 = vld [vmem:[%s19841_s11 + $0x1d8] sm:$0xf0] }
0x10d4   : > { %vm6737_vm13 = vcmp.ge.f32.partialorder %v6725_v48, 0.0  ;;  %v6749_v42 = vmul.f32 0.2, %v6725_v48  ;;  %7263 = vmatmul.bf16.vlgmr.msra.gmra.mxu1 %v17573_v19  ;;  %v6693_v36 = vadd.f32 %v6680_v2, %v6541_v52  ;;  %7320 = vmatmul.bf16.vlgmr.msrb.gmra.mxu0 %v17573_v19  ;;  %v6390_v56 = vadd.f32 %v19928_v41, %v17455_v46  ;;  %v12268_v46 = vld [vmem:[%s19841_s11 + $0x200] sm:$0xf] }
0x10d5   : > { %7301 = vmatmul.bf16.vlgmr.msra.gmra.mxu3 %v17575_v20  ;;  %v6727_v9 = vadd.f32 %v6714_v59, %v6691_v28  ;;  %7407 = vmatpush.bf16.msra.mxu1 %v12293_v34  ;;  %v12269_v39 = vor.u32 %v13243_v63, %v12268_v46  ;;  %v12245_v40 = vor.u32 %v13237_v1, %v12244_v38  ;;  %v13231_v34 = vld [vmem:[%s19841_s11 + $0x1a8] sm:$0xf0] }
0x10d6   : > { %v6761_v3 = vsel %vm6737_vm13, %v6725_v48, %v6749_v42  ;;  %7376 = vmatpush.bf16.msrb.mxu3 %v12017_v54  ;;  %v6542_v35 = vadd.f32 %v17391_v44, %v6390_v56  ;;  %v6729_v62 = vadd.f32 %v6714_v59, %v6693_v36  ;;  %v6391_v44 = vadd.f32 %v19930_v13, %v6239_v51 }
0x10d7   : > { %v17611_v15 = vpack.c.bf16 %v6761_v3, %v6758_v29  ;;  %v6661_v27 = vpop.f32.mrf.mxu3  ;;  %7356 = vmatpush.bf16.msrb.mxu2 %v12217_v21  ;;  %v6751_v7 = vmul.f32 0.2, %v6727_v9  ;;  %vm6739_vm14 = vcmp.ge.f32.partialorder %v6727_v9, 0.0  ;;  %v12257_v21 = vor.u32 %v13240_v23, %v12256_v61  ;;  %v12220_v3 = vld [vmem:[%s19841_s11 + $0x1a0] sm:$0xf] }
0x10d8   : > { %v6692_v58 = vadd.f32 %v6661_v27, %v6540_v11  ;;  %v6753_v37 = vmul.f32 0.2, %v6729_v62  ;;  %v6543_v54 = vadd.f32 %v17342_v32, %v6391_v44  ;;  %vm6741_vm15 = vcmp.ge.f32.partialorder %v6729_v62, 0.0 }
0x10d9   : > { %7282 = vmatmul.bf16.vlgmr.msra.gmra.mxu2 %v17611_v15  ;;  %7408 = vmatpush.bf16.msra.mxu1 %v12281_v18  ;;  %v6763_v43 = vsel %vm6739_vm14, %v6727_v9, %v6751_v7  ;;  %v12233_v29 = vor.u32 %v13234_v8, %v12232_v22  ;;  %v12221_v31 = vor.u32 %v13231_v34, %v12220_v3 }
0x10da   : > { %v6644_v55 = vpop.f32.mrf.mxu2  ;;  %v6728_v24 = vadd.f32 %v6714_v59, %v6692_v58  ;;  %v6765_v32 = vsel %vm6741_vm15, %v6729_v62, %v6753_v37  ;;  %v12209_v59 = vor.u32 %v13228_v45, %v12208_v57  ;;  %vm19933_vm15 = vcmask 64512  }
0x10db   : > { %v6682_v47 = vpop.f32.mrf.mxu0  ;;  %v6694_v60 = vadd.f32 %v6644_v55, %v6542_v35  ;;  %7357 = vmatpush.bf16.msrb.mxu2 %v12205_v10 }
0x10dc   : > { %v6696_v25 = vadd.f32 %v6682_v47, %v6544_v6  ;;  %v6752_v30 = vmul.f32 0.2, %v6728_v24  ;;  %vm6740_vm13 = vcmp.ge.f32.partialorder %v6728_v24, 0.0 }
0x10dd   : > { %v6730_v14 = vadd.f32 %v6719_v26, %v6694_v60  ;;  %7409 = vmatpush.bf16.msra.mxu1 %v12269_v39 }
0x10de   : > { %v6732_v4 = vadd.f32 %v6719_v26, %v6696_v25  ;;  %v6764_v12 = vsel %vm6740_vm13, %v6728_v24, %v6752_v30 }
0x10df   : > { %v6754_v5 = vmul.f32 0.2, %v6730_v14  ;;  %v6663_v16 = vpop.f32.mrf.mxu3  ;;  %vm6742_vm10 = vcmp.ge.f32.partialorder %v6730_v14, 0.0 }
0x10e0   : > { %v6756_v48 = vmul.f32 0.2, %v6732_v4  ;;  %vm6744_vm12 = vcmp.ge.f32.partialorder %v6732_v4, 0.0  ;;  %v6695_v2 = vadd.f32 %v6663_v16, %v6543_v54 }
0x10e1   : > { %v6766_v52 = vsel %vm6742_vm10, %v6730_v14, %v6754_v5  ;;  %7410 = vmatpush.bf16.msra.mxu1 %v12257_v21  ;;  %vm19934_vm10 = vmmov %vm19933_vm15 }
0x10e2   : > { %v6768_v49 = vsel %vm6744_vm12, %v6732_v4, %v6756_v48  ;;  %v6731_v33 = vadd.f32 %v6719_v26, %v6695_v2  ;;  %v6772_v42 = vpack.c.bf16 %v6766_v52, %v6763_v43  ;;  %vm19935_vm12 = vmmov %vm19934_vm10 }
0x10e3   : > { %v6774_v28 = vpack.c.bf16 %v6768_v49, %v6765_v32  ;;  %vm19936_vm13 = vmmov %vm19934_vm10 }
0x10e4   : > { %v6755_v50 = vmul.f32 0.2, %v6731_v33  ;;  %7268 = vmatmul.bf16.gmra.mxu1 %v6772_v42  ;;  %vm6743_vm1 = vcmp.ge.f32.partialorder %v6731_v33, 0.0  ;;  %7325 = vmatmul.bf16.gmra.mxu0 %v6772_v42 }
0x10e5   : > { %7306 = vmatmul.bf16.gmra.mxu3 %v6774_v28  ;;  %7411 = vmatpush.bf16.msra.mxu1 %v12245_v40 }
0x10e6   : > { %v6767_v36 = vsel %vm6743_vm1, %v6731_v33, %v6755_v50 }
0x10e7   : > { %v6773_v0 = vpack.c.bf16 %v6767_v36, %v6764_v12 }
0x10e9   : > { %7287 = vmatmul.bf16.gmra.mxu2 %v6773_v0  ;;  %7412 = vmatpush.bf16.msra.mxu1 %v12233_v29 }
0x10ed   : > { %7413 = vmatpush.bf16.msra.mxu1 %v12221_v31 }
0x10f1   : > { %7414 = vmatpush.bf16.msra.mxu1 %v12209_v59 }
0x10f4   : > { %7339 = vmatmul.bf16.vlgmr.msrb.gmra.mxu1 %v17611_v15  ;;  %7396 = vmatmul.bf16.vlgmr.msra.gmra.mxu0 %v17611_v15 }
0x10f5   : > { %7377 = vmatmul.bf16.vlgmr.msrb.gmra.mxu3 %v17573_v19 }
0x10f9   : > { %7358 = vmatmul.bf16.vlgmr.msrb.gmra.mxu2 %v17575_v20 }
0x1104   : > { %7344 = vmatmul.bf16.gmra.mxu1 %v6773_v0  ;;  %7401 = vmatmul.bf16.gmra.mxu0 %v6773_v0 }
0x1105   : > { %7382 = vmatmul.bf16.gmra.mxu3 %v6772_v42 }
0x1109   : > { %7363 = vmatmul.bf16.gmra.mxu2 %v6774_v28 }
0x1114   : > { %7415 = vmatmul.bf16.vlgmr.msra.gmra.mxu1 %v17575_v20 }
0x1124   : > { %7420 = vmatmul.bf16.gmra.mxu1 %v6774_v28 }
0x1151   : > { %v7264_v17 = vpop.f32.mrf.mxu1  ;;  %v7321_v27 = vpop.f32.mrf.mxu0 }
0x1158   : > { %v7302_v51 = vpop.f32.mrf.mxu3 }
0x1159   : > { %v7266_v41 = vpop.f32.mrf.mxu1  ;;  %v7323_v62 = vpop.f32.mrf.mxu0 }
0x115c   : > { %v7283_v56 = vpop.f32.mrf.mxu2 }
0x115d   : > { %v7284_v19 = vadd.f32 %v7283_v56, %v7264_v17 }
0x115f   : > { %v7303_v10 = vadd.f32 %v7302_v51, %v7284_v19 }
0x1160   : > { %v7304_v11 = vpop.f32.mrf.mxu3 }
0x1161   : > { %v7269_v53 = vpop.f32.mrf.mxu1  ;;  %v7326_v47 = vpop.f32.mrf.mxu0 }
0x1164   : > { %v7285_v9 = vpop.f32.mrf.mxu2 }
0x1165   : > { %v7286_v15 = vadd.f32 %v7285_v9, %v7266_v41 }
0x1167   : > { %v7305_v18 = vadd.f32 %v7304_v11, %v7286_v15 }
0x1168   : > { %v7307_v20 = vpop.f32.mrf.mxu3 }
0x1169   : > { %v7271_v6 = vpop.f32.mrf.mxu1  ;;  %v17659_v35 = vpack.i.bf16 %v7305_v18, %v7303_v10  ;;  %v7451_v14 = vpack.c.bf16 %v7305_v18, %v7303_v10  ;;  %v7328_v4 = vpop.f32.mrf.mxu0 }
0x116b   : > { %14319 = vrot.lane.b32.xlu0 %v17659_v35, %s19931_s22 }
0x116c   : > { %v7288_v46 = vpop.f32.mrf.mxu2 }
0x116d   : > { %v7289_v58 = vadd.f32 %v7288_v46, %v7269_v53  ;;  %v19932_v46 = vld [vmem:[#allocation10_spill] sm:$0xff] }
0x116f   : > { %v7308_v26 = vadd.f32 %v7307_v20, %v7289_v58 }
0x1170   : > { %v7309_v25 = vpop.f32.mrf.mxu3 }
0x1171   : > { %v7340_v63 = vpop.f32.mrf.mxu1  ;;  %v7397_v43 = vpop.f32.mrf.mxu0 }
0x1172   : > { %v7341_v61 = vadd.f32 %v7340_v63, %v7321_v27 }
0x1173   : > { %14324 = vrot.lane.b32.xlu0 %v17659_v35, %s19898_s21 }
0x1174   : > { %v7290_v55 = vpop.f32.mrf.mxu2 }
0x1175   : > { %v7291_v60 = vadd.f32 %v7290_v55, %v7271_v6 }
0x1177   : > { %v7310_v13 = vadd.f32 %v7309_v25, %v7291_v60  ;;  %v8200_v60 = vld [vmem:[%s19832_s2 + $0x108] sm:$0xff]  ;;  %v17776_v25 = vld [vmem:[%s19831_s1 + $0x4a4] sm:$0xf] }
0x1178   : > { %v7378_v16 = vpop.f32.mrf.mxu3 }
0x1179   : > { %v7342_v44 = vpop.f32.mrf.mxu1  ;;  %v17665_v7 = vpack.i.bf16 %v7310_v13, %v7308_v26  ;;  %v7454_v39 = vpack.c.bf16 %v7310_v13, %v7308_v26  ;;  %v7399_v30 = vpop.f32.mrf.mxu0  ;;  %v7398_v36 = vadd.f32 %v7397_v43, %v7378_v16 }
0x117a   : > { %v7343_v24 = vadd.f32 %v7342_v44, %v7323_v62 }
0x117b   : > { %14329 = vrot.lane.b32.xlu1 %v17665_v7, %s19931_s22  ;;  %7551 = vmatpush.bf16.msrb.mxu0 %v7454_v39 }
0x117c   : > { %v7359_v37 = vpop.f32.mrf.mxu2 }
0x117d   : > { %v7360_v48 = vadd.f32 %v7359_v37, %v7341_v61  ;;  %v7493_v61 = vld [vmem:[%s19831_s1 + $0x4a8] sm:$0xf] }
0x117f   : > { %7552 = vmatpush.bf16.msrb.mxu0 %v7451_v14 }
0x1180   : > { %v7380_v49 = vpop.f32.mrf.mxu3 }
0x1181   : > { %v7345_v54 = vpop.f32.mrf.mxu1  ;;  %v7400_v40 = vadd.f32 %v7399_v30, %v7380_v49  ;;  %v7402_v31 = vpop.f32.mrf.mxu0 }
0x1182   : > { %v7346_v33 = vadd.f32 %v7345_v54, %v7326_v47  ;;  %12297 = vmatmul.msk.bf16.vlgmr.msrb.gmra.mxu0 %vm1899_vm11, %v17776_v25 }
0x1183   : > { %14334 = vrot.lane.b32.xlu1 %v17665_v7, %s19898_s21 }
0x1184   : > { %v7361_v23 = vpop.f32.mrf.mxu2 }
0x1185   : > { %v7362_v5 = vadd.f32 %v7361_v23, %v7343_v24 }
0x1187   : > { %v17671_v2 = vpack.i.bf16 %v7362_v5, %v7360_v48  ;;  %v7452_v3 = vpack.c.bf16 %v7362_v5, %v7360_v48 }
0x1188   : > { %v7383_v29 = vpop.f32.mrf.mxu3 }
0x1189   : > { %v7347_v52 = vpop.f32.mrf.mxu1  ;;  %v7404_v17 = vpop.f32.mrf.mxu0  ;;  %v7403_v51 = vadd.f32 %v7402_v31, %v7383_v29 }
0x118a   : > { %v7348_v42 = vadd.f32 %v7347_v52, %v7328_v4 }
0x118b   : > { %14339 = vrot.lane.b32.xlu1 %v17671_v2, %s19931_s22 }
0x118c   : > { %v7364_v32 = vpop.f32.mrf.mxu2 }
0x118d   : > { %v7365_v50 = vadd.f32 %v7364_v32, %v7346_v33 }
0x1190   : > { %v7385_v59 = vpop.f32.mrf.mxu3 }
0x1191   : > { %v7416_v21 = vpop.f32.mrf.mxu1  ;;  %v7405_v41 = vadd.f32 %v7404_v17, %v7385_v59 }
0x1192   : > { %v17683_v8 = vadd.f32 %v7416_v21, %v7398_v36 }
0x1193   : > { %14344 = vrot.lane.b32.xlu1 %v17671_v2, %s19898_s21 }
0x1194   : > { %v7366_v28 = vpop.f32.mrf.mxu2 }
0x1195   : > { %v7367_v38 = vadd.f32 %v7366_v28, %v7348_v42 }
0x1197   : > { %v17677_v1 = vpack.i.bf16 %v7367_v38, %v7365_v50  ;;  %v7455_v12 = vpack.c.bf16 %v7367_v38, %v7365_v50 }
0x1199   : > { %v7418_v22 = vpop.f32.mrf.mxu1  ;;  %14359 = vrot.lane.b32.xlu0 %v17677_v1, %s19910_s30  ;;  %14349 = vrot.lane.b32.xlu2 %v17677_v1, %s19931_s22 }
0x119a   : > { %v17685_v0 = vadd.f32 %v7418_v22, %v7400_v40  ;;  %7564 = vmatpush.bf16.msrb.mxu1 %v7455_v12 }
0x119c   : > { %v17689_v34 = vpack.i.bf16 %v17685_v0, %v17683_v8  ;;  %v7453_v57 = vpack.c.bf16 %v17685_v0, %v17683_v8 }
0x119e   : > { %7565 = vmatpush.bf16.msrb.mxu1 %v7452_v3  ;;  %14384 = vrot.lane.b32.xlu1 %v17689_v34, %s19910_s30 }
0x11a1   : > { %v7421_v45 = vpop.f32.mrf.mxu1  ;;  %14364 = vrot.lane.b32.xlu0 %v17689_v34, %s19931_s22  ;;  %14354 = vrot.lane.b32.xlu2 %v17677_v1, %s19898_s21 }
0x11a2   : > { %v17703_v27 = vadd.f32 %v7421_v45, %v7403_v51  ;;  %12298 = vmatmul.msk.bf16.vlgmr.msrb.gmra.mxu1 %vm1899_vm11, %v17776_v25 }
0x11a6   : > { %14399 = vrot.lane.b32.xlu1 %v17665_v7, %s19911_s20 }
0x11a9   : > { %v7423_v56 = vpop.f32.mrf.mxu1  ;;  %14379 = vrot.lane.b32.xlu0 %v17671_v2, %s19910_s30 }
0x11aa   : > { %v17705_v53 = vadd.f32 %v7423_v56, %v7405_v41 }
0x11ac   : > { %v14368_v11 = vpack.i.bf16 %v17705_v53, %v17703_v27  ;;  %v7456_v19 = vpack.c.bf16 %v17705_v53, %v17703_v27 }
0x11ae   : > { %14369 = vrot.lane.b32.xlu2 %v14368_v11, %s19931_s22  ;;  %14414 = vrot.lane.b32.xlu1 %v14368_v11, %s19910_s30 }
0x11b1   : > { %14394 = vrot.lane.b32.xlu0 %v17659_v35, %s19910_s30 }
0x11b6   : > { %14374 = vrot.lane.b32.xlu2 %v17689_v34, %s19898_s21  ;;  %14419 = vrot.lane.b32.xlu1 %v17659_v35, %s19911_s20 }
0x11b9   : > { %14429 = vrot.lane.b32.xlu0 %v17689_v34, %s19911_s20 }
0x11be   : > { %14389 = vrot.lane.b32.xlu2 %v17665_v7, %s19910_s30  ;;  %14434 = vrot.lane.b32.xlu1 %v17677_v1, %s19909_s18 }
0x11c1   : > { %14439 = vrot.lane.b32.xlu0 %v17665_v7, %s19912_s27 }
0x11c6   : > { %14404 = vrot.lane.b32.xlu2 %v17677_v1, %s19911_s20  ;;  %14444 = vrot.lane.b32.xlu1 %v17677_v1, %s19912_s27 }
0x11c9   : > { %14454 = vrot.lane.b32.xlu0 %v14368_v11, %s19911_s20 }
0x11ce   : > { %14409 = vrot.lane.b32.xlu2 %v14368_v11, %s19898_s21  ;;  %14464 = vrot.lane.b32.xlu1 %v17665_v7, %s19909_s18 }
0x11d1   : > { %14459 = vrot.lane.b32.xlu0 %v17689_v34, %s19909_s18 }
0x11d6   : > { %14424 = vrot.lane.b32.xlu2 %v17671_v2, %s19911_s20  ;;  %14479 = vrot.lane.b32.xlu1 %v17659_v35, %s19909_s18 }
0x11d9   : > { %14474 = vrot.lane.b32.xlu0 %v17671_v2, %s19912_s27 }
0x11dd   : > { %v14320_v47 = vpop.permute.xlu0 %14319 }
0x11de   : > { %14449 = vrot.lane.b32.xlu2 %v17671_v2, %s19909_s18  ;;  %14509 = vrot.lane.b32.xlu1 %v14368_v11, %s19913_s16  ;;  %v14322_v26 = vunpack.i.h.bf16 %v14320_v47  ;;  %v14321_v13 = vunpack.i.l.bf16 %v14320_v47 }
0x11e1   : > { %14484 = vrot.lane.b32.xlu0 %v17677_v1, %s19913_s16 }
0x11e5   : > { %v17791_v24 = vpop.permute.xlu0 %14324 }
0x11e6   : > { %14469 = vrot.lane.b32.xlu2 %v17659_v35, %s19912_s27  ;;  %14514 = vrot.lane.b32.xlu1 %v17689_v34, %s19913_s16  ;;  %v14327_v3 = vunpack.i.h.bf16 %v17791_v24 }
0x11e9   : > { %14499 = vrot.lane.b32.xlu0 %v17671_v2, %s19913_s16 }
0x11ed   : > { %v14330_v9 = vpop.permute.xlu1 %14329 }
0x11ee   : > { %14489 = vrot.lane.b32.xlu2 %v14368_v11, %s19909_s18  ;;  %14529 = vrot.lane.b32.xlu1 %v17665_v7, %s19914_s28  ;;  %v14332_v10 = vunpack.i.h.bf16 %v14330_v9  ;;  %v14331_v18 = vunpack.i.l.bf16 %v14330_v9 }
0x11f1   : > { %14524 = vrot.lane.b32.xlu0 %v17659_v35, %s19913_s16 }
0x11f3   : > { %v14350_v15 = vpop.permute.xlu2 %14349 }
0x11f4   : > { %v14352_v6 = vunpack.i.h.bf16 %v14350_v15  ;;  %v14351_v62 = vunpack.i.l.bf16 %v14350_v15 }
0x11f5   : > { %v17759_v20 = vpop.permute.xlu1 %14334 }
0x11f6   : > { %v7487_v63 = vsel %vm463_vm2, %v14331_v18, %v14351_v62  ;;  %v7488_v58 = vsel %vm463_vm2, %v14332_v10, %v14352_v6  ;;  %14494 = vrot.lane.b32.xlu2 %v17689_v34, %s19912_s27  ;;  %14539 = vrot.lane.b32.xlu1 %v17659_v35, %s19914_s28  ;;  %v14337_v38 = vunpack.i.h.bf16 %v17759_v20  ;;  %v14336_v12 = vunpack.i.l.bf16 %v17759_v20 }
0x11f7   : > { %v7497_v55 = vpack.c.bf16 %v7488_v58, %v7487_v63 }
0x11f9   : > { %14549 = vrot.lane.b32.xlu0 %v14368_v11, %s19914_s28  ;;  %7509 = vmatpush.bf16.msra.mxu2 %v7497_v55 }
0x11fb   : > { %v17783_v37 = vpop.permute.xlu2 %14354 }
0x11fc   : > { %v14357_v28 = vunpack.i.h.bf16 %v17783_v37  ;;  %v14356_v50 = vunpack.i.l.bf16 %v17783_v37 }
0x11fd   : > { %v14340_v35 = vpop.permute.xlu1 %14339 }
0x11fe   : > { %14504 = vrot.lane.b32.xlu2 %v14368_v11, %s19912_s27  ;;  %8203 = vperm.xlu1 %13465, %v8200_v60   ;;  %v14342_v44 = vunpack.i.h.bf16 %v14340_v35  ;;  %v14341_v39 = vunpack.i.l.bf16 %v14340_v35  ;;  %v7614_v31 = vsel %vm581_vm4, %v14336_v12, %v14356_v50  ;;  %v7615_v45 = vsel %vm581_vm4, %v14337_v38, %v14357_v28 }
0x11ff   : > { %v7624_v9 = vpack.c.bf16 %v7615_v45, %v7614_v31  ;;  %v7620_v45 = vld [vmem:[%s19831_s1 + $0x4ac] sm:$0xf] }
0x1200   : > { %v7485_v14 = vsel %vm463_vm2, %v14321_v13, %v14341_v39  ;;  %v7486_v4 = vsel %vm463_vm2, %v14322_v26, %v14342_v44 }
0x1201   : > { %14554 = vrot.lane.b32.xlu0 %v17689_v34, %s19914_s28  ;;  %v7494_v54 = vpack.c.bf16 %v7486_v4, %v7485_v14  ;;  %v14326_v34 = vunpack.i.l.bf16 %v17791_v24 }
0x1203   : > { %7510 = vmatpush.bf16.msra.mxu2 %v7494_v54 }
0x1205   : > { %v17799_v23 = vpop.permute.xlu1 %14344 }
0x1206   : > { %14519 = vrot.lane.b32.xlu2 %v17665_v7, %s19913_s16  ;;  %12294 = vmatmul.msk.bf16.vlgmr.msra.gmra.mxu2 %vm1899_vm11, %v7493_v61  ;;  %v14347_v40 = vunpack.i.h.bf16 %v17799_v23  ;;  %v14346_v22 = vunpack.i.l.bf16 %v17799_v23 }
0x1208   : > { %v14370_v5 = vpop.permute.xlu2 %14369 }
0x1209   : > { %v14372_v48 = vunpack.i.h.bf16 %v14370_v5  ;;  %v14371_v16 = vunpack.i.l.bf16 %v14370_v5 }
0x120b   : > { %v7483_v43 = vsel %vm463_vm2, %v14351_v62, %v14371_v16  ;;  %v7484_v52 = vsel %vm463_vm2, %v14352_v6, %v14372_v48  ;;  %v7491_v32 = vsel %vm463_vm2, %v14371_v16, %v14331_v18  ;;  %v7492_v49 = vsel %vm463_vm2, %v14372_v48, %v14332_v10  ;;  %v17809_v7 = vpop.permute.xlu0 %14359 }
0x120c   : > { %v7498_v21 = vpack.c.bf16 %v7484_v52, %v7483_v43  ;;  %v7499_v30 = vpack.c.bf16 %v7492_v49, %v7491_v32  ;;  %v7613_v18 = vsel %vm581_vm4, %v14327_v3, %v14347_v40  ;;  %v14362_v6 = vunpack.i.h.bf16 %v17809_v7 }
0x120d   : > { %v14361_v62 = vunpack.i.l.bf16 %v17809_v7 }
0x120e   : > { %14534 = vrot.lane.b32.xlu2 %v17677_v1, %s19914_s28  ;;  %7522 = vmatpush.bf16.msrb.mxu2 %v7498_v21 }
0x120f   : > { %7535 = vmatpush.bf16.msra.mxu3 %v7499_v30 }
0x1210   : > { %v17813_v33 = vpop.permute.xlu2 %14374  ;;  %v17815_v42 = vpop.permute.xlu1 %14384 }
0x1211   : > { %v14387_v14 = vunpack.i.h.bf16 %v17815_v42  ;;  %v14386_v4 = vunpack.i.l.bf16 %v17815_v42  ;;  %v14376_v8 = vunpack.i.l.bf16 %v17813_v33  ;;  %v14377_v52 = vunpack.i.h.bf16 %v17813_v33 }
0x1213   : > { %v14365_v36 = vpop.permute.xlu0 %14364  ;;  %v7617_v37 = vsel %vm581_vm4, %v14377_v52, %v14327_v3 }
0x1214   : > { %v14367_v1 = vunpack.i.h.bf16 %v14365_v36  ;;  %v14366_v29 = vunpack.i.l.bf16 %v14365_v36  ;;  %v7608_v36 = vsel %vm581_vm4, %v14346_v22, %v14376_v8 }
0x1216   : > { %14544 = vrot.lane.b32.xlu2 %v17671_v2, %s19914_s28  ;;  %v7481_v59 = vsel %vm463_vm2, %v14341_v39, %v14366_v29  ;;  %v7482_v17 = vsel %vm463_vm2, %v14342_v44, %v14367_v1  ;;  %v7489_v51 = vsel %vm463_vm2, %v14366_v29, %v14321_v13  ;;  %v7490_v41 = vsel %vm463_vm2, %v14367_v1, %v14322_v26 }
0x1217   : > { %v7495_v56 = vpack.c.bf16 %v7482_v17, %v7481_v59  ;;  %v7496_v11 = vpack.c.bf16 %v7490_v41, %v7489_v51  ;;  %v7612_v2 = vsel %vm581_vm4, %v14326_v34, %v14346_v22  ;;  %v7609_v22 = vsel %vm581_vm4, %v14347_v40, %v14377_v52 }
0x1218   : > { %v17847_v15 = vpop.permute.xlu2 %14389  ;;  %v17849_v10 = vpop.permute.xlu1 %14399  ;;  %v7621_v35 = vpack.c.bf16 %v7613_v18, %v7612_v2  ;;  %v7616_v51 = vsel %vm581_vm4, %v14376_v8, %v14326_v34  ;;  %v7622_v2 = vpack.c.bf16 %v7609_v22, %v7608_v36 }
0x1219   : > { %v14392_v63 = vunpack.i.h.bf16 %v17847_v15  ;;  %v14391_v58 = vunpack.i.l.bf16 %v17847_v15  ;;  %7523 = vmatpush.bf16.msrb.mxu2 %v7495_v56  ;;  %7536 = vmatpush.bf16.msra.mxu3 %v7496_v11  ;;  %v14402_v59 = vunpack.i.h.bf16 %v17849_v10  ;;  %v14401_v17 = vunpack.i.l.bf16 %v17849_v10 }
0x121a   : > { %v7623_v18 = vpack.c.bf16 %v7617_v37, %v7616_v51 }
0x121b   : > { %v7703_v55 = vsel %vm649_vm3, %v14392_v63, %v14362_v6  ;;  %v7702_v47 = vsel %vm649_vm3, %v14391_v58, %v14361_v62  ;;  %v14380_v60 = vpop.permute.xlu0 %14379 }
0x121c   : > { %12295 = vmatmul.msk.bf16.vlgmr.msrb.gmra.mxu2 %vm1899_vm11, %v7493_v61  ;;  %12296 = vmatmul.msk.bf16.vlgmr.msra.gmra.mxu3 %vm1899_vm11, %v7493_v61  ;;  %v7712_v26 = vpack.c.bf16 %v7703_v55, %v7702_v47  ;;  %v14381_v13 = vunpack.i.l.bf16 %v14380_v60 }
0x121d   : > { %7577 = vmatpush.bf16.msra.mxu2 %v7456_v19  ;;  %7636 = vmatpush.bf16.msrb.mxu3 %v7624_v9  ;;  %v14382_v19 = vunpack.i.h.bf16 %v14380_v60 }
0x121e   : > { %v7696_v16 = vsel %vm649_vm3, %v14381_v13, %v14386_v4 }
0x121f   : > { %v7697_v43 = vsel %vm649_vm3, %v14382_v19, %v14387_v14 }
0x1220   : > { %v17883_v27 = vpop.permute.xlu2 %14404  ;;  %v14415_v53 = vpop.permute.xlu1 %14414  ;;  %v7710_v42 = vpack.c.bf16 %v7697_v43, %v7696_v16 }
0x1221   : > { %7578 = vmatpush.bf16.msra.mxu2 %v7453_v57  ;;  %7637 = vmatpush.bf16.msrb.mxu3 %v7621_v35  ;;  %v14417_v44 = vunpack.i.h.bf16 %v14415_v53  ;;  %v14416_v39 = vunpack.i.l.bf16 %v14415_v53  ;;  %v14407_v1 = vunpack.i.h.bf16 %v17883_v27  ;;  %v14406_v33 = vunpack.i.l.bf16 %v17883_v27 }
0x1223   : > { %v7699_v54 = vsel %vm649_vm3, %v14362_v6, %v14417_v44  ;;  %v14395_v61 = vpop.permute.xlu0 %14394  ;;  %v7698_v0 = vsel %vm649_vm3, %v14361_v62, %v14416_v39  ;;  %v7790_v20 = vsel %vm717_vm6, %v14401_v17, %v14406_v33  ;;  %v7706_v24 = vsel %vm649_vm3, %v14416_v39, %v14391_v58 }
0x1224   : > { %v14397_v57 = vunpack.i.h.bf16 %v14395_v61  ;;  %v7713_v5 = vpack.c.bf16 %v7699_v54, %v7698_v0  ;;  %v14396_v48 = vunpack.i.l.bf16 %v14395_v61 }
0x1225   : > { %7724 = vmatpush.bf16.msrb.mxu2 %v7712_v26 }
0x1226   : > { %v7701_v32 = vsel %vm649_vm3, %v14397_v57, %v14382_v19  ;;  %7737 = vmatpush.bf16.msra.mxu3 %v7713_v5  ;;  %v7700_v49 = vsel %vm649_vm3, %v14396_v48, %v14381_v13  ;;  %v7704_v15 = vsel %vm649_vm3, %v14386_v4, %v14396_v48  ;;  %v7705_v58 = vsel %vm649_vm3, %v14387_v14, %v14397_v57 }
0x1227   : > { %v7709_v30 = vpack.c.bf16 %v7701_v32, %v7700_v49  ;;  %v7711_v53 = vpack.c.bf16 %v7705_v58, %v7704_v15 }
0x1228   : > { %v14410_v7 = vpop.permute.xlu2 %14409  ;;  %v17901_v21 = vpop.permute.xlu1 %14419 }
0x1229   : > { %v14412_v29 = vunpack.i.h.bf16 %v14410_v7  ;;  %v14411_v31 = vunpack.i.l.bf16 %v14410_v7  ;;  %7725 = vmatpush.bf16.msrb.mxu2 %v7709_v30  ;;  %v14422_v6 = vunpack.i.h.bf16 %v17901_v21  ;;  %v14421_v62 = vunpack.i.l.bf16 %v17901_v21 }
0x122a   : > { %7738 = vmatpush.bf16.msra.mxu3 %v7710_v42 }
0x122b   : > { %v7611_v41 = vsel %vm581_vm4, %v14357_v28, %v14412_v29  ;;  %v7610_v56 = vsel %vm581_vm4, %v14356_v50, %v14411_v31  ;;  %v7618_v23 = vsel %vm581_vm4, %v14411_v31, %v14336_v12  ;;  %v7619_v40 = vsel %vm581_vm4, %v14412_v29, %v14337_v38  ;;  %v17938_v34 = vpop.permute.xlu0 %14429 }
0x122c   : > { %v7625_v11 = vpack.c.bf16 %v7611_v41, %v7610_v56  ;;  %v7626_v28 = vpack.c.bf16 %v7619_v40, %v7618_v23  ;;  %12299 = vmatmul.msk.bf16.vlgmr.msra.gmra.mxu2 %vm1899_vm11, %v17776_v25  ;;  %12300 = vmatmul.msk.bf16.vlgmr.msrb.gmra.mxu3 %vm1899_vm11, %v7620_v45  ;;  %v7791_v50 = vsel %vm717_vm6, %v14402_v59, %v14407_v1  ;;  %v14432_v39 = vunpack.i.h.bf16 %v17938_v34 }
0x122d   : > { %v7707_v25 = vsel %vm649_vm3, %v14417_v44, %v14392_v63  ;;  %v7800_v38 = vpack.c.bf16 %v7791_v50, %v7790_v20  ;;  %v7708_v44 = vld [vmem:[%s19831_s1 + $0x4b0] sm:$0xf]  ;;  %v14431_v14 = vunpack.i.l.bf16 %v17938_v34 }
0x122e   : > { %7649 = vmatpush.bf16.msra.mxu0 %v7625_v11  ;;  %7662 = vmatpush.bf16.msra.mxu1 %v7626_v28  ;;  %v7714_v12 = vpack.c.bf16 %v7707_v25, %v7706_v24  ;;  %v7793_v49 = vsel %vm717_vm6, %v14432_v39, %v14422_v6 }
0x122f   : > { %v7792_v32 = vsel %vm717_vm6, %v14431_v14, %v14421_v62 }
0x1230   : > { %v14425_v3 = vpop.permute.xlu2 %14424  ;;  %v17965_v9 = vpop.permute.xlu1 %14434  ;;  %v7799_v23 = vpack.c.bf16 %v7793_v49, %v7792_v32 }
0x1231   : > { %v14427_v55 = vunpack.i.h.bf16 %v14425_v3  ;;  %v14426_v63 = vunpack.i.l.bf16 %v14425_v3  ;;  %v14437_v27 = vunpack.i.h.bf16 %v17965_v9  ;;  %v14436_v7 = vunpack.i.l.bf16 %v17965_v9 }
0x1232   : > { %7650 = vmatpush.bf16.msra.mxu0 %v7622_v2  ;;  %7663 = vmatpush.bf16.msra.mxu1 %v7623_v18 }
0x1233   : > { %v17973_v47 = vpop.permute.xlu0 %14439  ;;  %v7788_v60 = vsel %vm717_vm6, %v14421_v62, %v14426_v63  ;;  %v7789_v35 = vsel %vm717_vm6, %v14422_v6, %v14427_v55  ;;  %v7785_v29 = vsel %vm717_vm6, %v14427_v55, %v14432_v39 }
0x1234   : > { %v7797_v26 = vpack.c.bf16 %v7789_v35, %v7788_v60  ;;  %v14442_v21 = vunpack.i.h.bf16 %v17973_v47  ;;  %v14441_v30 = vunpack.i.l.bf16 %v17973_v47 }
0x1235   : > { %12301 = vmatmul.msk.bf16.vlgmr.msra.gmra.mxu0 %vm1899_vm11, %v7620_v45  ;;  %12302 = vmatmul.msk.bf16.vlgmr.msra.gmra.mxu1 %vm1899_vm11, %v7620_v45 }
0x1236   : > { %7750 = vmatpush.bf16.msrb.mxu0 %v7714_v12  ;;  %7812 = vmatpush.bf16.msrb.mxu1 %v7800_v38 }
0x1238   : > { %v17981_v19 = vpop.permute.xlu2 %14449  ;;  %v17983_v13 = vpop.permute.xlu1 %14444 }
0x1239   : > { %v14447_v8 = vunpack.i.h.bf16 %v17983_v13  ;;  %v14446_v0 = vunpack.i.l.bf16 %v17983_v13  ;;  %v14452_v28 = vunpack.i.h.bf16 %v17981_v19  ;;  %v14451_v37 = vunpack.i.l.bf16 %v17981_v19 }
0x123a   : > { %7751 = vmatpush.bf16.msrb.mxu0 %v7711_v53  ;;  %7813 = vmatpush.bf16.msrb.mxu1 %v7797_v26 }
0x123b   : > { %v14455_v4 = vpop.permute.xlu0 %14454  ;;  %v7967_v31 = vsel %vm853_vm7, %v14442_v21, %v14447_v8  ;;  %v7966_v45 = vsel %vm853_vm7, %v14441_v30, %v14446_v0 }
0x123c   : > { %v14457_v54 = vunpack.i.h.bf16 %v14455_v4  ;;  %v14456_v61 = vunpack.i.l.bf16 %v14455_v4  ;;  %12303 = vmatmul.msk.bf16.vlgmr.msrb.gmra.mxu2 %vm1899_vm11, %v7708_v44  ;;  %12304 = vmatmul.msk.bf16.vlgmr.msra.gmra.mxu3 %vm1899_vm11, %v7708_v44  ;;  %v7976_v40 = vpack.c.bf16 %v7967_v31, %v7966_v45 }
0x123e   : > { %v7786_v57 = vsel %vm717_vm6, %v14406_v33, %v14456_v61  ;;  %v7787_v5 = vsel %vm717_vm6, %v14407_v1, %v14457_v54  ;;  %v7794_v48 = vsel %vm717_vm6, %v14456_v61, %v14401_v17  ;;  %v7795_v16 = vsel %vm717_vm6, %v14457_v54, %v14402_v59  ;;  %v7796_v59 = vld [vmem:[%s19831_s1 + $0x4b4] sm:$0xf] }
0x123f   : > { %v7801_v43 = vpack.c.bf16 %v7787_v5, %v7786_v57  ;;  %v7802_v52 = vpack.c.bf16 %v7795_v16, %v7794_v48  ;;  %v7784_v33 = vsel %vm717_vm6, %v14426_v63, %v14431_v14 }
0x1240   : > { %v18016_v10 = vpop.permute.xlu2 %14469  ;;  %v14465_v42 = vpop.permute.xlu1 %14464  ;;  %v7798_v56 = vpack.c.bf16 %v7785_v29, %v7784_v33 }
0x1241   : > { %v14467_v36 = vunpack.i.h.bf16 %v14465_v42  ;;  %v14466_v1 = vunpack.i.l.bf16 %v14465_v42  ;;  %7825 = vmatpush.bf16.msra.mxu2 %v7801_v43  ;;  %7838 = vmatpush.bf16.msrb.mxu3 %v7802_v52  ;;  %v14472_v3 = vunpack.i.h.bf16 %v18016_v10  ;;  %v14471_v9 = vunpack.i.l.bf16 %v18016_v10  ;;  %v7884_v43 = vld [vmem:[%s19831_s1 + $0x4b8] sm:$0xf] }
0x1243   : > { %v7878_v17 = vsel %vm785_vm5, %v14466_v1, %v14436_v7  ;;  %v7879_v22 = vsel %vm785_vm5, %v14467_v36, %v14437_v27  ;;  %v14460_v51 = vpop.permute.xlu0 %14459 }
0x1244   : > { %v7888_v41 = vpack.c.bf16 %v7879_v22, %v7878_v17  ;;  %v14462_v34 = vunpack.i.h.bf16 %v14460_v51  ;;  %v14461_v11 = vunpack.i.l.bf16 %v14460_v51  ;;  %v7972_v22 = vld [vmem:[%s19831_s1 + $0x4bc] sm:$0xf] }
0x1245   : > { %12305 = vmatmul.msk.bf16.vlgmr.msrb.gmra.mxu0 %vm1899_vm11, %v7708_v44  ;;  %12306 = vmatmul.msk.bf16.vlgmr.msrb.gmra.mxu1 %vm1899_vm11, %v7796_v59 }
0x1246   : > { %7826 = vmatpush.bf16.msra.mxu2 %v7798_v56  ;;  %7839 = vmatpush.bf16.msrb.mxu3 %v7799_v23  ;;  %v7872_v2 = vsel %vm785_vm5, %v14451_v37, %v14461_v11  ;;  %v7873_v18 = vsel %vm785_vm5, %v14452_v28, %v14462_v34 }
0x1247   : > { %7900 = vmatpush.bf16.msra.mxu0 %v7888_v41  ;;  %v7886_v5 = vpack.c.bf16 %v7873_v18, %v7872_v2 }
0x1248   : > { %v14490_v20 = vpop.permute.xlu2 %14489  ;;  %v14480_v50 = vpop.permute.xlu1 %14479 }
0x1249   : > { %v14492_v25 = vunpack.i.h.bf16 %v14490_v20  ;;  %v14491_v24 = vunpack.i.l.bf16 %v14490_v20  ;;  %v14482_v38 = vunpack.i.h.bf16 %v14480_v50  ;;  %v14481_v12 = vunpack.i.l.bf16 %v14480_v50 }
0x124a   : > { %7988 = vmatpush.bf16.msra.mxu3 %v7976_v40 }
0x124b   : > { %v7874_v6 = vsel %vm785_vm5, %v14436_v7, %v14491_v24  ;;  %v7875_v62 = vsel %vm785_vm5, %v14437_v27, %v14492_v25  ;;  %v7882_v55 = vsel %vm785_vm5, %v14491_v24, %v14466_v1  ;;  %v7883_v63 = vsel %vm785_vm5, %v14492_v25, %v14467_v36  ;;  %v14475_v15 = vpop.permute.xlu0 %14474 }
0x124c   : > { %v7889_v58 = vpack.c.bf16 %v7875_v62, %v7874_v6  ;;  %v7890_v60 = vpack.c.bf16 %v7883_v63, %v7882_v55  ;;  %v14477_v35 = vunpack.i.h.bf16 %v14475_v15  ;;  %v14476_v26 = vunpack.i.l.bf16 %v14475_v15  ;;  %12307 = vmatmul.msk.bf16.vlgmr.msra.gmra.mxu2 %vm1899_vm11, %v7796_v59  ;;  %12308 = vmatmul.msk.bf16.vlgmr.msrb.gmra.mxu3 %vm1899_vm11, %v7796_v59 }
0x124d   : > { %v7876_v53 = vsel %vm785_vm5, %v14481_v12, %v14451_v37  ;;  %v7877_v19 = vsel %vm785_vm5, %v14482_v38, %v14452_v28  ;;  %v7880_v44 = vsel %vm785_vm5, %v14461_v11, %v14481_v12  ;;  %v7881_v39 = vsel %vm785_vm5, %v14462_v34, %v14482_v38 }
0x124e   : > { %v7885_v14 = vpack.c.bf16 %v7877_v19, %v7876_v53  ;;  %7913 = vmatpush.bf16.msra.mxu1 %v7889_v58  ;;  %7926 = vmatpush.bf16.msrb.mxu2 %v7890_v60  ;;  %v7964_v4 = vsel %vm853_vm7, %v14471_v9, %v14476_v26  ;;  %v7965_v54 = vsel %vm853_vm7, %v14472_v3, %v14477_v35 }
0x124f   : > { %v7887_v48 = vpack.c.bf16 %v7881_v39, %v7880_v44  ;;  %v7973_v16 = vpack.c.bf16 %v7965_v54, %v7964_v4 }
0x1250   : > { %7901 = vmatpush.bf16.msra.mxu0 %v7885_v14  ;;  %v14495_v61 = vpop.permute.xlu2 %14494  ;;  %v14510_v57 = vpop.permute.xlu1 %14509 }
0x1251   : > { %7989 = vmatpush.bf16.msra.mxu3 %v7973_v16  ;;  %v14512_v32 = vunpack.i.h.bf16 %v14510_v57  ;;  %v14511_v49 = vunpack.i.l.bf16 %v14510_v57  ;;  %v14497_v31 = vunpack.i.h.bf16 %v14495_v61  ;;  %v14496_v45 = vunpack.i.l.bf16 %v14495_v61 }
0x1252   : > { %7914 = vmatpush.bf16.msra.mxu1 %v7886_v5  ;;  %7927 = vmatpush.bf16.msrb.mxu2 %v7887_v48  ;;  %v8060_v5 = vld [vmem:[%s19831_s1 + $0x4c0] sm:$0xf] }
0x1253   : > { %v14485_v52 = vpop.permute.xlu0 %14484  ;;  %v7960_v13 = vsel %vm853_vm7, %v14476_v26, %v14496_v45  ;;  %v7968_v47 = vsel %vm853_vm7, %v14496_v45, %v14471_v9 }
0x1254   : > { %v14487_v27 = vunpack.i.h.bf16 %v14485_v52  ;;  %v14486_v7 = vunpack.i.l.bf16 %v14485_v52 }
0x1255   : > { %12309 = vmatmul.msk.bf16.vlgmr.msra.gmra.mxu0 %vm1899_vm11, %v7884_v43  ;;  %12310 = vmatmul.msk.bf16.vlgmr.msra.gmra.mxu1 %vm1899_vm11, %v7884_v43 }
0x1256   : > { %v8050_v42 = vsel %vm921_vm8, %v14486_v7, %v14511_v49  ;;  %v8051_v36 = vsel %vm921_vm8, %v14487_v27, %v14512_v32 }
0x1257   : > { %v8065_v1 = vpack.c.bf16 %v8051_v36, %v8050_v42 }
0x1258   : > { %v14505_v33 = vpop.permute.xlu2 %14504  ;;  %v14515_v29 = vpop.permute.xlu1 %14514 }
0x1259   : > { %v14507_v59 = vunpack.i.h.bf16 %v14505_v33  ;;  %v14506_v17 = vunpack.i.l.bf16 %v14505_v33  ;;  %8089 = vmatpush.bf16.msrb.mxu3 %v8065_v1  ;;  %v14517_v51 = vunpack.i.h.bf16 %v14515_v29  ;;  %v14516_v41 = vunpack.i.l.bf16 %v14515_v29 }
0x125b   : > { %v7971_v56 = vsel %vm853_vm7, %v14507_v59, %v14442_v21  ;;  %v7962_v23 = vsel %vm853_vm7, %v14446_v0, %v14506_v17  ;;  %v7963_v40 = vsel %vm853_vm7, %v14447_v8, %v14507_v59  ;;  %v7970_v34 = vsel %vm853_vm7, %v14506_v17, %v14441_v30  ;;  %v14500_v11 = vpop.permute.xlu0 %14499 }
0x125c   : > { %v7977_v28 = vpack.c.bf16 %v7963_v40, %v7962_v23  ;;  %v7978_v37 = vpack.c.bf16 %v7971_v56, %v7970_v34  ;;  %v14502_v20 = vunpack.i.h.bf16 %v14500_v11  ;;  %v14501_v21 = vunpack.i.l.bf16 %v14500_v11  ;;  %12311 = vmatmul.msk.bf16.vlgmr.msrb.gmra.mxu2 %vm1899_vm11, %v7884_v43  ;;  %12312 = vmatmul.msk.bf16.vlgmr.msra.gmra.mxu3 %vm1899_vm11, %v7972_v22  ;;  %v8148_v11 = vld [vmem:[%s19831_s1 + $0x4c4] sm:$0xf] }
0x125d   : > { %v7961_v8 = vsel %vm853_vm7, %v14477_v35, %v14497_v31  ;;  %v7969_v0 = vsel %vm853_vm7, %v14497_v31, %v14472_v3 }
0x125e   : > { %8001 = vmatpush.bf16.msrb.mxu0 %v7977_v28  ;;  %8014 = vmatpush.bf16.msrb.mxu1 %v7978_v37  ;;  %v8048_v30 = vsel %vm921_vm8, %v14501_v21, %v14516_v41  ;;  %v8049_v50 = vsel %vm921_vm8, %v14502_v20, %v14517_v51  ;;  %v7974_v38 = vpack.c.bf16 %v7961_v8, %v7960_v13 }
0x125f   : > { %v8062_v25 = vpack.c.bf16 %v8049_v50, %v8048_v30  ;;  %v7975_v12 = vpack.c.bf16 %v7969_v0, %v7968_v47  ;;  %v7554_v47 = vpop.f32.mrf.mxu0  ;;  %v7567_v0 = vpop.f32.mrf.mxu1 }
0x1260   : > { %v14520_v24 = vpop.permute.xlu2 %14519  ;;  %v14530_v15 = vpop.permute.xlu1 %14529 }
0x1261   : > { %v14522_v2 = vunpack.i.h.bf16 %v14520_v24  ;;  %v14521_v18 = vunpack.i.l.bf16 %v14520_v24  ;;  %8090 = vmatpush.bf16.msrb.mxu3 %v8062_v25  ;;  %v14532_v4 = vunpack.i.h.bf16 %v14530_v15  ;;  %v14531_v54 = vunpack.i.l.bf16 %v14530_v15  ;;  %v12383_v15 = vld [vmem:[%s19841_s11 + $0x78] sm:$0xf] }
0x1262   : > { %8002 = vmatpush.bf16.msrb.mxu0 %v7974_v38  ;;  %8015 = vmatpush.bf16.msrb.mxu1 %v7975_v12 }
0x1263   : > { %v8055_v10 = vsel %vm921_vm8, %v14522_v2, %v14487_v27  ;;  %v8054_v3 = vsel %vm921_vm8, %v14521_v18, %v14486_v7  ;;  %v8058_v9 = vsel %vm921_vm8, %v14511_v49, %v14521_v18  ;;  %v8059_v6 = vsel %vm921_vm8, %v14512_v32, %v14522_v2  ;;  %v14525_v62 = vpop.permute.xlu0 %14524 }
0x1264   : > { %v8064_v55 = vpack.c.bf16 %v8055_v10, %v8054_v3  ;;  %v8066_v63 = vpack.c.bf16 %v8059_v6, %v8058_v9  ;;  %v14527_v58 = vunpack.i.h.bf16 %v14525_v62  ;;  %v14526_v60 = vunpack.i.l.bf16 %v14525_v62  ;;  %v12407_v10 = vld [vmem:[%s19841_s11 + $0xa8] sm:$0xf]  ;;  %v13272_v3 = vld [vmem:[%s19841_s11 + $0xb0] sm:$0xf0] }
0x1265   : > { %12313 = vmatmul.msk.bf16.vlgmr.msrb.gmra.mxu0 %vm1899_vm11, %v7972_v22  ;;  %12314 = vmatmul.msk.bf16.vlgmr.msrb.gmra.mxu1 %vm1899_vm11, %v7972_v22  ;;  %v12408_v9 = vor.u32 %v13272_v3, %v12407_v10  ;;  %v13251_v10 = vld [vmem:[%s19841_s11 + $0x8] sm:$0xf0] }
0x1266   : > { %8076 = vmatpush.bf16.msra.mxu2 %v8064_v55  ;;  %8102 = vmatpush.bf16.msra.mxu0 %v8066_v63  ;;  %v8052_v35 = vsel %vm921_vm8, %v14526_v60, %v14501_v21  ;;  %v8053_v26 = vsel %vm921_vm8, %v14527_v58, %v14502_v20  ;;  %v8056_v53 = vsel %vm921_vm8, %v14516_v41, %v14526_v60  ;;  %v12395_v55 = vld [vmem:[%s19841_s11 + $0x90] sm:$0xf]  ;;  %v13269_v63 = vld [vmem:[%s19841_s11 + $0x98] sm:$0xf0]  ;;  %v13266_v60 = vld [vmem:[%s19841_s11 + $0x80] sm:$0xf0] }
0x1267   : > { %v8061_v19 = vpack.c.bf16 %v8053_v26, %v8052_v35  ;;  %v8057_v44 = vsel %vm921_vm8, %v14517_v51, %v14527_v58  ;;  %v7556_v30 = vpop.f32.mrf.mxu0  ;;  %v7569_v50 = vpop.f32.mrf.mxu1  ;;  %v12396_v58 = vor.u32 %v13269_v63, %v12395_v55  ;;  %v12384_v35 = vor.u32 %v13266_v60, %v12383_v15  ;;  %v13295_v55 = vld [vmem:[%s19841_s11 + $0x16c] sm:$0xf]  ;;  %v12505_v15 = vld [vmem:[%s19841_s11 + $0x174] sm:$0xf0]  ;;  %v13290_v60 = vld [vmem:[%s19841_s11 + $0x140] sm:$0xf0] }
0x1268   : > { %v14535_v39 = vpop.permute.xlu2 %14534  ;;  %v8063_v14 = vpack.c.bf16 %v8057_v44, %v8056_v53  ;;  %v14540_v27 = vpop.permute.xlu1 %14539  ;;  %v12491_v50 = vld [vmem:[%s19841_s11 + $0x150] sm:$0xf] }
0x1269   : > { %v14537_v61 = vunpack.i.h.bf16 %v14535_v39  ;;  %v14536_v57 = vunpack.i.l.bf16 %v14535_v39  ;;  %v14542_v45 = vunpack.i.h.bf16 %v14540_v27  ;;  %v14541_v59 = vunpack.i.l.bf16 %v14540_v27 }
0x126a   : > { %8077 = vmatpush.bf16.msra.mxu2 %v8061_v19  ;;  %8103 = vmatpush.bf16.msra.mxu0 %v8063_v14 }
0x126b   : > { %v8142_v48 = vsel %vm19885_vm9, %v14531_v54, %v14536_v57  ;;  %v8143_v16 = vsel %vm19885_vm9, %v14532_v4, %v14537_v61  ;;  %v14550_v43 = vpop.permute.xlu0 %14549 }
0x126c   : > { %v8152_v52 = vpack.c.bf16 %v8143_v16, %v8142_v48  ;;  %v14552_v32 = vunpack.i.h.bf16 %v14550_v43  ;;  %v14551_v49 = vunpack.i.l.bf16 %v14550_v43  ;;  %12316 = vmatmul.msk.bf16.vlgmr.msrb.gmra.mxu3 %vm1899_vm11, %v8060_v5  ;;  %v12409_v48 = vld [vmem:[%s19841_s11 + $0xb4] sm:$0xf0]  ;;  %v12359_v16 = vld [vmem:[%s19841_s11 + $0x48] sm:$0xf]  ;;  %v13260_v43 = vld [vmem:[%s19841_s11 + $0x50] sm:$0xf0] }
0x126d   : > { %12315 = vmatmul.msk.bf16.vlgmr.msra.gmra.mxu2 %vm1899_vm11, %v8060_v5 }
0x126e   : > { %v8138_v7 = vsel %vm19885_vm9, %v14536_v57, %v14551_v49  ;;  %v8139_v42 = vsel %vm19885_vm9, %v14537_v61, %v14552_v32  ;;  %v8146_v36 = vsel %vm19885_vm9, %v14551_v49, %v14531_v54  ;;  %v8147_v1 = vsel %vm19885_vm9, %v14552_v32, %v14532_v4  ;;  %8164 = vmatpush.bf16.msra.mxu1 %v8152_v52  ;;  %v12371_v54 = vld [vmem:[%s19841_s11 + $0x60] sm:$0xf]  ;;  %v13263_v61 = vld [vmem:[%s19841_s11 + $0x68] sm:$0xf0] }
0x126f   : > { %v8153_v33 = vpack.c.bf16 %v8139_v42, %v8138_v7  ;;  %v8154_v29 = vpack.c.bf16 %v8147_v1, %v8146_v36  ;;  %8701 = vmatpush.bf16.msrb.mxu0 %v12408_v9  ;;  %v13271_v57 = vld [vmem:[%s19841_s11 + $0xac] sm:$0xf]  ;;  %v12360_v32 = vor.u32 %v13260_v43, %v12359_v16  ;;  %v13268_v7 = vld [vmem:[%s19841_s11 + $0x94] sm:$0xf]  ;;  %v12397_v42 = vld [vmem:[%s19841_s11 + $0x9c] sm:$0xf0] }
0x1270   : > { %v14545_v31 = vpop.permute.xlu2 %14544  ;;  %v12412_v52 = vor.u32 %v13271_v57, %v12409_v48  ;;  %v12400_v36 = vor.u32 %v13268_v7, %v12397_v42  ;;  %v13256_v57 = vld [vmem:[%s19841_s11 + $0x34] sm:$0xf]  ;;  %v12493_v43 = vld [vmem:[%s19841_s11 + $0x15c] sm:$0xf0]  ;;  %v13287_v7 = vld [vmem:[%s19841_s11 + $0x128] sm:$0xf0] }
0x1271   : > { %v14547_v17 = vunpack.i.h.bf16 %v14545_v31  ;;  %v14546_v22 = vunpack.i.l.bf16 %v14545_v31  ;;  %8177 = vmatpush.bf16.msrb.mxu2 %v8153_v33  ;;  %8190 = vmatpush.bf16.msra.mxu3 %v8154_v29  ;;  %v12347_v29 = vld [vmem:[%s19841_s11 + $0x30] sm:$0xf]  ;;  %v13257_v31 = vld [vmem:[%s19841_s11 + $0x38] sm:$0xf0]  ;;  %v13292_v48 = vld [vmem:[%s19841_s11 + $0x154] sm:$0xf] }
0x1272   : > { %v12563_v42 = vld [vmem:[%s19841_s11 + $0x1e0] sm:$0xf] }
0x1273   : > { %v14555_v51 = vpop.permute.xlu0 %14554  ;;  %v8140_v41 = vsel %vm19885_vm9, %v14541_v59, %v14546_v22  ;;  %v8141_v56 = vsel %vm19885_vm9, %v14542_v45, %v14547_v17  ;;  %8702 = vmatpush.bf16.msrb.mxu0 %v12396_v58  ;;  %v12479_v58 = vld [vmem:[%s19841_s11 + $0x138] sm:$0xf] }
0x1274   : > { %v14557_v23 = vunpack.i.h.bf16 %v14555_v51  ;;  %v14556_v40 = vunpack.i.l.bf16 %v14555_v51  ;;  %v8149_v34 = vpack.c.bf16 %v8141_v56, %v8140_v41  ;;  %v13296_v51 = vld [vmem:[%s19841_s11 + $0x170] sm:$0xf0] }
0x1275   : > { %12317 = vmatmul.msk.bf16.vlgmr.msra.gmra.mxu0 %vm1899_vm11, %v8060_v5  ;;  %v12372_v5 = vor.u32 %v13263_v61, %v12371_v54 }
0x1276   : > { %8165 = vmatpush.bf16.msra.mxu1 %v8149_v34  ;;  %v8136_v28 = vsel %vm19885_vm9, %v14546_v22, %v14556_v40  ;;  %v8137_v37 = vsel %vm19885_vm9, %v14547_v17, %v14557_v23  ;;  %v8144_v20 = vsel %vm19885_vm9, %v14556_v40, %v14541_v59  ;;  %v8145_v21 = vsel %vm19885_vm9, %v14557_v23, %v14542_v45  ;;  %v13265_v45 = vld [vmem:[%s19841_s11 + $0x7c] sm:$0xf]  ;;  %v12385_v17 = vld [vmem:[%s19841_s11 + $0x84] sm:$0xf0]  ;;  %v13320_v40 = vld [vmem:[%s19841_s11 + $0x230] sm:$0xf0] }
0x1277   : > { %v8150_v13 = vpack.c.bf16 %v8137_v37, %v8136_v28  ;;  %v8151_v8 = vpack.c.bf16 %v8145_v21, %v8144_v20  ;;  %8703 = vmatpush.bf16.msrb.mxu0 %v12384_v35  ;;  %v12348_v59 = vor.u32 %v13257_v31, %v12347_v29  ;;  %v12503_v22 = vld [vmem:[%s19841_s11 + $0x168] sm:$0xf]  ;;  %v12388_v41 = vor.u32 %v13265_v45, %v12385_v17  ;;  %v12335_v34 = vld [vmem:[%s19841_s11 + $0x18] sm:$0xf]  ;;  %v13254_v28 = vld [vmem:[%s19841_s11 + $0x20] sm:$0xf0] }
0x1278   : > { %v12504_v56 = vor.u32 %v13296_v51, %v12503_v22  ;;  %v12599_v23 = vld [vmem:[%s19841_s11 + $0x228] sm:$0xf]  ;;  %v12336_v37 = vor.u32 %v13254_v28, %v12335_v34  ;;  %v12508_v35 = vor.u32 %v13295_v55, %v12505_v15  ;;  %v13305_v55 = vld [vmem:[%s19841_s11 + $0x1b8] sm:$0xf0]  ;;  %v12457_v15 = vld [vmem:[%s19841_s11 + $0x114] sm:$0xf0] }
0x1279   : > { %12318 = vmatmul.msk.bf16.vlgmr.msra.gmra.mxu1 %vm1899_vm11, %v8148_v11  ;;  %8178 = vmatpush.bf16.msrb.mxu2 %v8150_v13  ;;  %v13262_v13 = vld [vmem:[%s19841_s11 + $0x64] sm:$0xf]  ;;  %v12337_v29 = vld [vmem:[%s19841_s11 + $0x24] sm:$0xf0] }
0x127a   : > { %8191 = vmatpush.bf16.msra.mxu3 %v8151_v8  ;;  %8714 = vmatpush.bf16.msrb.mxu1 %v12504_v56  ;;  %v12373_v8 = vld [vmem:[%s19841_s11 + $0x6c] sm:$0xf0]  ;;  %v12481_v17 = vld [vmem:[%s19841_s11 + $0x144] sm:$0xf0] }
0x127b   : > { %8704 = vmatpush.bf16.msrb.mxu0 %v12372_v5  ;;  %v12349_v5 = vld [vmem:[%s19841_s11 + $0x3c] sm:$0xf0]  ;;  %v12455_v22 = vld [vmem:[%s19841_s11 + $0x108] sm:$0xf] }
0x127c   : > { %v12352_v16 = vor.u32 %v13256_v57, %v12349_v5  ;;  %v12551_v56 = vld [vmem:[%s19841_s11 + $0x1c8] sm:$0xf] }
0x127d   : > { %12319 = vmatmul.msk.bf16.vlgmr.msrb.gmra.mxu2 %vm1899_vm11, %v8148_v11  ;;  %12320 = vmatmul.msk.bf16.vlgmr.msra.gmra.mxu3 %vm1899_vm11, %v8148_v11  ;;  %v12600_v11 = vor.u32 %v13320_v40, %v12599_v23  ;;  %v13308_v23 = vld [vmem:[%s19841_s11 + $0x1d0] sm:$0xf0] }
0x127e   : > { %8740 = vmatpush.bf16.msrb.mxu3 %v12412_v52  ;;  %v12496_v52 = vor.u32 %v13292_v48, %v12493_v43  ;;  %v12552_v34 = vor.u32 %v13308_v23, %v12551_v56  ;;  %v13302_v48 = vld [vmem:[%s19841_s11 + $0x1a0] sm:$0xf0]  ;;  %v13280_v43 = vld [vmem:[%s19841_s11 + $0xf4] sm:$0xf]  ;;  %v13273_v56 = vld [vmem:[%s19841_s11 + $0xb8] sm:$0xf0] }
0x127f   : > { %8705 = vmatpush.bf16.msrb.mxu0 %v12360_v32  ;;  %8727 = vmatpush.bf16.msra.mxu2 %v12600_v11  ;;  %v13277_v23 = vld [vmem:[%s19841_s11 + $0xdc] sm:$0xf] }
0x1282   : > { %8741 = vmatpush.bf16.msrb.mxu3 %v12400_v36 }
0x1283   : > { %8706 = vmatpush.bf16.msrb.mxu0 %v12348_v59  ;;  %v13289_v59 = vld [vmem:[%s19841_s11 + $0x13c] sm:$0xf] }
0x1284   : > { %v12484_v51 = vor.u32 %v13289_v59, %v12481_v17  ;;  %v13319_v59 = vld [vmem:[%s19841_s11 + $0x22c] sm:$0xf]  ;;  %v12601_v17 = vld [vmem:[%s19841_s11 + $0x234] sm:$0xf0] }
0x1286   : > { %8742 = vmatpush.bf16.msrb.mxu3 %v12388_v41  ;;  %v13284_v41 = vld [vmem:[%s19841_s11 + $0x110] sm:$0xf0] }
0x1287   : > { %8707 = vmatpush.bf16.msrb.mxu0 %v12336_v37  ;;  %v12456_v40 = vor.u32 %v13284_v41, %v12455_v22  ;;  %v13250_v37 = vld [vmem:[%s19841_s11 + $0x4] sm:$0xf]  ;;  %v12415_v41 = vld [vmem:[%s19841_s11 + $0xb0] sm:$0xf] }
0x1289   : > { %v7512_v25 = vpop.f32.mrf.mxu2 }
0x128a   : > { %v18177_v24 = vadd.f32 %v7554_v47, %v7512_v25  ;;  %v12376_v47 = vor.u32 %v13262_v13, %v12373_v8  ;;  %v13293_v25 = vld [vmem:[%s19841_s11 + $0x158] sm:$0xf0]  ;;  %v12325_v13 = vld [vmem:[%s19841_s11 + $0xc] sm:$0xf0]  ;;  %v13286_v8 = vld [vmem:[%s19841_s11 + $0x124] sm:$0xf] }
0x128c   : > { %8743 = vmatpush.bf16.msrb.mxu3 %v12376_v47  ;;  %v12328_v47 = vor.u32 %v13250_v37, %v12325_v13  ;;  %v12475_v37 = vld [vmem:[%s19841_s11 + $0x128] sm:$0xf]  ;;  %v13288_v13 = vld [vmem:[%s19841_s11 + $0x130] sm:$0xf0] }
0x1291   : > { %v7514_v38 = vpop.f32.mrf.mxu2 }
0x1292   : > { %v12587_v38 = vld [vmem:[%s19841_s11 + $0x210] sm:$0xf] }
0x129f   : > { %v7525_v12 = vpop.f32.mrf.mxu2  ;;  %v7538_v2 = vpop.f32.mrf.mxu3 }
0x12a0   : > { %v7568_v18 = vadd.f32 %v7567_v0, %v7525_v12  ;;  %v12492_v12 = vor.u32 %v13293_v25, %v12491_v50  ;;  %v12469_v50 = vld [vmem:[%s19841_s11 + $0x12c] sm:$0xf0] }
0x12a1   : > { %v12511_v25 = vld [vmem:[%s19841_s11 + $0x170] sm:$0xf] }
0x12a2   : > { %8715 = vmatpush.bf16.msrb.mxu1 %v12492_v12 }
0x12a7   : > { %v7527_v6 = vpop.f32.mrf.mxu2  ;;  %v7540_v62 = vpop.f32.mrf.mxu3 }
0x12a8   : > { %v13259_v6 = vld [vmem:[%s19841_s11 + $0x4c] sm:$0xf]  ;;  %v12361_v62 = vld [vmem:[%s19841_s11 + $0x54] sm:$0xf0] }
0x12a9   : > { %v12364_v63 = vor.u32 %v13259_v6, %v12361_v62  ;;  %v12539_v6 = vld [vmem:[%s19841_s11 + $0x1b0] sm:$0xf] }
0x12ab   : > { %8744 = vmatpush.bf16.msrb.mxu3 %v12364_v63  ;;  %v13283_v63 = vld [vmem:[%s19841_s11 + $0x10c] sm:$0xf] }
0x12af   : > { %v7580_v26 = vpop.f32.mrf.mxu2  ;;  %v18197_v53 = vpop.f32.mrf.mxu3  ;;  %8745 = vmatpush.bf16.msrb.mxu3 %v12352_v16 }
0x12b0   : > { %v7581_v19 = vadd.f32 %v7580_v26, %v7538_v2  ;;  %v13317_v2 = vld [vmem:[%s19841_s11 + $0x218] sm:$0xf0]  ;;  %v12480_v26 = vor.u32 %v13290_v60, %v12479_v58  ;;  %v12540_v58 = vor.u32 %v13305_v55, %v12539_v6  ;;  %v12460_v60 = vor.u32 %v13283_v63, %v12457_v15  ;;  %v12421_v55 = vld [vmem:[%s19841_s11 + $0xcc] sm:$0xf0] }
0x12b1   : > { %v12588_v3 = vor.u32 %v13317_v2, %v12587_v38  ;;  %v13297_v38 = vld [vmem:[%s19841_s11 + $0x178] sm:$0xf0]  ;;  %v12463_v15 = vld [vmem:[%s19841_s11 + $0x110] sm:$0xf] }
0x12b2   : > { %v7652_v44 = vpop.f32.mrf.mxu0  ;;  %v7665_v39 = vpop.f32.mrf.mxu1  ;;  %8716 = vmatpush.bf16.msrb.mxu1 %v12480_v26  ;;  %v13294_v26 = vld [vmem:[%s19841_s11 + $0x160] sm:$0xf0] }
0x12b3   : > { %v18199_v14 = vadd.f32 %v7652_v44, %v7568_v18  ;;  %v18201_v4 = vadd.f32 %v7665_v39, %v7581_v19  ;;  %v12323_v18 = vld [vmem:[%s19841_s11] sm:$0xf]  ;;  %8728 = vmatpush.bf16.msra.mxu2 %v12588_v3  ;;  %v12575_v19 = vld [vmem:[%s19841_s11 + $0x1f8] sm:$0xf]  ;;  %v13314_v44 = vld [vmem:[%s19841_s11 + $0x200] sm:$0xf0] }
0x12b4   : > { %v12324_v9 = vor.u32 %v13251_v10, %v12323_v18  ;;  %v12576_v61 = vor.u32 %v13314_v44, %v12575_v19  ;;  %v12472_v18 = vor.u32 %v13286_v8, %v12469_v50  ;;  %v12512_v10 = vor.u32 %v13297_v38, %v12511_v25  ;;  %v12443_v3 = vld [vmem:[%s19841_s11 + $0xf0] sm:$0xf]  ;;  %v12431_v44 = vld [vmem:[%s19841_s11 + $0xd8] sm:$0xf]  ;;  %v13316_v50 = vld [vmem:[%s19841_s11 + $0x214] sm:$0xf] }
0x12b5   : > { %v12589_v25 = vld [vmem:[%s19841_s11 + $0x21c] sm:$0xf0]  ;;  %v12403_v38 = vld [vmem:[%s19841_s11 + $0x98] sm:$0xf] }
0x12b6   : > { %8708 = vmatpush.bf16.msrb.mxu0 %v12324_v9  ;;  %v13281_v9 = vld [vmem:[%s19841_s11 + $0xf8] sm:$0xf0] }
0x12b7   : > { %v7582_v49 = vpop.f32.mrf.mxu2  ;;  %v7641_v27 = vpop.f32.mrf.mxu3  ;;  %8729 = vmatpush.bf16.msra.mxu2 %v12576_v61  ;;  %v12444_v62 = vor.u32 %v13281_v9, %v12443_v3  ;;  %v12592_v3 = vor.u32 %v13316_v50, %v12589_v25  ;;  %v13270_v9 = vld [vmem:[%s19841_s11 + $0xa0] sm:$0xf0] }
0x12b8   : > { %v12467_v27 = vld [vmem:[%s19841_s11 + $0x120] sm:$0xf]  ;;  %v12404_v6 = vor.u32 %v13270_v9, %v12403_v38 }
0x12b9   : > { %v12468_v36 = vor.u32 %v13287_v7, %v12467_v27  ;;  %v13291_v27 = vld [vmem:[%s19841_s11 + $0x148] sm:$0xf0] }
0x12ba   : > { %v7654_v1 = vpop.f32.mrf.mxu0  ;;  %v7667_v33 = vpop.f32.mrf.mxu1  ;;  %8753 = vmatpush.bf16.msra.mxu0 %v12508_v35  ;;  %v12499_v35 = vld [vmem:[%s19841_s11 + $0x158] sm:$0xf] }
0x12bb   : > { %v13311_v1 = vld [vmem:[%s19841_s11 + $0x1e8] sm:$0xf0]  ;;  %v13253_v33 = vld [vmem:[%s19841_s11 + $0x1c] sm:$0xf]  ;;  %8717 = vmatpush.bf16.msrb.mxu1 %v12468_v36  ;;  %v12500_v19 = vor.u32 %v13294_v26, %v12499_v35 }
0x12bc   : > { %v12564_v31 = vor.u32 %v13311_v1, %v12563_v42  ;;  %v12340_v45 = vor.u32 %v13253_v33, %v12337_v29  ;;  %v12419_v1 = vld [vmem:[%s19841_s11 + $0xc0] sm:$0xf]  ;;  %v13275_v33 = vld [vmem:[%s19841_s11 + $0xc8] sm:$0xf0] }
0x12bd   : > { %v12515_v29 = vld [vmem:[%s19841_s11 + $0x180] sm:$0xf] }
0x12be   : > { %8754 = vmatpush.bf16.msra.mxu0 %v12496_v52  ;;  %8730 = vmatpush.bf16.msra.mxu2 %v12564_v31  ;;  %v12445_v52 = vld [vmem:[%s19841_s11 + $0xfc] sm:$0xf0]  ;;  %v12420_v31 = vor.u32 %v13275_v33, %v12419_v1  ;;  %v13279_v1 = vld [vmem:[%s19841_s11 + $0xe8] sm:$0xf0]  ;;  %v7669_v33 = vadd.f32 %v18197_v53, %v18177_v24  ;;  %v13261_v53 = vld [vmem:[%s19841_s11 + $0x58] sm:$0xf0] }
0x12bf   : > { %v18257_v20 = vpop.f32.mrf.mxu2  ;;  %v18259_v21 = vpop.f32.mrf.mxu3  ;;  %8746 = vmatpush.bf16.msrb.mxu3 %v12340_v45  ;;  %8718 = vmatpush.bf16.msrb.mxu1 %v12456_v40  ;;  %v13299_v45 = vld [vmem:[%s19841_s11 + $0x188] sm:$0xf0]  ;;  %v12416_v40 = vor.u32 %v13273_v56, %v12415_v41  ;;  %v12427_v56 = vld [vmem:[%s19841_s11 + $0xc8] sm:$0xf] }
0x12c0   : > { %v12516_v22 = vor.u32 %v13299_v45, %v12515_v29  ;;  %v7757_v41 = vadd.f32 %v18257_v20, %v7669_v33  ;;  %v13304_v20 = vld [vmem:[%s19841_s11 + $0x1b4] sm:$0xf] }
0x12c2   : > { %v18267_v0 = vpop.f32.mrf.mxu0  ;;  %v18269_v30 = vpop.f32.mrf.mxu1  ;;  %8755 = vmatpush.bf16.msra.mxu0 %v12484_v51  ;;  %8731 = vmatpush.bf16.msra.mxu2 %v12552_v34  ;;  %v12604_v51 = vor.u32 %v13319_v59, %v12601_v17  ;;  %v12433_v34 = vld [vmem:[%s19841_s11 + $0xe4] sm:$0xf0]  ;;  %v13307_v17 = vld [vmem:[%s19841_s11 + $0x1cc] sm:$0xf] }
0x12c3   : > { %8747 = vmatpush.bf16.msrb.mxu3 %v12328_v47  ;;  %8719 = vmatpush.bf16.msrb.mxu1 %v12444_v62  ;;  %v12436_v8 = vor.u32 %v13277_v23, %v12433_v34  ;;  %v12476_v47 = vor.u32 %v13288_v13, %v12475_v37  ;;  %v13274_v62 = vld [vmem:[%s19841_s11 + $0xc4] sm:$0xf]  ;;  %v13276_v23 = vld [vmem:[%s19841_s11 + $0xd0] sm:$0xf0]  ;;  %v12541_v37 = vld [vmem:[%s19841_s11 + $0x1bc] sm:$0xf0]  ;;  %v7845_v50 = vadd.f32 %v18269_v30, %v7757_v41 }
0x12c4   : > { %v12424_v63 = vor.u32 %v13274_v62, %v12421_v55  ;;  %v12428_v34 = vor.u32 %v13276_v23, %v12427_v56  ;;  %v12355_v13 = vld [vmem:[%s19841_s11 + $0x38] sm:$0xf]  ;;  %v12529_v62 = vld [vmem:[%s19841_s11 + $0x1a4] sm:$0xf0]  ;;  %v12343_v55 = vld [vmem:[%s19841_s11 + $0x20] sm:$0xf] }
0x12c5   : > { %v12583_v41 = vld [vmem:[%s19841_s11 + $0x200] sm:$0xf] }
0x12c6   : > { %8756 = vmatpush.bf16.msra.mxu0 %v12472_v18  ;;  %8732 = vmatpush.bf16.msra.mxu2 %v12540_v58  ;;  %v13285_v58 = vld [vmem:[%s19841_s11 + $0x118] sm:$0xf0] }
0x12c7   : > { %v7729_v39 = vpop.f32.mrf.mxu2  ;;  %v7742_v54 = vpop.f32.mrf.mxu3  ;;  %8792 = vmatpush.bf16.msra.mxu3 %v12512_v10  ;;  %v12464_v26 = vor.u32 %v13285_v58, %v12463_v15  ;;  %v13255_v15 = vld [vmem:[%s19841_s11 + $0x28] sm:$0xf0] }
0x12c8   : > { %v13278_v39 = vld [vmem:[%s19841_s11 + $0xe0] sm:$0xf0]  ;;  %v12527_v54 = vld [vmem:[%s19841_s11 + $0x198] sm:$0xf]  ;;  %v12344_v58 = vor.u32 %v13255_v15, %v12343_v55  ;;  %v12535_v15 = vld [vmem:[%s19841_s11 + $0x1a0] sm:$0xf] }
0x12c9   : > { %v12432_v5 = vor.u32 %v13278_v39, %v12431_v44  ;;  %v12528_v16 = vor.u32 %v13302_v48, %v12527_v54  ;;  %v12577_v44 = vld [vmem:[%s19841_s11 + $0x204] sm:$0xf0]  ;;  %v12391_v39 = vld [vmem:[%s19841_s11 + $0x80] sm:$0xf]  ;;  %v13282_v48 = vld [vmem:[%s19841_s11 + $0x100] sm:$0xf0] }
0x12ca   : > { %v7755_v32 = vpop.f32.mrf.mxu0  ;;  %v7817_v49 = vpop.f32.mrf.mxu1  ;;  %8757 = vmatpush.bf16.msra.mxu0 %v12460_v60  ;;  %v12547_v55 = vld [vmem:[%s19841_s11 + $0x1b8] sm:$0xf] }
0x12cb   : > { %8793 = vmatpush.bf16.msra.mxu3 %v12500_v19  ;;  %8720 = vmatpush.bf16.msrb.mxu1 %v12432_v5  ;;  %v12448_v32 = vor.u32 %v13280_v43, %v12445_v52  ;;  %v12487_v49 = vld [vmem:[%s19841_s11 + $0x140] sm:$0xf]  ;;  %v13313_v19 = vld [vmem:[%s19841_s11 + $0x1fc] sm:$0xf]  ;;  %v12451_v5 = vld [vmem:[%s19841_s11 + $0xf8] sm:$0xf] }
0x12cc   : > { %8733 = vmatpush.bf16.msra.mxu2 %v12528_v16  ;;  %v12488_v36 = vor.u32 %v13291_v27, %v12487_v49  ;;  %v12580_v54 = vor.u32 %v13313_v19, %v12577_v44  ;;  %v12452_v16 = vor.u32 %v13282_v48, %v12451_v5  ;;  %v12565_v49 = vld [vmem:[%s19841_s11 + $0x1ec] sm:$0xf0]  ;;  %v12379_v27 = vld [vmem:[%s19841_s11 + $0x68] sm:$0xf]  ;;  %v7759_v19 = vadd.f32 %v18267_v0, %v18201_v4 }
0x12ce   : > { %8758 = vmatpush.bf16.msra.mxu0 %v12448_v32  ;;  %v13310_v32 = vld [vmem:[%s19841_s11 + $0x1e4] sm:$0xf] }
0x12cf   : > { %v18361_v11 = vpop.f32.mrf.mxu2  ;;  %v18363_v28 = vpop.f32.mrf.mxu3  ;;  %8794 = vmatpush.bf16.msra.mxu3 %v12488_v36  ;;  %8721 = vmatpush.bf16.msrb.mxu1 %v12420_v31  ;;  %v12439_v36 = vld [vmem:[%s19841_s11 + $0xe0] sm:$0xf] }
0x12d0   : > { %8734 = vmatpush.bf16.msra.mxu2 %v12516_v22  ;;  %v12440_v31 = vor.u32 %v13279_v1, %v12439_v36  ;;  %v12553_v22 = vld [vmem:[%s19841_s11 + $0x1d4] sm:$0xf0] }
0x12d1   : > { %v12556_v24 = vor.u32 %v13307_v17, %v12553_v22 }
0x12d2   : > { %v18383_v12 = vpop.f32.mrf.mxu0  ;;  %v18385_v2 = vpop.f32.mrf.mxu1  ;;  %8759 = vmatpush.bf16.msra.mxu0 %v12436_v8  ;;  %v12544_v8 = vor.u32 %v13304_v20, %v12541_v37  ;;  %v12571_v20 = vld [vmem:[%s19841_s11 + $0x1e8] sm:$0xf]  ;;  %v13312_v37 = vld [vmem:[%s19841_s11 + $0x1f0] sm:$0xf0] }
0x12d3   : > { %8766 = vmatpush.bf16.msra.mxu1 %v12604_v51  ;;  %8795 = vmatpush.bf16.msra.mxu3 %v12476_v47  ;;  %v12367_v51 = vld [vmem:[%s19841_s11 + $0x50] sm:$0xf]  ;;  %v13258_v47 = vld [vmem:[%s19841_s11 + $0x40] sm:$0xf0]  ;;  %v7933_v9 = vadd.f32 %v18383_v12, %v7845_v50 }
0x12d4   : > { %8779 = vmatpush.bf16.msrb.mxu2 %v12416_v40  ;;  %v12368_v40 = vor.u32 %v13261_v53, %v12367_v51  ;;  %v12356_v38 = vor.u32 %v13258_v47, %v12355_v13 }
0x12d6   : > { %8760 = vmatpush.bf16.msra.mxu0 %v12424_v63 }
0x12d7   : > { %v7830_v61 = vpop.f32.mrf.mxu2  ;;  %v7843_v57 = vpop.f32.mrf.mxu3  ;;  %8767 = vmatpush.bf16.msra.mxu1 %v12592_v3  ;;  %8796 = vmatpush.bf16.msra.mxu3 %v12464_v26  ;;  %v7758_v26 = vadd.f32 %v18259_v21, %v18199_v14  ;;  %v13252_v14 = vld [vmem:[%s19841_s11 + $0x10] sm:$0xf0]  ;;  %v7847_v21 = vadd.f32 %v18363_v28, %v7759_v19 }
0x12d8   : > { %8780 = vmatpush.bf16.msrb.mxu2 %v12404_v6  ;;  %v13267_v61 = vld [vmem:[%s19841_s11 + $0x88] sm:$0xf0]  ;;  %v13301_v6 = vld [vmem:[%s19841_s11 + $0x19c] sm:$0xf]  ;;  %v13300_v19 = vld [vmem:[%s19841_s11 + $0x190] sm:$0xf0] }
0x12d9   : > { %v12392_v57 = vor.u32 %v13267_v61, %v12391_v39  ;;  %v12532_v63 = vor.u32 %v13301_v6, %v12529_v62  ;;  %v13298_v39 = vld [vmem:[%s19841_s11 + $0x184] sm:$0xf]  ;;  %v7846_v4 = vadd.f32 %v18361_v11, %v7758_v26  ;;  %v13309_v6 = vld [vmem:[%s19841_s11 + $0x1d8] sm:$0xf0]  ;;  %v12523_v26 = vld [vmem:[%s19841_s11 + $0x188] sm:$0xf] }
0x12da   : > { %v7905_v7 = vpop.f32.mrf.mxu0  ;;  %v7918_v42 = vpop.f32.mrf.mxu1 }
0x12db   : > { %8768 = vmatpush.bf16.msra.mxu1 %v12580_v54  ;;  %8797 = vmatpush.bf16.msra.mxu3 %v12452_v16  ;;  %v12568_v7 = vor.u32 %v13310_v32, %v12565_v49  ;;  %v13264_v42 = vld [vmem:[%s19841_s11 + $0x70] sm:$0xf0]  ;;  %v12517_v54 = vld [vmem:[%s19841_s11 + $0x18c] sm:$0xf0]  ;;  %v8204_v16 = vpop.permute.xlu1 %8203  ;;  %v7934_v28 = vadd.f32 %v18385_v2, %v7846_v4 }
0x12dc   : > { %8781 = vmatpush.bf16.msrb.mxu2 %v12392_v57  ;;  %v12380_v29 = vor.u32 %v13264_v42, %v12379_v27  ;;  %v12520_v57 = vor.u32 %v13298_v39, %v12517_v54  ;;  %v12607_v49 = vld [vmem:[%s19841_s11 + $0x230] sm:$0xf]  ;;  %v13321_v27 = vld [vmem:[%s19841_s11 + $0x238] sm:$0xf0] }
0x12dd   : > { %v12608_v1 = vor.u32 %v13321_v27, %v12607_v49 }
0x12df   : > { %v18480_v18 = vpop.f32.mrf.mxu2  ;;  %v18482_v10 = vpop.f32.mrf.mxu3  ;;  %8769 = vmatpush.bf16.msra.mxu1 %v12568_v7  ;;  %8798 = vmatpush.bf16.msra.mxu3 %v12440_v31  ;;  %v12595_v31 = vld [vmem:[%s19841_s11 + $0x218] sm:$0xf] }
0x12e0   : > { %8782 = vmatpush.bf16.msrb.mxu2 %v12380_v29  ;;  %v8021_v12 = vadd.f32 %v18482_v10, %v7933_v9  ;;  %v12331_v10 = vld [vmem:[%s19841_s11 + $0x8] sm:$0xf]  ;;  %v12559_v9 = vld [vmem:[%s19841_s11 + $0x1d0] sm:$0xf] }
0x12e1   : > { %v12332_v48 = vor.u32 %v13252_v14, %v12331_v10  ;;  %v12560_v62 = vor.u32 %v13309_v6, %v12559_v9 }
0x12e2   : > { %v18499_v60 = vpop.f32.mrf.mxu0  ;;  %v18501_v35 = vpop.f32.mrf.mxu1 }
0x12e3   : > { %8770 = vmatpush.bf16.msra.mxu1 %v12556_v24  ;;  %8799 = vmatpush.bf16.msra.mxu3 %v12428_v34  ;;  %v8022_v42 = vadd.f32 %v18499_v60, %v7934_v28  ;;  %v13315_v24 = vld [vmem:[%s19841_s11 + $0x208] sm:$0xf0] }
0x12e4   : > { %8783 = vmatpush.bf16.msrb.mxu2 %v12368_v40  ;;  %v12584_v23 = vor.u32 %v13315_v24, %v12583_v41 }
0x12e7   : > { %v7931_v43 = vpop.f32.mrf.mxu2  ;;  %v7993_v52 = vpop.f32.mrf.mxu3  ;;  %8771 = vmatpush.bf16.msra.mxu1 %v12544_v8 }
0x12e8   : > { %8784 = vmatpush.bf16.msrb.mxu2 %v12356_v38  ;;  %v7935_v52 = vadd.f32 %v18480_v18, %v7847_v21 }
0x12ea   : > { %v8006_v45 = vpop.f32.mrf.mxu0  ;;  %v8019_v59 = vpop.f32.mrf.mxu1  ;;  %v8023_v18 = vadd.f32 %v18501_v35, %v7935_v52 }
0x12eb   : > { %8772 = vmatpush.bf16.msra.mxu1 %v12532_v63  ;;  %v13318_v45 = vld [vmem:[%s19841_s11 + $0x220] sm:$0xf0] }
0x12ec   : > { %8785 = vmatpush.bf16.msrb.mxu2 %v12344_v58  ;;  %v12596_v51 = vor.u32 %v13318_v45, %v12595_v31  ;;  %v9412_v31 = vld [vmem:[%s19832_s2 + $0x110] sm:$0xff] }
0x12ef   : > { %v8092_v25 = vpop.f32.mrf.mxu3  ;;  %8773 = vmatpush.bf16.msra.mxu1 %v12520_v57 }
0x12f0   : > { %v8079_v3 = vpop.f32.mrf.mxu2  ;;  %8786 = vmatpush.bf16.msrb.mxu2 %v12332_v48  ;;  %v8110_v2 = vadd.f32 %v8092_v25, %v8022_v42 }
0x12f1   : > { %v8109_v44 = vadd.f32 %v8079_v3, %v8021_v12  ;;  %v12572_v3 = vor.u32 %v13312_v37, %v12571_v20  ;;  %v13303_v12 = vld [vmem:[%s19841_s11 + $0x1a8] sm:$0xf0] }
0x12f2   : > { %v8105_v30 = vpop.f32.mrf.mxu0  ;;  %v12536_v58 = vor.u32 %v13303_v12, %v12535_v15 }
0x12f3   : > { %v8111_v59 = vadd.f32 %v8105_v30, %v8023_v18  ;;  %v13306_v30 = vld [vmem:[%s19841_s11 + $0x1c0] sm:$0xf0] }
0x12f4   : > { %v12548_v63 = vor.u32 %v13306_v30, %v12547_v55 }
0x12f6   : > { %v8167_v61 = vpop.f32.mrf.mxu1 }
0x12f7   : > { %v8197_v0 = vadd.f32 %v8167_v61, %v8109_v44  ;;  %v8094_v5 = vpop.f32.mrf.mxu3  ;;  %v12524_v44 = vor.u32 %v13300_v19, %v12523_v26 }
0x12f8   : > { %v8081_v43 = vpop.f32.mrf.mxu2 }
0x12f9   : > { %v8206_v32 = vadd.f32 %v8204_v16, %v8197_v0 }
0x12fa   : > { %v8107_v11 = vpop.f32.mrf.mxu0 }
0x12fb   : > { %vm8209_vm1 = vcmp.ge.f32.partialorder %v8206_v32, 0.0  ;;  %v8212_v7 = vmul.f32 0.2, %v8206_v32 }
0x12fd   : > { %v8215_v36 = vsel %vm8209_vm1, %v8206_v32, %v8212_v7  ;;  %vm19937_vm1 = vmmov %vm19934_vm10 }
0x12fe   : > { %v8218_v33 = vpack.c.bf16 %v8215_v36, %v8215_v36  ;;  %v8169_v29 = vpop.f32.mrf.mxu1 }
0x1300   : > { %v8180_v17 = vpop.f32.mrf.mxu2  ;;  %v8193_v22 = vpop.f32.mrf.mxu3  ;;  %8709 = vmatmul.bf16.vlgmr.msrb.gmra.mxu0 %v8218_v33  ;;  %8748 = vmatmul.bf16.vlgmr.msrb.gmra.mxu3 %v8218_v33 }
0x1301   : > { %v8198_v60 = vadd.f32 %v8180_v17, %v8110_v2  ;;  %v8199_v35 = vadd.f32 %v8193_v22, %v8111_v59  ;;  %8805 = vmatpush.bf16.msrb.mxu0 %v12608_v1 }
0x1303   : > { %v8207_v53 = vadd.f32 %v8204_v16, %v8198_v60  ;;  %v8208_v56 = vadd.f32 %v8204_v16, %v8199_v35 }
0x1305   : > { %vm8210_vm11 = vcmp.ge.f32.partialorder %v8207_v53, 0.0  ;;  %v8213_v40 = vmul.f32 0.2, %v8207_v53  ;;  %vm8211_vm14 = vcmp.ge.f32.partialorder %v8208_v56, 0.0  ;;  %v8214_v34 = vmul.f32 0.2, %v8208_v56  ;;  %8806 = vmatpush.bf16.msrb.mxu0 %v12596_v51 }
0x1307   : > { %v8216_v13 = vsel %vm8210_vm11, %v8207_v53, %v8213_v40  ;;  %v8217_v8 = vsel %vm8211_vm14, %v8208_v56, %v8214_v34  ;;  %vm19938_vm11 = vmmov %vm19937_vm1 }
0x1308   : > { %v8219_v47 = vpack.c.bf16 %v8216_v13, %v8216_v13  ;;  %v8220_v50 = vpack.c.bf16 %v8217_v8, %v8217_v8  ;;  %v8195_v25 = vpop.f32.mrf.mxu3  ;;  %v8182_v38 = vpop.f32.mrf.mxu2  ;;  %v8837_v13 = vld [vmem:[%s19831_s1 + $0x4cc] sm:$0xf]  ;;  %vm19939_vm14 = vmmov %vm19937_vm1 }
0x1309   : > { %8807 = vmatpush.bf16.msrb.mxu0 %v12584_v23 }
0x130a   : > { %8722 = vmatmul.bf16.vlgmr.msrb.gmra.mxu1 %v8219_v47  ;;  %8735 = vmatmul.bf16.vlgmr.msra.gmra.mxu2 %v8220_v50 }
0x130d   : > { %8808 = vmatpush.bf16.msrb.mxu0 %v12572_v3 }
0x1310   : > { %8761 = vmatmul.bf16.vlgmr.msra.gmra.mxu0 %v8219_v47  ;;  %8800 = vmatmul.bf16.vlgmr.msra.gmra.mxu3 %v8219_v47 }
0x1311   : > { %8809 = vmatpush.bf16.msrb.mxu0 %v12560_v62 }
0x1315   : > { %8810 = vmatpush.bf16.msrb.mxu0 %v12548_v63 }
0x1319   : > { %8811 = vmatpush.bf16.msrb.mxu0 %v12536_v58 }
0x131a   : > { %8774 = vmatmul.bf16.vlgmr.msra.gmra.mxu1 %v8220_v50  ;;  %8787 = vmatmul.bf16.vlgmr.msrb.gmra.mxu2 %v8218_v33 }
0x131d   : > { %8812 = vmatpush.bf16.msrb.mxu0 %v12524_v44 }
0x1320   : > { %8813 = vmatmul.bf16.vlgmr.msrb.gmra.mxu0 %v8220_v50 }
0x137d   : > { %v8710_v39 = vpop.f32.mrf.mxu0 }
0x1383   : > { %v8749_v54 = vpop.f32.mrf.mxu3 }
0x1385   : > { %v8712_v10 = vpop.f32.mrf.mxu0 }
0x1387   : > { %v8723_v61 = vpop.f32.mrf.mxu1 }
0x1388   : > { %v8724_v14 = vadd.f32 %v8723_v61, %v8710_v39 }
0x138b   : > { %v8751_v57 = vpop.f32.mrf.mxu3 }
0x138d   : > { %v8736_v4 = vpop.f32.mrf.mxu2  ;;  %v8762_v21 = vpop.f32.mrf.mxu0 }
0x138e   : > { %v8737_v0 = vadd.f32 %v8736_v4, %v8724_v14  ;;  %v8763_v52 = vadd.f32 %v8762_v21, %v8749_v54  ;;  %v8952_v21 = vld [vmem:[%s19831_s1 + $0x4d0] sm:$0xf] }
0x138f   : > { %v8725_v5 = vpop.f32.mrf.mxu1 }
0x1390   : > { %8828 = vrot.lane.b32.xlu0 %v8737_v0, %s19931_s22  ;;  %v8825_v24 = vpack.c.bf16 %v8737_v0, %v8737_v0 }
0x1392   : > { %v8896_v47 = vsel %vm475_vm0, %v8825_v24, 0 }
0x1393   : > { %v8801_v48 = vpop.f32.mrf.mxu3 }
0x1395   : > { %v8738_v16 = vpop.f32.mrf.mxu2  ;;  %v8764_v43 = vpop.f32.mrf.mxu0 }
0x1396   : > { %v8824_v16 = vld [vmem:[%s19831_s1 + $0x4c8] sm:$0xf] }
0x1397   : > { %v8775_v32 = vpop.f32.mrf.mxu1 }
0x1398   : > { %v8776_v49 = vadd.f32 %v8775_v32, %v8763_v52 }
0x139a   : > { %v14568_v27 = vpack.i.bf16 %v8776_v49, %v8737_v0  ;;  %v8826_v60 = vpack.c.bf16 %v8776_v49, %v8776_v49 }
0x139b   : > { %v8803_v11 = vpop.f32.mrf.mxu3 }
0x139c   : > { %14569 = vrot.lane.b32.xlu0 %v14568_v27, %s19910_s30  ;;  %14564 = vrot.lane.b32.xlu1 %v14568_v27, %s19898_s21  ;;  %v8899_v34 = vsel %vm475_vm0, %v8826_v60, 0 }
0x139d   : > { %v8788_v28 = vpop.f32.mrf.mxu2  ;;  %v8814_v7 = vpop.f32.mrf.mxu0 }
0x139e   : > { %v8802_v42 = vadd.f32 %v8801_v48, %v8788_v28 }
0x139f   : > { %v8777_v18 = vpop.f32.mrf.mxu1 }
0x13a0   : > { %v8815_v36 = vadd.f32 %v8814_v7, %v8802_v42 }
0x13a2   : > { %v14558_v1 = vpack.i.bf16 %v8815_v36, %v8776_v49  ;;  %v8827_v23 = vpack.c.bf16 %v8815_v36, %v8815_v36 }
0x13a4   : > { %9081 = vrot.lane.b32.xlu0 %v8815_v36, %s19911_s20  ;;  %9014 = vrot.lane.b32.xlu1 %v8815_v36, %s19910_s30  ;;  %v8902_v50 = vsel %vm475_vm0, %v8827_v23, 0 }
0x13a5   : > { %14559 = vrot.lane.b32.xlu2 %v14558_v1, %s19931_s22  ;;  %v8790_v33 = vpop.f32.mrf.mxu2  ;;  %v8816_v29 = vpop.f32.mrf.mxu0 }
0x13ac   : > { %14584 = vrot.lane.b32.xlu0 %v14568_v27, %s19912_s27  ;;  %14579 = vrot.lane.b32.xlu1 %v14558_v1, %s19909_s18 }
0x13ad   : > { %8947 = vrot.lane.b32.xlu2 %v8815_v36, %s19898_s21 }
0x13b4   : > { %9282 = vrot.lane.b32.xlu0 %v8815_v36, %s19913_s16  ;;  %9215 = vrot.lane.b32.xlu1 %v8815_v36, %s19912_s27 }
0x13b5   : > { %14574 = vrot.lane.b32.xlu2 %v14568_v27, %s19911_s20 }
0x13bc   : > { %9415 = vperm.xlu0 %13467, %v9412_v31   ;;  %14594 = vrot.lane.b32.xlu1 %v14568_v27, %s19914_s28 }
0x13bd   : > { %9144 = vrot.lane.b32.xlu2 %v8737_v0, %s19909_s18 }
0x13c5   : > { %14589 = vrot.lane.b32.xlu2 %v14568_v27, %s19913_s16 }
0x13cd   : > { %9349 = vrot.lane.b32.xlu2 %v8815_v36, %s19914_s28 }
0x13ff   : > { %v14560_v45 = vpop.permute.xlu2 %14559 }
0x1400   : > { %v14562_v2 = vunpack.i.h.bf16 %v14560_v45  ;;  %v14561_v59 = vunpack.i.l.bf16 %v14560_v45 }
0x1402   : > { %v8829_v17 = vpop.permute.xlu0 %8828  ;;  %v8834_v22 = vsel %vm463_vm2, %v14561_v59, %v14562_v2 }
0x1403   : > { %v8835_v35 = vsel %vm463_vm2, %v8829_v17, %v14561_v59  ;;  %v8836_v51 = vsel %vm463_vm2, %v14562_v2, %v8829_v17  ;;  %v8839_v41 = vpack.c.bf16 %v8834_v22, %v8834_v22 }
0x1404   : > { %v8838_v53 = vpack.c.bf16 %v8835_v35, %v8835_v35  ;;  %v8840_v56 = vpack.c.bf16 %v8836_v51, %v8836_v51 }
0x1405   : > { %v8848_v40 = vsel %vm475_vm0, %v8839_v41, 0 }
0x1406   : > { %8873 = vmatpush.bf16.msra.mxu2 %v8848_v40  ;;  %v8845_v20 = vsel %vm475_vm0, %v8838_v53, 0  ;;  %v8851_v37 = vsel %vm475_vm0, %v8840_v56, 0  ;;  %v9019_v53 = vld [vmem:[%s19831_s1 + $0x4d4] sm:$0xf] }
0x1407   : > { %v8948_v8 = vpop.permute.xlu2 %8947  ;;  %8860 = vmatpush.bf16.msrb.mxu1 %v8845_v20  ;;  %8886 = vmatpush.bf16.msrb.mxu3 %v8851_v37 }
0x1409   : > { %12610 = vmatmul.msk.bf16.vlgmr.msra.gmra.mxu2 %vm19933_vm15, %v8837_v13  ;;  %vm19940_vm15 = vmmov %vm19937_vm1 }
0x140a   : > { %8924 = vmatpush.bf16.msrb.mxu2 %v8899_v34  ;;  %12609 = vmatmul.msk.bf16.vlgmr.msrb.gmra.mxu1 %vm19934_vm10, %v8837_v13  ;;  %vm19941_vm10 = vmmov %vm19937_vm1 }
0x140b   : > { %8911 = vmatpush.bf16.msra.mxu1 %v8896_v47  ;;  %8937 = vmatpush.bf16.msra.mxu3 %v8902_v50 }
0x140c   : > { %12611 = vmatmul.msk.bf16.vlgmr.msrb.gmra.mxu3 %vm19935_vm12, %v8837_v13  ;;  %vm19942_vm12 = vmmov %vm19937_vm1 }
0x140e   : > { %v14570_v25 = vpop.permute.xlu0 %14569  ;;  %v14565_v38 = vpop.permute.xlu1 %14564 }
0x140f   : > { %v14572_v3 = vunpack.i.h.bf16 %v14570_v25  ;;  %v14571_v9 = vunpack.i.l.bf16 %v14570_v25  ;;  %v14567_v6 = vunpack.i.h.bf16 %v14565_v38  ;;  %v14566_v62 = vunpack.i.l.bf16 %v14565_v38  ;;  %v14575_v55 = vpop.permute.xlu2 %14574 }
0x1410   : > { %v14577_v30 = vunpack.i.h.bf16 %v14575_v55  ;;  %v14576_v63 = vunpack.i.l.bf16 %v14575_v55 }
0x1411   : > { %v8950_v15 = vsel %vm581_vm4, %v14566_v62, %v14567_v6  ;;  %v8949_v12 = vsel %vm581_vm4, %v14567_v6, %v8948_v8  ;;  %v8951_v58 = vsel %vm581_vm4, %v8948_v8, %v14566_v62  ;;  %v9017_v26 = vsel %vm649_vm3, %v14571_v9, %v14572_v3 }
0x1412   : > { %v8953_v19 = vpack.c.bf16 %v8950_v15, %v8950_v15  ;;  %v8954_v44 = vpack.c.bf16 %v8949_v12, %v8949_v12  ;;  %v8955_v39 = vpack.c.bf16 %v8951_v58, %v8951_v58  ;;  %v9020_v54 = vpack.c.bf16 %v9017_v26, %v9017_v26 }
0x1413   : > { %v9084_v10 = vsel %vm717_vm6, %v14576_v63, %v14577_v30 }
0x1414   : > { %v8960_v61 = vsel %vm475_vm0, %v8953_v19, 0  ;;  %v8963_v57 = vsel %vm475_vm0, %v8954_v44, 0  ;;  %v8966_v14 = vsel %vm475_vm0, %v8955_v39, 0  ;;  %v9027_v4 = vsel %vm475_vm0, %v9020_v54, 0 }
0x1415   : > { %8975 = vmatpush.bf16.msra.mxu0 %v8960_v61  ;;  %8988 = vmatpush.bf16.msrb.mxu1 %v8963_v57  ;;  %v9087_v0 = vpack.c.bf16 %v9084_v10, %v9084_v10 }
0x1416   : > { %9001 = vmatpush.bf16.msra.mxu2 %v8966_v14  ;;  %9042 = vmatpush.bf16.msrb.mxu3 %v9027_v4  ;;  %v9082_v5 = vpop.permute.xlu0 %9081  ;;  %v9015_v48 = vpop.permute.xlu1 %9014 }
0x1417   : > { %v9083_v43 = vsel %vm717_vm6, %v14577_v30, %v9082_v5  ;;  %v9085_v52 = vsel %vm717_vm6, %v9082_v5, %v14576_v63  ;;  %v9016_v32 = vsel %vm649_vm3, %v14572_v3, %v9015_v48  ;;  %v9018_v49 = vsel %vm649_vm3, %v9015_v48, %v14571_v9  ;;  %v9145_v60 = vpop.permute.xlu2 %9144  ;;  %v9086_v63 = vld [vmem:[%s19831_s1 + $0x4d8] sm:$0xf]  ;;  %v9220_v5 = vld [vmem:[%s19831_s1 + $0x4e0] sm:$0xf] }
0x1418   : > { %v9088_v27 = vpack.c.bf16 %v9083_v43, %v9083_v43  ;;  %v9089_v11 = vpack.c.bf16 %v9085_v52, %v9085_v52  ;;  %v9021_v28 = vpack.c.bf16 %v9016_v32, %v9016_v32  ;;  %v9022_v7 = vpack.c.bf16 %v9018_v49, %v9018_v49  ;;  %12615 = vmatmul.msk.bf16.vlgmr.msra.gmra.mxu0 %vm19936_vm13, %v8952_v21  ;;  %vm19943_vm13 = vmmov %vm19937_vm1  ;;  %v9153_v43 = vld [vmem:[%s19831_s1 + $0x4dc] sm:$0xf] }
0x1419   : > { %12613 = vmatmul.msk.bf16.vlgmr.msrb.gmra.mxu2 %vm19937_vm1, %v8824_v16  ;;  %v9094_v42 = vsel %vm475_vm0, %v9087_v0, 0 }
0x141a   : > { %9109 = vmatpush.bf16.msrb.mxu2 %v9094_v42  ;;  %12612 = vmatmul.msk.bf16.vlgmr.msra.gmra.mxu1 %vm19938_vm11, %v8824_v16  ;;  %v9030_v18 = vsel %vm475_vm0, %v9021_v28, 0  ;;  %v9033_v36 = vsel %vm475_vm0, %v9022_v7, 0  ;;  %v9097_v1 = vsel %vm475_vm0, %v9088_v27, 0  ;;  %v9100_v33 = vsel %vm475_vm0, %v9089_v11, 0  ;;  %vm19944_vm11 = vmmov %vm19937_vm1  ;;  %v9287_v28 = vld [vmem:[%s19831_s1 + $0x4e4] sm:$0xf] }
0x141b   : > { %9055 = vmatpush.bf16.msrb.mxu0 %v9030_v18  ;;  %9068 = vmatpush.bf16.msra.mxu1 %v9033_v36  ;;  %v9354_v7 = vld [vmem:[%s19831_s1 + $0x4e8] sm:$0xf] }
0x141c   : > { %12614 = vmatmul.msk.bf16.vlgmr.msra.gmra.mxu3 %vm19939_vm14, %v8824_v16  ;;  %vm19945_vm14 = vmmov %vm19937_vm1 }
0x141d   : > { %9122 = vmatpush.bf16.msra.mxu3 %v9097_v1 }
0x141e   : > { %v14585_v29 = vpop.permute.xlu0 %14584  ;;  %v14580_v31 = vpop.permute.xlu1 %14579 }
0x141f   : > { %9135 = vmatpush.bf16.msra.mxu0 %v9100_v33  ;;  %v14587_v45 = vunpack.i.h.bf16 %v14585_v29  ;;  %v14586_v2 = vunpack.i.l.bf16 %v14585_v29  ;;  %v14582_v59 = vunpack.i.h.bf16 %v14580_v31  ;;  %v14581_v17 = vunpack.i.l.bf16 %v14580_v31  ;;  %v14590_v8 = vpop.permute.xlu2 %14589 }
0x1420   : > { %v14592_v50 = vunpack.i.h.bf16 %v14590_v8  ;;  %v14591_v38 = vunpack.i.l.bf16 %v14590_v8 }
0x1421   : > { %v9218_v22 = vsel %vm853_vm7, %v14586_v2, %v14587_v45  ;;  %v9150_v35 = vsel %vm785_vm5, %v14581_v17, %v14582_v59  ;;  %v9151_v51 = vsel %vm785_vm5, %v9145_v60, %v14581_v17  ;;  %v9152_v24 = vsel %vm785_vm5, %v14582_v59, %v9145_v60 }
0x1422   : > { %v9221_v41 = vpack.c.bf16 %v9218_v22, %v9218_v22  ;;  %v9155_v56 = vpack.c.bf16 %v9150_v35, %v9150_v35  ;;  %v9154_v23 = vpack.c.bf16 %v9151_v51, %v9151_v51  ;;  %v9156_v40 = vpack.c.bf16 %v9152_v24, %v9152_v24  ;;  %v12722_v35 = vld [vmem:[%s19841_s11 + $0xa8] sm:$0xf]  ;;  %v13344_v51 = vld [vmem:[%s19841_s11 + $0xb0] sm:$0xf0] }
0x1423   : > { %v9285_v55 = vsel %vm921_vm8, %v14591_v38, %v14592_v50  ;;  %v12723_v24 = vor.u32 %v13344_v51, %v12722_v35  ;;  %v13326_v35 = vld [vmem:[%s19841_s11 + $0x20] sm:$0xf0] }
0x1424   : > { %v9228_v34 = vsel %vm475_vm0, %v9221_v41, 0  ;;  %v9164_v20 = vsel %vm475_vm0, %v9155_v56, 0  ;;  %v9161_v37 = vsel %vm475_vm0, %v9154_v23, 0  ;;  %v9167_v13 = vsel %vm475_vm0, %v9156_v40, 0  ;;  %v12710_v56 = vld [vmem:[%s19841_s11 + $0x90] sm:$0xf] }
0x1425   : > { %v9288_v12 = vpack.c.bf16 %v9285_v55, %v9285_v55  ;;  %v13341_v23 = vld [vmem:[%s19841_s11 + $0x98] sm:$0xf0]  ;;  %v13343_v55 = vld [vmem:[%s19841_s11 + $0xac] sm:$0xf] }
0x1426   : > { %v9283_v47 = vpop.permute.xlu0 %9282  ;;  %v9216_v25 = vpop.permute.xlu1 %9215  ;;  %v12711_v40 = vor.u32 %v13341_v23, %v12710_v56  ;;  %v13334_v56 = vld [vmem:[%s19841_s11 + $0x64] sm:$0xf]  ;;  %v12688_v23 = vld [vmem:[%s19841_s11 + $0x6c] sm:$0xf0] }
0x1427   : > { %v9284_v3 = vsel %vm921_vm8, %v14592_v50, %v9283_v47  ;;  %v9219_v9 = vsel %vm853_vm7, %v9216_v25, %v14586_v2  ;;  %v9217_v6 = vsel %vm853_vm7, %v14587_v45, %v9216_v25  ;;  %v9295_v39 = vsel %vm475_vm0, %v9288_v12, 0  ;;  %v9350_v61 = vpop.permute.xlu2 %9349  ;;  %v12914_v25 = vld [vmem:[%s19841_s11 + $0x228] sm:$0xf] }
0x1428   : > { %12619 = vmatmul.msk.bf16.vlgmr.msrb.gmra.mxu0 %vm19940_vm15, %v9019_v53  ;;  %v9289_v62 = vpack.c.bf16 %v9284_v3, %v9284_v3  ;;  %v9223_v30 = vpack.c.bf16 %v9219_v9, %v9219_v9  ;;  %v9222_v15 = vpack.c.bf16 %v9217_v6, %v9217_v6  ;;  %vm19946_vm15 = vmmov %vm19937_vm1  ;;  %v9286_v4 = vsel %vm921_vm8, %v9283_v47, %v14591_v38  ;;  %v13392_v38 = vld [vmem:[%s19841_s11 + $0x230] sm:$0xf0]  ;;  %v12686_v3 = vld [vmem:[%s19841_s11 + $0x60] sm:$0xf] }
0x1429   : > { %12617 = vmatmul.msk.bf16.vlgmr.msra.gmra.mxu2 %vm19941_vm10, %v8952_v21  ;;  %9243 = vmatpush.bf16.msrb.mxu0 %v9228_v34  ;;  %v9290_v16 = vpack.c.bf16 %v9286_v4, %v9286_v4  ;;  %vm19947_vm10 = vmmov %vm19937_vm1  ;;  %v12915_v9 = vor.u32 %v13392_v38, %v12914_v25  ;;  %v13335_v6 = vld [vmem:[%s19841_s11 + $0x68] sm:$0xf0]  ;;  %v13380_v25 = vld [vmem:[%s19841_s11 + $0x1d0] sm:$0xf0] }
0x142a   : > { %9189 = vmatpush.bf16.msra.mxu2 %v9164_v20  ;;  %12616 = vmatmul.msk.bf16.vlgmr.msrb.gmra.mxu1 %vm19942_vm12, %v8952_v21  ;;  %v9298_v58 = vsel %vm475_vm0, %v9289_v62, 0  ;;  %v9234_v26 = vsel %vm475_vm0, %v9223_v30, 0  ;;  %v9231_v44 = vsel %vm475_vm0, %v9222_v15, 0  ;;  %vm19948_vm12 = vmmov %vm19937_vm1  ;;  %v12698_v20 = vld [vmem:[%s19841_s11 + $0x78] sm:$0xf]  ;;  %v12687_v62 = vor.u32 %v13335_v6, %v12686_v3 }
0x142b   : > { %9176 = vmatpush.bf16.msrb.mxu1 %v9161_v37  ;;  %v9301_v27 = vsel %vm475_vm0, %v9290_v16, 0  ;;  %v13338_v37 = vld [vmem:[%s19841_s11 + $0x80] sm:$0xf0]  ;;  %v12724_v30 = vld [vmem:[%s19841_s11 + $0xb4] sm:$0xf0] }
0x142c   : > { %12618 = vmatmul.msk.bf16.vlgmr.msrb.gmra.mxu3 %vm19943_vm13, %v9019_v53  ;;  %vm19949_vm13 = vmmov %vm19937_vm1  ;;  %v12699_v8 = vor.u32 %v13338_v37, %v12698_v20  ;;  %v13365_v16 = vld [vmem:[%s19841_s11 + $0x158] sm:$0xf0]  ;;  %v12782_v20 = vld [vmem:[%s19841_s11 + $0x120] sm:$0xf] }
0x142d   : > { %9202 = vmatpush.bf16.msrb.mxu3 %v9167_v13  ;;  %v13359_v37 = vld [vmem:[%s19841_s11 + $0x128] sm:$0xf0]  ;;  %v12638_v38 = vld [vmem:[%s19841_s11] sm:$0xf] }
0x142e   : > { %v14595_v19 = vpop.permute.xlu1 %14594  ;;  %v13323_v3 = vld [vmem:[%s19841_s11 + $0x8] sm:$0xf0] }
0x142f   : > { %v14596_v54 = vunpack.i.l.bf16 %v14595_v19  ;;  %v14597_v10 = vunpack.i.h.bf16 %v14595_v19  ;;  %v12902_v19 = vld [vmem:[%s19841_s11 + $0x210] sm:$0xf]  ;;  %v12639_v6 = vor.u32 %v13323_v3, %v12638_v38 }
0x1431   : > { %v9353_v57 = vsel %vm19885_vm9, %v9350_v61, %v14596_v54  ;;  %v9352_v14 = vsel %vm19885_vm9, %v14596_v54, %v14597_v10  ;;  %v9351_v0 = vsel %vm19885_vm9, %v14597_v10, %v9350_v61  ;;  %vm19956_vm9 = vmmov %vm19937_vm1  ;;  %v13389_v54 = vld [vmem:[%s19841_s11 + $0x218] sm:$0xf0]  ;;  %v12674_v10 = vld [vmem:[%s19841_s11 + $0x48] sm:$0xf] }
0x1432   : > { %v9357_v21 = vpack.c.bf16 %v9353_v57, %v9353_v57  ;;  %v9355_v48 = vpack.c.bf16 %v9352_v14, %v9352_v14  ;;  %v9356_v52 = vpack.c.bf16 %v9351_v0, %v9351_v0  ;;  %v13332_v61 = vld [vmem:[%s19841_s11 + $0x50] sm:$0xf0]  ;;  %v12903_v14 = vor.u32 %v13389_v54, %v12902_v19  ;;  %v12712_v0 = vld [vmem:[%s19841_s11 + $0x9c] sm:$0xf0] }
0x1433   : > { %v12675_v4 = vor.u32 %v13332_v61, %v12674_v10  ;;  %v13356_v54 = vld [vmem:[%s19841_s11 + $0x110] sm:$0xf0]  ;;  %v12854_v10 = vld [vmem:[%s19841_s11 + $0x1b0] sm:$0xf] }
0x1434   : > { %v9368_v32 = vsel %vm475_vm0, %v9357_v21, 0  ;;  %v9362_v49 = vsel %vm475_vm0, %v9355_v48, 0  ;;  %v9365_v11 = vsel %vm475_vm0, %v9356_v52, 0  ;;  %v13340_v21 = vld [vmem:[%s19841_s11 + $0x94] sm:$0xf] }
0x1435   : > { %v12715_v48 = vor.u32 %v13340_v21, %v12712_v0  ;;  %v13386_v52 = vld [vmem:[%s19841_s11 + $0x200] sm:$0xf0]  ;;  %v13328_v0 = vld [vmem:[%s19841_s11 + $0x34] sm:$0xf] }
0x1438   : > { %12623 = vmatmul.msk.bf16.vlgmr.msra.gmra.mxu0 %vm19937_vm1, %v9086_v63 }
0x1439   : > { %12621 = vmatmul.msk.bf16.vlgmr.msrb.gmra.mxu2 %vm19944_vm11, %v9086_v63  ;;  %9323 = vmatpush.bf16.msra.mxu0 %v9298_v58  ;;  %vm19950_vm11 = vmmov %vm19937_vm1  ;;  %v12818_v58 = vld [vmem:[%s19841_s11 + $0x168] sm:$0xf] }
0x143a   : > { %9269 = vmatpush.bf16.msrb.mxu2 %v9234_v26  ;;  %12620 = vmatmul.msk.bf16.vlgmr.msra.gmra.mxu1 %vm19945_vm14, %v9019_v53  ;;  %vm19951_vm14 = vmmov %vm19937_vm1  ;;  %v13368_v26 = vld [vmem:[%s19841_s11 + $0x170] sm:$0xf0] }
0x143b   : > { %9256 = vmatpush.bf16.msra.mxu1 %v9231_v44 }
0x143c   : > { %12622 = vmatmul.msk.bf16.vlgmr.msra.gmra.mxu3 %vm19946_vm15, %v9086_v63  ;;  %vm19952_vm15 = vmmov %vm19937_vm1  ;;  %v12727_v63 = vor.u32 %v13343_v55, %v12724_v30  ;;  %v12676_v55 = vld [vmem:[%s19841_s11 + $0x54] sm:$0xf0]  ;;  %v13367_v30 = vld [vmem:[%s19841_s11 + $0x16c] sm:$0xf] }
0x143d   : > { %9310 = vmatpush.bf16.msra.mxu3 %v9295_v39  ;;  %v12819_v39 = vor.u32 %v13368_v26, %v12818_v58 }
0x1448   : > { %12627 = vmatmul.msk.bf16.vlgmr.msrb.gmra.mxu0 %vm19947_vm10, %v9220_v5  ;;  %vm19953_vm10 = vmmov %vm19937_vm1 }
0x1449   : > { %12625 = vmatmul.msk.bf16.vlgmr.msra.gmra.mxu2 %vm19948_vm12, %v9153_v43  ;;  %9403 = vmatpush.bf16.msrb.mxu0 %v9368_v32  ;;  %vm19954_vm12 = vmmov %vm19937_vm1 }
0x144a   : > { %9377 = vmatpush.bf16.msra.mxu2 %v9362_v49  ;;  %12624 = vmatmul.msk.bf16.vlgmr.msrb.gmra.mxu1 %vm19949_vm13, %v9153_v43  ;;  %vm19955_vm13 = vmmov %vm19937_vm1 }
0x144b   : > { %9336 = vmatpush.bf16.msrb.mxu1 %v9301_v27  ;;  %v12662_v27 = vld [vmem:[%s19841_s11 + $0x30] sm:$0xf] }
0x144c   : > { %12626 = vmatmul.msk.bf16.vlgmr.msrb.gmra.mxu3 %vm19937_vm1, %v9153_v43  ;;  %v12890_v43 = vld [vmem:[%s19841_s11 + $0x1f8] sm:$0xf] }
0x144d   : > { %9390 = vmatpush.bf16.msrb.mxu3 %v9365_v11  ;;  %v12891_v49 = vor.u32 %v13386_v52, %v12890_v43  ;;  %v13329_v11 = vld [vmem:[%s19841_s11 + $0x38] sm:$0xf0]  ;;  %v12808_v43 = vld [vmem:[%s19841_s11 + $0x15c] sm:$0xf0]  ;;  %v12758_v52 = vld [vmem:[%s19841_s11 + $0xf0] sm:$0xf] }
0x1458   : > { %12631 = vmatmul.msk.bf16.vlgmr.msra.gmra.mxu0 %vm19950_vm11, %v9287_v28 }
0x1459   : > { %12629 = vmatmul.msk.bf16.vlgmr.msrb.gmra.mxu2 %vm19951_vm14, %v9220_v5  ;;  %9952 = vmatpush.bf16.msra.mxu0 %v12727_v63 }
0x145a   : > { %12628 = vmatmul.msk.bf16.vlgmr.msra.gmra.mxu1 %vm19952_vm15, %v9220_v5  ;;  %v12806_v5 = vld [vmem:[%s19841_s11 + $0x150] sm:$0xf]  ;;  %9926 = vmatpush.bf16.msrb.mxu2 %v12819_v39  ;;  %v12770_v39 = vld [vmem:[%s19841_s11 + $0x108] sm:$0xf]  ;;  %vm19957_vm15 = vmmov %vm19937_vm1 }
0x145b   : > { %9913 = vmatpush.bf16.msra.mxu1 %v12723_v24  ;;  %v12807_v32 = vor.u32 %v13365_v16, %v12806_v5  ;;  %v12664_v5 = vld [vmem:[%s19841_s11 + $0x3c] sm:$0xf0] }
0x145c   : > { %12630 = vmatmul.msk.bf16.vlgmr.msra.gmra.mxu3 %vm19953_vm10, %v9287_v28  ;;  %v12667_v16 = vor.u32 %v13328_v0, %v12664_v5  ;;  %vm19959_vm10 = vmmov %vm19937_vm1 }
0x145d   : > { %9939 = vmatpush.bf16.msra.mxu3 %v12915_v9  ;;  %9953 = vmatpush.bf16.msra.mxu0 %v12715_v48  ;;  %v13364_v48 = vld [vmem:[%s19841_s11 + $0x154] sm:$0xf] }
0x145e   : > { %9927 = vmatpush.bf16.msrb.mxu2 %v12807_v32  ;;  %v13353_v32 = vld [vmem:[%s19841_s11 + $0xf8] sm:$0xf0] }
0x145f   : > { %9914 = vmatpush.bf16.msra.mxu1 %v12711_v40 }
0x1461   : > { %9940 = vmatpush.bf16.msra.mxu3 %v12903_v14  ;;  %v13377_v14 = vld [vmem:[%s19841_s11 + $0x1b8] sm:$0xf0] }
0x1462   : > { %v12855_v21 = vor.u32 %v13377_v14, %v12854_v10  ;;  %v13342_v10 = vld [vmem:[%s19841_s11 + $0xa0] sm:$0xf0] }
0x1463   : > { %9915 = vmatpush.bf16.msra.mxu1 %v12699_v8  ;;  %v12866_v8 = vld [vmem:[%s19841_s11 + $0x1c8] sm:$0xf] }
0x1464   : > { %v12867_v9 = vor.u32 %v13380_v25, %v12866_v8  ;;  %v13322_v8 = vld [vmem:[%s19841_s11 + $0x4] sm:$0xf] }
0x1465   : > { %9941 = vmatpush.bf16.msra.mxu3 %v12891_v49  ;;  %v12811_v49 = vor.u32 %v13364_v48, %v12808_v43  ;;  %v13358_v25 = vld [vmem:[%s19841_s11 + $0x124] sm:$0xf]  ;;  %v12814_v48 = vld [vmem:[%s19841_s11 + $0x158] sm:$0xf] }
0x1467   : > { %9916 = vmatpush.bf16.msra.mxu1 %v12687_v62  ;;  %v13331_v62 = vld [vmem:[%s19841_s11 + $0x4c] sm:$0xf] }
0x1468   : > { %12635 = vmatmul.msk.bf16.vlgmr.msrb.gmra.mxu0 %vm19954_vm12, %v9354_v7  ;;  %v12679_v63 = vor.u32 %v13331_v62, %v12676_v55  ;;  %v13369_v62 = vld [vmem:[%s19841_s11 + $0x178] sm:$0xf0]  ;;  %vm19960_vm12 = vmmov %vm19937_vm1 }
0x1469   : > { %12633 = vmatmul.msk.bf16.vlgmr.msra.gmra.mxu2 %vm19955_vm13, %v9354_v7  ;;  %vm19963_vm13 = vmmov %vm19937_vm1 }
0x146a   : > { %12632 = vmatmul.msk.bf16.vlgmr.msrb.gmra.mxu1 %vm19937_vm1, %v9287_v28  ;;  %v13337_v28 = vld [vmem:[%s19841_s11 + $0x7c] sm:$0xf] }
0x146b   : > { %9917 = vmatpush.bf16.msra.mxu1 %v12675_v4 }
0x146c   : > { %12634 = vmatmul.msk.bf16.vlgmr.msrb.gmra.mxu3 %vm19956_vm9, %v9354_v7  ;;  %v12663_v7 = vor.u32 %v13329_v11, %v12662_v27  ;;  %v12759_v27 = vor.u32 %v13353_v32, %v12758_v52  ;;  %v12842_v11 = vld [vmem:[%s19841_s11 + $0x198] sm:$0xf] }
0x146f   : > { %9918 = vmatpush.bf16.msra.mxu1 %v12663_v7  ;;  %v13325_v7 = vld [vmem:[%s19841_s11 + $0x1c] sm:$0xf] }
0x1487   : > { %v8862_v42 = vpop.f32.mrf.mxu1 }
0x148c   : > { %v8875_v18 = vpop.f32.mrf.mxu2 }
0x148f   : > { %v18805_v36 = vpop.f32.mrf.mxu3  ;;  %v8864_v1 = vpop.f32.mrf.mxu1 }
0x1494   : > { %v8877_v33 = vpop.f32.mrf.mxu2 }
0x1495   : > { %v8977_v29 = vpop.f32.mrf.mxu0  ;;  %v12794_v33 = vld [vmem:[%s19841_s11 + $0x138] sm:$0xf] }
0x1497   : > { %v8890_v31 = vpop.f32.mrf.mxu3  ;;  %v8913_v45 = vpop.f32.mrf.mxu1 }
0x1498   : > { %v8914_v2 = vadd.f32 %v8913_v45, %v8862_v42  ;;  %v12700_v42 = vld [vmem:[%s19841_s11 + $0x84] sm:$0xf0]  ;;  %v12878_v31 = vld [vmem:[%s19841_s11 + $0x1e0] sm:$0xf] }
0x149a   : > { %v18807_v59 = vadd.f32 %v8977_v29, %v8914_v2  ;;  %v13362_v29 = vld [vmem:[%s19841_s11 + $0x140] sm:$0xf0] }
0x149b   : > { %v12795_v2 = vor.u32 %v13362_v29, %v12794_v33  ;;  %v12796_v33 = vld [vmem:[%s19841_s11 + $0x144] sm:$0xf0] }
0x149c   : > { %v8926_v17 = vpop.f32.mrf.mxu2 }
0x149d   : > { %v18809_v22 = vadd.f32 %v8926_v17, %v8875_v18  ;;  %v8979_v60 = vpop.f32.mrf.mxu0  ;;  %v12703_v18 = vor.u32 %v13337_v28, %v12700_v42  ;;  %v13383_v17 = vld [vmem:[%s19841_s11 + $0x1e8] sm:$0xf0]  ;;  %9928 = vmatpush.bf16.msrb.mxu2 %v12795_v2  ;;  %v13374_v28 = vld [vmem:[%s19841_s11 + $0x1a0] sm:$0xf0] }
0x149e   : > { %v12650_v60 = vld [vmem:[%s19841_s11 + $0x18] sm:$0xf]  ;;  %v12879_v24 = vor.u32 %v13383_v17, %v12878_v31  ;;  %v12843_v42 = vor.u32 %v13374_v28, %v12842_v11  ;;  %v12706_v11 = vld [vmem:[%s19841_s11 + $0x80] sm:$0xf] }
0x149f   : > { %v18817_v41 = vpop.f32.mrf.mxu3  ;;  %v8915_v53 = vpop.f32.mrf.mxu1  ;;  %9954 = vmatpush.bf16.msra.mxu0 %v12703_v18  ;;  %v12652_v18 = vld [vmem:[%s19841_s11 + $0x24] sm:$0xf0]  ;;  %v12746_v17 = vld [vmem:[%s19841_s11 + $0xd8] sm:$0xf] }
0x14a0   : > { %v12651_v53 = vor.u32 %v13326_v35, %v12650_v60  ;;  %9942 = vmatpush.bf16.msra.mxu3 %v12879_v24  ;;  %v12655_v29 = vor.u32 %v13325_v7, %v12652_v18  ;;  %v13350_v60 = vld [vmem:[%s19841_s11 + $0xe0] sm:$0xf0]  ;;  %v12830_v35 = vld [vmem:[%s19841_s11 + $0x180] sm:$0xf]  ;;  %v13352_v18 = vld [vmem:[%s19841_s11 + $0xf4] sm:$0xf] }
0x14a1   : > { %v12747_v24 = vor.u32 %v13350_v60, %v12746_v17  ;;  %v13385_v60 = vld [vmem:[%s19841_s11 + $0x1fc] sm:$0xf] }
0x14a2   : > { %9919 = vmatpush.bf16.msra.mxu1 %v12651_v53  ;;  %v13371_v53 = vld [vmem:[%s19841_s11 + $0x188] sm:$0xf0] }
0x14a4   : > { %v8928_v34 = vpop.f32.mrf.mxu2  ;;  %9943 = vmatpush.bf16.msra.mxu3 %v12867_v9  ;;  %v12784_v9 = vld [vmem:[%s19841_s11 + $0x12c] sm:$0xf0] }
0x14a5   : > { %v18831_v13 = vpop.f32.mrf.mxu0  ;;  %v12691_v34 = vor.u32 %v13334_v56, %v12688_v23  ;;  %v12730_v56 = vld [vmem:[%s19841_s11 + $0xb0] sm:$0xf]  ;;  %v13345_v23 = vld [vmem:[%s19841_s11 + $0xb8] sm:$0xf0]  ;;  %v12787_v55 = vor.u32 %v13358_v25, %v12784_v9  ;;  %v13360_v25 = vld [vmem:[%s19841_s11 + $0x130] sm:$0xf0] }
0x14a6   : > { %9920 = vmatpush.bf16.msra.mxu1 %v12639_v6  ;;  %v12826_v6 = vld [vmem:[%s19841_s11 + $0x170] sm:$0xf] }
0x14a7   : > { %v8941_v47 = vpop.f32.mrf.mxu3  ;;  %v18833_v50 = vpop.f32.mrf.mxu1  ;;  %9955 = vmatpush.bf16.msra.mxu0 %v12691_v34 }
0x14a8   : > { %v12783_v47 = vor.u32 %v13359_v37, %v12782_v20  ;;  %9944 = vmatpush.bf16.msra.mxu3 %v12855_v21  ;;  %v12831_v20 = vor.u32 %v13371_v53, %v12830_v35  ;;  %v12731_v37 = vor.u32 %v13345_v23, %v12730_v56  ;;  %v12772_v21 = vld [vmem:[%s19841_s11 + $0x114] sm:$0xf0]  ;;  %v12892_v35 = vld [vmem:[%s19841_s11 + $0x204] sm:$0xf0]  ;;  %v13336_v56 = vld [vmem:[%s19841_s11 + $0x70] sm:$0xf0] }
0x14a9   : > { %v12895_v53 = vor.u32 %v13385_v60, %v12892_v35  ;;  %v13349_v23 = vld [vmem:[%s19841_s11 + $0xdc] sm:$0xf]  ;;  %v9008_v35 = vadd.f32 %v18833_v50, %v18809_v22  ;;  %v12742_v22 = vld [vmem:[%s19841_s11 + $0xc8] sm:$0xf]  ;;  %v13348_v50 = vld [vmem:[%s19841_s11 + $0xd0] sm:$0xf0] }
0x14aa   : > { %9929 = vmatpush.bf16.msrb.mxu2 %v12783_v47  ;;  %v12640_v47 = vld [vmem:[%s19841_s11 + $0xc] sm:$0xf0] }
0x14ab   : > { %9956 = vmatpush.bf16.msra.mxu0 %v12679_v63  ;;  %v12643_v3 = vor.u32 %v13322_v8, %v12640_v47  ;;  %v12734_v63 = vld [vmem:[%s19841_s11 + $0xc0] sm:$0xf]  ;;  %v12790_v47 = vld [vmem:[%s19841_s11 + $0x128] sm:$0xf] }
0x14ac   : > { %v18853_v15 = vpop.f32.mrf.mxu2  ;;  %9945 = vmatpush.bf16.msra.mxu3 %v12843_v42  ;;  %v13339_v42 = vld [vmem:[%s19841_s11 + $0x88] sm:$0xf0]  ;;  %v12791_v9 = vor.u32 %v13360_v25, %v12790_v47  ;;  %v9075_v25 = vadd.f32 %v18831_v13, %v9008_v35 }
0x14ad   : > { %v9059_v12 = vpop.f32.mrf.mxu0 }
0x14ae   : > { %v12820_v12 = vld [vmem:[%s19841_s11 + $0x174] sm:$0xf0] }
0x14af   : > { %v18864_v44 = vpop.f32.mrf.mxu3  ;;  %v8992_v57 = vpop.f32.mrf.mxu1  ;;  %v12823_v26 = vor.u32 %v13367_v30, %v12820_v12  ;;  %9957 = vmatpush.bf16.msra.mxu0 %v12667_v16  ;;  %v12827_v30 = vor.u32 %v13369_v62, %v12826_v6  ;;  %v13347_v12 = vld [vmem:[%s19841_s11 + $0xc8] sm:$0xf0]  ;;  %v13366_v16 = vld [vmem:[%s19841_s11 + $0x160] sm:$0xf0] }
0x14b0   : > { %v12771_v57 = vor.u32 %v13356_v54, %v12770_v39  ;;  %9946 = vmatpush.bf16.msra.mxu3 %v12831_v20  ;;  %v12916_v39 = vld [vmem:[%s19841_s11 + $0x234] sm:$0xf0]  ;;  %v12815_v52 = vor.u32 %v13366_v16, %v12814_v48  ;;  %v13382_v62 = vld [vmem:[%s19841_s11 + $0x1e4] sm:$0xf]  ;;  %v8940_v48 = vadd.f32 %v18817_v41, %v18805_v36 }
0x14b1   : > { %9965 = vmatpush.bf16.msrb.mxu1 %v12823_v26  ;;  %v13391_v26 = vld [vmem:[%s19841_s11 + $0x22c] sm:$0xf]  ;;  %v12718_v54 = vld [vmem:[%s19841_s11 + $0x98] sm:$0xf]  ;;  %v13354_v36 = vld [vmem:[%s19841_s11 + $0x100] sm:$0xf0] }
0x14b2   : > { %9930 = vmatpush.bf16.msrb.mxu2 %v12771_v57  ;;  %v12919_v57 = vor.u32 %v13391_v26, %v12916_v39  ;;  %v12719_v14 = vor.u32 %v13342_v10, %v12718_v54  ;;  %v13333_v26 = vld [vmem:[%s19841_s11 + $0x58] sm:$0xf0]  ;;  %v12736_v39 = vld [vmem:[%s19841_s11 + $0xcc] sm:$0xf0]  ;;  %v9009_v41 = vadd.f32 %v18853_v15, %v8940_v48  ;;  %v13327_v15 = vld [vmem:[%s19841_s11 + $0x28] sm:$0xf0] }
0x14b3   : > { %9958 = vmatpush.bf16.msra.mxu0 %v12655_v29 }
0x14b4   : > { %v9005_v1 = vpop.f32.mrf.mxu2  ;;  %9991 = vmatpush.bf16.msrb.mxu3 %v12731_v37 }
0x14b5   : > { %v18914_v45 = vpop.f32.mrf.mxu0  ;;  %v13361_v1 = vld [vmem:[%s19841_s11 + $0x13c] sm:$0xf]  ;;  %9966 = vmatpush.bf16.msrb.mxu1 %v12811_v49  ;;  %v13388_v49 = vld [vmem:[%s19841_s11 + $0x214] sm:$0xf] }
0x14b6   : > { %v12799_v31 = vor.u32 %v13361_v1, %v12796_v33  ;;  %9931 = vmatpush.bf16.msrb.mxu2 %v12759_v27  ;;  %v12904_v27 = vld [vmem:[%s19841_s11 + $0x21c] sm:$0xf0]  ;;  %v12707_v33 = vor.u32 %v13339_v42, %v12706_v11 }
0x14b7   : > { %v9046_v51 = vpop.f32.mrf.mxu3  ;;  %v18931_v40 = vpop.f32.mrf.mxu1  ;;  %9959 = vmatpush.bf16.msra.mxu0 %v12643_v3  ;;  %v12907_v7 = vor.u32 %v13388_v49, %v12904_v27  ;;  %v12760_v1 = vld [vmem:[%s19841_s11 + $0xfc] sm:$0xf0]  ;;  %v12766_v49 = vld [vmem:[%s19841_s11 + $0xf8] sm:$0xf] }
0x14b8   : > { %9992 = vmatpush.bf16.msrb.mxu3 %v12719_v14  ;;  %v12763_v29 = vor.u32 %v13352_v18, %v12760_v1  ;;  %v13357_v14 = vld [vmem:[%s19841_s11 + $0x118] sm:$0xf0]  ;;  %v12856_v42 = vld [vmem:[%s19841_s11 + $0x1bc] sm:$0xf0] }
0x14b9   : > { %9967 = vmatpush.bf16.msrb.mxu1 %v12799_v31  ;;  %v12802_v31 = vld [vmem:[%s19841_s11 + $0x140] sm:$0xf] }
0x14ba   : > { %9932 = vmatpush.bf16.msrb.mxu2 %v12747_v24  ;;  %v12694_v24 = vld [vmem:[%s19841_s11 + $0x68] sm:$0xf]  ;;  %v12658_v18 = vld [vmem:[%s19841_s11 + $0x20] sm:$0xf] }
0x14bb   : > { %10004 = vmatpush.bf16.msrb.mxu0 %v12827_v30  ;;  %v12695_v37 = vor.u32 %v13336_v56, %v12694_v24  ;;  %v12682_v30 = vld [vmem:[%s19841_s11 + $0x50] sm:$0xf]  ;;  %v12659_v60 = vor.u32 %v13327_v15, %v12658_v18  ;;  %v13373_v56 = vld [vmem:[%s19841_s11 + $0x19c] sm:$0xf] }
0x14bc   : > { %v18963_v58 = vpop.f32.mrf.mxu2  ;;  %9993 = vmatpush.bf16.msrb.mxu3 %v12707_v33  ;;  %v12683_v54 = vor.u32 %v13333_v26, %v12682_v30 }
0x14bd   : > { %v9139_v19 = vpop.f32.mrf.mxu0  ;;  %9968 = vmatpush.bf16.msrb.mxu1 %v12787_v55  ;;  %v12880_v55 = vld [vmem:[%s19841_s11 + $0x1ec] sm:$0xf0] }
0x14be   : > { %v12735_v19 = vor.u32 %v13347_v12, %v12734_v63  ;;  %v12883_v12 = vor.u32 %v13382_v62, %v12880_v55  ;;  %v13370_v62 = vld [vmem:[%s19841_s11 + $0x184] sm:$0xf] }
0x14bf   : > { %v18974_v61 = vpop.f32.mrf.mxu3  ;;  %v9072_v4 = vpop.f32.mrf.mxu1  ;;  %10005 = vmatpush.bf16.msrb.mxu0 %v12815_v52  ;;  %v13330_v52 = vld [vmem:[%s19841_s11 + $0x40] sm:$0xf0] }
0x14c0   : > { %v13355_v4 = vld [vmem:[%s19841_s11 + $0x10c] sm:$0xf]  ;;  %9933 = vmatpush.bf16.msrb.mxu2 %v12735_v19  ;;  %9994 = vmatpush.bf16.msrb.mxu3 %v12695_v37  ;;  %v13346_v19 = vld [vmem:[%s19841_s11 + $0xc4] sm:$0xf] }
0x14c1   : > { %v12775_v5 = vor.u32 %v13355_v4, %v12772_v21  ;;  %v12739_v10 = vor.u32 %v13346_v19, %v12736_v39  ;;  %v13379_v21 = vld [vmem:[%s19841_s11 + $0x1cc] sm:$0xf] }
0x14c3   : > { %9969 = vmatpush.bf16.msrb.mxu1 %v12775_v5  ;;  %v12868_v5 = vld [vmem:[%s19841_s11 + $0x1d4] sm:$0xf0] }
0x14c4   : > { %v9113_v2 = vpop.f32.mrf.mxu2  ;;  %9978 = vmatpush.bf16.msra.mxu2 %v12919_v57  ;;  %v12778_v57 = vld [vmem:[%s19841_s11 + $0x110] sm:$0xf]  ;;  %9995 = vmatpush.bf16.msrb.mxu3 %v12683_v54  ;;  %v12871_v16 = vor.u32 %v13379_v21, %v12868_v5 }
0x14c5   : > { %v19024_v51 = vpop.f32.mrf.mxu0  ;;  %v13363_v2 = vld [vmem:[%s19841_s11 + $0x148] sm:$0xf0]  ;;  %v12779_v4 = vor.u32 %v13357_v14, %v12778_v57 }
0x14c6   : > { %v12803_v17 = vor.u32 %v13363_v2, %v12802_v31  ;;  %v13351_v31 = vld [vmem:[%s19841_s11 + $0xe8] sm:$0xf0]  ;;  %v9076_v2 = vadd.f32 %v18931_v40, %v9009_v41  ;;  %v12646_v40 = vld [vmem:[%s19841_s11 + $0x8] sm:$0xf] }
0x14c7   : > { %v9126_v34 = vpop.f32.mrf.mxu3  ;;  %v19044_v38 = vpop.f32.mrf.mxu1  ;;  %9970 = vmatpush.bf16.msrb.mxu1 %v12763_v29  ;;  %v12754_v29 = vld [vmem:[%s19841_s11 + $0xe0] sm:$0xf] }
0x14c8   : > { %9979 = vmatpush.bf16.msra.mxu2 %v12907_v7  ;;  %10006 = vmatpush.bf16.msrb.mxu0 %v12803_v17  ;;  %v12748_v34 = vld [vmem:[%s19841_s11 + $0xe4] sm:$0xf0]  ;;  %v13376_v7 = vld [vmem:[%s19841_s11 + $0x1b4] sm:$0xf] }
0x14c9   : > { %v12751_v8 = vor.u32 %v13349_v23, %v12748_v34  ;;  %v12859_v33 = vor.u32 %v13376_v7, %v12856_v42  ;;  %v12844_v23 = vld [vmem:[%s19841_s11 + $0x1a4] sm:$0xf0]  ;;  %v13324_v34 = vld [vmem:[%s19841_s11 + $0x10] sm:$0xf0] }
0x14ca   : > { %v12847_v37 = vor.u32 %v13373_v56, %v12844_v23  ;;  %v12647_v47 = vor.u32 %v13324_v34, %v12646_v40  ;;  %v12874_v23 = vld [vmem:[%s19841_s11 + $0x1d0] sm:$0xf]  ;;  %v13381_v40 = vld [vmem:[%s19841_s11 + $0x1d8] sm:$0xf0] }
0x14cb   : > { %9971 = vmatpush.bf16.msrb.mxu1 %v12751_v8  ;;  %v9143_v8 = vadd.f32 %v18914_v45, %v9076_v2  ;;  %v9142_v45 = vadd.f32 %v18974_v61, %v9075_v25  ;;  %v9416_v61 = vpop.permute.xlu0 %9415  ;;  %v12875_v34 = vor.u32 %v13381_v40, %v12874_v23  ;;  %v12838_v25 = vld [vmem:[%s19841_s11 + $0x188] sm:$0xf] }
0x14cc   : > { %v19079_v0 = vpop.f32.mrf.mxu2  ;;  %9980 = vmatpush.bf16.msra.mxu2 %v12895_v53  ;;  %10007 = vmatpush.bf16.msrb.mxu0 %v12791_v9  ;;  %v12755_v53 = vor.u32 %v13351_v31, %v12754_v29 }
0x14cd   : > { %v9247_v43 = vpop.f32.mrf.mxu0  ;;  %v9209_v19 = vadd.f32 %v19079_v0, %v9142_v45 }
0x14ce   : > { %v12670_v43 = vld [vmem:[%s19841_s11 + $0x38] sm:$0xf] }
0x14cf   : > { %v19087_v32 = vpop.f32.mrf.mxu3  ;;  %v9180_v28 = vpop.f32.mrf.mxu1  ;;  %9972 = vmatpush.bf16.msrb.mxu1 %v12739_v10  ;;  %v12671_v27 = vor.u32 %v13330_v52, %v12670_v43 }
0x14d0   : > { %9981 = vmatpush.bf16.msra.mxu2 %v12883_v12  ;;  %10008 = vmatpush.bf16.msrb.mxu0 %v12779_v4  ;;  %v12767_v28 = vor.u32 %v13354_v36, %v12766_v49 }
0x14d1   : > { %9996 = vmatpush.bf16.msrb.mxu3 %v12671_v27 }
0x14d4   : > { %v9193_v20 = vpop.f32.mrf.mxu2  ;;  %9982 = vmatpush.bf16.msra.mxu2 %v12871_v16  ;;  %10009 = vmatpush.bf16.msrb.mxu0 %v12767_v28 }
0x14d5   : > { %v19137_v3 = vpop.f32.mrf.mxu0  ;;  %v9074_v20 = vadd.f32 %v18864_v44, %v18807_v59  ;;  %9997 = vmatpush.bf16.msrb.mxu3 %v12659_v60  ;;  %v12832_v59 = vld [vmem:[%s19841_s11 + $0x18c] sm:$0xf0]  ;;  %v9210_v44 = vadd.f32 %v19087_v32, %v9143_v8  ;;  %v13387_v60 = vld [vmem:[%s19841_s11 + $0x208] sm:$0xf0] }
0x14d6   : > { %v13375_v8 = vld [vmem:[%s19841_s11 + $0x1a8] sm:$0xf0] }
0x14d7   : > { %v9206_v6 = vpop.f32.mrf.mxu3  ;;  %v19148_v63 = vpop.f32.mrf.mxu1  ;;  %v9141_v9 = vadd.f32 %v18963_v58, %v9074_v20  ;;  %v12835_v58 = vor.u32 %v13370_v62, %v12832_v59 }
0x14d8   : > { %9983 = vmatpush.bf16.msra.mxu2 %v12859_v33  ;;  %10010 = vmatpush.bf16.msrb.mxu0 %v12755_v53  ;;  %v12743_v6 = vor.u32 %v13348_v50, %v12742_v22  ;;  %v9276_v32 = vadd.f32 %v19148_v63, %v9209_v19  ;;  %v13393_v63 = vld [vmem:[%s19841_s11 + $0x238] sm:$0xf0]  ;;  %v13390_v33 = vld [vmem:[%s19841_s11 + $0x220] sm:$0xf0]  ;;  %v13384_v53 = vld [vmem:[%s19841_s11 + $0x1f0] sm:$0xf0] }
0x14d9   : > { %v9208_v30 = vadd.f32 %v19044_v38, %v9141_v9  ;;  %9998 = vmatpush.bf16.msrb.mxu3 %v12647_v47  ;;  %v12862_v22 = vld [vmem:[%s19841_s11 + $0x1b8] sm:$0xf]  ;;  %v13378_v50 = vld [vmem:[%s19841_s11 + $0x1c0] sm:$0xf0]  ;;  %v13372_v9 = vld [vmem:[%s19841_s11 + $0x190] sm:$0xf0] }
0x14da   : > { %v9343_v21 = vadd.f32 %v19137_v3, %v9276_v32  ;;  %v12863_v20 = vor.u32 %v13378_v50, %v12862_v22 }
0x14db   : > { %v9275_v10 = vadd.f32 %v19024_v51, %v9208_v30  ;;  %v12922_v51 = vld [vmem:[%s19841_s11 + $0x230] sm:$0xf] }
0x14dc   : > { %v9271_v11 = vpop.f32.mrf.mxu2  ;;  %9984 = vmatpush.bf16.msra.mxu2 %v12847_v37  ;;  %10011 = vmatpush.bf16.msrb.mxu0 %v12743_v6  ;;  %v12923_v7 = vor.u32 %v13393_v63, %v12922_v51  ;;  %v12850_v37 = vld [vmem:[%s19841_s11 + $0x1a0] sm:$0xf]  ;;  %v12839_v6 = vor.u32 %v13372_v9, %v12838_v25  ;;  %v10049_v25 = vld [vmem:[%s19831_s1 + $0x4f0] sm:$0x1] }
0x14dd   : > { %v9327_v1 = vpop.f32.mrf.mxu0  ;;  %v9277_v12 = vadd.f32 %v9271_v11, %v9210_v44  ;;  %v12851_v47 = vor.u32 %v13375_v8, %v12850_v37 }
0x14de   : > { %v12910_v1 = vld [vmem:[%s19841_s11 + $0x218] sm:$0xf] }
0x14df   : > { %v9312_v17 = vpop.f32.mrf.mxu3  ;;  %v9260_v24 = vpop.f32.mrf.mxu1  ;;  %v12911_v2 = vor.u32 %v13390_v33, %v12910_v1 }
0x14e0   : > { %9985 = vmatpush.bf16.msra.mxu2 %v12835_v58  ;;  %v9342_v14 = vadd.f32 %v9312_v17, %v9275_v10  ;;  %v12898_v17 = vld [vmem:[%s19841_s11 + $0x200] sm:$0xf]  ;;  %v12886_v24 = vld [vmem:[%s19841_s11 + $0x1e8] sm:$0xf] }
0x14e1   : > { %v12899_v35 = vor.u32 %v13387_v60, %v12898_v17  ;;  %v12887_v56 = vor.u32 %v13384_v53, %v12886_v24 }
0x14e4   : > { %v9273_v55 = vpop.f32.mrf.mxu2 }
0x14e5   : > { %v9405_v13 = vpop.f32.mrf.mxu0 }
0x14e7   : > { %v9314_v26 = vpop.f32.mrf.mxu3  ;;  %v9338_v39 = vpop.f32.mrf.mxu1 }
0x14e8   : > { %v9344_v54 = vadd.f32 %v9338_v39, %v9277_v12 }
0x14ea   : > { %v9411_v57 = vadd.f32 %v9405_v13, %v9344_v54 }
0x14ec   : > { %v9420_v38 = vadd.f32 %v9416_v61, %v9411_v57  ;;  %v9379_v4 = vpop.f32.mrf.mxu2 }
0x14ed   : > { %v9409_v5 = vadd.f32 %v9379_v4, %v9342_v14  ;;  %v9407_v48 = vpop.f32.mrf.mxu0 }
0x14ee   : > { %vm9423_vm9 = vcmp.ge.f32.partialorder %v9420_v38, 0.0  ;;  %v9426_v16 = vmul.f32 0.2, %v9420_v38 }
0x14ef   : > { %v9392_v0 = vpop.f32.mrf.mxu3  ;;  %v9418_v43 = vadd.f32 %v9416_v61, %v9409_v5  ;;  %v9340_v49 = vpop.f32.mrf.mxu1 }
0x14f0   : > { %v9410_v52 = vadd.f32 %v9392_v0, %v9343_v21  ;;  %v9429_v27 = vsel %vm9423_vm9, %v9420_v38, %v9426_v16  ;;  %vm19965_vm9 = vmmov %vm19937_vm1 }
0x14f1   : > { %v9432_v36 = vpack.c.bf16 %v9429_v27, %v9429_v27  ;;  %vm9421_vm11 = vcmp.ge.f32.partialorder %v9418_v43, 0.0  ;;  %v9424_v3 = vmul.f32 0.2, %v9418_v43 }
0x14f2   : > { %v9419_v41 = vadd.f32 %v9416_v61, %v9410_v52  ;;  %v10624_v52 = vld [vmem:[%s19832_s2 + $0x118] sm:$0x3] }
0x14f3   : > { %v9427_v11 = vsel %vm9421_vm11, %v9418_v43, %v9424_v3  ;;  %9947 = vmatmul.bf16.vlgmr.msra.gmra.mxu3 %v9432_v36  ;;  %vm19966_vm11 = vmmov %vm19937_vm1 }
0x14f4   : > { %vm9422_vm14 = vcmp.ge.f32.partialorder %v9419_v41, 0.0  ;;  %v9425_v28 = vmul.f32 0.2, %v9419_v41  ;;  %v9430_v42 = vpack.c.bf16 %v9427_v11, %v9427_v11  ;;  %v9381_v18 = vpop.f32.mrf.mxu2 }
0x14f5   : > { %v19340_v18 = vld [vmem:[%s19831_s1 + $0x4f4] sm:$0x1] }
0x14f6   : > { %v9428_v15 = vsel %vm9422_vm14, %v9419_v41, %v9425_v28  ;;  %9921 = vmatmul.bf16.vlgmr.msra.gmra.mxu1 %v9430_v42  ;;  %9960 = vmatmul.bf16.vlgmr.msra.gmra.mxu0 %v9430_v42  ;;  %vm19967_vm14 = vcmp.lt.s32.totalorder %v19932_v46, 90 }
0x14f7   : > { %v9431_v29 = vpack.c.bf16 %v9428_v15, %v9428_v15  ;;  %v9394_v31 = vpop.f32.mrf.mxu3  ;;  %10017 = vmatpush.bf16.msra.mxu1 %v12923_v7 }
0x14f9   : > { %9934 = vmatmul.bf16.vlgmr.msrb.gmra.mxu2 %v9431_v29 }
0x14fb   : > { %10018 = vmatpush.bf16.msra.mxu1 %v12911_v2 }
0x14ff   : > { %10019 = vmatpush.bf16.msra.mxu1 %v12899_v35 }
0x1503   : > { %10020 = vmatpush.bf16.msra.mxu1 %v12887_v56  ;;  %9999 = vmatmul.bf16.vlgmr.msrb.gmra.mxu3 %v9430_v42 }
0x1506   : > { %9973 = vmatmul.bf16.vlgmr.msrb.gmra.mxu1 %v9431_v29  ;;  %10012 = vmatmul.bf16.vlgmr.msrb.gmra.mxu0 %v9431_v29 }
0x1507   : > { %10021 = vmatpush.bf16.msra.mxu1 %v12875_v34 }
0x1509   : > { %9986 = vmatmul.bf16.vlgmr.msra.gmra.mxu2 %v9432_v36 }
0x150b   : > { %10022 = vmatpush.bf16.msra.mxu1 %v12863_v20 }
0x150f   : > { %10023 = vmatpush.bf16.msra.mxu1 %v12851_v47 }
0x1513   : > { %10024 = vmatpush.bf16.msra.mxu1 %v12839_v6 }
0x1516   : > { %10025 = vmatmul.bf16.vlgmr.msra.gmra.mxu1 %v9432_v36 }
0x1573   : > { %v9922_v62 = vpop.f32.mrf.mxu1  ;;  %v9961_v59 = vpop.f32.mrf.mxu0 }
0x1576   : > { %v9948_v44 = vpop.f32.mrf.mxu3 }
0x157b   : > { %v9924_v55 = vpop.f32.mrf.mxu1  ;;  %v9963_v13 = vpop.f32.mrf.mxu0 }
0x157c   : > { %v9935_v45 = vpop.f32.mrf.mxu2 }
0x157d   : > { %v9936_v30 = vadd.f32 %v9935_v45, %v9922_v62 }
0x157e   : > { %v9950_v12 = vpop.f32.mrf.mxu3 }
0x157f   : > { %v19291_v58 = vadd.f32 %v9948_v44, %v9936_v30 }
0x1581   : > { %10040 = vrot.lane.b32.xlu2 %v19291_v58, %s19931_s22  ;;  %v10037_v60 = vpack.c.bf16 %v19291_v58, %v19291_v58 }
0x1583   : > { %v9974_v19 = vpop.f32.mrf.mxu1  ;;  %v10013_v39 = vpop.f32.mrf.mxu0  ;;  %v10108_v62 = vsel %vm475_vm0, %v10037_v60, 0 }
0x1584   : > { %v9937_v26 = vpop.f32.mrf.mxu2  ;;  %v9975_v10 = vadd.f32 %v9974_v19, %v9961_v59 }
0x1586   : > { %v10000_v54 = vpop.f32.mrf.mxu3 }
0x1587   : > { %v10014_v21 = vadd.f32 %v10013_v39, %v10000_v54  ;;  %v19387_v54 = vld [vmem:[%s19831_s1 + $0x4f8] sm:$0x1] }
0x158b   : > { %v9976_v32 = vpop.f32.mrf.mxu1  ;;  %v10015_v14 = vpop.f32.mrf.mxu0 }
0x158c   : > { %v9987_v57 = vpop.f32.mrf.mxu2 }
0x158d   : > { %v19295_v61 = vadd.f32 %v9987_v57, %v9975_v10 }
0x158e   : > { %v10002_v38 = vpop.f32.mrf.mxu3 }
0x158f   : > { %v14603_v4 = vpack.i.bf16 %v19295_v61, %v19291_v58  ;;  %v10038_v17 = vpack.c.bf16 %v19295_v61, %v19295_v61 }
0x1591   : > { %14604 = vrot.lane.b32.xlu0 %v14603_v4, %s19898_s21  ;;  %14609 = vrot.lane.b32.xlu2 %v14603_v4, %s19910_s30  ;;  %v10111_v47 = vsel %vm475_vm0, %v10038_v17, 0 }
0x1593   : > { %v10026_v48 = vpop.f32.mrf.mxu1 }
0x1594   : > { %v9989_v5 = vpop.f32.mrf.mxu2  ;;  %v19301_v16 = vadd.f32 %v10026_v48, %v10014_v21 }
0x1596   : > { %v14598_v0 = vpack.i.bf16 %v19301_v16, %v19295_v61  ;;  %v10039_v35 = vpack.c.bf16 %v19301_v16, %v19301_v16 }
0x1598   : > { %14599 = vrot.lane.b32.xlu1 %v14598_v0, %s19931_s22  ;;  %v10114_v59 = vsel %vm475_vm0, %v10039_v35, 0 }
0x1599   : > { %10226 = vrot.lane.b32.xlu0 %v19301_v16, %s19910_s30  ;;  %10293 = vrot.lane.b32.xlu2 %v19301_v16, %s19911_s20 }
0x159b   : > { %v10028_v43 = vpop.f32.mrf.mxu1 }
0x15a0   : > { %10159 = vrot.lane.b32.xlu1 %v19301_v16, %s19898_s21 }
0x15a1   : > { %14619 = vrot.lane.b32.xlu0 %v14598_v0, %s19909_s18  ;;  %14624 = vrot.lane.b32.xlu2 %v14603_v4, %s19912_s27 }
0x15a8   : > { %14614 = vrot.lane.b32.xlu1 %v14603_v4, %s19911_s20 }
0x15a9   : > { %10427 = vrot.lane.b32.xlu0 %v19301_v16, %s19912_s27  ;;  %10494 = vrot.lane.b32.xlu2 %v19301_v16, %s19913_s16 }
0x15b0   : > { %10356 = vrot.lane.b32.xlu1 %v19291_v58, %s19909_s18 }
0x15b1   : > { %14634 = vrot.lane.b32.xlu0 %v14603_v4, %s19914_s28  ;;  %10627 = vperm.xlu2 %13466, %v10624_v52  }
0x15b8   : > { %14629 = vrot.lane.b32.xlu1 %v14603_v4, %s19913_s16 }
0x15c0   : > { %10561 = vrot.lane.b32.xlu1 %v19301_v16, %s19914_s28 }
0x15db   : > { %v10041_v49 = vpop.permute.xlu2 %10040 }
0x15eb   : > { %v19328_v27 = vpop.permute.xlu2 %14609 }
0x15ec   : > { %v14612_v28 = vunpack.i.h.bf16 %v19328_v27  ;;  %v14611_v7 = vunpack.i.l.bf16 %v19328_v27 }
0x15ee   : > { %v10229_v23 = vsel %vm649_vm3, %v14611_v7, %v14612_v28 }
0x15ef   : > { %v10232_v9 = vpack.c.bf16 %v10229_v23, %v10229_v23 }
0x15f1   : > { %v10239_v58 = vsel %vm475_vm0, %v10232_v9, 0 }
0x15f3   : > { %v19335_v42 = vpop.permute.xlu2 %10293 }
0x15fb   : > { %v19370_v44 = vpop.permute.xlu2 %14624 }
0x15fc   : > { %v14627_v12 = vunpack.i.h.bf16 %v19370_v44  ;;  %v14626_v26 = vunpack.i.l.bf16 %v19370_v44 }
0x15fe   : > { %v10430_v32 = vsel %vm853_vm7, %v14626_v26, %v14627_v12 }
0x15ff   : > { %v10433_v21 = vpack.c.bf16 %v10430_v32, %v10430_v32 }
0x1601   : > { %v10440_v52 = vsel %vm475_vm0, %v10433_v21, 0 }
0x1603   : > { %v14605_v51 = vpop.permute.xlu0 %14604 }
0x1604   : > { %v14607_v63 = vunpack.i.h.bf16 %v14605_v51  ;;  %v14606_v36 = vunpack.i.l.bf16 %v14605_v51 }
0x1606   : > { %v10162_v3 = vsel %vm581_vm4, %v14606_v36, %v14607_v63 }
0x1607   : > { %v10165_v41 = vpack.c.bf16 %v10162_v3, %v10162_v3 }
0x1609   : > { %v10172_v11 = vsel %vm475_vm0, %v10165_v41, 0 }
0x160a   : > { %10187 = vmatpush.bf16.msrb.mxu1 %v10172_v11  ;;  %v14600_v1 = vpop.permute.xlu1 %14599 }
0x160b   : > { %v10227_v33 = vpop.permute.xlu0 %10226  ;;  %v14602_v15 = vunpack.i.h.bf16 %v14600_v1  ;;  %v14601_v29 = vunpack.i.l.bf16 %v14600_v1 }
0x160c   : > { %v10228_v31 = vsel %vm649_vm3, %v14612_v28, %v10227_v33  ;;  %v10230_v38 = vsel %vm649_vm3, %v10227_v33, %v14611_v7  ;;  %vm19962_vm3 = vmmov %vm19937_vm1  ;;  %v10298_v28 = vld [vmem:[%s19831_s1 + $0x4fc] sm:$0x1] }
0x160d   : > { %v10233_v2 = vpack.c.bf16 %v10228_v31, %v10228_v31  ;;  %12930 = vmatmul.msk.bf16.vlgmr.msrb.gmra.mxu1 %vm19957_vm15, %v19340_v18  ;;  %v10047_v24 = vsel %vm463_vm2, %v10041_v49, %v14601_v29  ;;  %v10046_v53 = vsel %vm463_vm2, %v14601_v29, %v14602_v15  ;;  %v10048_v56 = vsel %vm463_vm2, %v14602_v15, %v10041_v49  ;;  %vm19958_vm2 = vmmov %vm19937_vm1  ;;  %v10036_v49 = vld [vmem:[%s19831_s1 + $0x4ec] sm:$0x1]  ;;  %v10495_v15 = vpop.permute.xlu2 %10494 }
0x160e   : > { %v10050_v34 = vpack.c.bf16 %v10047_v24, %v10047_v24  ;;  %v10051_v22 = vpack.c.bf16 %v10046_v53, %v10046_v53  ;;  %v10052_v50 = vpack.c.bf16 %v10048_v56, %v10048_v56  ;;  %v10234_v0 = vpack.c.bf16 %v10230_v38, %v10230_v38  ;;  %vm19969_vm15 = vmmov %vm19937_vm1  ;;  %v10566_v38 = vld [vmem:[%s19831_s1 + $0x50c] sm:$0x1] }
0x160f   : > { %v10242_v40 = vsel %vm475_vm0, %v10233_v2, 0 }
0x1610   : > { %10267 = vmatpush.bf16.msra.mxu1 %v10242_v40  ;;  %v10057_v20 = vsel %vm475_vm0, %v10050_v34, 0  ;;  %v10060_v37 = vsel %vm475_vm0, %v10051_v22, 0  ;;  %v10063_v8 = vsel %vm475_vm0, %v10052_v50, 0 }
0x1611   : > { %10072 = vmatpush.bf16.msrb.mxu2 %v10057_v20  ;;  %10085 = vmatpush.bf16.msra.mxu3 %v10060_v37 }
0x1612   : > { %10098 = vmatpush.bf16.msra.mxu0 %v10063_v8  ;;  %v10160_v6 = vpop.permute.xlu1 %10159 }
0x1613   : > { %v10161_v55 = vsel %vm581_vm4, %v14607_v63, %v10160_v6  ;;  %v10163_v45 = vsel %vm581_vm4, %v10160_v6, %v14606_v36  ;;  %v14620_v14 = vpop.permute.xlu0 %14619  ;;  %vm19961_vm4 = vmmov %vm19937_vm1  ;;  %v10245_v36 = vsel %vm475_vm0, %v10234_v0, 0 }
0x1614   : > { %v10166_v30 = vpack.c.bf16 %v10161_v55, %v10161_v55  ;;  %v10167_v13 = vpack.c.bf16 %v10163_v45, %v10163_v45  ;;  %12924 = vmatmul.msk.bf16.vlgmr.msrb.gmra.mxu2 %vm19958_vm2, %v10049_v25  ;;  %12925 = vmatmul.msk.bf16.vlgmr.msra.gmra.mxu3 %vm19959_vm10, %v10049_v25  ;;  %v14622_v7 = vunpack.i.h.bf16 %v14620_v14  ;;  %vm19970_vm2 = vmmov %vm19937_vm1 }
0x1615   : > { %10136 = vmatpush.bf16.msrb.mxu3 %v10111_v47  ;;  %10123 = vmatpush.bf16.msra.mxu2 %v10108_v62  ;;  %vm19971_vm10 = vmmov %vm19937_vm1 }
0x1616   : > { %10149 = vmatpush.bf16.msrb.mxu0 %v10114_v59  ;;  %v10175_v19 = vsel %vm475_vm0, %v10166_v30, 0  ;;  %v10178_v39 = vsel %vm475_vm0, %v10167_v13, 0 }
0x1617   : > { %12926 = vmatmul.msk.bf16.vlgmr.msra.gmra.mxu0 %vm19960_vm12, %v10049_v25  ;;  %vm19972_vm12 = vmmov %vm19937_vm1 }
0x1619   : > { %10200 = vmatpush.bf16.msrb.mxu2 %v10175_v19  ;;  %10213 = vmatpush.bf16.msra.mxu3 %v10178_v39 }
0x161a   : > { %10254 = vmatpush.bf16.msra.mxu0 %v10239_v58  ;;  %v14615_v10 = vpop.permute.xlu1 %14614 }
0x161b   : > { %v14617_v57 = vunpack.i.h.bf16 %v14615_v10  ;;  %v14616_v61 = vunpack.i.l.bf16 %v14615_v10  ;;  %v10428_v11 = vpop.permute.xlu0 %10427 }
0x161c   : > { %v10429_v9 = vsel %vm853_vm7, %v14627_v12, %v10428_v11  ;;  %v10431_v6 = vsel %vm853_vm7, %v10428_v11, %v14626_v26  ;;  %v10499_v12 = vld [vmem:[%s19831_s1 + $0x508] sm:$0x1]  ;;  %vm19973_vm7 = vmmov %vm19937_vm1  ;;  %v10663_v11 = vld [vmem:[%s19842_s12 + $0xf0] sm:$0xff] }
0x161d   : > { %12934 = vmatmul.msk.bf16.vlgmr.msra.gmra.mxu1 %vm19961_vm4, %v19387_v54  ;;  %v10297_v4 = vsel %vm717_vm6, %v19335_v42, %v14616_v61  ;;  %v10296_v48 = vsel %vm717_vm6, %v14616_v61, %v14617_v57  ;;  %v10295_v16 = vsel %vm717_vm6, %v14617_v57, %v19335_v42  ;;  %vm19964_vm6 = vmmov %vm19937_vm1  ;;  %v14621_v42 = vunpack.i.l.bf16 %v14620_v14  ;;  %v10365_v57 = vld [vmem:[%s19831_s1 + $0x500] sm:$0x1] }
0x161e   : > { %v10301_v5 = vpack.c.bf16 %v10297_v4, %v10297_v4  ;;  %v10299_v27 = vpack.c.bf16 %v10296_v48, %v10296_v48  ;;  %v10300_v51 = vpack.c.bf16 %v10295_v16, %v10295_v16  ;;  %v10434_v59 = vpack.c.bf16 %v10429_v9, %v10429_v9  ;;  %vm19974_vm4 = vmmov %vm19967_vm14  ;;  %v10673_v9 = vld [vmem:[%s19842_s12 + $0x140] sm:$0xff] }
0x161f   : > { %v10362_v60 = vsel %vm785_vm5, %v14621_v42, %v14622_v7  ;;  %v10435_v55 = vpack.c.bf16 %v10431_v6, %v10431_v6 }
0x1620   : > { %v10312_v43 = vsel %vm475_vm0, %v10301_v5, 0  ;;  %v10306_v3 = vsel %vm475_vm0, %v10299_v27, 0  ;;  %v10309_v41 = vsel %vm475_vm0, %v10300_v51, 0  ;;  %v10367_v23 = vpack.c.bf16 %v10362_v60, %v10362_v60  ;;  %v10695_v27 = vld [vmem:[%s19842_s12 + $0x1f0] sm:$0xff]  ;;  %v10685_v60 = vld [vmem:[%s19842_s12 + $0x1a0] sm:$0xff] }
0x1621   : > { %10347 = vmatpush.bf16.msrb.mxu1 %v10312_v43  ;;  %v10443_v30 = vsel %vm475_vm0, %v10434_v59, 0  ;;  %v10446_v44 = vsel %vm475_vm0, %v10435_v55, 0 }
0x1622   : > { %v10357_v63 = vpop.permute.xlu1 %10356  ;;  %v10376_v20 = vsel %vm475_vm0, %v10367_v23, 0 }
0x1623   : > { %v10363_v29 = vsel %vm785_vm5, %v10357_v63, %v14621_v42  ;;  %v10364_v2 = vsel %vm785_vm5, %v14622_v7, %v10357_v63  ;;  %v14635_v24 = vpop.permute.xlu0 %14634  ;;  %vm19968_vm5 = vmmov %vm19937_vm1 }
0x1624   : > { %12927 = vmatmul.msk.bf16.vlgmr.msra.gmra.mxu2 %vm19962_vm3, %v10036_v49  ;;  %12928 = vmatmul.msk.bf16.vlgmr.msrb.gmra.mxu3 %vm19963_vm13, %v10036_v49  ;;  %v10366_v35 = vpack.c.bf16 %v10363_v29, %v10363_v29  ;;  %v10368_v56 = vpack.c.bf16 %v10364_v2, %v10364_v2  ;;  %v14636_v34 = vunpack.i.l.bf16 %v14635_v24  ;;  %v14637_v58 = vunpack.i.h.bf16 %v14635_v24  ;;  %vm19975_vm3 = vmmov %vm19974_vm4  ;;  %v10683_v24 = vld [vmem:[%s19842_s12 + $0x190] sm:$0xff] }
0x1625   : > { %10455 = vmatpush.bf16.msra.mxu1 %v10440_v52  ;;  %10280 = vmatpush.bf16.msra.mxu2 %v10245_v36  ;;  %vm19976_vm13 = vmmov %vm19937_vm1 }
0x1626   : > { %10321 = vmatpush.bf16.msrb.mxu3 %v10306_v3  ;;  %v10373_v22 = vsel %vm475_vm0, %v10366_v35, 0  ;;  %v10379_v37 = vsel %vm475_vm0, %v10368_v56, 0  ;;  %v10564_v19 = vsel %vm19974_vm4, %v14636_v34, %v14637_v58  ;;  %v10693_v3 = vld [vmem:[%s19842_s12 + $0x1e0] sm:$0xff] }
0x1627   : > { %12929 = vmatmul.msk.bf16.vlgmr.msrb.gmra.mxu0 %vm19964_vm6, %v10036_v49  ;;  %v10567_v10 = vpack.c.bf16 %v10564_v19, %v10564_v19  ;;  %vm19977_vm6 = vmmov %vm19937_vm1  ;;  %v10657_v35 = vld [vmem:[%s19842_s12 + $0xc0] sm:$0xff] }
0x1628   : > { %10334 = vmatpush.bf16.msrb.mxu0 %v10309_v41  ;;  %v10691_v41 = vld [vmem:[%s19842_s12 + $0x1d0] sm:$0xff]  ;;  %v10681_v56 = vld [vmem:[%s19842_s12 + $0x180] sm:$0xff] }
0x1629   : > { %v10574_v14 = vsel %vm475_vm0, %v10567_v10, 0  ;;  %v10641_v19 = vld [vmem:[%s19842_s12 + $0x40] sm:$0xff]  ;;  %v10639_v10 = vld [vmem:[%s19842_s12 + $0x30] sm:$0xff] }
0x162a   : > { %v14630_v1 = vpop.permute.xlu1 %14629 }
0x162b   : > { %v14632_v33 = vunpack.i.h.bf16 %v14630_v1  ;;  %v14631_v47 = vunpack.i.l.bf16 %v14630_v1 }
0x162d   : > { %12938 = vmatmul.msk.bf16.vlgmr.msrb.gmra.mxu1 %vm19937_vm1, %v10298_v28  ;;  %v10496_v31 = vsel %vm921_vm8, %v14632_v33, %v10495_v15  ;;  %v10497_v62 = vsel %vm921_vm8, %v14631_v47, %v14632_v33  ;;  %v10498_v26 = vsel %vm921_vm8, %v10495_v15, %v14631_v47  ;;  %vm19978_vm8 = vmmov %vm19937_vm1  ;;  %v10661_v33 = vld [vmem:[%s19842_s12 + $0xe0] sm:$0xff]  ;;  %v10687_v15 = vld [vmem:[%s19842_s12 + $0x1b0] sm:$0xff] }
0x162e   : > { %v10501_v17 = vpack.c.bf16 %v10496_v31, %v10496_v31  ;;  %v10500_v45 = vpack.c.bf16 %v10497_v62, %v10497_v62  ;;  %v10675_v47 = vld [vmem:[%s19842_s12 + $0x150] sm:$0xff] }
0x1630   : > { %v10510_v53 = vsel %vm475_vm0, %v10501_v17, 0  ;;  %v10507_v13 = vsel %vm475_vm0, %v10500_v45, 0  ;;  %v10659_v17 = vld [vmem:[%s19842_s12 + $0xd0] sm:$0xff]  ;;  %v10645_v45 = vld [vmem:[%s19842_s12 + $0x60] sm:$0xff] }
0x1631   : > { %10535 = vmatpush.bf16.msrb.mxu1 %v10510_v53  ;;  %v10655_v53 = vld [vmem:[%s19842_s12 + $0xb0] sm:$0xff] }
0x1632   : > { %v10562_v40 = vpop.permute.xlu1 %10561 }
0x1633   : > { %v10565_v50 = vsel %vm19967_vm14, %v10562_v40, %v14636_v34  ;;  %v10563_v39 = vsel %vm19975_vm3, %v14637_v58, %v10562_v40  ;;  %vm19981_vm14 = vmmov %vm19937_vm1  ;;  %v10653_v34 = vld [vmem:[%s19842_s12 + $0xa0] sm:$0xff] }
0x1634   : > { %12931 = vmatmul.msk.bf16.vlgmr.msrb.gmra.mxu2 %vm19965_vm9, %v19340_v18  ;;  %12932 = vmatmul.msk.bf16.vlgmr.msra.gmra.mxu3 %vm19966_vm11, %v19340_v18  ;;  %v10569_v8 = vpack.c.bf16 %v10565_v50, %v10565_v50  ;;  %v10432_v18 = vld [vmem:[%s19831_s1 + $0x504] sm:$0x1]  ;;  %v10568_v32 = vpack.c.bf16 %v10563_v39, %v10563_v39  ;;  %vm19979_vm9 = vmmov %vm19937_vm1  ;;  %v10667_v39 = vld [vmem:[%s19842_s12 + $0x110] sm:$0xff] }
0x1635   : > { %10388 = vmatpush.bf16.msrb.mxu2 %v10373_v22  ;;  %10401 = vmatpush.bf16.msra.mxu3 %v10376_v20  ;;  %vm19980_vm11 = vmmov %vm19937_vm1  ;;  %v10679_v22 = vld [vmem:[%s19842_s12 + $0x170] sm:$0xff] }
0x1636   : > { %v10580_v25 = vsel %vm475_vm0, %v10569_v8, 0  ;;  %v10577_v46 = vsel %vm475_vm0, %v10568_v32, 0  ;;  %v10677_v8 = vld [vmem:[%s19842_s12 + $0x160] sm:$0xff] }
0x1637   : > { %12933 = vmatmul.msk.bf16.vlgmr.msra.gmra.mxu0 %vm19968_vm5, %v19387_v54  ;;  %vm19982_vm5 = vmmov %vm19937_vm1  ;;  %v10665_v32 = vld [vmem:[%s19842_s12 + $0x100] sm:$0xff] }
0x1638   : > { %10414 = vmatpush.bf16.msra.mxu0 %v10379_v37  ;;  %v10651_v37 = vld [vmem:[%s19842_s12 + $0x90] sm:$0xff] }
0x163d   : > { %12942 = vmatmul.msk.bf16.vlgmr.msra.gmra.mxu1 %vm19969_vm15, %v10432_v18  ;;  %vm19983_vm15 = vmmov %vm19937_vm1 }
0x163e   : > { %10615 = vmatpush.bf16.msra.mxu1 %v10580_v25  ;;  %v10647_v25 = vld [vmem:[%s19842_s12 + $0x70] sm:$0xff] }
0x1644   : > { %12935 = vmatmul.msk.bf16.vlgmr.msra.gmra.mxu2 %vm19970_vm2, %v19387_v54  ;;  %12936 = vmatmul.msk.bf16.vlgmr.msrb.gmra.mxu3 %vm19971_vm10, %v10298_v28  ;;  %v10502_v54 = vpack.c.bf16 %v10498_v26, %v10498_v26  ;;  %vm19984_vm2 = vmmov %vm19937_vm1  ;;  %v10669_v26 = vld [vmem:[%s19842_s12 + $0x120] sm:$0xff] }
0x1645   : > { %10468 = vmatpush.bf16.msra.mxu2 %v10443_v30  ;;  %10481 = vmatpush.bf16.msrb.mxu3 %v10446_v44  ;;  %v10671_v30 = vld [vmem:[%s19842_s12 + $0x130] sm:$0xff] }
0x1646   : > { %v10513_v61 = vsel %vm475_vm0, %v10502_v54, 0  ;;  %v10664_v54 = vld [vmem:[%s19842_s12 + $0xf8] sm:$0xff]  ;;  %vm10852_vm0 = vcmask 1041408  }
0x1647   : > { %12937 = vmatmul.msk.bf16.vlgmr.msrb.gmra.mxu0 %vm19972_vm12, %v10298_v28  ;;  %v10689_v28 = vld [vmem:[%s19842_s12 + $0x1c0] sm:$0xff] }
0x1648   : > { %10522 = vmatpush.bf16.msrb.mxu0 %v10507_v13 }
0x164d   : > { %12946 = vmatmul.msk.bf16.vlgmr.msrb.gmra.mxu1 %vm19973_vm7, %v10499_v12 }
0x164e   : > { %10789 = vmatpush.msrb.mxu1 %v10664_v54  ;;  %v10682_v54 = vld [vmem:[%s19842_s12 + $0x188] sm:$0xff] }
0x1654   : > { %12939 = vmatmul.msk.bf16.vlgmr.msrb.gmra.mxu2 %vm19976_vm13, %v10365_v57  ;;  %12940 = vmatmul.msk.bf16.vlgmr.msra.gmra.mxu3 %vm19977_vm6, %v10365_v57 }
0x1655   : > { %10548 = vmatpush.bf16.msrb.mxu2 %v10513_v61  ;;  %10589 = vmatpush.bf16.msra.mxu3 %v10574_v14  ;;  %v10727_v14 = vld [vmem:[%s19842_s12 + $0x2f0] sm:$0xff] }
0x1657   : > { %12941 = vmatmul.msk.bf16.vlgmr.msra.gmra.mxu0 %vm19978_vm8, %v10365_v57 }
0x1658   : > { %10602 = vmatpush.bf16.msra.mxu0 %v10577_v46  ;;  %v10662_v46 = vld [vmem:[%s19842_s12 + $0xe8] sm:$0xff] }
0x1659   : > { %10790 = vmatpush.msrb.mxu1 %v10662_v46  ;;  %v10680_v46 = vld [vmem:[%s19842_s12 + $0x178] sm:$0xff] }
0x165d   : > { %12950 = vmatmul.msk.bf16.vlgmr.msra.gmra.mxu1 %vm19937_vm1, %v10566_v38 }
0x1664   : > { %12943 = vmatmul.msk.bf16.vlgmr.msra.gmra.mxu2 %vm19979_vm9, %v10432_v18  ;;  %12944 = vmatmul.msk.bf16.vlgmr.msrb.gmra.mxu3 %vm19980_vm11, %v10432_v18  ;;  %v10649_v18 = vld [vmem:[%s19842_s12 + $0x80] sm:$0xff] }
0x1665   : > { %10749 = vmatpush.msrb.mxu3 %v10695_v27  ;;  %10729 = vmatpush.msra.mxu2 %v10663_v11  ;;  %v10724_v27 = vld [vmem:[%s19842_s12 + $0x2d8] sm:$0xff] }
0x1666   : > { %v10696_v11 = vld [vmem:[%s19842_s12 + $0x1f8] sm:$0xff] }
0x1667   : > { %12945 = vmatmul.msk.bf16.vlgmr.msrb.gmra.mxu0 %vm19981_vm14, %v10499_v12  ;;  %10750 = vmatpush.msrb.mxu3 %v10693_v3 }
0x1668   : > { %10730 = vmatpush.msra.mxu2 %v10661_v33  ;;  %10769 = vmatpush.msrb.mxu0 %v10727_v14  ;;  %v10654_v33 = vld [vmem:[%s19842_s12 + $0xa8] sm:$0xff]  ;;  %v10640_v14 = vld [vmem:[%s19842_s12 + $0x38] sm:$0xff] }
0x1669   : > { %10751 = vmatpush.msrb.mxu3 %v10691_v41  ;;  %v10656_v41 = vld [vmem:[%s19842_s12 + $0xb8] sm:$0xff] }
0x166a   : > { %10731 = vmatpush.msra.mxu2 %v10659_v17 }
0x166b   : > { %10752 = vmatpush.msrb.mxu3 %v10689_v28  ;;  %v10722_v28 = vld [vmem:[%s19842_s12 + $0x2c8] sm:$0xff] }
0x166c   : > { %10732 = vmatpush.msra.mxu2 %v10657_v35 }
0x166d   : > { %10753 = vmatpush.msrb.mxu3 %v10687_v15  ;;  %v10694_v15 = vld [vmem:[%s19842_s12 + $0x1e8] sm:$0xff] }
0x166e   : > { %10733 = vmatpush.msra.mxu2 %v10655_v53  ;;  %v10652_v53 = vld [vmem:[%s19842_s12 + $0x98] sm:$0xff] }
0x166f   : > { %10754 = vmatpush.msrb.mxu3 %v10685_v60 }
0x1670   : > { %10734 = vmatpush.msra.mxu2 %v10653_v34  ;;  %v10690_v34 = vld [vmem:[%s19842_s12 + $0x1c8] sm:$0xff] }
0x1671   : > { %10755 = vmatpush.msrb.mxu3 %v10683_v24  ;;  %v10717_v24 = vld [vmem:[%s19842_s12 + $0x2a0] sm:$0xff] }
0x1672   : > { %10735 = vmatpush.msra.mxu2 %v10651_v37  ;;  %v10648_v37 = vld [vmem:[%s19842_s12 + $0x78] sm:$0xff] }
0x1673   : > { %10756 = vmatpush.msrb.mxu3 %v10681_v56  ;;  %v10692_v56 = vld [vmem:[%s19842_s12 + $0x1d8] sm:$0xff] }
0x1674   : > { %12947 = vmatmul.msk.bf16.vlgmr.msrb.gmra.mxu2 %vm19982_vm5, %v10499_v12  ;;  %12948 = vmatmul.msk.bf16.vlgmr.msra.gmra.mxu3 %vm19983_vm15, %v10566_v38  ;;  %v10643_v12 = vld [vmem:[%s19842_s12 + $0x50] sm:$0xff] }
0x1675   : > { %10757 = vmatpush.msrb.mxu3 %v10679_v22  ;;  %10736 = vmatpush.msra.mxu2 %v10649_v18  ;;  %v10716_v22 = vld [vmem:[%s19842_s12 + $0x298] sm:$0xff]  ;;  %v10714_v18 = vld [vmem:[%s19842_s12 + $0x288] sm:$0xff] }
0x1677   : > { %12949 = vmatmul.msk.bf16.vlgmr.msra.gmra.mxu0 %vm19984_vm2, %v10566_v38  ;;  %10758 = vmatpush.msrb.mxu3 %v10677_v8  ;;  %v10728_v38 = vld [vmem:[%s19842_s12 + $0x2f8] sm:$0xff] }
0x1678   : > { %10737 = vmatpush.msra.mxu2 %v10647_v25  ;;  %v10688_v8 = vld [vmem:[%s19842_s12 + $0x1b8] sm:$0xff] }
0x1679   : > { %10759 = vmatpush.msrb.mxu3 %v10675_v47 }
0x167a   : > { %10738 = vmatpush.msra.mxu2 %v10645_v45 }
0x167b   : > { %10760 = vmatpush.msrb.mxu3 %v10673_v9  ;;  %v10711_v9 = vld [vmem:[%s19842_s12 + $0x270] sm:$0xff] }
0x167c   : > { %10739 = vmatpush.msra.mxu2 %v10643_v12  ;;  %v10684_v12 = vld [vmem:[%s19842_s12 + $0x198] sm:$0xff] }
0x167d   : > { %10761 = vmatpush.msrb.mxu3 %v10671_v30  ;;  %v10709_v30 = vld [vmem:[%s19842_s12 + $0x260] sm:$0xff] }
0x167e   : > { %10740 = vmatpush.msra.mxu2 %v10641_v19  ;;  %v10707_v19 = vld [vmem:[%s19842_s12 + $0x250] sm:$0xff] }
0x167f   : > { %10762 = vmatpush.msrb.mxu3 %v10669_v26  ;;  %v10710_v26 = vld [vmem:[%s19842_s12 + $0x268] sm:$0xff] }
0x1680   : > { %10741 = vmatpush.msra.mxu2 %v10639_v10  ;;  %v10708_v10 = vld [vmem:[%s19842_s12 + $0x258] sm:$0xff] }
0x1681   : > { %10763 = vmatpush.msrb.mxu3 %v10667_v39  ;;  %v10642_v39 = vld [vmem:[%s19842_s12 + $0x48] sm:$0xff] }
0x1683   : > { %10764 = vmatpush.msrb.mxu3 %v10665_v32  ;;  %v10705_v32 = vld [vmem:[%s19842_s12 + $0x240] sm:$0xff] }
0x1685   : > { %10829 = vmatpush.msra.mxu3 %v10728_v38  ;;  %v10706_v38 = vld [vmem:[%s19842_s12 + $0x248] sm:$0xff] }
0x168a   : > { %v10189_v4 = vpop.f32.mrf.mxu1 }
0x1692   : > { %v10191_v5 = vpop.f32.mrf.mxu1 }
0x1694   : > { %v10100_v21 = vpop.f32.mrf.mxu0 }
0x1697   : > { %v10074_v48 = vpop.f32.mrf.mxu2  ;;  %v10087_v16 = vpop.f32.mrf.mxu3 }
0x169a   : > { %v19493_v43 = vpop.f32.mrf.mxu1 }
0x169c   : > { %v10102_v0 = vpop.f32.mrf.mxu0 }
0x169d   : > { %v10726_v0 = vld [vmem:[%s19842_s12 + $0x2e8] sm:$0xff] }
0x169e   : > { %10830 = vmatpush.msra.mxu3 %v10726_v0 }
0x169f   : > { %v10076_v52 = vpop.f32.mrf.mxu2  ;;  %v10089_v49 = vpop.f32.mrf.mxu3 }
0x16a0   : > { %v10723_v52 = vld [vmem:[%s19842_s12 + $0x2d0] sm:$0xff]  ;;  %v10658_v49 = vld [vmem:[%s19842_s12 + $0xc8] sm:$0xff]  ;;  %10831 = vmatpush.msra.mxu3 %v10724_v27  ;;  %v10676_v27 = vld [vmem:[%s19842_s12 + $0x158] sm:$0xff] }
0x16a2   : > { %v10271_v63 = vpop.f32.mrf.mxu1  ;;  %10832 = vmatpush.msra.mxu3 %v10722_v28  ;;  %v10697_v28 = vld [vmem:[%s19842_s12 + $0x200] sm:$0xff] }
0x16a3   : > { %v10721_v63 = vld [vmem:[%s19842_s12 + $0x2c0] sm:$0xff] }
0x16a4   : > { %v10151_v51 = vpop.f32.mrf.mxu0 }
0x16a5   : > { %v19498_v36 = vadd.f32 %v10151_v51, %v10100_v21  ;;  %v10633_v51 = vld [vmem:[%s19842_s12] sm:$0xff] }
0x16a7   : > { %v10125_v7 = vpop.f32.mrf.mxu2  ;;  %v10138_v42 = vpop.f32.mrf.mxu3 }
0x16a8   : > { %v10126_v1 = vadd.f32 %v10125_v7, %v10074_v48  ;;  %v10139_v6 = vadd.f32 %v10138_v42, %v10087_v16  ;;  %v10725_v48 = vld [vmem:[%s19842_s12 + $0x2e0] sm:$0xff]  ;;  %v10660_v16 = vld [vmem:[%s19842_s12 + $0xd8] sm:$0xff] }
0x16a9   : > { %10770 = vmatpush.msrb.mxu0 %v10725_v48  ;;  %10791 = vmatpush.msrb.mxu1 %v10660_v16  ;;  %v10638_v48 = vld [vmem:[%s19842_s12 + $0x28] sm:$0xff] }
0x16aa   : > { %v19518_v31 = vadd.f32 %v10189_v4, %v10126_v1  ;;  %v19520_v2 = vpop.f32.mrf.mxu1  ;;  %v10637_v4 = vld [vmem:[%s19842_s12 + $0x20] sm:$0xff]  ;;  %v10719_v1 = vld [vmem:[%s19842_s12 + $0x2b0] sm:$0xff]  ;;  %v10678_v16 = vld [vmem:[%s19842_s12 + $0x168] sm:$0xff] }
0x16ab   : > { %10742 = vmatpush.msra.mxu2 %v10637_v4  ;;  %10771 = vmatpush.msrb.mxu0 %v10723_v52  ;;  %v10701_v52 = vld [vmem:[%s19842_s12 + $0x220] sm:$0xff] }
0x16ac   : > { %v10153_v29 = vpop.f32.mrf.mxu0  ;;  %10792 = vmatpush.msrb.mxu1 %v10658_v49  ;;  %v10636_v49 = vld [vmem:[%s19842_s12 + $0x18] sm:$0xff] }
0x16ad   : > { %10772 = vmatpush.msrb.mxu0 %v10721_v63  ;;  %v10720_v29 = vld [vmem:[%s19842_s12 + $0x2b8] sm:$0xff]  ;;  %v10699_v63 = vld [vmem:[%s19842_s12 + $0x210] sm:$0xff] }
0x16ae   : > { %10793 = vmatpush.msrb.mxu1 %v10656_v41  ;;  %10833 = vmatpush.msra.mxu3 %v10720_v29  ;;  %v10674_v41 = vld [vmem:[%s19842_s12 + $0x148] sm:$0xff] }
0x16af   : > { %v10127_v23 = vpop.f32.mrf.mxu2  ;;  %v10140_v40 = vpop.f32.mrf.mxu3  ;;  %10773 = vmatpush.msrb.mxu0 %v10719_v1  ;;  %v10672_v1 = vld [vmem:[%s19842_s12 + $0x138] sm:$0xff] }
0x16b0   : > { %10794 = vmatpush.msrb.mxu1 %v10654_v33  ;;  %v10715_v23 = vld [vmem:[%s19842_s12 + $0x290] sm:$0xff]  ;;  %v10650_v40 = vld [vmem:[%s19842_s12 + $0x88] sm:$0xff] }
0x16b1   : > { %10774 = vmatpush.msrb.mxu0 %v10717_v24  ;;  %v10698_v33 = vld [vmem:[%s19842_s12 + $0x208] sm:$0xff]  ;;  %v10668_v24 = vld [vmem:[%s19842_s12 + $0x118] sm:$0xff] }
0x16b2   : > { %v10351_v20 = vpop.f32.mrf.mxu1  ;;  %10795 = vmatpush.msrb.mxu1 %v10652_v53  ;;  %v10666_v53 = vld [vmem:[%s19842_s12 + $0x108] sm:$0xff] }
0x16b3   : > { %v10713_v20 = vld [vmem:[%s19842_s12 + $0x280] sm:$0xff]  ;;  %10775 = vmatpush.msrb.mxu0 %v10715_v23 }
0x16b4   : > { %v19546_v50 = vpop.f32.mrf.mxu0  ;;  %10796 = vmatpush.msrb.mxu1 %v10650_v40 }
0x16b5   : > { %10776 = vmatpush.msrb.mxu0 %v10713_v20 }
0x16b6   : > { %10797 = vmatpush.msrb.mxu1 %v10648_v37 }
0x16b7   : > { %v10202_v62 = vpop.f32.mrf.mxu2  ;;  %v10215_v59 = vpop.f32.mrf.mxu3  ;;  %10777 = vmatpush.msrb.mxu0 %v10711_v9 }
0x16b8   : > { %v10220_v55 = vadd.f32 %v10202_v62, %v10139_v6  ;;  %v10221_v3 = vadd.f32 %v10215_v59, %v19498_v36  ;;  %v10646_v6 = vld [vmem:[%s19842_s12 + $0x68] sm:$0xff]  ;;  %v10712_v59 = vld [vmem:[%s19842_s12 + $0x278] sm:$0xff] }
0x16b9   : > { %v10686_v62 = vld [vmem:[%s19842_s12 + $0x1a8] sm:$0xff]  ;;  %10798 = vmatpush.msrb.mxu1 %v10646_v6  ;;  %10778 = vmatpush.msrb.mxu0 %v10709_v30 }
0x16ba   : > { %v19573_v13 = vadd.f32 %v19493_v43, %v10220_v55  ;;  %v19575_v58 = vpop.f32.mrf.mxu1  ;;  %v10635_v43 = vld [vmem:[%s19842_s12 + $0x10] sm:$0xff] }
0x16bb   : > { %10743 = vmatpush.msra.mxu2 %v10635_v43  ;;  %10779 = vmatpush.msrb.mxu0 %v10707_v19  ;;  %v10704_v43 = vld [vmem:[%s19842_s12 + $0x238] sm:$0xff] }
0x16bc   : > { %v10258_v44 = vpop.f32.mrf.mxu0 }
0x16bd   : > { %10744 = vmatpush.msra.mxu2 %v10633_v51  ;;  %v10644_v44 = vld [vmem:[%s19842_s12 + $0x58] sm:$0xff]  ;;  %10780 = vmatpush.msrb.mxu0 %v10705_v32  ;;  %v10702_v51 = vld [vmem:[%s19842_s12 + $0x228] sm:$0xff] }
0x16be   : > { %10799 = vmatpush.msrb.mxu1 %v10644_v44 }
0x16bf   : > { %v10204_v57 = vpop.f32.mrf.mxu2  ;;  %v10217_v61 = vpop.f32.mrf.mxu3  ;;  %10809 = vmatpush.msrb.mxu2 %v10696_v11  ;;  %v10700_v11 = vld [vmem:[%s19842_s12 + $0x218] sm:$0xff] }
0x16c0   : > { %10800 = vmatpush.msrb.mxu1 %v10642_v39 }
0x16c1   : > { %10810 = vmatpush.msrb.mxu2 %v10694_v15  ;;  %v10670_v15 = vld [vmem:[%s19842_s12 + $0x128] sm:$0xff] }
0x16c2   : > { %v10459_v5 = vpop.f32.mrf.mxu1  ;;  %10801 = vmatpush.msrb.mxu1 %v10640_v14 }
0x16c3   : > { %10811 = vmatpush.msrb.mxu2 %v10692_v56  ;;  %v10703_v5 = vld [vmem:[%s19842_s12 + $0x230] sm:$0xff] }
0x16c4   : > { %v19610_v21 = vpop.f32.mrf.mxu0  ;;  %10781 = vmatpush.msrb.mxu0 %v10703_v5  ;;  %10802 = vmatpush.msrb.mxu1 %v10638_v48 }
0x16c5   : > { %10812 = vmatpush.msrb.mxu2 %v10690_v34  ;;  %v10354_v23 = vadd.f32 %v19610_v21, %v19573_v13 }
0x16c6   : > { %10782 = vmatpush.msrb.mxu0 %v10701_v52  ;;  %10803 = vmatpush.msrb.mxu1 %v10636_v49 }
0x16c7   : > { %v10282_v7 = vpop.f32.mrf.mxu2  ;;  %v19649_v42 = vpop.f32.mrf.mxu3  ;;  %10813 = vmatpush.msrb.mxu2 %v10688_v8 }
0x16c8   : > { %v10288_v36 = vadd.f32 %v10282_v7, %v10221_v3  ;;  %v10634_v3 = vld [vmem:[%s19842_s12 + $0x8] sm:$0xff]  ;;  %10783 = vmatpush.msrb.mxu0 %v10699_v63 }
0x16c9   : > { %10814 = vmatpush.msrb.mxu2 %v10686_v62  ;;  %10804 = vmatpush.msrb.mxu1 %v10634_v3  ;;  %v10628_v62 = vpop.permute.xlu2 %10627 }
0x16ca   : > { %v19664_v60 = vadd.f32 %v19520_v2, %v10288_v36  ;;  %v19666_v35 = vpop.f32.mrf.mxu1  ;;  %v10718_v2 = vld [vmem:[%s19842_s12 + $0x2a8] sm:$0xff]  ;;  %10784 = vmatpush.msrb.mxu0 %v10697_v28 }
0x16cb   : > { %10834 = vmatpush.msra.mxu3 %v10718_v2  ;;  %10815 = vmatpush.msrb.mxu2 %v10684_v12 }
0x16cc   : > { %v10338_v17 = vpop.f32.mrf.mxu0 }
0x16cd   : > { %10835 = vmatpush.msra.mxu3 %v10716_v22  ;;  %10816 = vmatpush.msrb.mxu2 %v10682_v54  ;;  %v10286_v22 = vadd.f32 %v19546_v50, %v19518_v31 }
0x16cf   : > { %v10284_v47 = vpop.f32.mrf.mxu2  ;;  %v10325_v25 = vpop.f32.mrf.mxu3  ;;  %10836 = vmatpush.msra.mxu3 %v10714_v18  ;;  %10817 = vmatpush.msrb.mxu2 %v10680_v46  ;;  %v10353_v37 = vadd.f32 %v19649_v42, %v10286_v22 }
0x16d1   : > { %10837 = vmatpush.msra.mxu3 %v10712_v59  ;;  %10818 = vmatpush.msrb.mxu2 %v10678_v16 }
0x16d2   : > { %v10539_v45 = vpop.f32.mrf.mxu1 }
0x16d3   : > { %10838 = vmatpush.msra.mxu3 %v10710_v26  ;;  %10819 = vmatpush.msrb.mxu2 %v10676_v27 }
0x16d4   : > { %v19716_v55 = vpop.f32.mrf.mxu0 }
0x16d5   : > { %10839 = vmatpush.msra.mxu3 %v10708_v10  ;;  %10820 = vmatpush.msrb.mxu2 %v10674_v41  ;;  %v10422_v13 = vadd.f32 %v19716_v55, %v19664_v60 }
0x16d7   : > { %v19745_v57 = vpop.f32.mrf.mxu2  ;;  %v10403_v61 = vpop.f32.mrf.mxu3  ;;  %10840 = vmatpush.msra.mxu3 %v10706_v38  ;;  %10821 = vmatpush.msrb.mxu2 %v10672_v1 }
0x16d8   : > { %v10421_v34 = vadd.f32 %v10403_v61, %v10354_v23  ;;  %v10420_v47 = vadd.f32 %v19745_v57, %v10353_v37 }
0x16d9   : > { %10841 = vmatpush.msra.mxu3 %v10704_v43  ;;  %10822 = vmatpush.msrb.mxu2 %v10670_v15 }
0x16da   : > { %v19765_v0 = vpop.f32.mrf.mxu1  ;;  %v10487_v21 = vadd.f32 %v19575_v58, %v10420_v47 }
0x16db   : > { %10842 = vmatpush.msra.mxu3 %v10702_v51  ;;  %10823 = vmatpush.msrb.mxu2 %v10668_v24 }
0x16dc   : > { %v10418_v4 = vpop.f32.mrf.mxu0 }
0x16dd   : > { %10843 = vmatpush.msra.mxu3 %v10700_v11  ;;  %10824 = vmatpush.msrb.mxu2 %v10666_v53 }
0x16df   : > { %v10392_v7 = vpop.f32.mrf.mxu2  ;;  %v10405_v36 = vpop.f32.mrf.mxu3  ;;  %10844 = vmatpush.msra.mxu3 %v10698_v33 }
0x16e2   : > { %v10619_v17 = vpop.f32.mrf.mxu1 }
0x16e4   : > { %v10524_v29 = vpop.f32.mrf.mxu0 }
0x16e5   : > { %v10554_v45 = vadd.f32 %v10524_v29, %v10487_v21 }
0x16e7   : > { %v10470_v56 = vpop.f32.mrf.mxu2  ;;  %v10483_v2 = vpop.f32.mrf.mxu3 }
0x16e8   : > { %v10488_v20 = vadd.f32 %v10470_v56, %v10421_v34  ;;  %v10489_v31 = vadd.f32 %v10483_v2, %v10422_v13 }
0x16ea   : > { %v10555_v25 = vadd.f32 %v19666_v35, %v10488_v20 }
0x16ec   : > { %v10526_v40 = vpop.f32.mrf.mxu0 }
0x16ef   : > { %v10472_v8 = vpop.f32.mrf.mxu2  ;;  %v10485_v18 = vpop.f32.mrf.mxu3 }
0x16f4   : > { %v10604_v9 = vpop.f32.mrf.mxu0 }
0x16f5   : > { %v10622_v6 = vadd.f32 %v10604_v9, %v10555_v25 }
0x16f7   : > { %v10631_v59 = vadd.f32 %v10628_v62, %v10622_v6  ;;  %v10550_v50 = vpop.f32.mrf.mxu2  ;;  %v10591_v42 = vpop.f32.mrf.mxu3 }
0x16f8   : > { %v10556_v30 = vadd.f32 %v10550_v50, %v10489_v31  ;;  %v10621_v44 = vadd.f32 %v10591_v42, %v10554_v45 }
0x16f9   : > { %10765 = vmatmul.f32.vlgmr.msrb.gmra.mxu3 %v10631_v59 }
0x16fa   : > { %v10630_v12 = vadd.f32 %v10628_v62, %v10621_v44  ;;  %v10623_v26 = vadd.f32 %v19765_v0, %v10556_v30 }
0x16fc   : > { %v10606_v35 = vpop.f32.mrf.mxu0  ;;  %v10632_v19 = vadd.f32 %v10628_v62, %v10623_v26  ;;  %10745 = vmatmul.f32.vlgmr.msra.gmra.mxu2 %v10630_v12  ;;  %10805 = vmatmul.f32.vlgmr.msrb.gmra.mxu1 %v10630_v12 }
0x16fe   : > { %10785 = vmatmul.f32.vlgmr.msrb.gmra.mxu0 %v10632_v19 }
0x16ff   : > { %v10593_v60 = vpop.f32.mrf.mxu3  ;;  %v10552_v58 = vpop.f32.mrf.mxu2 }
0x1701   : > { %10845 = vmatmul.f32.vlgmr.msra.gmra.mxu3 %v10632_v19 }
0x1704   : > { %10825 = vmatmul.f32.vlgmr.msrb.gmra.mxu2 %v10631_v59 }
0x1779   : > { %v10806_v54 = vpop.f32.mrf.mxu1 }
0x177b   : > { %v10786_v46 = vpop.f32.mrf.mxu0 }
0x177c   : > { %v10766_v55 = vpop.f32.mrf.mxu3 }
0x177f   : > { %v10746_v39 = vpop.f32.mrf.mxu2 }
0x1780   : > { %v10767_v32 = vadd.f32 %v10766_v55, %v10746_v39 }
0x1782   : > { %v10787_v38 = vadd.f32 %v10786_v46, %v10767_v32 }
0x1784   : > { %v10846_v61 = vpop.f32.mrf.mxu3 }
0x1787   : > { %v10826_v10 = vpop.f32.mrf.mxu2 }
0x1788   : > { %v10827_v57 = vadd.f32 %v10826_v10, %v10806_v54 }
0x178a   : > { %v10847_v14 = vadd.f32 %v10846_v61, %v10827_v57 }
0x178c   : > { %v10851_v4 = vrot.slane %v10847_v14, 6 }
0x178e   : > { %v10853_v5 = vsel %vm10852_vm0, %v10787_v38, %v10851_v4 }
0x178f   : > { %10855 = vst [vmem:[%s440_s4] sm:$0xf] %v10853_v5 }
0x1790 PF: > { %s23_s25 = sadd.s32 1, %s14647_s25  }
0x1791   : > { %p20_p4 = scmp.ge.s32.totalorder %s23_s25, 4  }
0x1793   :  { %22 = sbr.rel (!%p20_p4) target bundleno = 6 (0x6), region = 102 }

</bundles_post_ra>
